<compile_context>
chip_gen: v5e
topology: v5e:2x2
jax: 0.10.0
libtpu: 0.0.40
codegen_flags: <defaults>
</compile_context>

<pallas_src>
import functools

import numpy as np
import jax
import jax.numpy as jnp
from jax import lax
from jax.experimental import pallas as pl
from jax.experimental.pallas import tpu as pltpu

DIM_OUT = 16
H0 = 50          # input spatial size implied by the pooling chain (ends at 1x1)
WPAD = 64        # per-image column strip width in the batched slab (lane padding)
C1OUT = 8
S1, S2, S3, S4 = 25, 12, 11, 5   # spatial sizes after conv1 / pool1 / conv2 / pool2


def _cnn_kernel(x_ref, w1_ref, c1_ref, b1_ref, rp1_ref, cp1_ref,
                w2_ref, c2_ref, b2_ref, rp2_ref, cp2_ref, out_ref,
                *, bb, dim_out):
    mm = functools.partial(jnp.dot, preferred_element_type=jnp.float32)

    x = x_ref[...]                                        # (50, WPAD*bb)

    # ---- Conv2d(1, 8, k=2, s=2) + bias + ReLU  -> (8*25, 25*bb) ----
    h1 = (mm(w1_ref[0], mm(x, c1_ref[0]))
          + mm(w1_ref[1], mm(x, c1_ref[1]))
          + b1_ref[...])
    h1 = jnp.maximum(h1, 0.0)

    # ---- MaxPool2d(3, 2) -> (8*12, 12*bb) ----
    p1 = mm(mm(rp1_ref[...], h1), cp1_ref[...])           # (3*96, 3*12*bb)
    pr1, pc1 = C1OUT * S2, S2 * bb
    h2 = p1[:pr1, :pc1]
    for di in range(3):
        for dj in range(3):
            if di == 0 and dj == 0:
                continue
            h2 = jnp.maximum(h2, p1[di * pr1:(di + 1) * pr1,
                                    dj * pc1:(dj + 1) * pc1])

    # ---- Conv2d(8, dim_out, k=2, s=1) + bias + ReLU -> (dim_out*11, 11*bb) ----
    h3 = (mm(w2_ref[0], mm(h2, c2_ref[0]))
          + mm(w2_ref[1], mm(h2, c2_ref[1]))
          + b2_ref[...])
    h3 = jnp.maximum(h3, 0.0)

    # ---- MaxPool2d(3, 2) -> (dim_out*5, 5*bb), rows i-major, cols j-major ----
    p2 = mm(mm(rp2_ref[...], h3), cp2_ref[...])           # (3*80, 3*5*bb)
    pr2, pc2 = dim_out * S4, S4 * bb
    h4 = p2[:pr2, :pc2]
    for di in range(3):
        for dj in range(3):
            if di == 0 and dj == 0:
                continue
            h4 = jnp.maximum(h4, p2[di * pr2:(di + 1) * pr2,
                                    dj * pc2:(dj + 1) * pc2])

    # ---- MaxPool2d(5, 5): pure VPU reduction over static slices ----
    cm = h4[:, :bb]                                       # max over j (lane groups)
    for j in range(1, S4):
        cm = jnp.maximum(cm, h4[:, j * bb:(j + 1) * bb])  # (dim_out*5, bb)
    res = cm[:dim_out, :]                                 # max over i (sublane groups)
    for i in range(1, S4):
        res = jnp.maximum(res, cm[i * dim_out:(i + 1) * dim_out, :])  # (dim_out, bb)

    out_ref[0] = res


def _build_constants(w1, b1, w2, b2, dim_out, bb):
    w1 = np.asarray(w1, np.float32); b1 = np.asarray(b1, np.float32)
    w2 = np.asarray(w2, np.float32); b2 = np.asarray(b2, np.float32)

    # conv1: ki-summed weight embedding (row side) + batched column selectors
    Wc1 = np.zeros((2, C1OUT * S1, H0), np.float32)
    for kj in range(2):
        for ki in range(2):
            for oc in range(C1OUT):
                for i in range(S1):
                    Wc1[kj, oc * S1 + i, 2 * i + ki] += w1[oc, 0, ki, kj]
    Cc1 = np.zeros((2, WPAD * bb, S1 * bb), np.float32)
    for kj in range(2):
        for b in range(bb):
            for j in range(S1):
                Cc1[kj, WPAD * b + 2 * j + kj, S1 * b + j] = 1.0
    b1col = np.repeat(b1, S1).reshape(C1OUT * S1, 1).astype(np.float32)

    # maxpool1: fused row / column window selectors (block-diagonal over batch)
    Rp1 = np.zeros((3 * C1OUT * S2, C1OUT * S1), np.float32)
    for di in range(3):
        for c in range(C1OUT):
            for i in range(S2):
                Rp1[di * C1OUT * S2 + c * S2 + i, c * S1 + 2 * i + di] = 1.0
    Cp1 = np.zeros((S1 * bb, 3 * S2 * bb), np.float32)
    for dj in range(3):
        for b in range(bb):
            for j in range(S2):
                Cp1[S1 * b + 2 * j + dj, dj * S2 * bb + S2 * b + j] = 1.0

    # conv2: ki-summed weight embedding (contracts input channels) + col selectors
    Wc2 = np.zeros((2, dim_out * S3, C1OUT * S2), np.float32)
    for kj in range(2):
        for ki in range(2):
            for oc in range(dim_out):
                for ic in range(C1OUT):
                    for i in range(S3):
                        Wc2[kj, oc * S3 + i, ic * S2 + i + ki] += w2[oc, ic, ki, kj]
    Cc2 = np.zeros((2, S2 * bb, S3 * bb), np.float32)
    for kj in range(2):
        for b in range(bb):
            for j in range(S3):
                Cc2[kj, S2 * b + j + kj, S3 * b + j] = 1.0
    b2col = np.repeat(b2, S3).reshape(dim_out * S3, 1).astype(np.float32)

    # maxpool2: fused selectors; output rows i-major (i*dim_out + c) and output
    # columns j-major (j*bb + b) so the final 5x5 pool needs no matmul/transpose.
    Rp2 = np.zeros((3 * dim_out * S4, dim_out * S3), np.float32)
    for di in range(3):
        for i in range(S4):
            for c in range(dim_out):
                Rp2[di * dim_out * S4 + i * dim_out + c, c * S3 + 2 * i + di] = 1.0
    Cp2 = np.zeros((S3 * bb, 3 * S4 * bb), np.float32)
    for dj in range(3):
        for b in range(bb):
            for j in range(S4):
                Cp2[S3 * b + 2 * j + dj, dj * S4 * bb + j * bb + b] = 1.0

    return Wc1, Cc1, b1col, Rp1, Cp1, Wc2, Cc2, b2col, Rp2, Cp2


def cnn_forward(x_nchw, w1, b1, w2, b2, dim_out=DIM_OUT, block_b=8):
    assert x_nchw.shape[1:] == (1, H0, H0), "expects NCHW (N, 1, 50, 50)"
    assert block_b % 2 == 0, "block_b must be even so WPAD*block_b % 128 == 0"
    n = x_nchw.shape[0]
    bb = block_b
    n_pad = ((n + bb - 1) // bb) * bb
    grid_n = n_pad // bb

    consts = _build_constants(w1, b1, w2, b2, dim_out, bb)
    consts = tuple(jnp.asarray(c) for c in consts)

    # (N,1,50,50) -> lane-packed slab (50, WPAD*n_pad); image b occupies columns
    # [WPAD*b, WPAD*b + 50); remaining lanes / padded images are zeros and are
    # never selected by the block-diagonal column selectors.
    x = jnp.asarray(x_nchw, jnp.float32).reshape(n, H0, H0)
    x = jnp.pad(x, ((0, n_pad - n), (0, 0), (0, WPAD - H0)))
    x_slab = jnp.transpose(x, (1, 0, 2)).reshape(H0, n_pad * WPAD)

    # Constant index maps return the same block every step -> fetched once.
    const_specs = [pl.BlockSpec(c.shape, (lambda i, nd=c.ndim: (0,) * nd))
                   for c in consts]

    # Advisory cost estimate: per-step matmul (M, K, N) shapes x number of steps.
    mm_shapes = (
        [(H0, WPAD * bb, S1 * bb)] * 2 + [(C1OUT * S1, H0, S1 * bb)] * 2
        + [(3 * C1OUT * S2, C1OUT * S1, S1 * bb),
           (3 * C1OUT * S2, S1 * bb, 3 * S2 * bb)]
        + [(C1OUT * S2, S2 * bb, S3 * bb)] * 2
        + [(dim_out * S3, C1OUT * S2, S3 * bb)] * 2
        + [(3 * dim_out * S4, dim_out * S3, S3 * bb),
           (3 * dim_out * S4, S3 * bb, 3 * S4 * bb)])
    flops = grid_n * sum(2 * m * k * nn for m, k, nn in mm_shapes)
    bytes_accessed = int(x_slab.size * 4 + n_pad * dim_out * 4
                         + sum(int(c.size) * 4 for c in consts))

    # NOTE: constants scale ~quadratically with block_b; bb<=16 stays well under
    # the default scoped VMEM on all generations (incl. v7x's 64 MiB). For larger
    # bb, raise vmem_limit_bytes in CompilerParams.
    kernel = functools.partial(_cnn_kernel, bb=bb, dim_out=dim_out)
    out = pl.pallas_call(
        kernel,
        out_shape=jax.ShapeDtypeStruct((grid_n, dim_out, bb), jnp.float32),
        grid_spec=pltpu.PrefetchScalarGridSpec(
            num_scalar_prefetch=0,
            grid=(grid_n,),
            in_specs=[pl.BlockSpec((H0, WPAD * bb), lambda i: (0, i))] + const_specs,
            out_specs=pl.BlockSpec((1, dim_out, bb), lambda i: (i, 0, 0)),
        ),
        compiler_params=pltpu.CompilerParams(
            dimension_semantics=("parallel",)),
        cost_estimate=pl.CostEstimate(flops=flops, transcendentals=0,
                                      bytes_accessed=bytes_accessed),
    )(x_slab, *consts)

    # (grid_n, dim_out, bb) -> (n, dim_out), matching torch .view(-1, dim_out)
    out = jnp.transpose(out, (0, 2, 1)).reshape(n_pad, dim_out)[:n]
    return out


def cnn_reference(x_nchw, w1, b1, w2, b2, dim_out=DIM_OUT):
    def conv(x, w, stride):
        dn = lax.conv_dimension_numbers(x.shape, w.shape, ('NCHW', 'OIHW', 'NCHW'))
        return lax.conv_general_dilated(x, w, (stride, stride), 'VALID',
                                        dimension_numbers=dn)

    def maxpool(x, k, s):
        return lax.reduce_window(x, -jnp.inf, lax.max,
                                 (1, 1, k, k), (1, 1, s, s), 'VALID')

    y = jnp.maximum(conv(x_nchw, w1, 2) + b1[None, :, None, None], 0.0)
    y = maxpool(y, 3, 2)
    y = jnp.maximum(conv(y, w2, 1) + b2[None, :, None, None], 0.0)
    y = maxpool(y, 3, 2)
    y = maxpool(y, 5, 5)
    return y.reshape(-1, dim_out)


if __name__ == "__main__":
    key = jax.random.PRNGKey(0)
    kx, k1, k2, k3, k4 = jax.random.split(key, 5)
    n = 12
    x = jax.random.normal(kx, (n, 1, H0, H0), jnp.float32)              # NCHW
    w1 = jax.random.normal(k1, (8, 1, 2, 2), jnp.float32) * 0.3         # Conv2d(1, 8, 2, 2)
    b1 = jax.random.normal(k2, (8,), jnp.float32) * 0.1
    w2 = jax.random.normal(k3, (DIM_OUT, 8, 2, 2), jnp.float32) * 0.2   # Conv2d(8, dim_out, 2, 1)
    b2 = jax.random.normal(k4, (DIM_OUT,), jnp.float32) * 0.1

    out = cnn_forward(x, w1, b1, w2, b2, dim_out=DIM_OUT, block_b=8)
    out = jax.block_until_ready(out)

    ref = cnn_reference(x, w1, b1, w2, b2, dim_out=DIM_OUT)
    np.testing.assert_allclose(np.asarray(out), np.asarray(ref),
                               rtol=2e-2, atol=2e-2)
    print("KERNEL_OK")
</pallas_src>

<mosaic_0001>
module attributes {stable_mosaic.version = 11 : i64} {
  func.func @_cnn_kernel(%arg0: i32, %arg1: memref<50x512xf32, #tpu.memory_space<vmem>>, %arg2: memref<2x200x50xf32, #tpu.memory_space<vmem>>, %arg3: memref<2x512x200xf32, #tpu.memory_space<vmem>>, %arg4: memref<200x1xf32, #tpu.memory_space<vmem>>, %arg5: memref<288x200xf32, #tpu.memory_space<vmem>>, %arg6: memref<200x288xf32, #tpu.memory_space<vmem>>, %arg7: memref<2x176x96xf32, #tpu.memory_space<vmem>>, %arg8: memref<2x96x88xf32, #tpu.memory_space<vmem>>, %arg9: memref<176x1xf32, #tpu.memory_space<vmem>>, %arg10: memref<240x176xf32, #tpu.memory_space<vmem>>, %arg11: memref<88x120xf32, #tpu.memory_space<vmem>>, %arg12: memref<1x16x8xf32, #tpu.memory_space<vmem>>) attributes {dimension_semantics = [#tpu.dimension_semantics<parallel>], iteration_bounds = array<i64: 2>, scalar_prefetch = 0 : i64, scratch_operands = 0 : i64, tpu.core_type = #tpu.core_type<tc>, window_params = [{transform_indices = @transform_0, window_bounds = array<i64: 50, 512>}, {pipeline_mode = #tpu.pipeline_mode<synchronous>, transform_indices = @transform_1, window_bounds = array<i64: 2, 200, 50>}, {pipeline_mode = #tpu.pipeline_mode<synchronous>, transform_indices = @transform_2, window_bounds = array<i64: 2, 512, 200>}, {pipeline_mode = #tpu.pipeline_mode<synchronous>, transform_indices = @transform_3, window_bounds = array<i64: 200, 1>}, {pipeline_mode = #tpu.pipeline_mode<synchronous>, transform_indices = @transform_4, window_bounds = array<i64: 288, 200>}, {pipeline_mode = #tpu.pipeline_mode<synchronous>, transform_indices = @transform_5, window_bounds = array<i64: 200, 288>}, {pipeline_mode = #tpu.pipeline_mode<synchronous>, transform_indices = @transform_6, window_bounds = array<i64: 2, 176, 96>}, {pipeline_mode = #tpu.pipeline_mode<synchronous>, transform_indices = @transform_7, window_bounds = array<i64: 2, 96, 88>}, {pipeline_mode = #tpu.pipeline_mode<synchronous>, transform_indices = @transform_8, window_bounds = array<i64: 176, 1>}, {pipeline_mode = #tpu.pipeline_mode<synchronous>, transform_indices = @transform_9, window_bounds = array<i64: 240, 176>}, {pipeline_mode = #tpu.pipeline_mode<synchronous>, transform_indices = @transform_10, window_bounds = array<i64: 88, 120>}, {transform_indices = @transform_11, window_bounds = array<i64: 1, 16, 8>}]} {
    %c0 = arith.constant 0 : index
    %c0_0 = arith.constant 0 : index
    %0 = vector.load %arg1[%c0, %c0_0] : memref<50x512xf32, #tpu.memory_space<vmem>>, vector<50x512xf32>
    %c0_1 = arith.constant 0 : index
    %c0_2 = arith.constant 0 : index
    %c0_3 = arith.constant 0 : index
    %1 = vector.load %arg2[%c0_1, %c0_2, %c0_3] : memref<2x200x50xf32, #tpu.memory_space<vmem>>, vector<1x200x50xf32>
    %2 = vector.shape_cast %1 : vector<1x200x50xf32> to vector<200x50xf32>
    %c0_4 = arith.constant 0 : index
    %c0_5 = arith.constant 0 : index
    %c0_6 = arith.constant 0 : index
    %3 = vector.load %arg3[%c0_4, %c0_5, %c0_6] : memref<2x512x200xf32, #tpu.memory_space<vmem>>, vector<1x512x200xf32>
    %4 = vector.shape_cast %3 : vector<1x512x200xf32> to vector<512x200xf32>
    %cst = arith.constant dense<0.000000e+00> : vector<50x200xf32>
    %5 = tpu.matmul %0, %4, %cst {dimension_numbers = #tpu.dot_dimension_numbers<[1], [0], [0], [1], [0, 0, 1, 1], [], []>} : vector<50x512xf32>, vector<512x200xf32>, vector<50x200xf32> -> vector<50x200xf32>
    %cst_7 = arith.constant dense<0.000000e+00> : vector<200x200xf32>
    %6 = tpu.matmul %2, %5, %cst_7 {dimension_numbers = #tpu.dot_dimension_numbers<[1], [0], [0], [1], [0, 0, 1, 1], [], []>} : vector<200x50xf32>, vector<50x200xf32>, vector<200x200xf32> -> vector<200x200xf32>
    %c1 = arith.constant 1 : index
    %c0_8 = arith.constant 0 : index
    %c0_9 = arith.constant 0 : index
    %7 = vector.load %arg2[%c1, %c0_8, %c0_9] : memref<2x200x50xf32, #tpu.memory_space<vmem>>, vector<1x200x50xf32>
    %8 = vector.shape_cast %7 : vector<1x200x50xf32> to vector<200x50xf32>
    %c1_10 = arith.constant 1 : index
    %c0_11 = arith.constant 0 : index
    %c0_12 = arith.constant 0 : index
    %9 = vector.load %arg3[%c1_10, %c0_11, %c0_12] : memref<2x512x200xf32, #tpu.memory_space<vmem>>, vector<1x512x200xf32>
    %10 = vector.shape_cast %9 : vector<1x512x200xf32> to vector<512x200xf32>
    %cst_13 = arith.constant dense<0.000000e+00> : vector<50x200xf32>
    %11 = tpu.matmul %0, %10, %cst_13 {dimension_numbers = #tpu.dot_dimension_numbers<[1], [0], [0], [1], [0, 0, 1, 1], [], []>} : vector<50x512xf32>, vector<512x200xf32>, vector<50x200xf32> -> vector<50x200xf32>
    %cst_14 = arith.constant dense<0.000000e+00> : vector<200x200xf32>
    %12 = tpu.matmul %8, %11, %cst_14 {dimension_numbers = #tpu.dot_dimension_numbers<[1], [0], [0], [1], [0, 0, 1, 1], [], []>} : vector<200x50xf32>, vector<50x200xf32>, vector<200x200xf32> -> vector<200x200xf32>
    %13 = arith.addf %6, %12 : vector<200x200xf32>
    %c0_15 = arith.constant 0 : index
    %c0_16 = arith.constant 0 : index
    %14 = vector.load %arg4[%c0_15, %c0_16] : memref<200x1xf32, #tpu.memory_space<vmem>>, vector<200x1xf32>
    %15 = vector.broadcast %14 : vector<200x1xf32> to vector<200x200xf32>
    %16 = arith.addf %13, %15 : vector<200x200xf32>
    %cst_17 = arith.constant 0.000000e+00 : f32
    %17 = vector.broadcast %cst_17 : f32 to vector<200x200xf32>
    %18 = arith.maximumf %16, %17 : vector<200x200xf32>
    %c0_18 = arith.constant 0 : index
    %c0_19 = arith.constant 0 : index
    %19 = vector.load %arg5[%c0_18, %c0_19] : memref<288x200xf32, #tpu.memory_space<vmem>>, vector<288x200xf32>
    %cst_20 = arith.constant dense<0.000000e+00> : vector<288x200xf32>
    %20 = tpu.matmul %19, %18, %cst_20 {dimension_numbers = #tpu.dot_dimension_numbers<[1], [0], [0], [1], [0, 0, 1, 1], [], []>} : vector<288x200xf32>, vector<200x200xf32>, vector<288x200xf32> -> vector<288x200xf32>
    %c0_21 = arith.constant 0 : index
    %c0_22 = arith.constant 0 : index
    %21 = vector.load %arg6[%c0_21, %c0_22] : memref<200x288xf32, #tpu.memory_space<vmem>>, vector<200x288xf32>
    %cst_23 = arith.constant dense<0.000000e+00> : vector<288x288xf32>
    %22 = tpu.matmul %20, %21, %cst_23 {dimension_numbers = #tpu.dot_dimension_numbers<[1], [0], [0], [1], [0, 0, 1, 1], [], []>} : vector<288x200xf32>, vector<200x288xf32>, vector<288x288xf32> -> vector<288x288xf32>
    %23 = vector.extract_strided_slice %22 {offsets = [0, 0], sizes = [96, 96], strides = [1, 1]} : vector<288x288xf32> to vector<96x96xf32>
    %24 = vector.extract_strided_slice %22 {offsets = [0, 96], sizes = [96, 96], strides = [1, 1]} : vector<288x288xf32> to vector<96x96xf32>
    %25 = arith.maximumf %23, %24 : vector<96x96xf32>
    %26 = vector.extract_strided_slice %22 {offsets = [0, 192], sizes = [96, 96], strides = [1, 1]} : vector<288x288xf32> to vector<96x96xf32>
    %27 = arith.maximumf %25, %26 : vector<96x96xf32>
    %28 = vector.extract_strided_slice %22 {offsets = [96, 0], sizes = [96, 96], strides = [1, 1]} : vector<288x288xf32> to vector<96x96xf32>
    %29 = arith.maximumf %27, %28 : vector<96x96xf32>
    %30 = vector.extract_strided_slice %22 {offsets = [96, 96], sizes = [96, 96], strides = [1, 1]} : vector<288x288xf32> to vector<96x96xf32>
    %31 = arith.maximumf %29, %30 : vector<96x96xf32>
    %32 = vector.extract_strided_slice %22 {offsets = [96, 192], sizes = [96, 96], strides = [1, 1]} : vector<288x288xf32> to vector<96x96xf32>
    %33 = arith.maximumf %31, %32 : vector<96x96xf32>
    %34 = vector.extract_strided_slice %22 {offsets = [192, 0], sizes = [96, 96], strides = [1, 1]} : vector<288x288xf32> to vector<96x96xf32>
    %35 = arith.maximumf %33, %34 : vector<96x96xf32>
    %36 = vector.extract_strided_slice %22 {offsets = [192, 96], sizes = [96, 96], strides = [1, 1]} : vector<288x288xf32> to vector<96x96xf32>
    %37 = arith.maximumf %35, %36 : vector<96x96xf32>
    %38 = vector.extract_strided_slice %22 {offsets = [192, 192], sizes = [96, 96], strides = [1, 1]} : vector<288x288xf32> to vector<96x96xf32>
    %39 = arith.maximumf %37, %38 : vector<96x96xf32>
    %c0_24 = arith.constant 0 : index
    %c0_25 = arith.constant 0 : index
    %c0_26 = arith.constant 0 : index
    %40 = vector.load %arg7[%c0_24, %c0_25, %c0_26] : memref<2x176x96xf32, #tpu.memory_space<vmem>>, vector<1x176x96xf32>
    %41 = vector.shape_cast %40 : vector<1x176x96xf32> to vector<176x96xf32>
    %c0_27 = arith.constant 0 : index
    %c0_28 = arith.constant 0 : index
    %c0_29 = arith.constant 0 : index
    %42 = vector.load %arg8[%c0_27, %c0_28, %c0_29] : memref<2x96x88xf32, #tpu.memory_space<vmem>>, vector<1x96x88xf32>
    %43 = vector.shape_cast %42 : vector<1x96x88xf32> to vector<96x88xf32>
    %cst_30 = arith.constant dense<0.000000e+00> : vector<96x88xf32>
    %44 = tpu.matmul %39, %43, %cst_30 {dimension_numbers = #tpu.dot_dimension_numbers<[1], [0], [0], [1], [0, 0, 1, 1], [], []>} : vector<96x96xf32>, vector<96x88xf32>, vector<96x88xf32> -> vector<96x88xf32>
    %cst_31 = arith.constant dense<0.000000e+00> : vector<176x88xf32>
    %45 = tpu.matmul %41, %44, %cst_31 {dimension_numbers = #tpu.dot_dimension_numbers<[1], [0], [0], [1], [0, 0, 1, 1], [], []>} : vector<176x96xf32>, vector<96x88xf32>, vector<176x88xf32> -> vector<176x88xf32>
    %c1_32 = arith.constant 1 : index
    %c0_33 = arith.constant 0 : index
    %c0_34 = arith.constant 0 : index
    %46 = vector.load %arg7[%c1_32, %c0_33, %c0_34] : memref<2x176x96xf32, #tpu.memory_space<vmem>>, vector<1x176x96xf32>
    %47 = vector.shape_cast %46 : vector<1x176x96xf32> to vector<176x96xf32>
    %c1_35 = arith.constant 1 : index
    %c0_36 = arith.constant 0 : index
    %c0_37 = arith.constant 0 : index
    %48 = vector.load %arg8[%c1_35, %c0_36, %c0_37] : memref<2x96x88xf32, #tpu.memory_space<vmem>>, vector<1x96x88xf32>
    %49 = vector.shape_cast %48 : vector<1x96x88xf32> to vector<96x88xf32>
    %cst_38 = arith.constant dense<0.000000e+00> : vector<96x88xf32>
    %50 = tpu.matmul %39, %49, %cst_38 {dimension_numbers = #tpu.dot_dimension_numbers<[1], [0], [0], [1], [0, 0, 1, 1], [], []>} : vector<96x96xf32>, vector<96x88xf32>, vector<96x88xf32> -> vector<96x88xf32>
    %cst_39 = arith.constant dense<0.000000e+00> : vector<176x88xf32>
    %51 = tpu.matmul %47, %50, %cst_39 {dimension_numbers = #tpu.dot_dimension_numbers<[1], [0], [0], [1], [0, 0, 1, 1], [], []>} : vector<176x96xf32>, vector<96x88xf32>, vector<176x88xf32> -> vector<176x88xf32>
    %52 = arith.addf %45, %51 : vector<176x88xf32>
    %c0_40 = arith.constant 0 : index
    %c0_41 = arith.constant 0 : index
    %53 = vector.load %arg9[%c0_40, %c0_41] : memref<176x1xf32, #tpu.memory_space<vmem>>, vector<176x1xf32>
    %54 = vector.broadcast %53 : vector<176x1xf32> to vector<176x88xf32>
    %55 = arith.addf %52, %54 : vector<176x88xf32>
    %cst_42 = arith.constant 0.000000e+00 : f32
    %56 = vector.broadcast %cst_42 : f32 to vector<176x88xf32>
    %57 = arith.maximumf %55, %56 : vector<176x88xf32>
    %c0_43 = arith.constant 0 : index
    %c0_44 = arith.constant 0 : index
    %58 = vector.load %arg10[%c0_43, %c0_44] : memref<240x176xf32, #tpu.memory_space<vmem>>, vector<240x176xf32>
    %cst_45 = arith.constant dense<0.000000e+00> : vector<240x88xf32>
    %59 = tpu.matmul %58, %57, %cst_45 {dimension_numbers = #tpu.dot_dimension_numbers<[1], [0], [0], [1], [0, 0, 1, 1], [], []>} : vector<240x176xf32>, vector<176x88xf32>, vector<240x88xf32> -> vector<240x88xf32>
    %c0_46 = arith.constant 0 : index
    %c0_47 = arith.constant 0 : index
    %60 = vector.load %arg11[%c0_46, %c0_47] : memref<88x120xf32, #tpu.memory_space<vmem>>, vector<88x120xf32>
    %cst_48 = arith.constant dense<0.000000e+00> : vector<240x120xf32>
    %61 = tpu.matmul %59, %60, %cst_48 {dimension_numbers = #tpu.dot_dimension_numbers<[1], [0], [0], [1], [0, 0, 1, 1], [], []>} : vector<240x88xf32>, vector<88x120xf32>, vector<240x120xf32> -> vector<240x120xf32>
    %62 = vector.extract_strided_slice %61 {offsets = [0, 0], sizes = [80, 40], strides = [1, 1]} : vector<240x120xf32> to vector<80x40xf32>
    %63 = vector.extract_strided_slice %61 {offsets = [0, 40], sizes = [80, 40], strides = [1, 1]} : vector<240x120xf32> to vector<80x40xf32>
    %64 = arith.maximumf %62, %63 : vector<80x40xf32>
    %65 = vector.extract_strided_slice %61 {offsets = [0, 80], sizes = [80, 40], strides = [1, 1]} : vector<240x120xf32> to vector<80x40xf32>
    %66 = arith.maximumf %64, %65 : vector<80x40xf32>
    %67 = vector.extract_strided_slice %61 {offsets = [80, 0], sizes = [80, 40], strides = [1, 1]} : vector<240x120xf32> to vector<80x40xf32>
    %68 = arith.maximumf %66, %67 : vector<80x40xf32>
    %69 = vector.extract_strided_slice %61 {offsets = [80, 40], sizes = [80, 40], strides = [1, 1]} : vector<240x120xf32> to vector<80x40xf32>
    %70 = arith.maximumf %68, %69 : vector<80x40xf32>
    %71 = vector.extract_strided_slice %61 {offsets = [80, 80], sizes = [80, 40], strides = [1, 1]} : vector<240x120xf32> to vector<80x40xf32>
    %72 = arith.maximumf %70, %71 : vector<80x40xf32>
    %73 = vector.extract_strided_slice %61 {offsets = [160, 0], sizes = [80, 40], strides = [1, 1]} : vector<240x120xf32> to vector<80x40xf32>
    %74 = arith.maximumf %72, %73 : vector<80x40xf32>
    %75 = vector.extract_strided_slice %61 {offsets = [160, 40], sizes = [80, 40], strides = [1, 1]} : vector<240x120xf32> to vector<80x40xf32>
    %76 = arith.maximumf %74, %75 : vector<80x40xf32>
    %77 = vector.extract_strided_slice %61 {offsets = [160, 80], sizes = [80, 40], strides = [1, 1]} : vector<240x120xf32> to vector<80x40xf32>
    %78 = arith.maximumf %76, %77 : vector<80x40xf32>
    %79 = vector.extract_strided_slice %78 {offsets = [0, 0], sizes = [80, 8], strides = [1, 1]} : vector<80x40xf32> to vector<80x8xf32>
    %80 = vector.extract_strided_slice %78 {offsets = [0, 8], sizes = [80, 8], strides = [1, 1]} : vector<80x40xf32> to vector<80x8xf32>
    %81 = arith.maximumf %79, %80 : vector<80x8xf32>
    %82 = vector.extract_strided_slice %78 {offsets = [0, 16], sizes = [80, 8], strides = [1, 1]} : vector<80x40xf32> to vector<80x8xf32>
    %83 = arith.maximumf %81, %82 : vector<80x8xf32>
    %84 = vector.extract_strided_slice %78 {offsets = [0, 24], sizes = [80, 8], strides = [1, 1]} : vector<80x40xf32> to vector<80x8xf32>
    %85 = arith.maximumf %83, %84 : vector<80x8xf32>
    %86 = vector.extract_strided_slice %78 {offsets = [0, 32], sizes = [80, 8], strides = [1, 1]} : vector<80x40xf32> to vector<80x8xf32>
    %87 = arith.maximumf %85, %86 : vector<80x8xf32>
    %88 = vector.extract_strided_slice %87 {offsets = [0, 0], sizes = [16, 8], strides = [1, 1]} : vector<80x8xf32> to vector<16x8xf32>
    %89 = vector.extract_strided_slice %87 {offsets = [16, 0], sizes = [16, 8], strides = [1, 1]} : vector<80x8xf32> to vector<16x8xf32>
    %90 = arith.maximumf %88, %89 : vector<16x8xf32>
    %91 = vector.extract_strided_slice %87 {offsets = [32, 0], sizes = [16, 8], strides = [1, 1]} : vector<80x8xf32> to vector<16x8xf32>
    %92 = arith.maximumf %90, %91 : vector<16x8xf32>
    %93 = vector.extract_strided_slice %87 {offsets = [48, 0], sizes = [16, 8], strides = [1, 1]} : vector<80x8xf32> to vector<16x8xf32>
    %94 = arith.maximumf %92, %93 : vector<16x8xf32>
    %95 = vector.extract_strided_slice %87 {offsets = [64, 0], sizes = [16, 8], strides = [1, 1]} : vector<80x8xf32> to vector<16x8xf32>
    %96 = arith.maximumf %94, %95 : vector<16x8xf32>
    %c0_49 = arith.constant 0 : index
    %c0_50 = arith.constant 0 : index
    %c0_51 = arith.constant 0 : index
    %97 = vector.load %arg12[%c0_49, %c0_50, %c0_51] : memref<1x16x8xf32, #tpu.memory_space<vmem>>, vector<1x16x8xf32>
    %98 = vector.shape_cast %97 : vector<1x16x8xf32> to vector<16x8xf32>
    %99 = vector.shape_cast %96 : vector<16x8xf32> to vector<1x16x8xf32>
    tpu.vector_store %arg12[%c0_49, %c0_50, %c0_51], %99 {strides = array<i32>} : memref<1x16x8xf32, #tpu.memory_space<vmem>>, vector<1x16x8xf32>,
    return
  }
  func.func @transform_0(%arg0: i32) -> (i32, i32) {
    %c0_i32 = arith.constant 0 : i32
    %c0_i32_0 = arith.constant 0 : i32
    return %c0_i32, %arg0 : i32, i32
  }
  func.func @transform_1(%arg0: i32) -> (i32, i32, i32) {
    %c0_i32 = arith.constant 0 : i32
    %c0_i32_0 = arith.constant 0 : i32
    %c0_i32_1 = arith.constant 0 : i32
    %c0_i32_2 = arith.constant 0 : i32
    return %c0_i32, %c0_i32_0, %c0_i32_1 : i32, i32, i32
  }
  func.func @transform_2(%arg0: i32) -> (i32, i32, i32) {
    %c0_i32 = arith.constant 0 : i32
    %c0_i32_0 = arith.constant 0 : i32
    %c0_i32_1 = arith.constant 0 : i32
    %c0_i32_2 = arith.constant 0 : i32
    return %c0_i32, %c0_i32_0, %c0_i32_1 : i32, i32, i32
  }
  func.func @transform_3(%arg0: i32) -> (i32, i32) {
    %c0_i32 = arith.constant 0 : i32
    %c0_i32_0 = arith.constant 0 : i32
    %c0_i32_1 = arith.constant 0 : i32
    return %c0_i32, %c0_i32_0 : i32, i32
  }
  func.func @transform_4(%arg0: i32) -> (i32, i32) {
    %c0_i32 = arith.constant 0 : i32
    %c0_i32_0 = arith.constant 0 : i32
    %c0_i32_1 = arith.constant 0 : i32
    return %c0_i32, %c0_i32_0 : i32, i32
  }
  func.func @transform_5(%arg0: i32) -> (i32, i32) {
    %c0_i32 = arith.constant 0 : i32
    %c0_i32_0 = arith.constant 0 : i32
    %c0_i32_1 = arith.constant 0 : i32
    return %c0_i32, %c0_i32_0 : i32, i32
  }
  func.func @transform_6(%arg0: i32) -> (i32, i32, i32) {
    %c0_i32 = arith.constant 0 : i32
    %c0_i32_0 = arith.constant 0 : i32
    %c0_i32_1 = arith.constant 0 : i32
    %c0_i32_2 = arith.constant 0 : i32
    return %c0_i32, %c0_i32_0, %c0_i32_1 : i32, i32, i32
  }
  func.func @transform_7(%arg0: i32) -> (i32, i32, i32) {
    %c0_i32 = arith.constant 0 : i32
    %c0_i32_0 = arith.constant 0 : i32
    %c0_i32_1 = arith.constant 0 : i32
    %c0_i32_2 = arith.constant 0 : i32
    return %c0_i32, %c0_i32_0, %c0_i32_1 : i32, i32, i32
  }
  func.func @transform_8(%arg0: i32) -> (i32, i32) {
    %c0_i32 = arith.constant 0 : i32
    %c0_i32_0 = arith.constant 0 : i32
    %c0_i32_1 = arith.constant 0 : i32
    return %c0_i32, %c0_i32_0 : i32, i32
  }
  func.func @transform_9(%arg0: i32) -> (i32, i32) {
    %c0_i32 = arith.constant 0 : i32
    %c0_i32_0 = arith.constant 0 : i32
    %c0_i32_1 = arith.constant 0 : i32
    return %c0_i32, %c0_i32_0 : i32, i32
  }
  func.func @transform_10(%arg0: i32) -> (i32, i32) {
    %c0_i32 = arith.constant 0 : i32
    %c0_i32_0 = arith.constant 0 : i32
    %c0_i32_1 = arith.constant 0 : i32
    return %c0_i32, %c0_i32_0 : i32, i32
  }
  func.func @transform_11(%arg0: i32) -> (i32, i32, i32) {
    %c0_i32 = arith.constant 0 : i32
    %c0_i32_0 = arith.constant 0 : i32
    %c0_i32_1 = arith.constant 0 : i32
    return %arg0, %c0_i32, %c0_i32_0 : i32, i32, i32
  }
}

</mosaic_0001>

<bundles_post_ra>
// kernel: tpu_custom_call.1
= control target key start
LH: loop header
LB: loop body
LE: loop exit
PB: predicated region body
PF: predicated region fallthrough
CT: control target
= control target key end

     0   :  { %s7021_s17 = smov 0   ;;  %s7023_s18 = smov 0   ;;  %s12480_s0 = inlined_call_operand.vmem [shape: f32[50,1024], index: 0, kind: input, shape index: {}]   ;;  %s12481_s1 = inlined_call_operand.vmem [shape: f32[2,200,50], index: 1, kind: input, shape index: {}]   ;;  %s12482_s2 = inlined_call_operand.vmem [shape: f32[2,512,200], index: 2, kind: input, shape index: {}]   ;;  %s12483_s3 = inlined_call_operand.vmem [shape: f32[200,1], index: 3, kind: input, shape index: {}]   ;;  %s12484_s4 = inlined_call_operand.vmem [shape: f32[288,200], index: 4, kind: input, shape index: {}]   ;;  %s12485_s5 = inlined_call_operand.vmem [shape: f32[200,288], index: 5, kind: input, shape index: {}]   ;;  %s12486_s6 = inlined_call_operand.vmem [shape: f32[2,176,96], index: 6, kind: input, shape index: {}]   ;;  %s12487_s7 = inlined_call_operand.vmem [shape: f32[2,96,88], index: 7, kind: input, shape index: {}]   ;;  %s12488_s8 = inlined_call_operand.vmem [shape: f32[176,1], index: 8, kind: input, shape index: {}]   ;;  %s12489_s9 = inlined_call_operand.vmem [shape: f32[240,176], index: 9, kind: input, shape index: {}]   ;;  %s12490_s10 = inlined_call_operand.vmem [shape: f32[88,120], index: 10, kind: input, shape index: {}]   ;;  %s12491_s11 = inlined_call_operand.vmem [shape: f32[2,16,8], index: 11, kind: output, shape index: {}]  }
   0x1   :  { %s7025_s19 = smov 0  }
   0x2 LB: > { %s6233_s20 = sadd.s32 4294967295, %s6950_s19   ;;  %s7038_s21 = sadd.s32 1, %s6950_s19   ;;  %s6950_s19 = sphi %s7025_s19, %s13029_s19   ;;  %s6946_s18 = sphi %s7023_s18, %s13028_s18   ;;  %s6942_s17 = sphi %s7021_s17, %s13027_s17  }
   0x3   : > { %s25_s22 = ssub.s32 %s6950_s19, %s7038_s21  ;;  %s28_s23 = sadd.s32 1, %s6946_s18 }
   0x4   : > { %p26_p0 = scmp.eq.s32.totalorder %s25_s22, 0  ;;  %p35_p1 = scmp.ne.s32.totalorder %s6946_s18, %s6942_s17 }
   0x5   : > { %p36_p2 = scmp.eq.s32.totalorder %s6950_s19, 0  ;;  %p6236_p4 = scmp.ge.s32.totalorder %s6950_s19, 2 }
   0x6   : > { %s7047_s24 = scalar_select %p26_p0, %s6946_s18, %s28_s23  }
   0x7   : > { %p37_p3 = por %p36_p2, %p35_p1  ;;  %327 = sbr.rel (%p6236_p4) target bundleno = 44 (0x2c), region = 56 }
   0xc   : > { %330 = sbr.rel (!%p37_p3) target bundleno = 44 (0x2c), region = 60  ;;  %s332_s25 = sand.u32 (%p37_p3), 1, %s6946_s18  }
   0xd   : > { %s6843_s26 = sshll.u32 (%p37_p3), %s6950_s19, 5  ;;  %s6880_s27 = smul.u32 (%p37_p3), 224, %s332_s25 }
   0xe   : > { %s7055_s30 = scalar_lea.vmem (%p37_p3), %s12480_s0, %s6843_s26 }
   0xf   : > { %v350_v0 = vld [vmem:[%s7055_s30] sm:$0xff] (%p37_p3)  ;;  %v352_v1 = vld [vmem:[%s7055_s30 + $0x8] sm:$0xff] (%p37_p3)  ;;  %v354_v2 = vld [vmem:[%s7055_s30 + $0x10] sm:$0xff] (%p37_p3)  ;;  %s7060_s12 = scalar_lea.vmem (%p37_p3), [#allocation2], %s6880_s27 }
  0x10   : > { %351 = vst [vmem:[%s7060_s12] sm:$0xff] (%p37_p3), %v350_v0  ;;  %v356_v3 = vld [vmem:[%s7055_s30 + $0x18] sm:$0xff] (%p37_p3)  ;;  %v358_v4 = vld [vmem:[%s7055_s30 + $0x40] sm:$0xff] (%p37_p3)  ;;  %v360_v5 = vld [vmem:[%s7055_s30 + $0x48] sm:$0xff] (%p37_p3) }
  0x11   : > { %353 = vst [vmem:[%s7060_s12 + $0x8] sm:$0xff] %v352_v1  ;;  %v362_v6 = vld [vmem:[%s7055_s30 + $0x50] sm:$0xff]  ;;  %v364_v7 = vld [vmem:[%s7055_s30 + $0x58] sm:$0xff]  ;;  %v366_v8 = vld [vmem:[%s7055_s30 + $0x80] sm:$0xff] }
  0x12   : > { %355 = vst [vmem:[%s7060_s12 + $0x10] sm:$0xff] %v354_v2  ;;  %v368_v9 = vld [vmem:[%s7055_s30 + $0x88] sm:$0xff]  ;;  %v370_v10 = vld [vmem:[%s7055_s30 + $0x90] sm:$0xff]  ;;  %v372_v11 = vld [vmem:[%s7055_s30 + $0x98] sm:$0xff] }
  0x13   : > { %357 = vst [vmem:[%s7060_s12 + $0x18] sm:$0xff] %v356_v3  ;;  %v374_v12 = vld [vmem:[%s7055_s30 + $0xc0] sm:$0xff]  ;;  %v376_v13 = vld [vmem:[%s7055_s30 + $0xc8] sm:$0xff]  ;;  %v378_v14 = vld [vmem:[%s7055_s30 + $0xd0] sm:$0xff] }
  0x14   : > { %359 = vst [vmem:[%s7060_s12 + $0x20] sm:$0xff] %v358_v4  ;;  %v380_v15 = vld [vmem:[%s7055_s30 + $0xd8] sm:$0xff]  ;;  %v382_v16 = vld [vmem:[%s7055_s30 + $0x100] sm:$0xff]  ;;  %v384_v17 = vld [vmem:[%s7055_s30 + $0x108] sm:$0xff] }
  0x15   : > { %361 = vst [vmem:[%s7060_s12 + $0x28] sm:$0xff] %v360_v5  ;;  %v386_v18 = vld [vmem:[%s7055_s30 + $0x110] sm:$0xff]  ;;  %v388_v19 = vld [vmem:[%s7055_s30 + $0x118] sm:$0xff]  ;;  %v390_v20 = vld [vmem:[%s7055_s30 + $0x140] sm:$0xff] }
  0x16   : > { %363 = vst [vmem:[%s7060_s12 + $0x30] sm:$0xff] %v362_v6  ;;  %v392_v21 = vld [vmem:[%s7055_s30 + $0x148] sm:$0xff]  ;;  %v394_v22 = vld [vmem:[%s7055_s30 + $0x150] sm:$0xff]  ;;  %v396_v23 = vld [vmem:[%s7055_s30 + $0x158] sm:$0xff] }
  0x17   : > { %365 = vst [vmem:[%s7060_s12 + $0x38] sm:$0xff] %v364_v7  ;;  %v398_v24 = vld [vmem:[%s7055_s30 + $0x180] sm:$0xff]  ;;  %v400_v25 = vld [vmem:[%s7055_s30 + $0x188] sm:$0xff]  ;;  %v402_v26 = vld [vmem:[%s7055_s30 + $0x190] sm:$0xff] }
  0x18   : > { %367 = vst [vmem:[%s7060_s12 + $0x40] sm:$0xff] %v366_v8  ;;  %v404_v27 = vld [vmem:[%s7055_s30 + $0x198] sm:$0xff] }
  0x19   : > { %369 = vst [vmem:[%s7060_s12 + $0x48] sm:$0xff] %v368_v9 }
  0x1a   : > { %371 = vst [vmem:[%s7060_s12 + $0x50] sm:$0xff] %v370_v10 }
  0x1b   : > { %373 = vst [vmem:[%s7060_s12 + $0x58] sm:$0xff] %v372_v11 }
  0x1c   : > { %375 = vst [vmem:[%s7060_s12 + $0x60] sm:$0xff] %v374_v12 }
  0x1d   : > { %377 = vst [vmem:[%s7060_s12 + $0x68] sm:$0xff] %v376_v13 }
  0x1e   : > { %379 = vst [vmem:[%s7060_s12 + $0x70] sm:$0xff] %v378_v14 }
  0x1f   : > { %381 = vst [vmem:[%s7060_s12 + $0x78] sm:$0xff] %v380_v15 }
  0x20   : > { %383 = vst [vmem:[%s7060_s12 + $0x80] sm:$0xff] %v382_v16 }
  0x21   : > { %385 = vst [vmem:[%s7060_s12 + $0x88] sm:$0xff] %v384_v17 }
  0x22   : > { %387 = vst [vmem:[%s7060_s12 + $0x90] sm:$0xff] %v386_v18 }
  0x23   : > { %389 = vst [vmem:[%s7060_s12 + $0x98] sm:$0xff] %v388_v19 }
  0x24   : > { %391 = vst [vmem:[%s7060_s12 + $0xa0] sm:$0xff] %v390_v20 }
  0x25   : > { %393 = vst [vmem:[%s7060_s12 + $0xa8] sm:$0xff] %v392_v21 }
  0x26   : > { %395 = vst [vmem:[%s7060_s12 + $0xb0] sm:$0xff] %v394_v22 }
  0x27   : > { %397 = vst [vmem:[%s7060_s12 + $0xb8] sm:$0xff] %v396_v23 }
  0x28   : > { %399 = vst [vmem:[%s7060_s12 + $0xc0] sm:$0xff] %v398_v24 }
  0x29   : > { %401 = vst [vmem:[%s7060_s12 + $0xc8] sm:$0xff] %v400_v25 }
  0x2a   : > { %403 = vst [vmem:[%s7060_s12 + $0xd0] sm:$0xff] %v402_v26 }
  0x2b   : > { %405 = vst [vmem:[%s7060_s12 + $0xd8] sm:$0xff] %v404_v27 }
  0x2c PF: > { %p6239_p5 = scmp.ge.s32.totalorder %s6950_s19, 1  ;;  %p410_p6 = scmp.lt.s32.totalorder %s6950_s19, 3 }
  0x2e   : > { %p411_p7 = pnand %p6239_p5, %p410_p6 }
  0x30   : > { %414 = sbr.rel (%p411_p7) target bundleno = 3095 (0xc17), region = 83 }
  0x35   : > { %v609_v28 = vld [vmem:[%s12482_s2 + $0x2f0] sm:$0xff]  ;;  %v607_v29 = vld [vmem:[%s12482_s2 + $0x2e0] sm:$0xff]  ;;  %s417_s29 = sand.u32 1, %s6942_s17   ;;  %vm1482_vm0 = vcmask 1041408   ;;  %vm1406_vm1 = vcmask 408576   ;;  %vm2260_vm2 = vcmask 588800  }
  0x36   : > { %v641_v30 = vld [vmem:[%s12482_s2 + $0x3f0] sm:$0xff]  ;;  %719 = vmatpush.msra.mxu2 %v609_v28  ;;  %v639_v34 = vld [vmem:[%s12482_s2 + $0x3e0] sm:$0xff]  ;;  %s6881_s28 = smul.u32 224, %s417_s29  ;;  %s6953_s14 = smov 32   ;;  %vm3874_vm3 = vcmask 261120   ;;  %vm3971_vm4 = vcmask 523264  }
  0x37   : > { %757 = vmatpush.msra.mxu3 %v641_v30  ;;  %v545_v31 = vld [vmem:[%s12482_s2 + $0xf0] sm:$0xff]  ;;  %v543_v35 = vld [vmem:[%s12482_s2 + $0xe0] sm:$0xff]  ;;  %s6954_s29 = smov 64   ;;  %vm4474_vm5 = vcmask 785408   ;;  %vm5187_vm6 = vcmask 392192   ;;  %vm5503_vm7 = vcmask 719872  }
  0x38   : > { %v577_v32 = vld [vmem:[%s12482_s2 + $0x1f0] sm:$0xff]  ;;  %643 = vmatpush.msra.mxu0 %v545_v31  ;;  %v575_v36 = vld [vmem:[%s12482_s2 + $0x1e0] sm:$0xff]  ;;  %720 = vmatpush.msra.mxu2 %v607_v29  ;;  %s7304_s26 = scalar_lea.vmem [#allocation2], %s6881_s28  ;;  %s6955_s13 = smov 88   ;;  %vm6169_vm8 = vcmask 64512  }
  0x39   : > { %v605_v33 = vld [vmem:[%s12482_s2 + $0x2d0] sm:$0xff]  ;;  %681 = vmatpush.msra.mxu1 %v577_v32  ;;  %758 = vmatpush.msra.mxu3 %v639_v34  ;;  %v603_v39 = vld [vmem:[%s12482_s2 + $0x2c0] sm:$0xff]  ;;  %v7310_v27 = vld [vmem:[%s7304_s26 + $0x18] sm:$0xff]  ;;  %s6956_s28 = smov 48   ;;  %s6958_s15 = smov 104  }
  0x3a   : > { %v637_v37 = vld [vmem:[%s12482_s2 + $0x3d0] sm:$0xff]  ;;  %644 = vmatpush.msra.mxu0 %v543_v35  ;;  %v635_v41 = vld [vmem:[%s12482_s2 + $0x3c0] sm:$0xff]  ;;  %721 = vmatpush.msra.mxu2 %v605_v33  ;;  %v7322_v31 = vld [vmem:[%s7304_s26 + $0x8] sm:$0xff]  ;;  %s6959_s16 = smov 112   ;;  %s6960_s22 = smov 96  }
  0x3b   : > { %v541_v38 = vld [vmem:[%s12482_s2 + $0xd0] sm:$0xff]  ;;  %682 = vmatpush.msra.mxu1 %v575_v36  ;;  %759 = vmatpush.msra.mxu3 %v637_v37  ;;  %v539_v42 = vld [vmem:[%s12482_s2 + $0xc0] sm:$0xff]  ;;  %v610_v32 = vld [vmem:[%s12482_s2 + $0x2f8] sm:$0xff]  ;;  %p457_p8 = scmp.lt.s32.totalorder %s6233_s20, 1 }
  0x3c   : > { %v573_v40 = vld [vmem:[%s12482_s2 + $0x1d0] sm:$0xff]  ;;  %v571_v43 = vld [vmem:[%s12482_s2 + $0x1c0] sm:$0xff]  ;;  %645 = vmatpush.msra.mxu0 %v541_v38  ;;  %722 = vmatpush.msra.mxu2 %v603_v39  ;;  %v642_v33 = vld [vmem:[%s12482_s2 + $0x3f8] sm:$0xff] }
  0x3d   : > { %683 = vmatpush.msra.mxu1 %v573_v40  ;;  %v601_v44 = vld [vmem:[%s12482_s2 + $0x2b0] sm:$0xff]  ;;  %760 = vmatpush.msra.mxu3 %v635_v41  ;;  %v599_v48 = vld [vmem:[%s12482_s2 + $0x2a0] sm:$0xff]  ;;  %v546_v34 = vld [vmem:[%s12482_s2 + $0xf8] sm:$0xff]  ;;  %s13031_s20 = smov (!%p457_p8, %s6233_s20), 1 }
  0x3e   : > { %v633_v45 = vld [vmem:[%s12482_s2 + $0x3b0] sm:$0xff]  ;;  %646 = vmatpush.msra.mxu0 %v539_v42  ;;  %v631_v49 = vld [vmem:[%s12482_s2 + $0x3a0] sm:$0xff]  ;;  %723 = vmatpush.msra.mxu2 %v601_v44  ;;  %v578_v35 = vld [vmem:[%s12482_s2 + $0x1f8] sm:$0xff]  ;;  %s6844_s23 = sshll.u32 %s13031_s20, 4 }
  0x3f   : > { %v537_v46 = vld [vmem:[%s12482_s2 + $0xb0] sm:$0xff]  ;;  %684 = vmatpush.msra.mxu1 %v571_v43  ;;  %761 = vmatpush.msra.mxu3 %v633_v45  ;;  %v535_v50 = vld [vmem:[%s12482_s2 + $0xa0] sm:$0xff]  ;;  %v608_v36 = vld [vmem:[%s12482_s2 + $0x2e8] sm:$0xff]  ;;  %s461_s19 = scalar_lea.vmem %s12491_s11, %s6844_s23 }
  0x40   : > { %v569_v47 = vld [vmem:[%s12482_s2 + $0x1b0] sm:$0xff]  ;;  %v567_v51 = vld [vmem:[%s12482_s2 + $0x1a0] sm:$0xff]  ;;  %647 = vmatpush.msra.mxu0 %v537_v46  ;;  %724 = vmatpush.msra.mxu2 %v599_v48  ;;  %v640_v37 = vld [vmem:[%s12482_s2 + $0x3e8] sm:$0xff] }
  0x41   : > { %685 = vmatpush.msra.mxu1 %v569_v47  ;;  %v597_v52 = vld [vmem:[%s12482_s2 + $0x290] sm:$0xff]  ;;  %762 = vmatpush.msra.mxu3 %v631_v49  ;;  %v595_v56 = vld [vmem:[%s12482_s2 + $0x280] sm:$0xff]  ;;  %v544_v38 = vld [vmem:[%s12482_s2 + $0xe8] sm:$0xff] }
  0x42   : > { %v629_v53 = vld [vmem:[%s12482_s2 + $0x390] sm:$0xff]  ;;  %648 = vmatpush.msra.mxu0 %v535_v50  ;;  %v627_v57 = vld [vmem:[%s12482_s2 + $0x380] sm:$0xff]  ;;  %725 = vmatpush.msra.mxu2 %v597_v52  ;;  %v576_v39 = vld [vmem:[%s12482_s2 + $0x1e8] sm:$0xff] }
  0x43   : > { %v533_v54 = vld [vmem:[%s12482_s2 + $0x90] sm:$0xff]  ;;  %686 = vmatpush.msra.mxu1 %v567_v51  ;;  %763 = vmatpush.msra.mxu3 %v629_v53  ;;  %v531_v58 = vld [vmem:[%s12482_s2 + $0x80] sm:$0xff]  ;;  %v606_v40 = vld [vmem:[%s12482_s2 + $0x2d8] sm:$0xff] }
  0x44   : > { %v565_v55 = vld [vmem:[%s12482_s2 + $0x190] sm:$0xff]  ;;  %v563_v59 = vld [vmem:[%s12482_s2 + $0x180] sm:$0xff]  ;;  %649 = vmatpush.msra.mxu0 %v533_v54  ;;  %726 = vmatpush.msra.mxu2 %v595_v56  ;;  %v638_v41 = vld [vmem:[%s12482_s2 + $0x3d8] sm:$0xff] }
  0x45   : > { %687 = vmatpush.msra.mxu1 %v565_v55  ;;  %v593_v60 = vld [vmem:[%s12482_s2 + $0x270] sm:$0xff]  ;;  %764 = vmatpush.msra.mxu3 %v627_v57  ;;  %v591_v0 = vld [vmem:[%s12482_s2 + $0x260] sm:$0xff]  ;;  %v7362_v43 = vld [vmem:[%s7304_s26 + $0x38] sm:$0xff] }
  0x46   : > { %v625_v61 = vld [vmem:[%s12482_s2 + $0x370] sm:$0xff]  ;;  %650 = vmatpush.msra.mxu0 %v531_v58  ;;  %v623_v1 = vld [vmem:[%s12482_s2 + $0x360] sm:$0xff]  ;;  %727 = vmatpush.msra.mxu2 %v593_v60  ;;  %v604_v44 = vld [vmem:[%s12482_s2 + $0x2c8] sm:$0xff] }
  0x47   : > { %v529_v62 = vld [vmem:[%s12482_s2 + $0x70] sm:$0xff]  ;;  %688 = vmatpush.msra.mxu1 %v563_v59  ;;  %765 = vmatpush.msra.mxu3 %v625_v61  ;;  %v527_v2 = vld [vmem:[%s12482_s2 + $0x60] sm:$0xff]  ;;  %v542_v45 = vld [vmem:[%s12482_s2 + $0xd8] sm:$0xff] }
  0x48   : > { %v561_v63 = vld [vmem:[%s12482_s2 + $0x170] sm:$0xff]  ;;  %v559_v3 = vld [vmem:[%s12482_s2 + $0x160] sm:$0xff]  ;;  %651 = vmatpush.msra.mxu0 %v529_v62  ;;  %728 = vmatpush.msra.mxu2 %v591_v0  ;;  %v7374_v47 = vld [vmem:[%s7304_s26 + $0x28] sm:$0xff] }
  0x49   : > { %689 = vmatpush.msra.mxu1 %v561_v63  ;;  %v589_v4 = vld [vmem:[%s12482_s2 + $0x250] sm:$0xff]  ;;  %766 = vmatpush.msra.mxu3 %v623_v1  ;;  %v587_v8 = vld [vmem:[%s12482_s2 + $0x240] sm:$0xff]  ;;  %v574_v48 = vld [vmem:[%s12482_s2 + $0x1d8] sm:$0xff] }
  0x4a   : > { %v621_v5 = vld [vmem:[%s12482_s2 + $0x350] sm:$0xff]  ;;  %652 = vmatpush.msra.mxu0 %v527_v2  ;;  %v619_v9 = vld [vmem:[%s12482_s2 + $0x340] sm:$0xff]  ;;  %729 = vmatpush.msra.mxu2 %v589_v4  ;;  %v602_v49 = vld [vmem:[%s12482_s2 + $0x2b8] sm:$0xff] }
  0x4b   : > { %v525_v6 = vld [vmem:[%s12482_s2 + $0x50] sm:$0xff]  ;;  %690 = vmatpush.msra.mxu1 %v559_v3  ;;  %767 = vmatpush.msra.mxu3 %v621_v5  ;;  %v523_v10 = vld [vmem:[%s12482_s2 + $0x40] sm:$0xff]  ;;  %v636_v50 = vld [vmem:[%s12482_s2 + $0x3c8] sm:$0xff] }
  0x4c   : > { %v557_v7 = vld [vmem:[%s12482_s2 + $0x150] sm:$0xff]  ;;  %v555_v11 = vld [vmem:[%s12482_s2 + $0x140] sm:$0xff]  ;;  %653 = vmatpush.msra.mxu0 %v525_v6  ;;  %730 = vmatpush.msra.mxu2 %v587_v8  ;;  %v540_v51 = vld [vmem:[%s12482_s2 + $0xc8] sm:$0xff] }
  0x4d   : > { %691 = vmatpush.msra.mxu1 %v557_v7  ;;  %v585_v12 = vld [vmem:[%s12482_s2 + $0x230] sm:$0xff]  ;;  %768 = vmatpush.msra.mxu3 %v619_v9  ;;  %v583_v16 = vld [vmem:[%s12482_s2 + $0x220] sm:$0xff]  ;;  %v572_v52 = vld [vmem:[%s12482_s2 + $0x1c8] sm:$0xff] }
  0x4e   : > { %v617_v13 = vld [vmem:[%s12482_s2 + $0x330] sm:$0xff]  ;;  %654 = vmatpush.msra.mxu0 %v523_v10  ;;  %v615_v17 = vld [vmem:[%s12482_s2 + $0x320] sm:$0xff]  ;;  %731 = vmatpush.msra.mxu2 %v585_v12  ;;  %v600_v53 = vld [vmem:[%s12482_s2 + $0x2a8] sm:$0xff] }
  0x4f   : > { %v521_v14 = vld [vmem:[%s12482_s2 + $0x30] sm:$0xff]  ;;  %692 = vmatpush.msra.mxu1 %v555_v11  ;;  %769 = vmatpush.msra.mxu3 %v617_v13  ;;  %v519_v18 = vld [vmem:[%s12482_s2 + $0x20] sm:$0xff]  ;;  %v634_v54 = vld [vmem:[%s12482_s2 + $0x3b8] sm:$0xff] }
  0x50   : > { %v553_v15 = vld [vmem:[%s12482_s2 + $0x130] sm:$0xff]  ;;  %v551_v19 = vld [vmem:[%s12482_s2 + $0x120] sm:$0xff]  ;;  %655 = vmatpush.msra.mxu0 %v521_v14  ;;  %732 = vmatpush.msra.mxu2 %v583_v16  ;;  %v538_v55 = vld [vmem:[%s12482_s2 + $0xb8] sm:$0xff] }
  0x51   : > { %693 = vmatpush.msra.mxu1 %v553_v15  ;;  %v581_v20 = vld [vmem:[%s12482_s2 + $0x210] sm:$0xff]  ;;  %770 = vmatpush.msra.mxu3 %v615_v17  ;;  %v579_v24 = vld [vmem:[%s12482_s2 + $0x200] sm:$0xff]  ;;  %v570_v56 = vld [vmem:[%s12482_s2 + $0x1b8] sm:$0xff] }
  0x52   : > { %v613_v21 = vld [vmem:[%s12482_s2 + $0x310] sm:$0xff]  ;;  %656 = vmatpush.msra.mxu0 %v519_v18  ;;  %v611_v25 = vld [vmem:[%s12482_s2 + $0x300] sm:$0xff]  ;;  %733 = vmatpush.msra.mxu2 %v581_v20  ;;  %v598_v57 = vld [vmem:[%s12482_s2 + $0x298] sm:$0xff] }
  0x53   : > { %v517_v22 = vld [vmem:[%s12482_s2 + $0x10] sm:$0xff]  ;;  %694 = vmatpush.msra.mxu1 %v551_v19  ;;  %771 = vmatpush.msra.mxu3 %v613_v21  ;;  %v515_v28 = vld [vmem:[%s12482_s2] sm:$0xff]  ;;  %v7414_v59 = vld [vmem:[%s7304_s26 + $0x58] sm:$0xff] }
  0x54   : > { %v549_v23 = vld [vmem:[%s12482_s2 + $0x110] sm:$0xff]  ;;  %657 = vmatpush.msra.mxu0 %v517_v22  ;;  %v547_v29 = vld [vmem:[%s12482_s2 + $0x100] sm:$0xff]  ;;  %734 = vmatpush.msra.mxu2 %v579_v24  ;;  %v632_v60 = vld [vmem:[%s12482_s2 + $0x3a8] sm:$0xff] }
  0x55   : > { %v7307_v26 = vld [vmem:[%s7304_s26 + $0x10] sm:$0xff]  ;;  %695 = vmatpush.msra.mxu1 %v549_v23  ;;  %772 = vmatpush.msra.mxu3 %v611_v25  ;;  %v7319_v30 = vld [vmem:[%s7304_s26] sm:$0xff]  ;;  %v536_v61 = vld [vmem:[%s12482_s2 + $0xa8] sm:$0xff] }
  0x56   : > { %735 = vmatmul.f32.vlgmr.msra.gmra.mxu2 %v7307_v26  ;;  %773 = vmatmul.f32.vlgmr.msra.gmra.mxu3 %v7310_v27  ;;  %v7359_v42 = vld [vmem:[%s7304_s26 + $0x30] sm:$0xff]  ;;  %v7371_v46 = vld [vmem:[%s7304_s26 + $0x20] sm:$0xff]  ;;  %v7426_v63 = vld [vmem:[%s7304_s26 + $0x48] sm:$0xff] }
  0x57   : > { %658 = vmatpush.msra.mxu0 %v515_v28  ;;  %696 = vmatpush.msra.mxu1 %v547_v29  ;;  %v7411_v58 = vld [vmem:[%s7304_s26 + $0x50] sm:$0xff]  ;;  %v7423_v62 = vld [vmem:[%s7304_s26 + $0x40] sm:$0xff]  ;;  %v568_v0 = vld [vmem:[%s12482_s2 + $0x1a8] sm:$0xff] }
  0x58   : > { %659 = vmatmul.f32.vlgmr.msra.gmra.mxu0 %v7319_v30  ;;  %697 = vmatmul.f32.vlgmr.msra.gmra.mxu1 %v7322_v31  ;;  %v596_v1 = vld [vmem:[%s12482_s2 + $0x288] sm:$0xff]  ;;  %v630_v2 = vld [vmem:[%s12482_s2 + $0x398] sm:$0xff]  ;;  %v7463_v10 = vld [vmem:[%s7304_s26 + $0x70] sm:$0xff] }
  0x59   : > { %871 = vmatpush.msrb.mxu2 %v610_v32  ;;  %909 = vmatpush.msrb.mxu3 %v642_v33  ;;  %v534_v3 = vld [vmem:[%s12482_s2 + $0x98] sm:$0xff]  ;;  %v628_v6 = vld [vmem:[%s12482_s2 + $0x388] sm:$0xff]  ;;  %v7475_v14 = vld [vmem:[%s7304_s26 + $0x60] sm:$0xff] }
  0x5a   : > { %795 = vmatpush.msrb.mxu0 %v546_v34  ;;  %833 = vmatpush.msrb.mxu1 %v578_v35  ;;  %v566_v4 = vld [vmem:[%s12482_s2 + $0x198] sm:$0xff]  ;;  %v532_v7 = vld [vmem:[%s12482_s2 + $0x88] sm:$0xff]  ;;  %v7515_v28 = vld [vmem:[%s7304_s26 + $0x90] sm:$0xff] }
  0x5b   : > { %872 = vmatpush.msrb.mxu2 %v608_v36  ;;  %910 = vmatpush.msrb.mxu3 %v640_v37  ;;  %v594_v5 = vld [vmem:[%s12482_s2 + $0x278] sm:$0xff]  ;;  %v564_v8 = vld [vmem:[%s12482_s2 + $0x188] sm:$0xff]  ;;  %v7527_v34 = vld [vmem:[%s7304_s26 + $0x80] sm:$0xff] }
  0x5c   : > { %796 = vmatpush.msrb.mxu0 %v544_v38  ;;  %834 = vmatpush.msrb.mxu1 %v576_v39  ;;  %v592_v9 = vld [vmem:[%s12482_s2 + $0x268] sm:$0xff]  ;;  %v7466_v11 = vld [vmem:[%s7304_s26 + $0x78] sm:$0xff] }
  0x5d   : > { %873 = vmatpush.msrb.mxu2 %v606_v40  ;;  %911 = vmatpush.msrb.mxu3 %v638_v41  ;;  %v626_v12 = vld [vmem:[%s12482_s2 + $0x378] sm:$0xff]  ;;  %v7478_v15 = vld [vmem:[%s7304_s26 + $0x68] sm:$0xff] }
  0x5e   : > { %738 = vmatmul.f32.gmra.mxu2 %v7359_v42  ;;  %776 = vmatmul.f32.gmra.mxu3 %v7362_v43  ;;  %v530_v13 = vld [vmem:[%s12482_s2 + $0x78] sm:$0xff]  ;;  %v624_v18 = vld [vmem:[%s12482_s2 + $0x368] sm:$0xff] }
  0x5f   : > { %874 = vmatpush.msrb.mxu2 %v604_v44  ;;  %797 = vmatpush.msrb.mxu0 %v542_v45  ;;  %v562_v16 = vld [vmem:[%s12482_s2 + $0x178] sm:$0xff]  ;;  %v528_v19 = vld [vmem:[%s12482_s2 + $0x68] sm:$0xff] }
  0x60   : > { %662 = vmatmul.f32.gmra.mxu0 %v7371_v46  ;;  %700 = vmatmul.f32.gmra.mxu1 %v7374_v47  ;;  %v590_v17 = vld [vmem:[%s12482_s2 + $0x258] sm:$0xff]  ;;  %v560_v20 = vld [vmem:[%s12482_s2 + $0x168] sm:$0xff] }
  0x61   : > { %835 = vmatpush.msrb.mxu1 %v574_v48  ;;  %875 = vmatpush.msrb.mxu2 %v602_v49  ;;  %v588_v21 = vld [vmem:[%s12482_s2 + $0x248] sm:$0xff]  ;;  %v622_v22 = vld [vmem:[%s12482_s2 + $0x358] sm:$0xff] }
  0x62   : > { %912 = vmatpush.msrb.mxu3 %v636_v50  ;;  %798 = vmatpush.msrb.mxu0 %v540_v51  ;;  %v526_v23 = vld [vmem:[%s12482_s2 + $0x58] sm:$0xff]  ;;  %v620_v32 = vld [vmem:[%s12482_s2 + $0x348] sm:$0xff]  ;;  %v7567_v50 = vld [vmem:[%s7304_s26 + $0xb0] sm:$0xff] }
  0x63   : > { %836 = vmatpush.msrb.mxu1 %v572_v52  ;;  %876 = vmatpush.msrb.mxu2 %v600_v53  ;;  %v558_v24 = vld [vmem:[%s12482_s2 + $0x158] sm:$0xff]  ;;  %v524_v33 = vld [vmem:[%s12482_s2 + $0x48] sm:$0xff] }
  0x64   : > { %913 = vmatpush.msrb.mxu3 %v634_v54  ;;  %799 = vmatpush.msrb.mxu0 %v538_v55  ;;  %v586_v25 = vld [vmem:[%s12482_s2 + $0x238] sm:$0xff]  ;;  %v7530_v35 = vld [vmem:[%s7304_s26 + $0x88] sm:$0xff]  ;;  %v7579_v54 = vld [vmem:[%s7304_s26 + $0xa0] sm:$0xff] }
  0x65   : > { %837 = vmatpush.msrb.mxu1 %v570_v56  ;;  %877 = vmatpush.msrb.mxu2 %v598_v57  ;;  %v7518_v29 = vld [vmem:[%s7304_s26 + $0x98] sm:$0xff]  ;;  %v556_v36 = vld [vmem:[%s12482_s2 + $0x148] sm:$0xff] }
  0x66   : > { %741 = vmatmul.f32.gmra.mxu2 %v7411_v58  ;;  %779 = vmatmul.f32.gmra.mxu3 %v7414_v59  ;;  %v584_v37 = vld [vmem:[%s12482_s2 + $0x228] sm:$0xff]  ;;  %v618_v38 = vld [vmem:[%s12482_s2 + $0x338] sm:$0xff] }
  0x67   : > { %914 = vmatpush.msrb.mxu3 %v632_v60  ;;  %800 = vmatpush.msrb.mxu0 %v536_v61  ;;  %v522_v39 = vld [vmem:[%s12482_s2 + $0x38] sm:$0xff]  ;;  %v616_v44 = vld [vmem:[%s12482_s2 + $0x328] sm:$0xff] }
  0x68   : > { %665 = vmatmul.f32.gmra.mxu0 %v7423_v62  ;;  %703 = vmatmul.f32.gmra.mxu1 %v7426_v63  ;;  %v554_v40 = vld [vmem:[%s12482_s2 + $0x138] sm:$0xff]  ;;  %v520_v45 = vld [vmem:[%s12482_s2 + $0x28] sm:$0xff] }
  0x69   : > { %838 = vmatpush.msrb.mxu1 %v568_v0  ;;  %878 = vmatpush.msrb.mxu2 %v596_v1  ;;  %v582_v41 = vld [vmem:[%s12482_s2 + $0x218] sm:$0xff]  ;;  %v552_v48 = vld [vmem:[%s12482_s2 + $0x128] sm:$0xff]  ;;  %v7601_v0 = vld [vmem:[%s7304_s26 + $0xd0] sm:$0x3] }
  0x6a   : > { %915 = vmatpush.msrb.mxu3 %v630_v2  ;;  %801 = vmatpush.msrb.mxu0 %v534_v3  ;;  %v580_v49 = vld [vmem:[%s12482_s2 + $0x208] sm:$0xff]  ;;  %v7570_v51 = vld [vmem:[%s7304_s26 + $0xb8] sm:$0xff]  ;;  %v7607_v2 = vld [vmem:[%s7304_s26 + $0xc0] sm:$0x3] }
  0x6b   : > { %839 = vmatpush.msrb.mxu1 %v566_v4  ;;  %879 = vmatpush.msrb.mxu2 %v594_v5  ;;  %v614_v52 = vld [vmem:[%s12482_s2 + $0x318] sm:$0xff]  ;;  %v7582_v55 = vld [vmem:[%s7304_s26 + $0xa8] sm:$0xff]  ;;  %v6361_v4 = vld [vmem:[%s12482_s2 + $0x6f0] sm:$0xff] }
  0x6c   : > { %916 = vmatpush.msrb.mxu3 %v628_v6  ;;  %802 = vmatpush.msrb.mxu0 %v532_v7  ;;  %v518_v53 = vld [vmem:[%s12482_s2 + $0x18] sm:$0xff]  ;;  %v612_v57 = vld [vmem:[%s12482_s2 + $0x308] sm:$0xff]  ;;  %v6359_v5 = vld [vmem:[%s12482_s2 + $0x6e0] sm:$0xff] }
  0x6d   : > { %840 = vmatpush.msrb.mxu1 %v564_v8  ;;  %880 = vmatpush.msrb.mxu2 %v592_v9  ;;  %v550_v56 = vld [vmem:[%s12482_s2 + $0x118] sm:$0xff]  ;;  %v516_v60 = vld [vmem:[%s12482_s2 + $0x8] sm:$0xff]  ;;  %v6393_v6 = vld [vmem:[%s12482_s2 + $0x7f0] sm:$0xff] }
  0x6e   : > { %744 = vmatmul.f32.gmra.mxu2 %v7463_v10  ;;  %782 = vmatmul.f32.gmra.mxu3 %v7466_v11  ;;  %v548_v61 = vld [vmem:[%s12482_s2 + $0x108] sm:$0xff]  ;;  %v7604_v1 = vld [vmem:[%s7304_s26 + $0xd8] sm:$0x3]  ;;  %v6297_v7 = vld [vmem:[%s12482_s2 + $0x4f0] sm:$0xff] }
  0x6f   : > { %917 = vmatpush.msrb.mxu3 %v626_v12  ;;  %803 = vmatpush.msrb.mxu0 %v530_v13  ;;  %v7610_v3 = vld [vmem:[%s7304_s26 + $0xc8] sm:$0x3]  ;;  %v6329_v8 = vld [vmem:[%s12482_s2 + $0x5f0] sm:$0xff]  ;;  %v6391_v12 = vld [vmem:[%s12482_s2 + $0x7e0] sm:$0xff] }
  0x70   : > { %668 = vmatmul.f32.gmra.mxu0 %v7475_v14  ;;  %706 = vmatmul.f32.gmra.mxu1 %v7478_v15  ;;  %v6357_v9 = vld [vmem:[%s12482_s2 + $0x6d0] sm:$0xff]  ;;  %v6295_v13 = vld [vmem:[%s12482_s2 + $0x4e0] sm:$0xff] }
  0x71   : > { %841 = vmatpush.msrb.mxu1 %v562_v16  ;;  %881 = vmatpush.msrb.mxu2 %v590_v17  ;;  %v6327_v16 = vld [vmem:[%s12482_s2 + $0x5e0] sm:$0xff] }
  0x72   : > { %918 = vmatpush.msrb.mxu3 %v624_v18  ;;  %804 = vmatpush.msrb.mxu0 %v528_v19  ;;  %v6355_v17 = vld [vmem:[%s12482_s2 + $0x6c0] sm:$0xff]  ;;  %v6389_v18 = vld [vmem:[%s12482_s2 + $0x7d0] sm:$0xff] }
  0x73   : > { %842 = vmatpush.msrb.mxu1 %v560_v20  ;;  %882 = vmatpush.msrb.mxu2 %v588_v21  ;;  %v6293_v19 = vld [vmem:[%s12482_s2 + $0x4d0] sm:$0xff] }
  0x74   : > { %919 = vmatpush.msrb.mxu3 %v622_v22  ;;  %805 = vmatpush.msrb.mxu0 %v526_v23  ;;  %v6325_v20 = vld [vmem:[%s12482_s2 + $0x5d0] sm:$0xff]  ;;  %v6387_v22 = vld [vmem:[%s12482_s2 + $0x7c0] sm:$0xff] }
  0x75   : > { %843 = vmatpush.msrb.mxu1 %v558_v24  ;;  %883 = vmatpush.msrb.mxu2 %v586_v25  ;;  %v6353_v21 = vld [vmem:[%s12482_s2 + $0x6b0] sm:$0xff]  ;;  %v6291_v23 = vld [vmem:[%s12482_s2 + $0x4c0] sm:$0xff] }
  0x76   : > { %747 = vmatmul.f32.gmra.mxu2 %v7515_v28  ;;  %785 = vmatmul.f32.gmra.mxu3 %v7518_v29  ;;  %v6323_v24 = vld [vmem:[%s12482_s2 + $0x5c0] sm:$0xff] }
  0x77   : > { %920 = vmatpush.msrb.mxu3 %v620_v32  ;;  %806 = vmatpush.msrb.mxu0 %v524_v33  ;;  %v6351_v25 = vld [vmem:[%s12482_s2 + $0x6a0] sm:$0xff]  ;;  %v6385_v32 = vld [vmem:[%s12482_s2 + $0x7b0] sm:$0xff] }
  0x78   : > { %671 = vmatmul.f32.gmra.mxu0 %v7527_v34  ;;  %709 = vmatmul.f32.gmra.mxu1 %v7530_v35  ;;  %v6289_v33 = vld [vmem:[%s12482_s2 + $0x4b0] sm:$0xff] }
  0x79   : > { %844 = vmatpush.msrb.mxu1 %v556_v36  ;;  %884 = vmatpush.msrb.mxu2 %v584_v37  ;;  %v6321_v36 = vld [vmem:[%s12482_s2 + $0x5b0] sm:$0xff] }
  0x7a   : > { %921 = vmatpush.msrb.mxu3 %v618_v38  ;;  %807 = vmatpush.msrb.mxu0 %v522_v39  ;;  %v6349_v37 = vld [vmem:[%s12482_s2 + $0x690] sm:$0xff]  ;;  %v6383_v38 = vld [vmem:[%s12482_s2 + $0x7a0] sm:$0xff] }
  0x7b   : > { %845 = vmatpush.msrb.mxu1 %v554_v40  ;;  %885 = vmatpush.msrb.mxu2 %v582_v41  ;;  %v6287_v39 = vld [vmem:[%s12482_s2 + $0x4a0] sm:$0xff] }
  0x7c   : > { %922 = vmatpush.msrb.mxu3 %v616_v44  ;;  %808 = vmatpush.msrb.mxu0 %v520_v45  ;;  %v6319_v40 = vld [vmem:[%s12482_s2 + $0x5a0] sm:$0xff]  ;;  %v6381_v44 = vld [vmem:[%s12482_s2 + $0x790] sm:$0xff] }
  0x7d   : > { %846 = vmatpush.msrb.mxu1 %v552_v48  ;;  %886 = vmatpush.msrb.mxu2 %v580_v49  ;;  %v6347_v41 = vld [vmem:[%s12482_s2 + $0x680] sm:$0xff]  ;;  %v6285_v45 = vld [vmem:[%s12482_s2 + $0x490] sm:$0xff] }
  0x7e   : > { %750 = vmatmul.f32.gmra.mxu2 %v7567_v50  ;;  %788 = vmatmul.f32.gmra.mxu3 %v7570_v51  ;;  %v6317_v48 = vld [vmem:[%s12482_s2 + $0x590] sm:$0xff] }
  0x7f   : > { %923 = vmatpush.msrb.mxu3 %v614_v52  ;;  %809 = vmatpush.msrb.mxu0 %v518_v53  ;;  %v6345_v49 = vld [vmem:[%s12482_s2 + $0x670] sm:$0xff]  ;;  %v6379_v52 = vld [vmem:[%s12482_s2 + $0x780] sm:$0xff] }
  0x80   : > { %674 = vmatmul.f32.gmra.mxu0 %v7579_v54  ;;  %712 = vmatmul.f32.gmra.mxu1 %v7582_v55  ;;  %v6283_v53 = vld [vmem:[%s12482_s2 + $0x480] sm:$0xff] }
  0x81   : > { %847 = vmatpush.msrb.mxu1 %v550_v56  ;;  %924 = vmatpush.msrb.mxu3 %v612_v57  ;;  %v6315_v56 = vld [vmem:[%s12482_s2 + $0x580] sm:$0xff] }
  0x82   : > { %810 = vmatpush.msrb.mxu0 %v516_v60  ;;  %1178 = vmatpush.msra.mxu2 %v6361_v4  ;;  %v6343_v57 = vld [vmem:[%s12482_s2 + $0x660] sm:$0xff]  ;;  %v6377_v60 = vld [vmem:[%s12482_s2 + $0x770] sm:$0xff] }
  0x83   : > { %848 = vmatpush.msrb.mxu1 %v548_v61  ;;  %1216 = vmatpush.msra.mxu3 %v6393_v6  ;;  %v6281_v61 = vld [vmem:[%s12482_s2 + $0x470] sm:$0xff]  ;;  %v6375_v6 = vld [vmem:[%s12482_s2 + $0x760] sm:$0xff] }
  0x84   : > { %1179 = vmatpush.msra.mxu2 %v6359_v5  ;;  %1102 = vmatpush.msra.mxu0 %v6297_v7  ;;  %v6313_v4 = vld [vmem:[%s12482_s2 + $0x570] sm:$0xff]  ;;  %v6279_v7 = vld [vmem:[%s12482_s2 + $0x460] sm:$0xff] }
  0x85   : > { %1140 = vmatpush.msra.mxu1 %v6329_v8  ;;  %1217 = vmatpush.msra.mxu3 %v6391_v12  ;;  %v6341_v5 = vld [vmem:[%s12482_s2 + $0x650] sm:$0xff]  ;;  %v6311_v8 = vld [vmem:[%s12482_s2 + $0x560] sm:$0xff] }
  0x86   : > { %753 = vmatmul.f32.gmra.mxu2 %v7601_v0  ;;  %791 = vmatmul.f32.gmra.mxu3 %v7604_v1  ;;  %v6373_v12 = vld [vmem:[%s12482_s2 + $0x750] sm:$0xff] }
  0x87   : > { %1180 = vmatpush.msra.mxu2 %v6357_v9  ;;  %1103 = vmatpush.msra.mxu0 %v6295_v13  ;;  %v6339_v9 = vld [vmem:[%s12482_s2 + $0x640] sm:$0xff]  ;;  %v6277_v13 = vld [vmem:[%s12482_s2 + $0x450] sm:$0xff] }
  0x88   : > { %677 = vmatmul.f32.gmra.mxu0 %v7607_v2  ;;  %715 = vmatmul.f32.gmra.mxu1 %v7610_v3 }
  0x89   : > { %1141 = vmatpush.msra.mxu1 %v6327_v16  ;;  %1218 = vmatpush.msra.mxu3 %v6389_v18  ;;  %v6309_v16 = vld [vmem:[%s12482_s2 + $0x550] sm:$0xff]  ;;  %v6371_v18 = vld [vmem:[%s12482_s2 + $0x740] sm:$0xff] }
  0x8a   : > { %1181 = vmatpush.msra.mxu2 %v6355_v17  ;;  %1104 = vmatpush.msra.mxu0 %v6293_v19  ;;  %v6337_v17 = vld [vmem:[%s12482_s2 + $0x630] sm:$0xff]  ;;  %v6275_v19 = vld [vmem:[%s12482_s2 + $0x440] sm:$0xff] }
  0x8b   : > { %1142 = vmatpush.msra.mxu1 %v6325_v20  ;;  %1219 = vmatpush.msra.mxu3 %v6387_v22  ;;  %v6307_v20 = vld [vmem:[%s12482_s2 + $0x540] sm:$0xff]  ;;  %v6369_v22 = vld [vmem:[%s12482_s2 + $0x730] sm:$0xff] }
  0x8c   : > { %1182 = vmatpush.msra.mxu2 %v6353_v21  ;;  %1105 = vmatpush.msra.mxu0 %v6291_v23  ;;  %v6335_v21 = vld [vmem:[%s12482_s2 + $0x620] sm:$0xff]  ;;  %v6273_v23 = vld [vmem:[%s12482_s2 + $0x430] sm:$0xff] }
  0x8d   : > { %1143 = vmatpush.msra.mxu1 %v6323_v24  ;;  %1220 = vmatpush.msra.mxu3 %v6385_v32  ;;  %v6305_v24 = vld [vmem:[%s12482_s2 + $0x530] sm:$0xff]  ;;  %v6367_v32 = vld [vmem:[%s12482_s2 + $0x720] sm:$0xff] }
  0x8e   : > { %887 = vmatmul.f32.vlgmr.msrb.gmra.mxu2 %v7307_v26  ;;  %925 = vmatmul.f32.vlgmr.msrb.gmra.mxu3 %v7310_v27 }
  0x8f   : > { %1183 = vmatpush.msra.mxu2 %v6351_v25  ;;  %1106 = vmatpush.msra.mxu0 %v6289_v33  ;;  %v6333_v25 = vld [vmem:[%s12482_s2 + $0x610] sm:$0xff]  ;;  %v6271_v33 = vld [vmem:[%s12482_s2 + $0x420] sm:$0xff] }
  0x90   : > { %811 = vmatmul.f32.vlgmr.msrb.gmra.mxu0 %v7319_v30  ;;  %849 = vmatmul.f32.vlgmr.msrb.gmra.mxu1 %v7322_v31 }
  0x91   : > { %1144 = vmatpush.msra.mxu1 %v6321_v36  ;;  %1184 = vmatpush.msra.mxu2 %v6349_v37  ;;  %v6303_v36 = vld [vmem:[%s12482_s2 + $0x520] sm:$0xff] }
  0x92   : > { %1221 = vmatpush.msra.mxu3 %v6383_v38  ;;  %1107 = vmatpush.msra.mxu0 %v6287_v39  ;;  %v6331_v37 = vld [vmem:[%s12482_s2 + $0x600] sm:$0xff]  ;;  %v6365_v38 = vld [vmem:[%s12482_s2 + $0x710] sm:$0xff] }
  0x93   : > { %1145 = vmatpush.msra.mxu1 %v6319_v40  ;;  %1185 = vmatpush.msra.mxu2 %v6347_v41  ;;  %v6269_v39 = vld [vmem:[%s12482_s2 + $0x410] sm:$0xff]  ;;  %v6363_v41 = vld [vmem:[%s12482_s2 + $0x700] sm:$0xff] }
  0x94   : > { %1222 = vmatpush.msra.mxu3 %v6381_v44  ;;  %1108 = vmatpush.msra.mxu0 %v6285_v45  ;;  %v6301_v40 = vld [vmem:[%s12482_s2 + $0x510] sm:$0xff]  ;;  %v6267_v44 = vld [vmem:[%s12482_s2 + $0x400] sm:$0xff] }
  0x95   : > { %1146 = vmatpush.msra.mxu1 %v6317_v48  ;;  %1186 = vmatpush.msra.mxu2 %v6345_v49  ;;  %v6299_v45 = vld [vmem:[%s12482_s2 + $0x500] sm:$0xff]  ;;  %v6362_v48 = vld [vmem:[%s12482_s2 + $0x6f8] sm:$0xff]  ;;  %v6360_v49 = vld [vmem:[%s12482_s2 + $0x6e8] sm:$0xff] }
  0x96   : > { %890 = vmatmul.f32.gmra.mxu2 %v7359_v42  ;;  %928 = vmatmul.f32.gmra.mxu3 %v7362_v43 }
  0x97   : > { %1223 = vmatpush.msra.mxu3 %v6379_v52  ;;  %1109 = vmatpush.msra.mxu0 %v6283_v53  ;;  %v6358_v52 = vld [vmem:[%s12482_s2 + $0x6d8] sm:$0xff]  ;;  %v6356_v53 = vld [vmem:[%s12482_s2 + $0x6c8] sm:$0xff] }
  0x98   : > { %814 = vmatmul.f32.gmra.mxu0 %v7371_v46  ;;  %852 = vmatmul.f32.gmra.mxu1 %v7374_v47 }
  0x99   : > { %1147 = vmatpush.msra.mxu1 %v6315_v56  ;;  %1187 = vmatpush.msra.mxu2 %v6343_v57  ;;  %v6354_v56 = vld [vmem:[%s12482_s2 + $0x6b8] sm:$0xff]  ;;  %v6352_v57 = vld [vmem:[%s12482_s2 + $0x6a8] sm:$0xff] }
  0x9a   : > { %1224 = vmatpush.msra.mxu3 %v6377_v60  ;;  %1110 = vmatpush.msra.mxu0 %v6281_v61  ;;  %v6350_v60 = vld [vmem:[%s12482_s2 + $0x698] sm:$0xff]  ;;  %v6348_v61 = vld [vmem:[%s12482_s2 + $0x688] sm:$0xff] }
  0x9b   : > { %1148 = vmatpush.msra.mxu1 %v6313_v4  ;;  %1188 = vmatpush.msra.mxu2 %v6341_v5  ;;  %v6346_v4 = vld [vmem:[%s12482_s2 + $0x678] sm:$0xff]  ;;  %v6344_v5 = vld [vmem:[%s12482_s2 + $0x668] sm:$0xff] }
  0x9c   : > { %1225 = vmatpush.msra.mxu3 %v6375_v6  ;;  %1111 = vmatpush.msra.mxu0 %v6279_v7  ;;  %v6298_v6 = vld [vmem:[%s12482_s2 + $0x4f8] sm:$0xff] }
  0x9d   : > { %1149 = vmatpush.msra.mxu1 %v6311_v8  ;;  %1189 = vmatpush.msra.mxu2 %v6339_v9  ;;  %v6342_v7 = vld [vmem:[%s12482_s2 + $0x658] sm:$0xff]  ;;  %v6296_v8 = vld [vmem:[%s12482_s2 + $0x4e8] sm:$0xff] }
  0x9e   : > { %893 = vmatmul.f32.gmra.mxu2 %v7411_v58  ;;  %931 = vmatmul.f32.gmra.mxu3 %v7414_v59  ;;  %v6340_v9 = vld [vmem:[%s12482_s2 + $0x648] sm:$0xff] }
  0x9f   : > { %1226 = vmatpush.msra.mxu3 %v6373_v12  ;;  %1112 = vmatpush.msra.mxu0 %v6277_v13  ;;  %v6294_v12 = vld [vmem:[%s12482_s2 + $0x4d8] sm:$0xff]  ;;  %v6336_v13 = vld [vmem:[%s12482_s2 + $0x628] sm:$0xff] }
  0xa0   : > { %817 = vmatmul.f32.gmra.mxu0 %v7423_v62  ;;  %855 = vmatmul.f32.gmra.mxu1 %v7426_v63 }
  0xa1   : > { %1150 = vmatpush.msra.mxu1 %v6309_v16  ;;  %1190 = vmatpush.msra.mxu2 %v6337_v17  ;;  %v6288_v16 = vld [vmem:[%s12482_s2 + $0x4a8] sm:$0xff] }
  0xa2   : > { %1227 = vmatpush.msra.mxu3 %v6371_v18  ;;  %1113 = vmatpush.msra.mxu0 %v6275_v19  ;;  %v6332_v17 = vld [vmem:[%s12482_s2 + $0x608] sm:$0xff]  ;;  %v6286_v18 = vld [vmem:[%s12482_s2 + $0x498] sm:$0xff] }
  0xa3   : > { %1151 = vmatpush.msra.mxu1 %v6307_v20  ;;  %1191 = vmatpush.msra.mxu2 %v6335_v21  ;;  %v7914_v19 = vld [vmem:[%s12482_s2 + $0x7f8] sm:$0xff] }
  0xa4   : > { %1228 = vmatpush.msra.mxu3 %v6369_v22  ;;  %1114 = vmatpush.msra.mxu0 %v6273_v23  ;;  %v6282_v20 = vld [vmem:[%s12482_s2 + $0x478] sm:$0xff]  ;;  %v7948_v23 = vld [vmem:[%s12482_s2 + $0x7c8] sm:$0xff] }
  0xa5   : > { %1152 = vmatpush.msra.mxu1 %v6305_v24  ;;  %1192 = vmatpush.msra.mxu2 %v6333_v25  ;;  %v6278_v24 = vld [vmem:[%s12482_s2 + $0x458] sm:$0xff]  ;;  %v6276_v25 = vld [vmem:[%s12482_s2 + $0x448] sm:$0xff] }
  0xa6   : > { %896 = vmatmul.f32.gmra.mxu2 %v7463_v10  ;;  %934 = vmatmul.f32.gmra.mxu3 %v7466_v11 }
  0xa7   : > { %1229 = vmatpush.msra.mxu3 %v6367_v32  ;;  %1115 = vmatpush.msra.mxu0 %v6271_v33  ;;  %v6330_v32 = vld [vmem:[%s12482_s2 + $0x5f8] sm:$0xff] }
  0xa8   : > { %820 = vmatmul.f32.gmra.mxu0 %v7475_v14  ;;  %858 = vmatmul.f32.gmra.mxu1 %v7478_v15 }
  0xa9   : > { %1153 = vmatpush.msra.mxu1 %v6303_v36  ;;  %1193 = vmatpush.msra.mxu2 %v6331_v37  ;;  %v7975_v37 = vld [vmem:[%s12482_s2 + $0x7a8] sm:$0xff] }
  0xaa   : > { %1230 = vmatpush.msra.mxu3 %v6365_v38  ;;  %1116 = vmatpush.msra.mxu0 %v6269_v39  ;;  %v6274_v38 = vld [vmem:[%s12482_s2 + $0x438] sm:$0xff]  ;;  %v6328_v39 = vld [vmem:[%s12482_s2 + $0x5e8] sm:$0xff] }
  0xab   : > { %1154 = vmatpush.msra.mxu1 %v6301_v40  ;;  %1330 = vmatpush.msrb.mxu2 %v6362_v48  ;;  %v7987_v40 = vld [vmem:[%s12482_s2 + $0x798] sm:$0xff] }
  0xac   : > { %1231 = vmatpush.msra.mxu3 %v6363_v41  ;;  %1117 = vmatpush.msra.mxu0 %v6267_v44  ;;  %v6272_v41 = vld [vmem:[%s12482_s2 + $0x428] sm:$0xff]  ;;  %v6326_v44 = vld [vmem:[%s12482_s2 + $0x5d8] sm:$0xff] }
  0xad   : > { %1155 = vmatpush.msra.mxu1 %v6299_v45  ;;  %1331 = vmatpush.msrb.mxu2 %v6360_v49  ;;  %v8005_v49 = vld [vmem:[%s12482_s2 + $0x788] sm:$0xff] }
  0xae   : > { %899 = vmatmul.f32.gmra.mxu2 %v7515_v28  ;;  %937 = vmatmul.f32.gmra.mxu3 %v7518_v29 }
  0xaf   : > { %1332 = vmatpush.msrb.mxu2 %v6358_v52  ;;  %1254 = vmatpush.msrb.mxu0 %v6298_v6  ;;  %v6270_v52 = vld [vmem:[%s12482_s2 + $0x418] sm:$0xff] }
  0xb0   : > { %823 = vmatmul.f32.gmra.mxu0 %v7527_v34  ;;  %861 = vmatmul.f32.gmra.mxu1 %v7530_v35  ;;  %v8044_v6 = vld [vmem:[%s12482_s2 + $0x758] sm:$0xff] }
  0xb1   : > { %1333 = vmatpush.msrb.mxu2 %v6356_v53  ;;  %1255 = vmatpush.msrb.mxu0 %v6296_v8  ;;  %v6324_v53 = vld [vmem:[%s12482_s2 + $0x5c8] sm:$0xff] }
  0xb2   : > { %1292 = vmatpush.msrb.mxu1 %v6330_v32  ;;  %v6304_v32 = vld [vmem:[%s12482_s2 + $0x528] sm:$0xff] }
  0xb3   : > { %1334 = vmatpush.msrb.mxu2 %v6354_v56  ;;  %1256 = vmatpush.msrb.mxu0 %v6294_v12  ;;  %v6268_v56 = vld [vmem:[%s12482_s2 + $0x408] sm:$0xff] }
  0xb4   : > { %1293 = vmatpush.msrb.mxu1 %v6328_v39  ;;  %v8060_v12 = vld [vmem:[%s12482_s2 + $0x748] sm:$0xff] }
  0xb5   : > { %1335 = vmatpush.msrb.mxu2 %v6352_v57 }
  0xb6   : > { %902 = vmatmul.f32.gmra.mxu2 %v7567_v50  ;;  %940 = vmatmul.f32.gmra.mxu3 %v7570_v51 }
  0xb7   : > { %1336 = vmatpush.msrb.mxu2 %v6350_v60  ;;  %1294 = vmatpush.msrb.mxu1 %v6326_v44 }
  0xb8   : > { %826 = vmatmul.f32.gmra.mxu0 %v7579_v54  ;;  %864 = vmatmul.f32.gmra.mxu1 %v7582_v55 }
  0xb9   : > { %1337 = vmatpush.msrb.mxu2 %v6348_v61  ;;  %v6322_v61 = vld [vmem:[%s12482_s2 + $0x5b8] sm:$0xff]  ;;  %1295 = vmatpush.msrb.mxu1 %v6324_v53  ;;  %v6918_v53 = vld [vmem:[%s7304_s26 + $0x10] sm:$0xff] }
  0xbb   : > { %1338 = vmatpush.msrb.mxu2 %v6346_v4  ;;  %v8035_v4 = vld [vmem:[%s12482_s2 + $0x768] sm:$0xff]  ;;  %1296 = vmatpush.msrb.mxu1 %v6322_v61 }
  0xbc   : > { %v6920_v61 = vld [vmem:[%s7304_s26 + $0x8] sm:$0xff] }
  0xbd   : > { %1339 = vmatpush.msrb.mxu2 %v6344_v5  ;;  %v6320_v5 = vld [vmem:[%s12482_s2 + $0x5a8] sm:$0xff] }
  0xbe   : > { %905 = vmatmul.f32.gmra.mxu2 %v7601_v0  ;;  %943 = vmatmul.f32.gmra.mxu3 %v7604_v1 }
  0xbf   : > { %1340 = vmatpush.msrb.mxu2 %v6342_v7  ;;  %1297 = vmatpush.msrb.mxu1 %v6320_v5 }
  0xc0   : > { %829 = vmatmul.f32.gmra.mxu0 %v7607_v2  ;;  %867 = vmatmul.f32.gmra.mxu1 %v7610_v3 }
  0xc1   : > { %1341 = vmatpush.msrb.mxu2 %v6340_v9  ;;  %v6318_v9 = vld [vmem:[%s12482_s2 + $0x598] sm:$0xff] }
  0xc2   : > { %1298 = vmatpush.msrb.mxu1 %v6318_v9 }
  0xc6   : > { %1194 = vmatmul.f32.vlgmr.msra.gmra.mxu2 %v7307_v26  ;;  %1232 = vmatmul.f32.vlgmr.msra.gmra.mxu3 %v7310_v27  ;;  %v6338_v26 = vld [vmem:[%s12482_s2 + $0x638] sm:$0xff]  ;;  %v6292_v27 = vld [vmem:[%s12482_s2 + $0x4c8] sm:$0xff] }
  0xc7   : > { %1257 = vmatpush.msrb.mxu0 %v6292_v27  ;;  %1342 = vmatpush.msrb.mxu2 %v6338_v26  ;;  %v6316_v26 = vld [vmem:[%s12482_s2 + $0x588] sm:$0xff]  ;;  %v8071_v27 = vld [vmem:[%s12482_s2 + $0x738] sm:$0xff] }
  0xc8   : > { %1118 = vmatmul.f32.vlgmr.msra.gmra.mxu0 %v7319_v30  ;;  %1156 = vmatmul.f32.vlgmr.msra.gmra.mxu1 %v7322_v31  ;;  %v6290_v30 = vld [vmem:[%s12482_s2 + $0x4b8] sm:$0xff] }
  0xc9   : > { %1258 = vmatpush.msrb.mxu0 %v6290_v30  ;;  %v6334_v31 = vld [vmem:[%s12482_s2 + $0x618] sm:$0xff]  ;;  %1343 = vmatpush.msrb.mxu2 %v6336_v13 }
  0xca   : > { %1299 = vmatpush.msrb.mxu1 %v6316_v26 }
  0xcb   : > { %1259 = vmatpush.msrb.mxu0 %v6288_v16  ;;  %1344 = vmatpush.msrb.mxu2 %v6334_v31  ;;  %v6314_v31 = vld [vmem:[%s12482_s2 + $0x578] sm:$0xff]  ;;  %v8084_v16 = vld [vmem:[%s12482_s2 + $0x728] sm:$0xff] }
  0xcc   : > { %1300 = vmatpush.msrb.mxu1 %v6314_v31  ;;  %v6922_v31 = vld [vmem:[%s7304_s26 + $0x20] sm:$0xff] }
  0xcd   : > { %1260 = vmatpush.msrb.mxu0 %v6286_v18  ;;  %1345 = vmatpush.msrb.mxu2 %v6332_v17  ;;  %v6312_v17 = vld [vmem:[%s12482_s2 + $0x568] sm:$0xff]  ;;  %v8094_v18 = vld [vmem:[%s12482_s2 + $0x718] sm:$0xff] }
  0xce   : > { %1197 = vmatmul.f32.gmra.mxu2 %v7359_v42  ;;  %1235 = vmatmul.f32.gmra.mxu3 %v7362_v43  ;;  %v6284_v42 = vld [vmem:[%s12482_s2 + $0x488] sm:$0xff] }
  0xcf   : > { %1261 = vmatpush.msrb.mxu0 %v6284_v42  ;;  %v7924_v43 = vld [vmem:[%s12482_s2 + $0x7e8] sm:$0xff]  ;;  %6845 = vmatpush.msra.mxu2 %v7914_v19 }
  0xd0   : > { %1121 = vmatmul.f32.gmra.mxu0 %v7371_v46  ;;  %1159 = vmatmul.f32.gmra.mxu1 %v7374_v47  ;;  %v7934_v46 = vld [vmem:[%s12482_s2 + $0x7d8] sm:$0xff]  ;;  %v6280_v47 = vld [vmem:[%s12482_s2 + $0x468] sm:$0xff] }
  0xd1   : > { %1262 = vmatpush.msrb.mxu0 %v6282_v20  ;;  %6846 = vmatpush.msra.mxu2 %v7924_v43  ;;  %v8110_v20 = vld [vmem:[%s12482_s2 + $0x708] sm:$0xff] }
  0xd2   : > { %1301 = vmatpush.msrb.mxu1 %v6312_v17  ;;  %v6923_v17 = vld [vmem:[%s7304_s26 + $0x28] sm:$0xff] }
  0xd3   : > { %1263 = vmatpush.msrb.mxu0 %v6280_v47  ;;  %6847 = vmatpush.msra.mxu2 %v7934_v46 }
  0xd5   : > { %v7939_v21 = vpop.f32.mrf.mxu0  ;;  %v7941_v22 = vpop.f32.mrf.mxu1  ;;  %1264 = vmatpush.msrb.mxu0 %v6278_v24  ;;  %6848 = vmatpush.msra.mxu2 %v7948_v23 }
  0xd6   : > { %1200 = vmatmul.f32.gmra.mxu2 %v7411_v58  ;;  %1238 = vmatmul.f32.gmra.mxu3 %v7414_v59  ;;  %v7959_v59 = vld [vmem:[%s12482_s2 + $0x7b8] sm:$0xff] }
  0xd7   : > { %1265 = vmatpush.msrb.mxu0 %v6276_v25  ;;  %6849 = vmatpush.msra.mxu2 %v7959_v59  ;;  %v6306_v25 = vld [vmem:[%s12482_s2 + $0x538] sm:$0xff] }
  0xd8   : > { %1124 = vmatmul.f32.gmra.mxu0 %v7423_v62  ;;  %1162 = vmatmul.f32.gmra.mxu1 %v7426_v63 }
  0xd9   : > { %v7967_v33 = vpop.f32.mrf.mxu2  ;;  %v7969_v36 = vpop.f32.mrf.mxu3  ;;  %1266 = vmatpush.msrb.mxu0 %v6274_v38  ;;  %6850 = vmatpush.msra.mxu2 %v7975_v37 }
  0xdb   : > { %1267 = vmatpush.msrb.mxu0 %v6272_v41  ;;  %6851 = vmatpush.msra.mxu2 %v7987_v40  ;;  %v6302_v41 = vld [vmem:[%s12482_s2 + $0x518] sm:$0xff] }
  0xdd   : > { %v7995_v45 = vpop.f32.mrf.mxu0  ;;  %v7997_v48 = vpop.f32.mrf.mxu1  ;;  %6852 = vmatpush.msra.mxu2 %v8005_v49  ;;  %1268 = vmatpush.msrb.mxu0 %v6270_v52 }
  0xde   : > { %1203 = vmatmul.f32.gmra.mxu2 %v7463_v10  ;;  %1241 = vmatmul.f32.gmra.mxu3 %v7466_v11  ;;  %v8019_v11 = vld [vmem:[%s12482_s2 + $0x778] sm:$0xff] }
  0xdf   : > { %6853 = vmatpush.msra.mxu2 %v8019_v11  ;;  %1269 = vmatpush.msrb.mxu0 %v6268_v56  ;;  %v6919_v56 = vld [vmem:[%s7304_s26] sm:$0xff] }
  0xe0   : > { %1127 = vmatmul.f32.gmra.mxu0 %v7475_v14  ;;  %1165 = vmatmul.f32.gmra.mxu1 %v7478_v15 }
  0xe1   : > { %v8024_v57 = vpop.f32.mrf.mxu2  ;;  %v8026_v60 = vpop.f32.mrf.mxu3  ;;  %1368 = vmatpush.msra.mxu0 %v7914_v19  ;;  %6854 = vmatpush.msra.mxu2 %v8035_v4 }
  0xe3   : > { %6855 = vmatpush.msra.mxu2 %v8044_v6  ;;  %1369 = vmatpush.msra.mxu0 %v7924_v43  ;;  %v6310_v43 = vld [vmem:[%s12482_s2 + $0x558] sm:$0xff] }
  0xe4   : > { %1302 = vmatpush.msrb.mxu1 %v6310_v43 }
  0xe5   : > { %v8047_v7 = vpop.f32.mrf.mxu0  ;;  %v8049_v8 = vpop.f32.mrf.mxu1  ;;  %6856 = vmatpush.msra.mxu2 %v8060_v12  ;;  %1370 = vmatpush.msra.mxu0 %v7934_v46  ;;  %v6308_v46 = vld [vmem:[%s12482_s2 + $0x548] sm:$0xff] }
  0xe6   : > { %1206 = vmatmul.f32.gmra.mxu2 %v7515_v28  ;;  %1244 = vmatmul.f32.gmra.mxu3 %v7518_v29 }
  0xe7   : > { %6857 = vmatpush.msra.mxu2 %v8071_v27  ;;  %1371 = vmatpush.msra.mxu0 %v7948_v23  ;;  %v6300_v23 = vld [vmem:[%s12482_s2 + $0x508] sm:$0xff] }
  0xe8   : > { %1130 = vmatmul.f32.gmra.mxu0 %v7527_v34  ;;  %1168 = vmatmul.f32.gmra.mxu1 %v7530_v35 }
  0xe9   : > { %v8073_v13 = vpop.f32.mrf.mxu2  ;;  %v8075_v30 = vpop.f32.mrf.mxu3  ;;  %6858 = vmatpush.msra.mxu2 %v8084_v16  ;;  %1303 = vmatpush.msrb.mxu1 %v6308_v46 }
  0xea   : > { %1372 = vmatpush.msra.mxu0 %v7959_v59 }
  0xeb   : > { %6859 = vmatpush.msra.mxu2 %v8094_v18  ;;  %1304 = vmatpush.msrb.mxu1 %v6306_v25 }
  0xec   : > { %1373 = vmatpush.msra.mxu0 %v7975_v37 }
  0xed   : > { %v8097_v19 = vpop.f32.mrf.mxu0  ;;  %v8099_v42 = vpop.f32.mrf.mxu1  ;;  %6860 = vmatpush.msra.mxu2 %v8110_v20  ;;  %1305 = vmatpush.msrb.mxu1 %v6304_v32 }
  0xee   : > { %1209 = vmatmul.f32.gmra.mxu2 %v7567_v50  ;;  %1247 = vmatmul.f32.gmra.mxu3 %v7570_v51 }
  0xef   : > { %1306 = vmatpush.msrb.mxu1 %v6302_v41  ;;  %1374 = vmatpush.msra.mxu0 %v7987_v40 }
  0xf0   : > { %1133 = vmatmul.f32.gmra.mxu0 %v7579_v54  ;;  %1171 = vmatmul.f32.gmra.mxu1 %v7582_v55 }
  0xf1   : > { %v8118_v47 = vpop.f32.mrf.mxu2  ;;  %v8120_v24 = vpop.f32.mrf.mxu3  ;;  %1307 = vmatpush.msrb.mxu1 %v6300_v23  ;;  %1375 = vmatpush.msra.mxu0 %v8005_v49 }
  0xf3   : > { %1376 = vmatpush.msra.mxu0 %v8019_v11  ;;  %v6921_v11 = vld [vmem:[%s7304_s26 + $0x30] sm:$0xff] }
  0xf5   : > { %v672_v38 = vpop.f32.mrf.mxu0  ;;  %v710_v39 = vpop.f32.mrf.mxu1  ;;  %1377 = vmatpush.msra.mxu0 %v8035_v4 }
  0xf6   : > { %1212 = vmatmul.f32.gmra.mxu2 %v7601_v0  ;;  %1250 = vmatmul.f32.gmra.mxu3 %v7604_v1  ;;  %v711_v43 = vadd.f32 %v710_v39, %v672_v38 }
  0xf7   : > { %1378 = vmatpush.msra.mxu0 %v8044_v6 }
  0xf8   : > { %1136 = vmatmul.f32.gmra.mxu0 %v7607_v2  ;;  %1174 = vmatmul.f32.gmra.mxu1 %v7610_v3 }
  0xf9   : > { %v748_v59 = vpop.f32.mrf.mxu2  ;;  %v786_v44 = vpop.f32.mrf.mxu3  ;;  %1379 = vmatpush.msra.mxu0 %v8060_v12  ;;  %v708_v12 = vadd.f32 %v8099_v42, %v8097_v19 }
  0xfa   : > { %v749_v41 = vadd.f32 %v748_v59, %v711_v43 }
  0xfb   : > { %1380 = vmatpush.msra.mxu0 %v8071_v27  ;;  %v746_v19 = vadd.f32 %v8118_v47, %v708_v12 }
  0xfd   : > { %v675_v52 = vpop.f32.mrf.mxu0  ;;  %v713_v37 = vpop.f32.mrf.mxu1  ;;  %1381 = vmatpush.msra.mxu0 %v8084_v16  ;;  %v705_v16 = vadd.f32 %v8049_v8, %v8047_v7  ;;  %v699_v7 = vadd.f32 %v7941_v22, %v7939_v21 }
  0xfe   : > { %1346 = vmatmul.f32.vlgmr.msrb.gmra.mxu2 %v6918_v53  ;;  %v714_v4 = vadd.f32 %v713_v37, %v675_v52 }
  0xff   : > { %1382 = vmatpush.msra.mxu0 %v8094_v18  ;;  %v702_v18 = vadd.f32 %v7997_v48, %v7995_v45  ;;  %v743_v8 = vadd.f32 %v8073_v13, %v705_v16  ;;  %v784_v48 = vadd.f32 %v8120_v24, %v746_v19 }
 0x100   : > { %1270 = vmatmul.f32.vlgmr.msrb.gmra.mxu0 %v6919_v56  ;;  %1308 = vmatmul.f32.vlgmr.msrb.gmra.mxu1 %v6920_v61 }
 0x101   : > { %v751_v5 = vpop.f32.mrf.mxu2  ;;  %v789_v40 = vpop.f32.mrf.mxu3  ;;  %1383 = vmatpush.msra.mxu0 %v8110_v20  ;;  %v787_v20 = vadd.f32 %v786_v44, %v749_v41  ;;  %v740_v45 = vadd.f32 %v8024_v57, %v702_v18 }
 0x102   : > { %v752_v27 = vadd.f32 %v751_v5, %v714_v4  ;;  %v6925_v5 = vld [vmem:[%s7304_s26 + $0x38] sm:$0xff] }
 0x103   : > { %v778_v22 = vadd.f32 %v8026_v60, %v740_v45  ;;  %v6927_v45 = vld [vmem:[%s7304_s26 + $0x78] sm:$0xff] }
 0x104   : > { %v790_v42 = vadd.f32 %v789_v40, %v752_v27  ;;  %v6926_v27 = vld [vmem:[%s7304_s26 + $0x58] sm:$0xff] }
 0x105   : > { %v678_v49 = vpop.f32.mrf.mxu0  ;;  %v716_v9 = vpop.f32.mrf.mxu1 }
 0x106   : > { %1349 = vmatmul.f32.gmra.mxu2 %v6921_v11  ;;  %v717_v26 = vadd.f32 %v716_v9, %v678_v49 }
 0x108   : > { %1273 = vmatmul.f32.gmra.mxu0 %v6922_v31  ;;  %1311 = vmatmul.f32.gmra.mxu1 %v6923_v17 }
 0x109   : > { %v754_v46 = vpop.f32.mrf.mxu2  ;;  %v792_v25 = vpop.f32.mrf.mxu3 }
 0x10a   : > { %v755_v6 = vadd.f32 %v754_v46, %v717_v26 }
 0x10c   : > { %v793_v32 = vadd.f32 %v792_v25, %v755_v6 }
 0x10d   : > { %v8162_v23 = vpop.f32.mrf.mxu0  ;;  %v8164_v38 = vpop.f32.mrf.mxu1 }
 0x10e   : > { %1352 = vmatmul.f32.gmra.mxu2 %v7411_v58  ;;  %v851_v25 = vadd.f32 %v8164_v38, %v8162_v23 }
 0x10f   : > { %6447 = vmatpush.msk.msrb.mxu2 %vm1482_vm0, %v793_v32 }
 0x110   : > { %1276 = vmatmul.f32.gmra.mxu0 %v7423_v62  ;;  %1314 = vmatmul.f32.gmra.mxu1 %v7426_v63  ;;  %v737_v62 = vadd.f32 %v7967_v33, %v699_v7  ;;  %v781_v63 = vadd.f32 %v8075_v30, %v743_v8  ;;  %v6952_v7 = vmov 0  }
 0x111   : > { %1764 = vmatpush.msrb.mxu2 %v790_v42  ;;  %v8176_v58 = vpop.f32.mrf.mxu2  ;;  %v8178_v39 = vpop.f32.mrf.mxu3  ;;  %6915 = vset.pattern.permute.xlu0 %v6952_v7 }
 0x112   : > { %v775_v57 = vadd.f32 %v7969_v36, %v737_v62  ;;  %v889_v19 = vadd.f32 %v8176_v58, %v851_v25  ;;  %6916 = vset.pattern.permute.xlu1 %v6952_v7  ;;  %6917 = vset.pattern.permute.xlu2 %v6952_v7 }
 0x113   : > { %1765 = vmatpush.msrb.mxu2 %v787_v20  ;;  %v1953_v20 = vld [vmem:[%s12483_s3 + $0x78] sm:$0xff] }
 0x114   : > { %2040 = vperm.xlu0 %6915, %v1953_v20   ;;  %v927_v58 = vadd.f32 %v8178_v39, %v889_v19  ;;  %v1952_v39 = vld [vmem:[%s12483_s3 + $0x70] sm:$0xff]  ;;  %v1943_v19 = vld [vmem:[%s12483_s3 + $0x28] sm:$0xff] }
 0x115   : > { %1766 = vmatpush.msrb.mxu2 %v784_v48  ;;  %v815_v47 = vpop.f32.mrf.mxu0  ;;  %v853_v21 = vpop.f32.mrf.mxu1 }
 0x116   : > { %1355 = vmatmul.f32.gmra.mxu2 %v7463_v10  ;;  %v854_v43 = vadd.f32 %v853_v21, %v815_v47 }
 0x117   : > { %1767 = vmatpush.msrb.mxu2 %v781_v63  ;;  %v491_v63 = vld [vmem:[%s12481_s1 + $0x8] sm:$0xff] }
 0x118   : > { %1279 = vmatmul.f32.gmra.mxu0 %v7475_v14  ;;  %1317 = vmatmul.f32.gmra.mxu1 %v7478_v15 }
 0x119   : > { %1768 = vmatpush.msrb.mxu2 %v778_v22  ;;  %v891_v13 = vpop.f32.mrf.mxu2  ;;  %v8189_v24 = vpop.f32.mrf.mxu3 }
 0x11a   : > { %v892_v41 = vadd.f32 %v891_v13, %v854_v43  ;;  %v492_v13 = vld [vmem:[%s12481_s1 + $0x10] sm:$0xff] }
 0x11b   : > { %1769 = vmatpush.msrb.mxu2 %v775_v57 }
 0x11c   : > { %v930_v8 = vadd.f32 %v8189_v24, %v892_v41  ;;  %2035 = vperm.xlu0 %6915, %v1952_v39   ;;  %v497_v39 = vld [vmem:[%s12481_s1 + $0x38] sm:$0xff] }
 0x11d   : > { %v818_v33 = vpop.f32.mrf.mxu0  ;;  %v856_v30 = vpop.f32.mrf.mxu1 }
 0x11e   : > { %1358 = vmatmul.f32.gmra.mxu2 %v7515_v28 }
 0x120   : > { %1282 = vmatmul.f32.gmra.mxu0 %v7527_v34  ;;  %1320 = vmatmul.f32.gmra.mxu1 %v7530_v35 }
 0x121   : > { %v894_v10 = vpop.f32.mrf.mxu2  ;;  %v932_v60 = vpop.f32.mrf.mxu3 }
 0x125   : > { %v821_v14 = vpop.f32.mrf.mxu0  ;;  %v859_v59 = vpop.f32.mrf.mxu1 }
 0x126   : > { %1361 = vmatmul.f32.gmra.mxu2 %v7567_v50  ;;  %v6924_v50 = vld [vmem:[%s7304_s26 + $0x18] sm:$0xff]  ;;  %v860_v49 = vadd.f32 %v859_v59, %v821_v14  ;;  %s6957_s26 = smov 120  }
 0x127   : > { %v493_v59 = vld [vmem:[%s12481_s1 + $0x18] sm:$0xff] }
 0x128   : > { %1285 = vmatmul.f32.gmra.mxu0 %v7579_v54  ;;  %1323 = vmatmul.f32.gmra.mxu1 %v7582_v55 }
 0x129   : > { %v897_v15 = vpop.f32.mrf.mxu2  ;;  %v935_v36 = vpop.f32.mrf.mxu3 }
 0x12a   : > { %v898_v46 = vadd.f32 %v897_v15, %v860_v49  ;;  %v1949_v15 = vld [vmem:[%s12483_s3 + $0x58] sm:$0xff] }
 0x12b   : > { %2020 = vperm.xlu2 %6917, %v1949_v15   ;;  %v1961_v49 = vld [vmem:[%s12483_s3 + $0xb8] sm:$0xff]  ;;  %v8394_v15 = vld [vmem:[%s12481_s1 + $0xd0] sm:$0xff] }
 0x12c   : > { %v936_v18 = vadd.f32 %v935_v36, %v898_v46 }
 0x12d   : > { %v824_v44 = vpop.f32.mrf.mxu0  ;;  %v862_v52 = vpop.f32.mrf.mxu1 }
 0x12e   : > { %1364 = vmatmul.f32.gmra.mxu2 %v7601_v0 }
 0x130   : > { %1288 = vmatmul.f32.gmra.mxu0 %v7607_v2  ;;  %1326 = vmatmul.f32.gmra.mxu1 %v7610_v3  ;;  %v863_v2 = vadd.f32 %v862_v52, %v824_v44  ;;  %v1950_v52 = vld [vmem:[%s12483_s3 + $0x60] sm:$0xff] }
 0x131   : > { %v900_v28 = vpop.f32.mrf.mxu2  ;;  %v938_v34 = vpop.f32.mrf.mxu3 }
 0x132   : > { %v901_v26 = vadd.f32 %v900_v28, %v863_v2  ;;  %v1945_v28 = vld [vmem:[%s12483_s3 + $0x38] sm:$0xff]  ;;  %v495_v2 = vld [vmem:[%s12481_s1 + $0x28] sm:$0xff] }
 0x134   : > { %v939_v12 = vadd.f32 %v938_v34, %v901_v26 }
 0x135   : > { %v827_v35 = vpop.f32.mrf.mxu0  ;;  %v865_v37 = vpop.f32.mrf.mxu1 }
 0x136   : > { %1396 = vmatmul.f32.vlgmr.msra.gmra.mxu2 %v7518_v29  ;;  %v866_v61 = vadd.f32 %v865_v37, %v827_v35  ;;  %v857_v29 = vadd.f32 %v856_v30, %v818_v33  ;;  %v1951_v30 = vld [vmem:[%s12483_s3 + $0x68] sm:$0xff]  ;;  %v494_v37 = vld [vmem:[%s12481_s1 + $0x20] sm:$0xff] }
 0x137   : > { %2030 = vperm.xlu1 %6916, %v1951_v30   ;;  %v498_v30 = vld [vmem:[%s12481_s1 + $0x40] sm:$0xff] }
 0x138   : > { %1384 = vmatmul.f32.vlgmr.msra.gmra.mxu0 %v6924_v50  ;;  %v895_v6 = vadd.f32 %v894_v10, %v857_v29  ;;  %v1947_v10 = vld [vmem:[%s12483_s3 + $0x48] sm:$0xff]  ;;  %v1948_v50 = vld [vmem:[%s12483_s3 + $0x50] sm:$0xff] }
 0x139   : > { %v903_v54 = vpop.f32.mrf.mxu2  ;;  %v941_v55 = vpop.f32.mrf.mxu3  ;;  %2010 = vperm.xlu0 %6915, %v1947_v10   ;;  %2015 = vperm.xlu2 %6917, %v1948_v50   ;;  %v1939_v10 = vld [vmem:[%s12483_s3 + $0x8] sm:$0xff]  ;;  %v8421_v50 = vld [vmem:[%s12481_s1 + $0xd8] sm:$0xff] }
 0x13a   : > { %v904_v9 = vadd.f32 %v903_v54, %v866_v61  ;;  %v933_v23 = vadd.f32 %v932_v60, %v895_v6  ;;  %v1944_v6 = vld [vmem:[%s12483_s3 + $0x30] sm:$0xff] }
 0x13d   : > { %v830_v53 = vpop.f32.mrf.mxu0  ;;  %v868_v56 = vpop.f32.mrf.mxu1 }
 0x13e   : > { %1399 = vmatmul.f32.gmra.mxu2 %v7570_v51  ;;  %v869_v0 = vadd.f32 %v868_v56, %v830_v53  ;;  %v942_v51 = vadd.f32 %v941_v55, %v904_v9  ;;  %v1946_v53 = vld [vmem:[%s12483_s3 + $0x40] sm:$0xff]  ;;  %v1960_v56 = vld [vmem:[%s12483_s3 + $0xb0] sm:$0xff] }
 0x13f   : > { %2025 = vperm.xlu1 %6916, %v1950_v52   ;;  %v1942_v9 = vld [vmem:[%s12483_s3 + $0x20] sm:$0xff]  ;;  %v1940_v52 = vld [vmem:[%s12483_s3 + $0x10] sm:$0xff] }
 0x140   : > { %1387 = vmatmul.f32.gmra.mxu0 %v6925_v5  ;;  %v1962_v5 = vld [vmem:[%s12483_s3 + $0xc0] sm:$0xff] }
 0x141   : > { %v906_v3 = vpop.f32.mrf.mxu2  ;;  %v944_v40 = vpop.f32.mrf.mxu3  ;;  %2000 = vperm.xlu0 %6915, %v1945_v28   ;;  %2085 = vperm.xlu2 %6917, %v1962_v5   ;;  %v499_v28 = vld [vmem:[%s12481_s1 + $0x48] sm:$0xff] }
 0x142   : > { %v907_v11 = vadd.f32 %v906_v3, %v869_v0 }
 0x144   : > { %v945_v4 = vadd.f32 %v944_v40, %v907_v11 }
 0x145   : > { %v8204_v31 = vpop.f32.mrf.mxu0  ;;  %v8206_v17 = vpop.f32.mrf.mxu1 }
 0x146   : > { %1402 = vmatmul.f32.gmra.mxu2 %v7604_v1  ;;  %6473 = vmatpush.msk.msrb.mxu3 %vm1482_vm0, %v945_v4  ;;  %v490_v1 = vld [vmem:[%s12481_s1] sm:$0xff]  ;;  %v1158_v20 = vadd.f32 %v8206_v17, %v8204_v31  ;;  %v1957_v31 = vld [vmem:[%s12483_s3 + $0x98] sm:$0xff] }
 0x147   : > { %2005 = vperm.xlu1 %6916, %v1946_v53   ;;  %v500_v53 = vld [vmem:[%s12481_s1 + $0x50] sm:$0xff] }
 0x148   : > { %1856 = vmatpush.msrb.mxu3 %v942_v51  ;;  %1390 = vmatmul.f32.gmra.mxu0 %v6926_v27 }
 0x149   : > { %v8213_v32 = vpop.f32.mrf.mxu2  ;;  %v8215_v16 = vpop.f32.mrf.mxu3  ;;  %2075 = vperm.xlu0 %6915, %v1960_v56   ;;  %1995 = vperm.xlu2 %6917, %v1944_v6   ;;  %v8483_v6 = vld [vmem:[%s12481_s1 + $0x118] sm:$0xff] }
 0x14a   : > { %1857 = vmatpush.msrb.mxu3 %v939_v12  ;;  %v1196_v17 = vadd.f32 %v8213_v32, %v1158_v20 }
 0x14c   : > { %1858 = vmatpush.msrb.mxu3 %v936_v18  ;;  %v496_v18 = vld [vmem:[%s12481_s1 + $0x30] sm:$0xff]  ;;  %v1234_v32 = vadd.f32 %v8215_v16, %v1196_v17  ;;  %v1958_v16 = vld [vmem:[%s12483_s3 + $0xa0] sm:$0xff] }
 0x14d   : > { %v8221_v38 = vpop.f32.mrf.mxu0  ;;  %v8223_v42 = vpop.f32.mrf.mxu1 }
 0x14e   : > { %1859 = vmatpush.msrb.mxu3 %v933_v23  ;;  %6448 = vmatmul.msk.f32.vlgmr.msrb.gmra.mxu2 %vm1406_vm1, %v490_v1  ;;  %v1161_v23 = vadd.f32 %v8223_v42, %v8221_v38 }
 0x14f   : > { %2080 = vperm.xlu1 %6916, %v1961_v49   ;;  %v8459_v49 = vld [vmem:[%s12481_s1 + $0x108] sm:$0xff] }
 0x150   : > { %1860 = vmatpush.msrb.mxu3 %v930_v8  ;;  %1393 = vmatmul.f32.gmra.mxu0 %v6927_v45 }
 0x151   : > { %v8232_v48 = vpop.f32.mrf.mxu2  ;;  %v8234_v62 = vpop.f32.mrf.mxu3  ;;  %1985 = vperm.xlu0 %6915, %v1942_v9  }
 0x152   : > { %1861 = vmatpush.msrb.mxu3 %v927_v58  ;;  %v1199_v38 = vadd.f32 %v8232_v48, %v1161_v23 }
 0x153   : > { %6474 = vmatmul.msk.f32.vlgmr.msrb.gmra.mxu3 %vm1406_vm1, %v490_v1 }
 0x155   : > { %v8240_v47 = vpop.f32.mrf.mxu0  ;;  %v8242_v21 = vpop.f32.mrf.mxu1 }
 0x156   : > { %6449 = vmatmul.msk.f32.gmra.mxu2 %vm1406_vm1, %v491_v63  ;;  %v1164_v12 = vadd.f32 %v8242_v21, %v8240_v47  ;;  %v1959_v21 = vld [vmem:[%s12483_s3 + $0xa8] sm:$0xff] }
 0x157   : > { %1990 = vperm.xlu1 %6916, %v1943_v19   ;;  %2070 = vperm.xlu2 %6917, %v1959_v21   ;;  %v8495_v19 = vld [vmem:[%s12481_s1 + $0x120] sm:$0xff] }
 0x159   : > { %v8248_v22 = vpop.f32.mrf.mxu2  ;;  %v8250_v57 = vpop.f32.mrf.mxu3  ;;  %2060 = vperm.xlu0 %6915, %v1957_v31  }
 0x15a   : > { %v1202_v58 = vadd.f32 %v8248_v22, %v1164_v12 }
 0x15b   : > { %6475 = vmatmul.msk.f32.gmra.mxu3 %vm1406_vm1, %v491_v63 }
 0x15c   : > { %v1240_v48 = vadd.f32 %v8250_v57, %v1202_v58  ;;  %v8355_v57 = vld [vmem:[%s12481_s1 + $0xe8] sm:$0xff]  ;;  %v505_v58 = vld [vmem:[%s12481_s1 + $0x78] sm:$0xff] }
 0x15d   : > { %v1128_v24 = vpop.f32.mrf.mxu0  ;;  %v1166_v33 = vpop.f32.mrf.mxu1 }
 0x15e   : > { %6450 = vmatmul.msk.f32.gmra.mxu2 %vm1406_vm1, %v492_v13  ;;  %v1167_v46 = vadd.f32 %v1166_v33, %v1128_v24  ;;  %v8360_v24 = vld [vmem:[%s12481_s1 + $0xc8] sm:$0xff] }
 0x15f   : > { %2065 = vperm.xlu1 %6916, %v1958_v16  }
 0x161   : > { %v1204_v60 = vpop.f32.mrf.mxu2  ;;  %v8263_v14 = vpop.f32.mrf.mxu3  ;;  %1970 = vperm.xlu0 %6915, %v1939_v10  }
 0x162   : > { %v1205_v7 = vadd.f32 %v1204_v60, %v1167_v46  ;;  %v503_v46 = vld [vmem:[%s12481_s1 + $0x68] sm:$0xff] }
 0x163   : > { %6476 = vmatmul.msk.f32.gmra.mxu3 %vm1406_vm1, %v492_v13  ;;  %v1237_v13 = vadd.f32 %v8234_v62, %v1199_v38  ;;  %v1941_v62 = vld [vmem:[%s12483_s3 + $0x18] sm:$0xff] }
 0x164   : > { %v1243_v42 = vadd.f32 %v8263_v14, %v1205_v7  ;;  %1980 = vperm.xlu2 %6917, %v1941_v62  }
 0x165   : > { %v1131_v36 = vpop.f32.mrf.mxu0  ;;  %v1169_v44 = vpop.f32.mrf.mxu1 }
 0x166   : > { %6451 = vmatmul.msk.f32.gmra.mxu2 %vm1406_vm1, %v493_v59  ;;  %v1170_v26 = vadd.f32 %v1169_v44, %v1131_v36  ;;  %v1956_v44 = vld [vmem:[%s12483_s3 + $0x90] sm:$0xff] }
 0x167   : > { %1975 = vperm.xlu1 %6916, %v1940_v52  }
 0x169   : > { %v1207_v34 = vpop.f32.mrf.mxu2  ;;  %v1245_v35 = vpop.f32.mrf.mxu3 }
 0x16a   : > { %v1208_v27 = vadd.f32 %v1207_v34, %v1170_v26 }
 0x16b   : > { %6477 = vmatmul.msk.f32.gmra.mxu3 %vm1406_vm1, %v493_v59  ;;  %v8389_v59 = vld [vmem:[%s12481_s1 + $0xf0] sm:$0xff] }
 0x16c   : > { %v1246_v45 = vadd.f32 %v1245_v35, %v1208_v27  ;;  %2055 = vperm.xlu2 %6917, %v1956_v44   ;;  %v504_v27 = vld [vmem:[%s12481_s1 + $0x70] sm:$0xff]  ;;  %v506_v44 = vld [vmem:[%s12481_s1 + $0x80] sm:$0xff] }
 0x16d   : > { %v1134_v54 = vpop.f32.mrf.mxu0  ;;  %v1172_v55 = vpop.f32.mrf.mxu1 }
 0x16e   : > { %6452 = vmatmul.msk.f32.gmra.mxu2 %vm1406_vm1, %v494_v37  ;;  %v1173_v11 = vadd.f32 %v1172_v55, %v1134_v54  ;;  %v1938_v55 = vld [vmem:[%s12483_s3] sm:$0xff] }
 0x171   : > { %v1210_v61 = vpop.f32.mrf.mxu2  ;;  %v1248_v0 = vpop.f32.mrf.mxu3 }
 0x172   : > { %v1211_v51 = vadd.f32 %v1210_v61, %v1173_v11  ;;  %v8440_v61 = vld [vmem:[%s12481_s1 + $0x100] sm:$0xff] }
 0x173   : > { %6478 = vmatmul.msk.f32.gmra.mxu3 %vm1406_vm1, %v494_v37  ;;  %v8416_v37 = vld [vmem:[%s12481_s1 + $0xf8] sm:$0xff] }
 0x174   : > { %v1249_v8 = vadd.f32 %v1248_v0, %v1211_v51  ;;  %1965 = vperm.xlu2 %6917, %v1938_v55   ;;  %v8445_v0 = vld [vmem:[%s12481_s1 + $0xe0] sm:$0xff] }
 0x175   : > { %v1137_v3 = vpop.f32.mrf.mxu0  ;;  %v1175_v40 = vpop.f32.mrf.mxu1 }
 0x176   : > { %v1176_v29 = vadd.f32 %v1175_v40, %v1137_v3  ;;  %6453 = vmatmul.msk.f32.gmra.mxu2 %vm1406_vm1, %v495_v2  ;;  %v501_v3 = vld [vmem:[%s12481_s1 + $0x58] sm:$0xff] }
 0x179   : > { %v1213_v4 = vpop.f32.mrf.mxu2  ;;  %v1251_v43 = vpop.f32.mrf.mxu3 }
 0x17a   : > { %v1214_v25 = vadd.f32 %v1213_v4, %v1176_v29  ;;  %v502_v29 = vld [vmem:[%s12481_s1 + $0x60] sm:$0xff]  ;;  %v8471_v4 = vld [vmem:[%s12481_s1 + $0x110] sm:$0xff] }
 0x17b   : > { %6479 = vmatmul.msk.f32.gmra.mxu3 %vm1406_vm1, %v495_v2 }
 0x17c   : > { %v1252_v41 = vadd.f32 %v1251_v43, %v1214_v25 }
 0x17d   : > { %v8316_v1 = vpop.f32.mrf.mxu0  ;;  %v8333_v47 = vpop.f32.mrf.mxu1 }
 0x17e   : > { %6395 = vmatpush.msk.msrb.mxu0 %vm1482_vm0, %v1252_v41  ;;  %6861 = vmatpush.msk.msra.mxu1 %vm1482_vm0, %v1252_v41 }
 0x17f   : > { %6454 = vmatmul.msk.f32.gmra.mxu2 %vm1406_vm1, %v496_v18 }
 0x180   : > { %1499 = vmatpush.msrb.mxu0 %v1249_v8  ;;  %6862 = vmatpush.msra.mxu1 %v1249_v8 }
 0x181   : > { %v8329_v63 = vpop.f32.mrf.mxu2 }
 0x182   : > { %1500 = vmatpush.msrb.mxu0 %v1246_v45  ;;  %6863 = vmatpush.msra.mxu1 %v1246_v45 }
 0x183   : > { %6480 = vmatmul.msk.f32.gmra.mxu3 %vm1406_vm1, %v496_v18 }
 0x184   : > { %1501 = vmatpush.msrb.mxu0 %v1243_v42  ;;  %6864 = vmatpush.msra.mxu1 %v1243_v42 }
 0x185   : > { %v8347_v22 = vpop.f32.mrf.mxu0  ;;  %v8383_v14 = vpop.f32.mrf.mxu1 }
 0x186   : > { %1502 = vmatpush.msrb.mxu0 %v1240_v48  ;;  %6865 = vmatpush.msra.mxu1 %v1240_v48  ;;  %v8508_v48 = vld [vmem:[%s12481_s1 + $0x128] sm:$0xff] }
 0x187   : > { %6455 = vmatmul.msk.f32.gmra.mxu2 %vm1406_vm1, %v497_v39 }
 0x188   : > { %1503 = vmatpush.msrb.mxu0 %v1237_v13  ;;  %6866 = vmatpush.msra.mxu1 %v1237_v13  ;;  %v1313_v13 = vadd.f32 %v8383_v14, %v8347_v22 }
 0x189   : > { %v8362_v33 = vpop.f32.mrf.mxu2 }
 0x18a   : > { %1504 = vmatpush.msrb.mxu0 %v1234_v32  ;;  %6867 = vmatpush.msra.mxu1 %v1234_v32  ;;  %v1351_v14 = vadd.f32 %v8362_v33, %v1313_v13  ;;  %v1954_v33 = vld [vmem:[%s12483_s3 + $0x80] sm:$0xff] }
 0x18b   : > { %6400 = vmatmul.msk.f32.vlgmr.msra.gmra.mxu1 %vm1406_vm1, %v8355_v57  ;;  %6396 = vmatmul.msk.f32.vlgmr.msrb.gmra.mxu0 %vm1406_vm1, %v8360_v24 }
 0x18c   : > { %6481 = vmatmul.msk.f32.gmra.mxu3 %vm1406_vm1, %v497_v39  ;;  %2045 = vperm.xlu0 %6915, %v1954_v33  }
 0x18d   : > { %v8381_v60 = vpop.f32.mrf.mxu0  ;;  %v1315_v35 = vpop.f32.mrf.mxu1 }
 0x18e   : > { %v1316_v31 = vadd.f32 %v1315_v35, %v8381_v60 }
 0x18f   : > { %6456 = vmatmul.msk.f32.gmra.mxu2 %vm1406_vm1, %v498_v30 }
 0x191   : > { %v8396_v36 = vpop.f32.mrf.mxu2 }
 0x192   : > { %v1354_v60 = vadd.f32 %v8396_v36, %v1316_v31  ;;  %v8529_v36 = vld [vmem:[%s12481_s1 + $0x130] sm:$0xff] }
 0x193   : > { %6401 = vmatmul.msk.f32.gmra.mxu1 %vm1406_vm1, %v8389_v59  ;;  %6397 = vmatmul.msk.f32.gmra.mxu0 %vm1406_vm1, %v8394_v15 }
 0x194   : > { %6482 = vmatmul.msk.f32.gmra.mxu3 %vm1406_vm1, %v498_v30  ;;  %v1310_v30 = vadd.f32 %v8333_v47, %v8316_v1 }
 0x195   : > { %v1280_v34 = vpop.f32.mrf.mxu0  ;;  %v1318_v5 = vpop.f32.mrf.mxu1 }
 0x196   : > { %v1319_v38 = vadd.f32 %v1318_v5, %v1280_v34  ;;  %v1348_v1 = vadd.f32 %v8329_v63, %v1310_v30  ;;  %v507_v63 = vld [vmem:[%s12481_s1 + $0x88] sm:$0xff] }
 0x197   : > { %6457 = vmatmul.msk.f32.gmra.mxu2 %vm1406_vm1, %v499_v28 }
 0x199   : > { %v8423_v54 = vpop.f32.mrf.mxu2 }
 0x19a   : > { %v1357_v62 = vadd.f32 %v8423_v54, %v1319_v38  ;;  %v8546_v54 = vld [vmem:[%s12481_s1 + $0x138] sm:$0xff] }
 0x19b   : > { %6402 = vmatmul.msk.f32.gmra.mxu1 %vm1406_vm1, %v8416_v37  ;;  %6398 = vmatmul.msk.f32.gmra.mxu0 %vm1406_vm1, %v8421_v50 }
 0x19c   : > { %6483 = vmatmul.msk.f32.gmra.mxu3 %vm1406_vm1, %v499_v28 }
 0x19d   : > { %v1283_v56 = vpop.f32.mrf.mxu0  ;;  %v1321_v11 = vpop.f32.mrf.mxu1 }
 0x19e   : > { %v1322_v20 = vadd.f32 %v1321_v11, %v1283_v56  ;;  %v508_v56 = vld [vmem:[%s12481_s1 + $0x90] sm:$0xff]  ;;  %v510_v11 = vld [vmem:[%s12481_s1 + $0xa0] sm:$0xff] }
 0x19f   : > { %6458 = vmatmul.msk.f32.gmra.mxu2 %vm1406_vm1, %v500_v53 }
 0x1a1   : > { %v1359_v2 = vpop.f32.mrf.mxu2 }
 0x1a2   : > { %v1360_v17 = vadd.f32 %v1359_v2, %v1322_v20  ;;  %v8563_v2 = vld [vmem:[%s12481_s1 + $0x140] sm:$0xff] }
 0x1a3   : > { %6403 = vmatmul.msk.f32.gmra.mxu1 %vm1406_vm1, %v8440_v61  ;;  %6399 = vmatmul.msk.f32.gmra.mxu0 %vm1406_vm1, %v8445_v0 }
 0x1a4   : > { %6484 = vmatmul.msk.f32.gmra.mxu3 %vm1406_vm1, %v500_v53  ;;  %v1955_v53 = vld [vmem:[%s12483_s3 + $0x88] sm:$0xff] }
 0x1a5   : > { %v1286_v40 = vpop.f32.mrf.mxu0  ;;  %v1324_v25 = vpop.f32.mrf.mxu1  ;;  %2050 = vperm.xlu1 %6916, %v1955_v53  }
 0x1a6   : > { %v1325_v7 = vadd.f32 %v1324_v25, %v1286_v40  ;;  %v8577_v40 = vld [vmem:[%s12481_s1 + $0x148] sm:$0xff]  ;;  %v512_v25 = vld [vmem:[%s12481_s1 + $0xb0] sm:$0xff] }
 0x1a7   : > { %6459 = vmatmul.msk.f32.gmra.mxu2 %vm1406_vm1, %v501_v3  ;;  %12648 = vst [vmem:[#allocation3_spill] sm:$0xff] %v8577_v40 }
 0x1a9   : > { %v1362_v9 = vpop.f32.mrf.mxu2 }
 0x1aa   : > { %v1363_v42 = vadd.f32 %v1362_v9, %v1325_v7 }
 0x1ab   : > { %6404 = vmatmul.msk.f32.gmra.mxu1 %vm1406_vm1, %v8459_v49 }
 0x1ac   : > { %6485 = vmatmul.msk.f32.gmra.mxu3 %vm1406_vm1, %v501_v3  ;;  %v509_v3 = vld [vmem:[%s12481_s1 + $0x98] sm:$0xff] }
 0x1ad   : > { %v1289_v26 = vpop.f32.mrf.mxu0  ;;  %v1327_v18 = vpop.f32.mrf.mxu1 }
 0x1ae   : > { %v1328_v8 = vadd.f32 %v1327_v18, %v1289_v26 }
 0x1af   : > { %6460 = vmatmul.msk.f32.gmra.mxu2 %vm1406_vm1, %v502_v29 }
 0x1b1   : > { %v1365_v43 = vpop.f32.mrf.mxu2 }
 0x1b2   : > { %v1366_v21 = vadd.f32 %v1365_v43, %v1328_v8  ;;  %v511_v43 = vld [vmem:[%s12481_s1 + $0xa8] sm:$0xff]  ;;  %v8644_v8 = vld [vmem:[%s12481_s1 + $0xc0] sm:$0xff] }
 0x1b3   : > { %6405 = vmatmul.msk.f32.gmra.mxu1 %vm1406_vm1, %v8471_v4 }
 0x1b4   : > { %6486 = vmatmul.msk.f32.gmra.mxu3 %vm1406_vm1, %v502_v29  ;;  %v8591_v29 = vld [vmem:[%s12481_s1 + $0x150] sm:$0xff] }
 0x1b5   : > { %v1385_v51 = vpop.f32.mrf.mxu0  ;;  %12649 = vst [vmem:[#allocation4_spill] sm:$0xff] %v8591_v29 }
 0x1b6   : > { %v1386_v35 = vadd.f32 %v1385_v51, %v1348_v1 }
 0x1b7   : > { %6461 = vmatmul.msk.f32.gmra.mxu2 %vm1406_vm1, %v503_v46 }
 0x1b9   : > { %v1397_v12 = vpop.f32.mrf.mxu2 }
 0x1ba   : > { %v1398_v10 = vadd.f32 %v1397_v12, %v1360_v17  ;;  %v8619_v12 = vld [vmem:[%s12481_s1 + $0x160] sm:$0xff] }
 0x1bb   : > { %6406 = vmatmul.msk.f32.gmra.mxu1 %vm1406_vm1, %v8483_v6  ;;  %12651 = vst [vmem:[#allocation6_spill] sm:$0xff] %v8619_v12  ;;  %v8676_v17 = vld [vmem:[%s12481_s1 + $0x180] sm:$0xff] }
 0x1bc   : > { %6487 = vmatmul.msk.f32.gmra.mxu3 %vm1406_vm1, %v503_v46  ;;  %v8605_v46 = vld [vmem:[%s12481_s1 + $0x158] sm:$0xff]  ;;  %12655 = vst [vmem:[#allocation10_spill] sm:$0xff] %v8676_v17 }
 0x1bd   : > { %v1388_v41 = vpop.f32.mrf.mxu0  ;;  %12650 = vst [vmem:[#allocation5_spill] sm:$0xff] %v8605_v46 }
 0x1be   : > { %v1389_v34 = vadd.f32 %v1388_v41, %v1351_v14  ;;  %v513_v41 = vld [vmem:[%s12481_s1 + $0xb8] sm:$0xff]  ;;  %v8697_v14 = vpop.permute.xlu1 %2030 }
 0x1bf   : > { %6462 = vmatmul.msk.f32.gmra.mxu2 %vm1406_vm1, %v504_v27 }
 0x1c1   : > { %v1400_v23 = vpop.f32.mrf.mxu2 }
 0x1c2   : > { %v1401_v32 = vadd.f32 %v1400_v23, %v1363_v42  ;;  %v8635_v23 = vld [vmem:[%s12481_s1 + $0x168] sm:$0xff]  ;;  %v8665_v42 = vld [vmem:[%s12481_s1 + $0x178] sm:$0xff] }
 0x1c3   : > { %6407 = vmatmul.msk.f32.gmra.mxu1 %vm1406_vm1, %v8495_v19  ;;  %12652 = vst [vmem:[#allocation7_spill] sm:$0xff] %v8635_v23 }
 0x1c4   : > { %6488 = vmatmul.msk.f32.gmra.mxu3 %vm1406_vm1, %v504_v27  ;;  %12654 = vst [vmem:[#allocation9_spill] sm:$0xff] %v8665_v42 }
 0x1c5   : > { %v1391_v45 = vpop.f32.mrf.mxu0 }
 0x1c6   : > { %v1392_v47 = vadd.f32 %v1391_v45, %v1354_v60  ;;  %v8693_v60 = vpop.permute.xlu0 %2040 }
 0x1c7   : > { %6463 = vmatmul.msk.f32.gmra.mxu2 %vm1406_vm1, %v505_v58 }
 0x1c9   : > { %v1403_v39 = vpop.f32.mrf.mxu2 }
 0x1ca   : > { %v1404_v16 = vadd.f32 %v1403_v39, %v1366_v21 }
 0x1cb   : > { %6408 = vmatmul.msk.f32.gmra.mxu1 %vm1406_vm1, %v8508_v48 }
 0x1cc   : > { %6421 = vmatpush.msk.msrb.mxu1 %vm1482_vm0, %v1404_v16  ;;  %6489 = vmatmul.msk.f32.gmra.mxu3 %vm1406_vm1, %v505_v58  ;;  %v8654_v58 = vld [vmem:[%s12481_s1 + $0x170] sm:$0xff] }
 0x1cd   : > { %v1394_v22 = vpop.f32.mrf.mxu0  ;;  %12653 = vst [vmem:[#allocation8_spill] sm:$0xff] %v8654_v58 }
 0x1ce   : > { %1591 = vmatpush.msrb.mxu1 %v1401_v32  ;;  %v1395_v52 = vadd.f32 %v1394_v22, %v1357_v62  ;;  %v8685_v32 = vld [vmem:[%s12481_s1 + $0x188] sm:$0xff]  ;;  %v8701_v1 = vpop.permute.xlu0 %2035 }
 0x1cf   : > { %6464 = vmatmul.msk.f32.gmra.mxu2 %vm1406_vm1, %v506_v44  ;;  %12656 = vst [vmem:[#allocation11_spill] sm:$0xff] %v8685_v32 }
 0x1d0   : > { %1592 = vmatpush.msrb.mxu1 %v1398_v10  ;;  %v8691_v10 = vpop.permute.xlu2 %2020 }
 0x1d1   : > { %v8531_v28 = vpop.f32.mrf.mxu2 }
 0x1d2   : > { %1593 = vmatpush.msrb.mxu1 %v1395_v52 }
 0x1d3   : > { %6409 = vmatmul.msk.f32.gmra.mxu1 %vm1406_vm1, %v8529_v36 }
 0x1d4   : > { %1594 = vmatpush.msrb.mxu1 %v1392_v47  ;;  %6490 = vmatmul.msk.f32.gmra.mxu3 %vm1406_vm1, %v506_v44 }
 0x1d6   : > { %1595 = vmatpush.msrb.mxu1 %v1389_v34 }
 0x1d7   : > { %6465 = vmatmul.msk.f32.gmra.mxu2 %vm1406_vm1, %v507_v63 }
 0x1d8   : > { %1596 = vmatpush.msrb.mxu1 %v1386_v35  ;;  %v8699_v52 = vpop.permute.xlu2 %2015 }
 0x1d9   : > { %v8548_v55 = vpop.f32.mrf.mxu2 }
 0x1db   : > { %6410 = vmatmul.msk.f32.gmra.mxu1 %vm1406_vm1, %v8546_v54 }
 0x1dc   : > { %6491 = vmatmul.msk.f32.gmra.mxu3 %vm1406_vm1, %v507_v63  ;;  %v8709_v63 = vpop.permute.xlu0 %2010 }
 0x1df   : > { %6466 = vmatmul.msk.f32.gmra.mxu2 %vm1406_vm1, %v508_v56 }
 0x1e0   : > { %v8707_v35 = vpop.permute.xlu2 %2085 }
 0x1e1   : > { %v8565_v5 = vpop.f32.mrf.mxu2  ;;  %12657 = vst [vmem:[#allocation12_spill] sm:$0xff] %v8707_v35 }
 0x1e3   : > { %6411 = vmatmul.msk.f32.gmra.mxu1 %vm1406_vm1, %v8563_v2 }
 0x1e4   : > { %6492 = vmatmul.msk.f32.gmra.mxu3 %vm1406_vm1, %v508_v56 }
 0x1e7   : > { %6467 = vmatmul.msk.f32.gmra.mxu2 %vm1406_vm1, %v509_v3 }
 0x1e9   : > { %v8579_v9 = vpop.f32.mrf.mxu2 }
 0x1eb   : > { %6412 = vmatmul.msk.f32.gmra.mxu1 %vm1406_vm1, %v8577_v40 }
 0x1ec   : > { %6493 = vmatmul.msk.f32.gmra.mxu3 %vm1406_vm1, %v509_v3  ;;  %v8715_v3 = vpop.permute.xlu2 %1995 }
 0x1ef   : > { %6468 = vmatmul.msk.f32.gmra.mxu2 %vm1406_vm1, %v510_v11 }
 0x1f1   : > { %v8593_v26 = vpop.f32.mrf.mxu2 }
 0x1f3   : > { %6413 = vmatmul.msk.f32.gmra.mxu1 %vm1406_vm1, %v8591_v29 }
 0x1f4   : > { %6494 = vmatmul.msk.f32.gmra.mxu3 %vm1406_vm1, %v510_v11  ;;  %v8717_v11 = vpop.permute.xlu0 %2000 }
 0x1f7   : > { %6469 = vmatmul.msk.f32.gmra.mxu2 %vm1406_vm1, %v511_v43 }
 0x1f9   : > { %v8607_v51 = vpop.f32.mrf.mxu2 }
 0x1fb   : > { %6414 = vmatmul.msk.f32.gmra.mxu1 %vm1406_vm1, %v8605_v46 }
 0x1fc   : > { %6495 = vmatmul.msk.f32.gmra.mxu3 %vm1406_vm1, %v511_v43 }
 0x1ff   : > { %6470 = vmatmul.msk.f32.gmra.mxu2 %vm1406_vm1, %v512_v25 }
 0x202   : > { %v8621_v27 = vpop.f32.mrf.mxu2 }
 0x203   : > { %6415 = vmatmul.msk.f32.gmra.mxu1 %vm1406_vm1, %v8619_v12 }
 0x204   : > { %6496 = vmatmul.msk.f32.gmra.mxu3 %vm1406_vm1, %v512_v25 }
 0x207   : > { %6471 = vmatmul.msk.f32.gmra.mxu2 %vm1406_vm1, %v513_v41 }
 0x208   : > { %v8630_v18 = vpop.f32.mrf.mxu1 }
 0x20a   : > { %v8637_v7 = vpop.f32.mrf.mxu2 }
 0x20b   : > { %6416 = vmatmul.msk.f32.gmra.mxu1 %vm1406_vm1, %v8635_v23 }
 0x20c   : > { %6497 = vmatmul.msk.f32.gmra.mxu3 %vm1406_vm1, %v513_v41  ;;  %v8729_v41 = vpop.permute.xlu2 %2070 }
 0x20d   : > { %12659 = vst [vmem:[#allocation14_spill] sm:$0xff] %v8729_v41 }
 0x20f   : > { %6472 = vmatmul.msk.f32.gmra.mxu2 %vm1406_vm1, %v8644_v8 }
 0x210   : > { %v8649_v20 = vpop.f32.mrf.mxu1 }
 0x212   : > { %v8656_v45 = vpop.f32.mrf.mxu2 }
 0x213   : > { %6417 = vmatmul.msk.f32.gmra.mxu1 %vm1406_vm1, %v8654_v58 }
 0x218   : > { %v8660_v38 = vpop.f32.mrf.mxu1 }
 0x21a   : > { %v8667_v21 = vpop.f32.mrf.mxu2 }
 0x21b   : > { %6418 = vmatmul.msk.f32.gmra.mxu1 %vm1406_vm1, %v8665_v42 }
 0x220   : > { %v8671_v31 = vpop.f32.mrf.mxu1 }
 0x222   : > { %v1801_v39 = vpop.f32.mrf.mxu2 }
 0x223   : > { %6419 = vmatmul.msk.f32.gmra.mxu1 %vm1406_vm1, %v8676_v17 }
 0x228   : > { %v8680_v13 = vpop.f32.mrf.mxu1 }
 0x22a   : > { %v1804_v16 = vpop.f32.mrf.mxu2 }
 0x22b   : > { %6420 = vmatmul.msk.f32.gmra.mxu1 %vm1406_vm1, %v8685_v32  ;;  %v8731_v32 = vpop.permute.xlu0 %2075 }
 0x22c   : > { %12660 = vst [vmem:[#allocation15_spill] sm:$0xff] %v8731_v32 }
 0x230   : > { %v1533_v62 = vpop.f32.mrf.mxu1 }
 0x232   : > { %v1807_v30 = vpop.f32.mrf.mxu2 }
 0x233   : > { %6422 = vmatmul.msk.f32.vlgmr.msrb.gmra.mxu1 %vm1406_vm1, %v8360_v24  ;;  %v8705_v24 = vpop.permute.xlu1 %2025 }
 0x238   : > { %v1536_v44 = vpop.f32.mrf.mxu1 }
 0x23a   : > { %v1810_v22 = vpop.f32.mrf.mxu2 }
 0x23b   : > { %6423 = vmatmul.msk.f32.gmra.mxu1 %vm1406_vm1, %v8394_v15  ;;  %v8713_v56 = vpop.permute.xlu1 %2005 }
 0x240   : > { %v1539_v47 = vpop.f32.mrf.mxu1 }
 0x242   : > { %v1813_v34 = vpop.f32.mrf.mxu2 }
 0x243   : > { %6424 = vmatmul.msk.f32.gmra.mxu1 %vm1406_vm1, %v8421_v50  ;;  %v8721_v50 = vpop.f32.mrf.mxu0 }
 0x248   : > { %v1542_v33 = vpop.f32.mrf.mxu1 }
 0x249   : > { %v1808_v46 = vadd.f32 %v1807_v30, %v1542_v33 }
 0x24a   : > { %v1816_v15 = vpop.f32.mrf.mxu2 }
 0x24b   : > { %6425 = vmatmul.msk.f32.gmra.mxu1 %vm1406_vm1, %v8445_v0  ;;  %v8727_v0 = vpop.permute.xlu1 %2080  ;;  %v8733_v17 = vpop.f32.mrf.mxu0 }
 0x250   : > { %v1545_v53 = vpop.f32.mrf.mxu1 }
 0x252   : > { %v8723_v43 = vpop.f32.mrf.mxu2 }
 0x253   : > { %6426 = vmatmul.msk.f32.gmra.mxu1 %vm1406_vm1, %v8355_v57  ;;  %12658 = vst [vmem:[#allocation13_spill] sm:$0xff] %v8723_v43  ;;  %v1811_v57 = vadd.f32 %v1810_v22, %v1545_v53  ;;  %v8742_v32 = vpop.permute.xlu1 %1990  ;;  %v1802_v22 = vadd.f32 %v1801_v39, %v1536_v44  ;;  %v1512_v30 = vpop.f32.mrf.mxu0  ;;  %v1790_v44 = vadd.f32 %v8621_v27, %v8660_v38 }
 0x254   : > { %v1784_v27 = vadd.f32 %v8593_v26, %v8630_v18 }
 0x255   : > { %v2114_v40 = vadd.f32 %v8697_v14, %v1811_v57  ;;  %v2108_v39 = vadd.f32 %v8699_v52, %v1802_v22  ;;  %v2100_v38 = vadd.f32 %v8715_v3, %v1790_v44 }
 0x257   : > { %v2150_v26 = vmax.f32 %v2100_v38, 0.0 }
 0x258   : > { %v1548_v25 = vpop.f32.mrf.mxu1 }
 0x259   : > { %v1814_v42 = vadd.f32 %v1813_v34, %v1548_v25  ;;  %v8744_v34 = vpop.permute.xlu2 %1980  ;;  %v8746_v25 = vpop.permute.xlu0 %1985 }
 0x25a   : > { %v8735_v23 = vpop.f32.mrf.mxu2 }
 0x25b   : > { %6427 = vmatmul.msk.f32.gmra.mxu1 %vm1406_vm1, %v8389_v59  ;;  %v2116_v29 = vadd.f32 %v8701_v1, %v1814_v42  ;;  %v1805_v59 = vadd.f32 %v1804_v16, %v1539_v47  ;;  %v2164_v47 = vmax.f32 %v2114_v40, 0.0  ;;  %v8763_v40 = vpop.permute.xlu1 %2065  ;;  %v1515_v57 = vpop.f32.mrf.mxu0 }
 0x25c   : > { %12661 = vst [vmem:[#allocation16_spill] sm:$0xff] %v8763_v40 }
 0x25d   : > { %v2166_v42 = vmax.f32 %v2116_v29, 0.0  ;;  %v2110_v16 = vadd.f32 %v8691_v10, %v1805_v59 }
 0x260   : > { %v1551_v58 = vpop.f32.mrf.mxu1 }
 0x261   : > { %v1817_v12 = vadd.f32 %v1816_v15, %v1551_v58  ;;  %v2112_v58 = vadd.f32 %v8705_v24, %v1808_v46  ;;  %v1796_v15 = vadd.f32 %v8656_v45, %v8680_v13  ;;  %v1793_v46 = vadd.f32 %v8637_v7, %v8671_v31  ;;  %v8768_v53 = vpop.permute.xlu0 %2060 }
 0x262   : > { %v8753_v33 = vpop.f32.mrf.mxu2  ;;  %v2158_v13 = vmax.f32 %v2108_v39, 0.0  ;;  %12662 = vst [vmem:[#allocation17_spill] sm:$0xff] %v8768_v53  ;;  %v1787_v7 = vadd.f32 %v8607_v51, %v8649_v20  ;;  %v1781_v20 = vadd.f32 %v8579_v9, %v1515_v57  ;;  %v1772_v39 = vadd.f32 %v8531_v28, %v8721_v50  ;;  %v8811_v50 = vld [vmem:[%s12484_s4] sm:$0xff] }
 0x263   : > { %v2118_v43 = vadd.f32 %v8693_v60, %v1817_v12  ;;  %6428 = vmatmul.msk.f32.gmra.mxu1 %vm1406_vm1, %v8416_v37  ;;  %v1799_v37 = vadd.f32 %v8667_v21, %v1533_v62  ;;  %v2162_v29 = vmax.f32 %v2112_v58, 0.0  ;;  %v2160_v62 = vmax.f32 %v2110_v16, 0.0  ;;  %v8788_v18 = vpop.permute.xlu1 %1975 }
 0x264   : > { %v2104_v45 = vadd.f32 %v8713_v56, %v1796_v15  ;;  %v2102_v31 = vadd.f32 %v8717_v11, %v1793_v46  ;;  %v2098_v51 = vadd.f32 %v8742_v32, %v1787_v7  ;;  %v8819_v7 = vld [vmem:[%s12484_s4 + $0x10] sm:$0xff] }
 0x265   : > { %v2168_v41 = vmax.f32 %v2118_v43, 0.0  ;;  %v2106_v21 = vadd.f32 %v8709_v63, %v1799_v37  ;;  %v1778_v37 = vadd.f32 %v8565_v5, %v1512_v30 }
 0x266   : > { %v2154_v59 = vmax.f32 %v2104_v45, 0.0  ;;  %v2152_v58 = vmax.f32 %v2102_v31, 0.0  ;;  %v2148_v15 = vmax.f32 %v2098_v51, 0.0  ;;  %v8822_v31 = vpop.f32.mrf.mxu3  ;;  %6498 = vmatmul.msk.f32.gmra.mxu3 %vm1406_vm1, %v8644_v8  ;;  %v8841_v8 = vld [vmem:[%s12484_s4 + $0x30] sm:$0xff]  ;;  %v8851_v51 = vld [vmem:[%s12484_s4 + $0x40] sm:$0xff] }
 0x267   : > { %2369 = vmatpush.msra.mxu0 %v2168_v41  ;;  %v2156_v43 = vmax.f32 %v2106_v21, 0.0  ;;  %v8775_v41 = vpop.permute.xlu2 %2055  ;;  %v2092_v5 = vadd.f32 %v8788_v18, %v1778_v37 }
 0x268   : > { %v8749_v12 = vpop.f32.mrf.mxu1  ;;  %12663 = vst [vmem:[#allocation18_spill] sm:$0xff] %v8775_v41 }
 0x269   : > { %2370 = vmatpush.msra.mxu0 %v2166_v42  ;;  %v2096_v42 = vadd.f32 %v8746_v25, %v1784_v27  ;;  %v8795_v9 = vpop.permute.xlu0 %1970 }
 0x26a   : > { %v8782_v22 = vpop.f32.mrf.mxu2 }
 0x26b   : > { %6429 = vmatmul.msk.f32.gmra.mxu1 %vm1406_vm1, %v8440_v61  ;;  %2371 = vmatpush.msra.mxu0 %v2164_v47  ;;  %v2094_v47 = vadd.f32 %v8744_v34, %v1781_v20  ;;  %v2146_v30 = vmax.f32 %v2096_v42, 0.0 }
 0x26d   : > { %2372 = vmatpush.msra.mxu0 %v2162_v29 }
 0x26e   : > { %v8834_v27 = vpop.f32.mrf.mxu3 }
 0x26f   : > { %2373 = vmatpush.msra.mxu0 %v2160_v62  ;;  %v8802_v29 = vpop.permute.xlu2 %1965  ;;  %v2142_v62 = vmax.f32 %v2092_v5, 0.0 }
 0x270   : > { %v8770_v61 = vpop.f32.mrf.mxu1  ;;  %v2088_v21 = vadd.f32 %v8802_v29, %v1772_v39 }
 0x271   : > { %2374 = vmatpush.msra.mxu0 %v2158_v13 }
 0x272   : > { %v1831_v46 = vpop.f32.mrf.mxu2 }
 0x273   : > { %6430 = vmatmul.msk.f32.gmra.mxu1 %vm1406_vm1, %v8459_v49  ;;  %2375 = vmatpush.msra.mxu0 %v2156_v43  ;;  %v1775_v49 = vadd.f32 %v8548_v55, %v8733_v17  ;;  %v2144_v17 = vmax.f32 %v2094_v47, 0.0 }
 0x275   : > { %2376 = vmatpush.msra.mxu0 %v2154_v59  ;;  %v2090_v55 = vadd.f32 %v8795_v9, %v1775_v49 }
 0x276   : > { %v8844_v59 = vpop.f32.mrf.mxu3 }
 0x277   : > { %2377 = vmatpush.msra.mxu0 %v2152_v58  ;;  %v2140_v28 = vmax.f32 %v2090_v55, 0.0 }
 0x278   : > { %v8790_v16 = vpop.f32.mrf.mxu1 }
 0x279   : > { %2378 = vmatpush.msra.mxu0 %v2150_v26 }
 0x27a   : > { %v1834_v13 = vpop.f32.mrf.mxu2 }
 0x27b   : > { %6431 = vmatmul.msk.f32.gmra.mxu1 %vm1406_vm1, %v8471_v4  ;;  %2379 = vmatpush.msra.mxu0 %v2148_v15  ;;  %v2138_v4 = vmax.f32 %v2088_v21, 0.0 }
 0x27d   : > { %2380 = vmatpush.msra.mxu0 %v2146_v30  ;;  %v12665_v30 = vld [vmem:[#allocation15_spill] sm:$0xff] }
 0x27e   : > { %v8854_v42 = vpop.f32.mrf.mxu3 }
 0x27f   : > { %2381 = vmatpush.msra.mxu0 %v2144_v17 }
 0x280   : > { %v1563_v44 = vpop.f32.mrf.mxu1 }
 0x281   : > { %2382 = vmatpush.msra.mxu0 %v2142_v62  ;;  %v1829_v21 = vadd.f32 %v8782_v22, %v1563_v44  ;;  %v12666_v62 = vld [vmem:[#allocation14_spill] sm:$0xff]  ;;  %v8881_v22 = vld [vmem:[%s12484_s4 + $0x60] sm:$0xff]  ;;  %v1823_v44 = vadd.f32 %v8735_v23, %v8770_v61 }
 0x282   : > { %v1837_v43 = vpop.f32.mrf.mxu2 }
 0x283   : > { %6432 = vmatmul.msk.f32.gmra.mxu1 %vm1406_vm1, %v8483_v6  ;;  %2383 = vmatpush.msra.mxu0 %v2140_v28 }
 0x285   : > { %2384 = vmatpush.msra.mxu0 %v2138_v4 }
 0x286   : > { %2385 = vmatmul.f32.vlgmr.msra.gmra.mxu0 %v8811_v50 }
 0x288   : > { %v1566_v45 = vpop.f32.mrf.mxu1 }
 0x289   : > { %v1832_v5 = vadd.f32 %v1831_v46, %v1566_v45 }
 0x28a   : > { %v1840_v38 = vpop.f32.mrf.mxu2 }
 0x28b   : > { %6433 = vmatmul.msk.f32.gmra.mxu1 %vm1406_vm1, %v8495_v19  ;;  %v8831_v19 = vld [vmem:[%s12484_s4 + $0x20] sm:$0xff]  ;;  %v2128_v46 = vadd.f32 %v8763_v40, %v1832_v5 }
 0x28e   : > { %2388 = vmatmul.f32.gmra.mxu0 %v8819_v7 }
 0x290   : > { %v1569_v6 = vpop.f32.mrf.mxu1 }
 0x291   : > { %v1835_v15 = vadd.f32 %v1834_v13, %v1569_v6  ;;  %v1826_v13 = vadd.f32 %v8753_v33, %v8790_v16  ;;  %v12667_v6 = vld [vmem:[#allocation3_spill] sm:$0xff]  ;;  %v12670_v33 = vld [vmem:[#allocation13_spill] sm:$0xff] }
 0x292   : > { %12668 = vst [vmem:[#allocation3_spill] sm:$0xff] %v8881_v22  ;;  %v1820_v16 = vadd.f32 %v12670_v33, %v8749_v12 }
 0x293   : > { %6434 = vmatmul.msk.f32.gmra.mxu1 %vm1406_vm1, %v8508_v48  ;;  %v2130_v28 = vadd.f32 %v12666_v62, %v1835_v15 }
 0x296   : > { %2391 = vmatmul.f32.gmra.mxu0 %v8831_v19 }
 0x298   : > { %v1572_v57 = vpop.f32.mrf.mxu1 }
 0x299   : > { %v1838_v26 = vadd.f32 %v1837_v43, %v1572_v57  ;;  %v2126_v43 = vadd.f32 %v8768_v53, %v1829_v21  ;;  %v2180_v57 = vmax.f32 %v2130_v28, 0.0  ;;  %v8917_v21 = vld [vmem:[%s12484_s4 + $0x80] sm:$0xff] }
 0x29b   : > { %6435 = vmatmul.msk.f32.gmra.mxu1 %vm1406_vm1, %v8529_v36  ;;  %v1843_v36 = vpop.f32.mrf.mxu2  ;;  %v2132_v55 = vadd.f32 %v12665_v30, %v1838_v26  ;;  %v2176_v61 = vmax.f32 %v2126_v43, 0.0  ;;  %v12678_v43 = vld [vmem:[#allocation7_spill] sm:$0xff] }
 0x29d   : > { %v2182_v45 = vmax.f32 %v2132_v55, 0.0 }
 0x29e   : > { %2394 = vmatmul.f32.gmra.mxu0 %v8841_v8 }
 0x2a0   : > { %v1575_v48 = vpop.f32.mrf.mxu1 }
 0x2a1   : > { %v1841_v20 = vadd.f32 %v1840_v38, %v1575_v48  ;;  %v8886_v38 = vpop.permute.xlu1 %2050  ;;  %v2124_v48 = vadd.f32 %v8775_v41, %v1826_v13  ;;  %v9066_v41 = vld [vmem:[%s12484_s4 + $0x58] sm:$0xff] }
 0x2a2   : > { %12669 = vst [vmem:[#allocation20_spill] sm:$0xff] %v8886_v38 }
 0x2a3   : > { %6436 = vmatmul.msk.f32.gmra.mxu1 %vm1406_vm1, %v8546_v54  ;;  %v2134_v49 = vadd.f32 %v8727_v0, %v1841_v20  ;;  %v8863_v54 = vld [vmem:[%s12484_s4 + $0x50] sm:$0xff]  ;;  %v8892_v20 = vpop.permute.xlu0 %2045  ;;  %v2174_v12 = vmax.f32 %v2124_v48, 0.0  ;;  %v12680_v48 = vld [vmem:[#allocation8_spill] sm:$0xff]  ;;  %12703 = vst [vmem:[#allocation36_spill] sm:$0xff] %v9066_v41 }
 0x2a4   : > { %12664 = vst [vmem:[#allocation19_spill] sm:$0xff] %v8863_v54  ;;  %v2120_v26 = vadd.f32 %v8892_v20, %v1820_v16 }
 0x2a5   : > { %v2184_v17 = vmax.f32 %v2134_v49, 0.0  ;;  %12671 = vst [vmem:[#allocation13_spill] sm:$0xff] %v8892_v20  ;;  %v12672_v49 = vld [vmem:[#allocation4_spill] sm:$0xff] }
 0x2a6   : > { %2397 = vmatmul.f32.gmra.mxu0 %v8851_v51 }
 0x2a8   : > { %v1578_v58 = vpop.f32.mrf.mxu1 }
 0x2a9   : > { %v1844_v37 = vadd.f32 %v1843_v36, %v1578_v58  ;;  %v2178_v36 = vmax.f32 %v2128_v46, 0.0  ;;  %v2122_v58 = vadd.f32 %v8886_v38, %v1823_v44  ;;  %v12676_v46 = vld [vmem:[#allocation6_spill] sm:$0xff]  ;;  %v9049_v38 = vld [vmem:[%s12484_s4 + $0x48] sm:$0xff] }
 0x2aa   : > { %12699 = vst [vmem:[#allocation32_spill] sm:$0xff] %v9049_v38 }
 0x2ab   : > { %v2136_v47 = vadd.f32 %v8707_v35, %v1844_v37  ;;  %6437 = vmatmul.msk.f32.gmra.mxu1 %vm1406_vm1, %v8563_v2  ;;  %v8871_v2 = vpop.f32.mrf.mxu3  ;;  %v2172_v15 = vmax.f32 %v2122_v58, 0.0 }
 0x2ad   : > { %v2186_v39 = vmax.f32 %v2136_v47, 0.0  ;;  %v8905_v47 = vld [vmem:[%s12484_s4 + $0x70] sm:$0xff] }
 0x2ae   : > { %2400 = vmatmul.f32.gmra.mxu0 %v8863_v54  ;;  %12673 = vst [vmem:[#allocation4_spill] sm:$0xff] %v8905_v47 }
 0x2af   : > { %2501 = vmatpush.msra.mxu1 %v2186_v39  ;;  %v2170_v39 = vmax.f32 %v2120_v26, 0.0  ;;  %v12682_v26 = vld [vmem:[#allocation9_spill] sm:$0xff] }
 0x2b0   : > { %v8869_v4 = vpop.f32.mrf.mxu1 }
 0x2b1   : > { %2502 = vmatpush.msra.mxu1 %v2184_v17  ;;  %v12674_v17 = vld [vmem:[#allocation5_spill] sm:$0xff] }
 0x2b2   : > { %12675 = vst [vmem:[#allocation5_spill] sm:$0xff] %v8917_v21 }
 0x2b3   : > { %6438 = vmatmul.msk.f32.gmra.mxu1 %vm1406_vm1, %v12667_v6  ;;  %v8897_v37 = vpop.f32.mrf.mxu3 }
 0x2b4   : > { %2503 = vmatpush.msra.mxu1 %v2182_v45  ;;  %v8929_v45 = vld [vmem:[%s12484_s4 + $0x90] sm:$0xff] }
 0x2b5   : > { %12677 = vst [vmem:[#allocation6_spill] sm:$0xff] %v8929_v45 }
 0x2b6   : > { %2504 = vmatpush.msra.mxu1 %v2180_v57  ;;  %2403 = vmatmul.f32.gmra.mxu0 %v8881_v22  ;;  %v8941_v57 = vld [vmem:[%s12484_s4 + $0xa0] sm:$0xff] }
 0x2b7   : > { %12679 = vst [vmem:[#allocation7_spill] sm:$0xff] %v8941_v57 }
 0x2b8   : > { %2505 = vmatpush.msra.mxu1 %v2178_v36  ;;  %v8895_v23 = vpop.f32.mrf.mxu1  ;;  %v8953_v36 = vld [vmem:[%s12484_s4 + $0xb0] sm:$0xff] }
 0x2b9   : > { %12681 = vst [vmem:[#allocation8_spill] sm:$0xff] %v8953_v36 }
 0x2ba   : > { %2506 = vmatpush.msra.mxu1 %v2176_v61 }
 0x2bb   : > { %6439 = vmatmul.msk.f32.gmra.mxu1 %vm1406_vm1, %v12672_v49  ;;  %v8910_v55 = vpop.f32.mrf.mxu3 }
 0x2bc   : > { %2507 = vmatpush.msra.mxu1 %v2174_v12  ;;  %v8965_v12 = vld [vmem:[%s12484_s4 + $0xc0] sm:$0xff] }
 0x2bd   : > { %12683 = vst [vmem:[#allocation9_spill] sm:$0xff] %v8965_v12 }
 0x2be   : > { %2508 = vmatpush.msra.mxu1 %v2172_v15  ;;  %2406 = vmatmul.f32.gmra.mxu0 %v8905_v47  ;;  %v12684_v15 = vld [vmem:[#allocation10_spill] sm:$0xff] }
 0x2c0   : > { %2509 = vmatpush.msra.mxu1 %v2170_v39  ;;  %v8908_v5 = vpop.f32.mrf.mxu1  ;;  %v8975_v39 = vld [vmem:[%s12484_s4 + $0xd0] sm:$0xff] }
 0x2c1   : > { %12685 = vst [vmem:[#allocation10_spill] sm:$0xff] %v8975_v39 }
 0x2c3   : > { %6440 = vmatmul.msk.f32.gmra.mxu1 %vm1406_vm1, %v12674_v17  ;;  %v8922_v13 = vpop.f32.mrf.mxu3 }
 0x2c6   : > { %2409 = vmatmul.f32.gmra.mxu0 %v8917_v21  ;;  %v9019_v21 = vld [vmem:[%s12484_s4 + $0x28] sm:$0xff] }
 0x2c7   : > { %12693 = vst [vmem:[#allocation26_spill] sm:$0xff] %v9019_v21 }
 0x2c8   : > { %v8920_v28 = vpop.f32.mrf.mxu1 }
 0x2cb   : > { %6441 = vmatmul.msk.f32.gmra.mxu1 %vm1406_vm1, %v12676_v46  ;;  %v8934_v44 = vpop.f32.mrf.mxu3 }
 0x2ce   : > { %2412 = vmatmul.f32.gmra.mxu0 %v8929_v45  ;;  %v9013_v45 = vld [vmem:[%s12484_s4 + $0x100] sm:$0xff] }
 0x2cf   : > { %12692 = vst [vmem:[#allocation25_spill] sm:$0xff] %v9013_v45 }
 0x2d0   : > { %v8932_v6 = vpop.f32.mrf.mxu1 }
 0x2d3   : > { %6442 = vmatmul.msk.f32.gmra.mxu1 %vm1406_vm1, %v12678_v43  ;;  %v8946_v16 = vpop.f32.mrf.mxu3  ;;  %v12686_v43 = vld [vmem:[#allocation11_spill] sm:$0xff] }
 0x2d6   : > { %2415 = vmatmul.f32.gmra.mxu0 %v8941_v57 }
 0x2d8   : > { %v8944_v33 = vpop.f32.mrf.mxu1 }
 0x2db   : > { %6443 = vmatmul.msk.f32.gmra.mxu1 %vm1406_vm1, %v12680_v48  ;;  %v8958_v61 = vpop.f32.mrf.mxu3  ;;  %v8985_v48 = vld [vmem:[%s12484_s4 + $0xe0] sm:$0xff] }
 0x2dc   : > { %12687 = vst [vmem:[#allocation11_spill] sm:$0xff] %v8985_v48 }
 0x2de   : > { %2418 = vmatmul.f32.gmra.mxu0 %v8953_v36 }
 0x2e0   : > { %v8956_v58 = vpop.f32.mrf.mxu1 }
 0x2e3   : > { %6444 = vmatmul.msk.f32.gmra.mxu1 %vm1406_vm1, %v12682_v26  ;;  %v1896_v17 = vpop.f32.mrf.mxu3 }
 0x2e6   : > { %2421 = vmatmul.f32.gmra.mxu0 %v8965_v12  ;;  %v8991_v12 = vld [vmem:[%s12484_s4 + $0x8] sm:$0xff] }
 0x2e7   : > { %12688 = vst [vmem:[#allocation21_spill] sm:$0xff] %v8991_v12 }
 0x2e8   : > { %v8968_v49 = vpop.f32.mrf.mxu1 }
 0x2eb   : > { %6445 = vmatmul.msk.f32.gmra.mxu1 %vm1406_vm1, %v12684_v15  ;;  %v1899_v26 = vpop.f32.mrf.mxu3 }
 0x2ee   : > { %2424 = vmatmul.f32.gmra.mxu0 %v8975_v39 }
 0x2f0   : > { %v8978_v46 = vpop.f32.mrf.mxu1 }
 0x2f3   : > { %6446 = vmatmul.msk.f32.gmra.mxu1 %vm1406_vm1, %v12686_v43  ;;  %v8998_v43 = vld [vmem:[%s12484_s4 + $0xf0] sm:$0xff]  ;;  %v1902_v36 = vpop.f32.mrf.mxu3 }
 0x2f4   : > { %12689 = vst [vmem:[#allocation22_spill] sm:$0xff] %v8998_v43 }
 0x2f6   : > { %2427 = vmatmul.f32.gmra.mxu0 %v8985_v48  ;;  %v9004_v48 = vld [vmem:[%s12484_s4 + $0x18] sm:$0xff] }
 0x2f7   : > { %12690 = vst [vmem:[#allocation23_spill] sm:$0xff] %v9004_v48 }
 0x2f8   : > { %v1625_v15 = vpop.f32.mrf.mxu1 }
 0x2fb   : > { %6499 = vmatmul.msk.f32.vlgmr.msra.gmra.mxu1 %vm2260_vm2, %v8991_v12  ;;  %v1905_v12 = vpop.f32.mrf.mxu3 }
 0x2fe   : > { %2430 = vmatmul.f32.gmra.mxu0 %v8998_v43 }
 0x300   : > { %v1628_v39 = vpop.f32.mrf.mxu1 }
 0x303   : > { %v9006_v57 = vpop.f32.mrf.mxu0  ;;  %6500 = vmatmul.msk.f32.gmra.mxu1 %vm2260_vm2, %v9004_v48  ;;  %v9034_v48 = vld [vmem:[%s12484_s4 + $0x38] sm:$0xff] }
 0x304   : > { %12691 = vst [vmem:[#allocation24_spill] sm:$0xff] %v9006_v57  ;;  %v9028_v57 = vld [vmem:[%s12484_s4 + $0x110] sm:$0xff] }
 0x305   : > { %12695 = vst [vmem:[#allocation28_spill] sm:$0xff] %v9028_v57 }
 0x306   : > { %2433 = vmatmul.f32.gmra.mxu0 %v9013_v45  ;;  %12696 = vst [vmem:[#allocation29_spill] sm:$0xff] %v9034_v48 }
 0x308   : > { %v1631_v43 = vpop.f32.mrf.mxu1 }
 0x30b   : > { %v9021_v47 = vpop.f32.mrf.mxu0  ;;  %6501 = vmatmul.msk.f32.gmra.mxu1 %vm2260_vm2, %v9019_v21  ;;  %v1908_v21 = vpop.f32.mrf.mxu3 }
 0x30c   : > { %12694 = vst [vmem:[#allocation27_spill] sm:$0xff] %v9021_v47  ;;  %v9043_v47 = vld [vmem:[%s12484_s4 + $0x120] sm:$0xff] }
 0x30d   : > { %12698 = vst [vmem:[#allocation31_spill] sm:$0xff] %v9043_v47 }
 0x30e   : > { %2436 = vmatmul.f32.gmra.mxu0 %v9028_v57 }
 0x310   : > { %v1634_v45 = vpop.f32.mrf.mxu1 }
 0x311   : > { %v1900_v54 = vadd.f32 %v1899_v26, %v1634_v45 }
 0x313   : > { %v9036_v20 = vpop.f32.mrf.mxu0  ;;  %6502 = vmatmul.msk.f32.gmra.mxu1 %vm2260_vm2, %v9034_v48  ;;  %v9061_v48 = vpop.f32.mrf.mxu3 }
 0x314   : > { %12697 = vst [vmem:[#allocation30_spill] sm:$0xff] %v9036_v20  ;;  %v9058_v20 = vld [vmem:[%s12484_s4 + $0x130] sm:$0xff] }
 0x315   : > { %12701 = vst [vmem:[#allocation34_spill] sm:$0xff] %v9058_v20 }
 0x316   : > { %2439 = vmatmul.f32.gmra.mxu0 %v9043_v47  ;;  %12702 = vst [vmem:[#allocation35_spill] sm:$0xff] %v9061_v48  ;;  %v9081_v48 = vld [vmem:[%s12484_s4 + $0x68] sm:$0xff] }
 0x318   : > { %v1637_v57 = vpop.f32.mrf.mxu1 }
 0x31b   : > { %v9051_v22 = vpop.f32.mrf.mxu0  ;;  %6503 = vmatmul.msk.f32.gmra.mxu1 %vm2260_vm2, %v9049_v38  ;;  %v9083_v40 = vpop.f32.mrf.mxu3 }
 0x31c   : > { %12700 = vst [vmem:[#allocation33_spill] sm:$0xff] %v9051_v22  ;;  %v9075_v22 = vld [vmem:[%s12484_s4 + $0x140] sm:$0xff] }
 0x31d   : > { %12705 = vst [vmem:[#allocation38_spill] sm:$0xff] %v9075_v22 }
 0x31e   : > { %2442 = vmatmul.f32.gmra.mxu0 %v9058_v20 }
 0x320   : > { %v1640_v47 = vpop.f32.mrf.mxu1 }
 0x321   : > { %v1906_v20 = vadd.f32 %v1905_v12, %v1640_v47  ;;  %v9094_v47 = vld [vmem:[%s12484_s4 + $0x150] sm:$0xff]  ;;  %v1897_v12 = vadd.f32 %v1896_v17, %v1631_v43  ;;  %v9135_v17 = vld [vmem:[%s12484_s4 + $0x88] sm:$0xff] }
 0x323   : > { %v9068_v53 = vpop.f32.mrf.mxu0  ;;  %6504 = vmatmul.msk.f32.gmra.mxu1 %vm2260_vm2, %v9066_v41  ;;  %v2117_v41 = vadd.f32 %v8701_v1, %v1906_v20  ;;  %v1894_v1 = vadd.f32 %v8958_v61, %v1628_v39  ;;  %v9105_v20 = vld [vmem:[%s12484_s4 + $0x78] sm:$0xff] }
 0x324   : > { %12704 = vst [vmem:[#allocation37_spill] sm:$0xff] %v9068_v53  ;;  %v1903_v53 = vadd.f32 %v1902_v36, %v1637_v57 }
 0x326   : > { %2445 = vmatmul.f32.gmra.mxu0 %v9075_v22  ;;  %v2115_v22 = vadd.f32 %v8697_v14, %v1903_v53  ;;  %v2111_v14 = vadd.f32 %v8691_v10, %v1897_v12  ;;  %v9121_v10 = vld [vmem:[%s12484_s4 + $0x160] sm:$0xff]  ;;  %v9166_v12 = vld [vmem:[%s12484_s4 + $0x98] sm:$0xff] }
 0x328   : > { %v1643_v38 = vpop.f32.mrf.mxu1  ;;  %v2165_v53 = vmax.f32 %v2115_v22, 0.0  ;;  %v1885_v22 = vadd.f32 %v8922_v13, %v8968_v49 }
 0x329   : > { %v1909_v62 = vadd.f32 %v1908_v21, %v1643_v38  ;;  %v1891_v21 = vadd.f32 %v8946_v16, %v1625_v15 }
 0x32a   : > { %v2103_v13 = vadd.f32 %v8717_v11, %v1885_v22  ;;  %v9225_v22 = vld [vmem:[%s12484_s4 + $0xc8] sm:$0xff] }
 0x32b   : > { %v2119_v30 = vadd.f32 %v8693_v60, %v1909_v62  ;;  %v9087_v35 = vpop.f32.mrf.mxu0  ;;  %6505 = vmatmul.msk.f32.gmra.mxu1 %vm2260_vm2, %v9081_v48  ;;  %v2113_v60 = vadd.f32 %v8705_v24, %v1900_v54  ;;  %v2167_v62 = vmax.f32 %v2117_v41, 0.0  ;;  %v1888_v24 = vadd.f32 %v8934_v44, %v8978_v46 }
 0x32c   : > { %v2109_v41 = vadd.f32 %v8699_v52, %v1894_v1  ;;  %v2107_v16 = vadd.f32 %v8709_v63, %v1891_v21  ;;  %v2161_v44 = vmax.f32 %v2111_v14, 0.0  ;;  %v1882_v52 = vadd.f32 %v8910_v55, %v8956_v58 }
 0x32d   : > { %v2169_v57 = vmax.f32 %v2119_v30, 0.0  ;;  %v9109_v30 = vpop.f32.mrf.mxu3  ;;  %v2163_v45 = vmax.f32 %v2113_v60, 0.0  ;;  %v2105_v36 = vadd.f32 %v8713_v56, %v1888_v24  ;;  %v1879_v63 = vadd.f32 %v8897_v37, %v8944_v33  ;;  %v9150_v37 = vld [vmem:[%s12484_s4 + $0x170] sm:$0xff]  ;;  %v9193_v60 = vld [vmem:[%s12484_s4 + $0xa8] sm:$0xff] }
 0x32e   : > { %2448 = vmatmul.f32.gmra.mxu0 %v9094_v47  ;;  %v2159_v61 = vmax.f32 %v2109_v41, 0.0  ;;  %v2157_v49 = vmax.f32 %v2107_v16, 0.0  ;;  %v1876_v55 = vadd.f32 %v8871_v2, %v8932_v6  ;;  %v2101_v56 = vadd.f32 %v8715_v3, %v1882_v52  ;;  %v9234_v52 = vld [vmem:[%s12484_s4 + $0x1b0] sm:$0xff] }
 0x32f   : > { %2619 = vmatpush.msra.mxu2 %v2169_v57  ;;  %v2155_v46 = vmax.f32 %v2105_v36, 0.0  ;;  %v1873_v33 = vadd.f32 %v8854_v42, %v8920_v28  ;;  %v2099_v2 = vadd.f32 %v8742_v32, %v1879_v63  ;;  %v2153_v3 = vmax.f32 %v2103_v13, 0.0  ;;  %v9241_v36 = vld [vmem:[%s12484_s4 + $0xd8] sm:$0xff]  ;;  %v9250_v63 = vld [vmem:[%s12484_s4 + $0x1c0] sm:$0xff] }
 0x330   : > { %v9100_v38 = vpop.f32.mrf.mxu1  ;;  %v1870_v6 = vadd.f32 %v8844_v59, %v8908_v5  ;;  %v2097_v26 = vadd.f32 %v8746_v25, %v1876_v55  ;;  %v2151_v15 = vmax.f32 %v2101_v56, 0.0  ;;  %v1867_v32 = vadd.f32 %v8834_v27, %v8895_v23  ;;  %v9181_v27 = vld [vmem:[%s12484_s4 + $0x180] sm:$0xff]  ;;  %v9260_v55 = vld [vmem:[%s12484_s4 + $0xe8] sm:$0xff]  ;;  %v2911_v56 = vld [vmem:[%s12485_s5 + $0x150] sm:$0xff] }
 0x331   : > { %2620 = vmatpush.msra.mxu2 %v2167_v62  ;;  %v2095_v42 = vadd.f32 %v8744_v34, %v1873_v33  ;;  %v2149_v28 = vmax.f32 %v2099_v2, 0.0  ;;  %v1864_v59 = vadd.f32 %v8822_v31, %v8869_v4  ;;  %v2908_v33 = vld [vmem:[%s12485_s5 + $0x138] sm:$0xff]  ;;  %v2905_v2 = vld [vmem:[%s12485_s5 + $0x120] sm:$0xff] }
 0x332   : > { %v2093_v25 = vadd.f32 %v8788_v18, %v1870_v6  ;;  %v2147_v57 = vmax.f32 %v2097_v26, 0.0  ;;  %v2091_v34 = vadd.f32 %v8795_v9, %v1867_v32  ;;  %v2902_v6 = vld [vmem:[%s12485_s5 + $0x108] sm:$0xff]  ;;  %v9288_v32 = vld [vmem:[%s12484_s4 + $0xf8] sm:$0xff] }
 0x333   : > { %v9114_v54 = vpop.f32.mrf.mxu0  ;;  %6506 = vmatmul.msk.f32.gmra.mxu1 %vm2260_vm2, %v9105_v20  ;;  %2621 = vmatpush.msra.mxu2 %v2165_v53  ;;  %v2145_v23 = vmax.f32 %v2095_v42, 0.0  ;;  %v2089_v18 = vadd.f32 %v8802_v29, %v1864_v59  ;;  %v9202_v29 = vld [vmem:[%s12484_s4 + $0x190] sm:$0xff]  ;;  %v9209_v53 = vld [vmem:[%s12484_s4 + $0xb8] sm:$0xff] }
 0x334   : > { %v2143_v4 = vmax.f32 %v2093_v25, 0.0  ;;  %v2141_v62 = vmax.f32 %v2091_v34, 0.0 }
 0x335   : > { %2622 = vmatpush.msra.mxu2 %v2163_v45  ;;  %v9152_v11 = vpop.f32.mrf.mxu3  ;;  %v2139_v21 = vmax.f32 %v2089_v18, 0.0  ;;  %v9218_v45 = vld [vmem:[%s12484_s4 + $0x1a0] sm:$0xff] }
 0x336   : > { %2451 = vmatmul.f32.gmra.mxu0 %v9121_v10  ;;  %v9302_v18 = vld [vmem:[%s12484_s4 + $0x1e0] sm:$0xff] }
 0x337   : > { %2623 = vmatpush.msra.mxu2 %v2161_v44 }
 0x338   : > { %v9130_v39 = vpop.f32.mrf.mxu1 }
 0x339   : > { %2624 = vmatpush.msra.mxu2 %v2159_v61 }
 0x33b   : > { %v9143_v58 = vpop.f32.mrf.mxu0  ;;  %6507 = vmatmul.msk.f32.gmra.mxu1 %vm2260_vm2, %v9135_v17  ;;  %2625 = vmatpush.msra.mxu2 %v2157_v49 }
 0x33d   : > { %2626 = vmatpush.msra.mxu2 %v2155_v46  ;;  %v9185_v31 = vpop.f32.mrf.mxu3 }
 0x33e   : > { %2454 = vmatmul.f32.gmra.mxu0 %v9150_v37 }
 0x33f   : > { %2627 = vmatpush.msra.mxu2 %v2153_v3 }
 0x340   : > { %v9161_v43 = vpop.f32.mrf.mxu1 }
 0x341   : > { %2628 = vmatpush.msra.mxu2 %v2151_v15 }
 0x343   : > { %v9174_v5 = vpop.f32.mrf.mxu0  ;;  %6508 = vmatmul.msk.f32.gmra.mxu1 %vm2260_vm2, %v9166_v12  ;;  %2629 = vmatpush.msra.mxu2 %v2149_v28 }
 0x345   : > { %2630 = vmatpush.msra.mxu2 %v2147_v57  ;;  %v1926_v24 = vpop.f32.mrf.mxu3  ;;  %v12706_v57 = vld [vmem:[#allocation12_spill] sm:$0xff] }
 0x346   : > { %2457 = vmatmul.f32.gmra.mxu0 %v9181_v27 }
 0x347   : > { %2631 = vmatpush.msra.mxu2 %v2145_v23 }
 0x348   : > { %v9188_v1 = vpop.f32.mrf.mxu1 }
 0x349   : > { %2632 = vmatpush.msra.mxu2 %v2143_v4  ;;  %v2896_v4 = vld [vmem:[%s12485_s5 + $0xd8] sm:$0xff] }
 0x34b   : > { %v9195_v9 = vpop.f32.mrf.mxu0  ;;  %6509 = vmatmul.msk.f32.gmra.mxu1 %vm2260_vm2, %v9193_v60  ;;  %2633 = vmatpush.msra.mxu2 %v2141_v62 }
 0x34d   : > { %2634 = vmatpush.msra.mxu2 %v2139_v21  ;;  %v1929_v16 = vpop.f32.mrf.mxu3  ;;  %v12707_v21 = vld [vmem:[#allocation15_spill] sm:$0xff] }
 0x34e   : > { %2460 = vmatmul.f32.gmra.mxu0 %v9202_v29  ;;  %2635 = vmatmul.f32.vlgmr.msra.gmra.mxu2 %v8811_v50 }
 0x350   : > { %v1658_v14 = vpop.f32.mrf.mxu1 }
 0x351   : > { %v1924_v62 = vadd.f32 %v9185_v31, %v1658_v14  ;;  %v9325_v14 = vld [vmem:[%s12484_s4 + $0x108] sm:$0xff] }
 0x353   : > { %v9211_v41 = vpop.f32.mrf.mxu0  ;;  %6510 = vmatmul.msk.f32.gmra.mxu1 %vm2260_vm2, %v9209_v53 }
 0x355   : > { %v1932_v13 = vpop.f32.mrf.mxu3 }
 0x356   : > { %2463 = vmatmul.f32.gmra.mxu0 %v9218_v45  ;;  %2638 = vmatmul.f32.gmra.mxu2 %v8819_v7 }
 0x358   : > { %v1661_v50 = vpop.f32.mrf.mxu1 }
 0x359   : > { %v1927_v59 = vadd.f32 %v1926_v24, %v1661_v50 }
 0x35b   : > { %v9227_v44 = vpop.f32.mrf.mxu0  ;;  %6511 = vmatmul.msk.f32.gmra.mxu1 %vm2260_vm2, %v9225_v22 }
 0x35d   : > { %v1935_v3 = vpop.f32.mrf.mxu3 }
 0x35e   : > { %2466 = vmatmul.f32.gmra.mxu0 %v9234_v52  ;;  %2641 = vmatmul.f32.gmra.mxu2 %v8831_v19  ;;  %v2914_v19 = vld [vmem:[%s12485_s5 + $0x168] sm:$0xff] }
 0x35f   : > { %3052 = vmatpush.msrb.mxu0 %v2914_v19  ;;  %v12709_v19 = vld [vmem:[#allocation14_spill] sm:$0xff] }
 0x360   : > { %v1664_v7 = vpop.f32.mrf.mxu1 }
 0x361   : > { %3053 = vmatpush.msrb.mxu0 %v2911_v56  ;;  %v1930_v42 = vadd.f32 %v1929_v16, %v1664_v7  ;;  %v12708_v16 = vld [vmem:[#allocation19_spill] sm:$0xff]  ;;  %v2890_v7 = vld [vmem:[%s12485_s5 + $0xa8] sm:$0xff] }
 0x363   : > { %v9243_v61 = vpop.f32.mrf.mxu0  ;;  %6512 = vmatmul.msk.f32.gmra.mxu1 %vm2260_vm2, %v9241_v36  ;;  %3054 = vmatpush.msrb.mxu0 %v2908_v33  ;;  %v2133_v24 = vadd.f32 %v12707_v21, %v1930_v42  ;;  %v1918_v33 = vadd.f32 %v9109_v30, %v9161_v43  ;;  %v9343_v43 = vld [vmem:[%s12484_s4 + $0x1f0] sm:$0xff] }
 0x365   : > { %3055 = vmatpush.msrb.mxu0 %v2905_v2  ;;  %v12710_v2 = vld [vmem:[#allocation16_spill] sm:$0xff] }
 0x366   : > { %2469 = vmatmul.f32.gmra.mxu0 %v9250_v63  ;;  %2644 = vmatmul.f32.gmra.mxu2 %v8841_v8  ;;  %v9272_v8 = vld [vmem:[%s12484_s4 + $0x1d0] sm:$0xff] }
 0x367   : > { %3056 = vmatpush.msrb.mxu0 %v2902_v6  ;;  %v2183_v6 = vmax.f32 %v2133_v24, 0.0  ;;  %v12716_v24 = vld [vmem:[#allocation13_spill] sm:$0xff] }
 0x368   : > { %v1667_v49 = vpop.f32.mrf.mxu1 }
 0x369   : > { %v1933_v26 = vadd.f32 %v1932_v13, %v1667_v49  ;;  %v1921_v13 = vadd.f32 %v9152_v11, %v9188_v1  ;;  %v2131_v49 = vadd.f32 %v12709_v19, %v1927_v59  ;;  %v2887_v11 = vld [vmem:[%s12485_s5 + $0x90] sm:$0xff]  ;;  %v1915_v1 = vadd.f32 %v9083_v40, %v9130_v39  ;;  %v12712_v40 = vld [vmem:[#allocation35_spill] sm:$0xff] }
 0x36a   : > { %v1912_v39 = vadd.f32 %v12712_v40, %v9100_v38  ;;  %v9362_v38 = vld [vmem:[%s12484_s4 + $0x118] sm:$0xff]  ;;  %v12719_v40 = vld [vmem:[#allocation5_spill] sm:$0xff] }
 0x36b   : > { %v9265_v46 = vpop.f32.mrf.mxu0  ;;  %6513 = vmatmul.msk.f32.gmra.mxu1 %vm2260_vm2, %v9260_v55  ;;  %v2135_v25 = vadd.f32 %v8727_v0, %v1933_v26  ;;  %v2893_v0 = vld [vmem:[%s12485_s5 + $0xc0] sm:$0xff]  ;;  %v12711_v26 = vld [vmem:[#allocation17_spill] sm:$0xff]  ;;  %v2181_v30 = vmax.f32 %v2131_v49, 0.0 }
 0x36c   : > { %v9375_v49 = vld [vmem:[%s12484_s4 + $0x200] sm:$0xff] }
 0x36d   : > { %v2185_v56 = vmax.f32 %v2135_v25, 0.0 }
 0x36e   : > { %2472 = vmatmul.f32.gmra.mxu0 %v9272_v8  ;;  %2647 = vmatmul.f32.gmra.mxu2 %v8851_v51  ;;  %v2899_v51 = vld [vmem:[%s12485_s5 + $0xf0] sm:$0xff] }
 0x36f   : > { %3057 = vmatpush.msrb.mxu0 %v2899_v51  ;;  %v12713_v51 = vld [vmem:[#allocation18_spill] sm:$0xff] }
 0x370   : > { %v1670_v15 = vpop.f32.mrf.mxu1  ;;  %v2125_v59 = vadd.f32 %v12713_v51, %v1918_v33  ;;  %v2941_v33 = vld [vmem:[%s12485_s5 + $0x240] sm:$0xff] }
 0x371   : > { %v1936_v28 = vadd.f32 %v1935_v3, %v1670_v15  ;;  %3058 = vmatpush.msrb.mxu0 %v2896_v4  ;;  %v2129_v3 = vadd.f32 %v12710_v2, %v1924_v62  ;;  %v2127_v15 = vadd.f32 %v12711_v26, %v1921_v13  ;;  %v12715_v4 = vld [vmem:[#allocation20_spill] sm:$0xff]  ;;  %3184 = vmatpush.msrb.mxu1 %v2941_v33  ;;  %v12720_v51 = vld [vmem:[#allocation23_spill] sm:$0xff] }
 0x372   : > { %v9393_v26 = vld [vmem:[%s12484_s4 + $0x128] sm:$0xff] }
 0x373   : > { %v2137_v34 = vadd.f32 %v12706_v57, %v1936_v28  ;;  %v9295_v23 = vpop.f32.mrf.mxu0  ;;  %6514 = vmatmul.msk.f32.gmra.mxu1 %vm2260_vm2, %v9288_v32  ;;  %3059 = vmatpush.msrb.mxu0 %v2893_v0  ;;  %v2884_v28 = vld [vmem:[%s12485_s5 + $0x78] sm:$0xff]  ;;  %v2179_v25 = vmax.f32 %v2129_v3, 0.0  ;;  %v12714_v57 = vld [vmem:[#allocation3_spill] sm:$0xff]  ;;  %v2123_v0 = vadd.f32 %v12715_v4, %v1915_v1  ;;  %v2177_v62 = vmax.f32 %v2127_v15, 0.0  ;;  %v12717_v3 = vld [vmem:[#allocation4_spill] sm:$0xff] }
 0x374   : > { %v12718_v1 = vld [vmem:[#allocation21_spill] sm:$0xff]  ;;  %v2869_v15 = vld [vmem:[%s12485_s5] sm:$0xff] }
 0x375   : > { %v2187_v50 = vmax.f32 %v2137_v34, 0.0  ;;  %3060 = vmatpush.msrb.mxu0 %v2890_v7  ;;  %v2881_v34 = vld [vmem:[%s12485_s5 + $0x60] sm:$0xff]  ;;  %v2878_v7 = vld [vmem:[%s12485_s5 + $0x48] sm:$0xff]  ;;  %v2173_v19 = vmax.f32 %v2123_v0, 0.0  ;;  %v12722_v0 = vld [vmem:[#allocation26_spill] sm:$0xff] }
 0x376   : > { %2475 = vmatmul.f32.gmra.mxu0 %v9302_v18  ;;  %2650 = vmatmul.f32.gmra.mxu2 %v12708_v16  ;;  %v2175_v16 = vmax.f32 %v2125_v59, 0.0  ;;  %v9414_v59 = vld [vmem:[%s12484_s4 + $0x138] sm:$0xff] }
 0x377   : > { %2751 = vmatpush.msra.mxu3 %v2187_v50  ;;  %3061 = vmatpush.msrb.mxu0 %v2887_v11  ;;  %v2121_v50 = vadd.f32 %v12716_v24, %v1912_v39 }
 0x378   : > { %v9320_v31 = vpop.f32.mrf.mxu1 }
 0x379   : > { %2752 = vmatpush.msra.mxu3 %v2185_v56  ;;  %3062 = vmatpush.msrb.mxu0 %v2884_v28  ;;  %v2875_v56 = vld [vmem:[%s12485_s5 + $0x30] sm:$0xff]  ;;  %v2171_v2 = vmax.f32 %v2121_v50, 0.0 }
 0x37a   : > { %v9405_v28 = vld [vmem:[%s12484_s4 + $0x210] sm:$0xff] }
 0x37b   : > { %v9336_v42 = vpop.f32.mrf.mxu0  ;;  %6515 = vmatmul.msk.f32.gmra.mxu1 %vm2260_vm2, %v9325_v14  ;;  %2753 = vmatpush.msra.mxu3 %v2183_v6  ;;  %v2872_v6 = vld [vmem:[%s12485_s5 + $0x18] sm:$0xff]  ;;  %v9441_v50 = vld [vmem:[%s12484_s4 + $0x230] sm:$0xff] }
 0x37c   : > { %3063 = vmatpush.msrb.mxu0 %v2881_v34  ;;  %v12721_v34 = vld [vmem:[#allocation6_spill] sm:$0xff]  ;;  %12723 = vst [vmem:[#allocation12_spill] sm:$0xff] %v9441_v50 }
 0x37d   : > { %2754 = vmatpush.msra.mxu3 %v2181_v30 }
 0x37e   : > { %2478 = vmatmul.f32.gmra.mxu0 %v9343_v43  ;;  %2653 = vmatmul.f32.gmra.mxu2 %v12714_v57  ;;  %v9423_v57 = vld [vmem:[%s12484_s4 + $0x220] sm:$0xff] }
 0x37f   : > { %2755 = vmatpush.msra.mxu3 %v2179_v25  ;;  %3064 = vmatpush.msrb.mxu0 %v2878_v7 }
 0x380   : > { %v9357_v21 = vpop.f32.mrf.mxu1 }
 0x381   : > { %2756 = vmatpush.msra.mxu3 %v2177_v62  ;;  %3065 = vmatpush.msrb.mxu0 %v2875_v56  ;;  %v9432_v62 = vld [vmem:[%s12484_s4 + $0x148] sm:$0xff]  ;;  %v9450_v56 = vld [vmem:[%s12484_s4 + $0x158] sm:$0xff] }
 0x383   : > { %v9368_v13 = vpop.f32.mrf.mxu0  ;;  %6516 = vmatmul.msk.f32.gmra.mxu1 %vm2260_vm2, %v9362_v38  ;;  %2757 = vmatpush.msra.mxu3 %v2175_v16  ;;  %v12724_v16 = vld [vmem:[#allocation7_spill] sm:$0xff] }
 0x384   : > { %3066 = vmatpush.msrb.mxu0 %v2872_v6 }
 0x385   : > { %2758 = vmatpush.msra.mxu3 %v2173_v19  ;;  %v12725_v19 = vld [vmem:[#allocation29_spill] sm:$0xff] }
 0x386   : > { %2481 = vmatmul.f32.gmra.mxu0 %v9375_v49  ;;  %2656 = vmatmul.f32.gmra.mxu2 %v12717_v3  ;;  %v12726_v3 = vld [vmem:[#allocation24_spill] sm:$0xff] }
 0x387   : > { %2759 = vmatpush.msra.mxu3 %v2171_v2  ;;  %3067 = vmatpush.msrb.mxu0 %v2869_v15  ;;  %v2938_v2 = vld [vmem:[%s12485_s5 + $0x228] sm:$0xff]  ;;  %v9461_v6 = vadd.f32 %v9320_v31, %v12726_v3  ;;  %v12730_v31 = vld [vmem:[#allocation27_spill] sm:$0xff]  ;;  %v9487_v3 = vld [vmem:[%s12484_s4 + $0x178] sm:$0xff] }
 0x388   : > { %v2517_v11 = vpop.f32.mrf.mxu1  ;;  %6535 = vmatmul.msk.f32.vlgmr.msra.gmra.mxu3 %vm2260_vm2, %v12718_v1  ;;  %3185 = vmatpush.msrb.mxu1 %v2938_v2  ;;  %v12728_v1 = vld [vmem:[#allocation8_spill] sm:$0xff] }
 0x389   : > { %12727 = vst [vmem:[#allocation15_spill] sm:$0xff] %v9461_v6  ;;  %v12733_v2 = vld [vmem:[#allocation36_spill] sm:$0xff] }
 0x38b   : > { %v9398_v30 = vpop.f32.mrf.mxu0  ;;  %6517 = vmatmul.msk.f32.gmra.mxu1 %vm2260_vm2, %v9393_v26 }
 0x38e   : > { %2484 = vmatmul.f32.gmra.mxu0 %v9405_v28  ;;  %2659 = vmatmul.f32.gmra.mxu2 %v12719_v40  ;;  %v12729_v40 = vld [vmem:[#allocation32_spill] sm:$0xff] }
 0x390   : > { %v2520_v39 = vpop.f32.mrf.mxu1  ;;  %6536 = vmatmul.msk.f32.gmra.mxu3 %vm2260_vm2, %v12720_v51  ;;  %v9470_v51 = vld [vmem:[%s12484_s4 + $0x168] sm:$0xff] }
 0x393   : > { %v9416_v25 = vpop.f32.mrf.mxu0  ;;  %6518 = vmatmul.msk.f32.gmra.mxu1 %vm2260_vm2, %v9414_v59 }
 0x396   : > { %2487 = vmatmul.f32.gmra.mxu0 %v9423_v57  ;;  %2662 = vmatmul.f32.gmra.mxu2 %v12721_v34 }
 0x398   : > { %v2523_v4 = vpop.f32.mrf.mxu1  ;;  %6537 = vmatmul.msk.f32.gmra.mxu3 %vm2260_vm2, %v12722_v0  ;;  %v9478_v0 = vadd.f32 %v9357_v21, %v12730_v31  ;;  %v12734_v21 = vld [vmem:[#allocation30_spill] sm:$0xff] }
 0x399   : > { %v12736_v31 = vld [vmem:[#allocation10_spill] sm:$0xff] }
 0x39a   : > { %12731 = vst [vmem:[#allocation19_spill] sm:$0xff] %v9478_v0 }
 0x39b   : > { %v9434_v24 = vpop.f32.mrf.mxu0  ;;  %6519 = vmatmul.msk.f32.gmra.mxu1 %vm2260_vm2, %v9432_v62 }
 0x39e   : > { %2490 = vmatmul.f32.gmra.mxu0 %v9441_v50  ;;  %2665 = vmatmul.f32.gmra.mxu2 %v12724_v16  ;;  %v12732_v16 = vld [vmem:[#allocation9_spill] sm:$0xff]  ;;  %v9538_v50 = vld [vmem:[%s12484_s4 + $0x1a8] sm:$0xff] }
 0x3a0   : > { %v2526_v7 = vpop.f32.mrf.mxu1  ;;  %6538 = vmatmul.msk.f32.gmra.mxu3 %vm2260_vm2, %v12725_v19 }
 0x3a3   : > { %v9452_v33 = vpop.f32.mrf.mxu0  ;;  %6520 = vmatmul.msk.f32.gmra.mxu1 %vm2260_vm2, %v9450_v56 }
 0x3a6   : > { %2668 = vmatmul.f32.gmra.mxu2 %v12728_v1  ;;  %3068 = vmatmul.f32.vlgmr.msrb.gmra.mxu0 %v9461_v6 }
 0x3a8   : > { %v2529_v15 = vpop.f32.mrf.mxu1  ;;  %6539 = vmatmul.msk.f32.gmra.mxu3 %vm2260_vm2, %v12729_v40  ;;  %v9494_v40 = vadd.f32 %v2517_v11, %v12734_v21  ;;  %v12737_v11 = vld [vmem:[#allocation33_spill] sm:$0xff] }
 0x3a9   : > { %v9510_v21 = vadd.f32 %v2520_v39, %v12737_v11  ;;  %v2935_v39 = vld [vmem:[%s12485_s5 + $0x210] sm:$0xff] }
 0x3aa   : > { %12735 = vst [vmem:[#allocation14_spill] sm:$0xff] %v9494_v40  ;;  %v12741_v11 = vld [vmem:[#allocation37_spill] sm:$0xff]  ;;  %3186 = vmatpush.msrb.mxu1 %v2935_v39 }
 0x3ab   : > { %v9472_v34 = vpop.f32.mrf.mxu0  ;;  %6521 = vmatmul.msk.f32.gmra.mxu1 %vm2260_vm2, %v9470_v51  ;;  %12738 = vst [vmem:[#allocation16_spill] sm:$0xff] %v9510_v21 }
 0x3ae   : > { %2671 = vmatmul.f32.gmra.mxu2 %v12732_v16  ;;  %3071 = vmatmul.f32.gmra.mxu0 %v9478_v0 }
 0x3b0   : > { %v2532_v19 = vpop.f32.mrf.mxu1  ;;  %6540 = vmatmul.msk.f32.gmra.mxu3 %vm2260_vm2, %v12733_v2  ;;  %v9503_v2 = vld [vmem:[%s12484_s4 + $0x188] sm:$0xff] }
 0x3b3   : > { %v9489_v1 = vpop.f32.mrf.mxu0  ;;  %6522 = vmatmul.msk.f32.gmra.mxu1 %vm2260_vm2, %v9487_v3 }
 0x3b6   : > { %2674 = vmatmul.f32.gmra.mxu2 %v12736_v31  ;;  %3074 = vmatmul.f32.gmra.mxu0 %v9494_v40  ;;  %v12739_v31 = vld [vmem:[#allocation11_spill] sm:$0xff] }
 0x3b8   : > { %v2535_v16 = vpop.f32.mrf.mxu1  ;;  %6541 = vmatmul.msk.f32.gmra.mxu3 %vm2260_vm2, %v9081_v48  ;;  %v9519_v48 = vld [vmem:[%s12484_s4 + $0x198] sm:$0xff] }
 0x3bb   : > { %v9505_v0 = vpop.f32.mrf.mxu0  ;;  %6523 = vmatmul.msk.f32.gmra.mxu1 %vm2260_vm2, %v9503_v2 }
 0x3be   : > { %2677 = vmatmul.f32.gmra.mxu2 %v12739_v31  ;;  %3077 = vmatmul.f32.gmra.mxu0 %v9510_v21  ;;  %v9529_v31 = vadd.f32 %v2523_v4, %v12741_v11  ;;  %v12743_v21 = vld [vmem:[#allocation22_spill] sm:$0xff]  ;;  %v9545_v4 = vadd.f32 %v2526_v7, %v9087_v35  ;;  %v9563_v35 = vadd.f32 %v2529_v15, %v9114_v54  ;;  %v12748_v7 = vld [vmem:[#allocation28_spill] sm:$0xff]  ;;  %v12751_v15 = vld [vmem:[#allocation31_spill] sm:$0xff] }
 0x3bf   : > { %v9583_v54 = vadd.f32 %v2532_v19, %v9143_v58  ;;  %v2932_v58 = vld [vmem:[%s12485_s5 + $0x1f8] sm:$0xff]  ;;  %v9606_v19 = vadd.f32 %v2535_v16, %v9174_v5 }
 0x3c0   : > { %v2538_v40 = vpop.f32.mrf.mxu1  ;;  %6542 = vmatmul.msk.f32.gmra.mxu3 %vm2260_vm2, %v9105_v20  ;;  %12742 = vst [vmem:[#allocation35_spill] sm:$0xff] %v9529_v31  ;;  %3187 = vmatpush.msrb.mxu1 %v2932_v58  ;;  %v12757_v16 = vld [vmem:[#allocation38_spill] sm:$0xff] }
 0x3c1   : > { %12744 = vst [vmem:[#allocation18_spill] sm:$0xff] %v9545_v4  ;;  %v9626_v5 = vadd.f32 %v2538_v40, %v9195_v9  ;;  %v9637_v58 = vld [vmem:[%s12484_s4 + $0x1f8] sm:$0xff]  ;;  %v2929_v9 = vld [vmem:[%s12485_s5 + $0x1e0] sm:$0xff] }
 0x3c2   : > { %12747 = vst [vmem:[#allocation20_spill] sm:$0xff] %v9563_v35  ;;  %3188 = vmatpush.msrb.mxu1 %v2929_v9  ;;  %v2923_v9 = vld [vmem:[%s12485_s5 + $0x1b0] sm:$0xff] }
 0x3c3   : > { %v9521_v6 = vpop.f32.mrf.mxu0  ;;  %6524 = vmatmul.msk.f32.gmra.mxu1 %vm2260_vm2, %v9519_v48  ;;  %12750 = vst [vmem:[#allocation4_spill] sm:$0xff] %v9583_v54 }
 0x3c4   : > { %12740 = vst [vmem:[#allocation17_spill] sm:$0xff] %v9521_v6 }
 0x3c5   : > { %12754 = vst [vmem:[#allocation23_spill] sm:$0xff] %v9606_v19 }
 0x3c6   : > { %2680 = vmatmul.f32.gmra.mxu2 %v12743_v21  ;;  %3080 = vmatmul.f32.gmra.mxu0 %v9529_v31  ;;  %v12745_v21 = vld [vmem:[#allocation25_spill] sm:$0xff]  ;;  %12756 = vst [vmem:[#allocation6_spill] sm:$0xff] %v9626_v5 }
 0x3c8   : > { %v2541_v20 = vpop.f32.mrf.mxu1  ;;  %6543 = vmatmul.msk.f32.gmra.mxu3 %vm2260_vm2, %v9135_v17  ;;  %v9554_v17 = vld [vmem:[%s12484_s4 + $0x1b8] sm:$0xff] }
 0x3cb   : > { %v9540_v6 = vpop.f32.mrf.mxu0  ;;  %6525 = vmatmul.msk.f32.gmra.mxu1 %vm2260_vm2, %v9538_v50 }
 0x3ce   : > { %2683 = vmatmul.f32.gmra.mxu2 %v12745_v21  ;;  %3083 = vmatmul.f32.gmra.mxu0 %v9545_v4  ;;  %v9574_v21 = vld [vmem:[%s12484_s4 + $0x1c8] sm:$0xff] }
 0x3d0   : > { %v2544_v39 = vpop.f32.mrf.mxu1  ;;  %6544 = vmatmul.msk.f32.gmra.mxu3 %vm2260_vm2, %v9166_v12 }
 0x3d1   : > { %v9556_v11 = vpop.f32.mrf.mxu2 }
 0x3d3   : > { %v9558_v31 = vpop.f32.mrf.mxu0  ;;  %6526 = vmatmul.msk.f32.gmra.mxu1 %vm2260_vm2, %v9554_v17 }
 0x3d4   : > { %12746 = vst [vmem:[#allocation3_spill] sm:$0xff] %v9558_v31 }
 0x3d6   : > { %2686 = vmatmul.f32.gmra.mxu2 %v12748_v7  ;;  %3086 = vmatmul.f32.gmra.mxu0 %v9563_v35  ;;  %v9594_v7 = vld [vmem:[%s12484_s4 + $0x1d8] sm:$0xff] }
 0x3d7   : > { %12752 = vst [vmem:[#allocation21_spill] sm:$0xff] %v9594_v7 }
 0x3d8   : > { %v9567_v12 = vpop.f32.mrf.mxu1  ;;  %6545 = vmatmul.msk.f32.gmra.mxu3 %vm2260_vm2, %v9193_v60 }
 0x3d9   : > { %v9576_v4 = vpop.f32.mrf.mxu2 }
 0x3db   : > { %v9578_v31 = vpop.f32.mrf.mxu0  ;;  %6527 = vmatmul.msk.f32.gmra.mxu1 %vm2260_vm2, %v9574_v21 }
 0x3dc   : > { %12749 = vst [vmem:[#allocation13_spill] sm:$0xff] %v9578_v31 }
 0x3de   : > { %2689 = vmatmul.f32.gmra.mxu2 %v12751_v15  ;;  %3089 = vmatmul.f32.gmra.mxu0 %v9583_v54  ;;  %v9617_v54 = vld [vmem:[%s12484_s4 + $0x1e8] sm:$0xff] }
 0x3e0   : > { %v9587_v60 = vpop.f32.mrf.mxu1  ;;  %6546 = vmatmul.msk.f32.gmra.mxu3 %vm2260_vm2, %v9209_v53  ;;  %v12755_v53 = vld [vmem:[#allocation34_spill] sm:$0xff] }
 0x3e1   : > { %v9596_v35 = vpop.f32.mrf.mxu2 }
 0x3e3   : > { %v9598_v31 = vpop.f32.mrf.mxu0  ;;  %6528 = vmatmul.msk.f32.gmra.mxu1 %vm2260_vm2, %v9594_v7 }
 0x3e4   : > { %12753 = vst [vmem:[#allocation5_spill] sm:$0xff] %v9598_v31 }
 0x3e6   : > { %2692 = vmatmul.f32.gmra.mxu2 %v12755_v53  ;;  %3092 = vmatmul.f32.gmra.mxu0 %v9606_v19 }
 0x3e8   : > { %v9610_v15 = vpop.f32.mrf.mxu1  ;;  %6547 = vmatmul.msk.f32.gmra.mxu3 %vm2260_vm2, %v9225_v22 }
 0x3e9   : > { %v9619_v31 = vpop.f32.mrf.mxu2 }
 0x3eb   : > { %v9621_v7 = vpop.f32.mrf.mxu0  ;;  %6529 = vmatmul.msk.f32.gmra.mxu1 %vm2260_vm2, %v9617_v54 }
 0x3ee   : > { %2695 = vmatmul.f32.gmra.mxu2 %v12757_v16  ;;  %3095 = vmatmul.f32.gmra.mxu0 %v9626_v5  ;;  %v9649_v16 = vadd.f32 %v2541_v20, %v9211_v41  ;;  %v9664_v41 = vld [vmem:[%s12484_s4 + $0x208] sm:$0xff] }
 0x3f0   : > { %v9630_v22 = vpop.f32.mrf.mxu1  ;;  %6548 = vmatmul.msk.f32.gmra.mxu3 %vm2260_vm2, %v9241_v36  ;;  %12758 = vst [vmem:[#allocation26_spill] sm:$0xff] %v9649_v16  ;;  %v2926_v36 = vld [vmem:[%s12485_s5 + $0x1c8] sm:$0xff] }
 0x3f1   : > { %v9639_v53 = vpop.f32.mrf.mxu2  ;;  %3189 = vmatpush.msrb.mxu1 %v2926_v36  ;;  %v2917_v36 = vld [vmem:[%s12485_s5 + $0x180] sm:$0xff] }
 0x3f3   : > { %v9644_v40 = vpop.f32.mrf.mxu0  ;;  %6530 = vmatmul.msk.f32.gmra.mxu1 %vm2260_vm2, %v9637_v58 }
 0x3f4   : > { %3190 = vmatpush.msrb.mxu1 %v2923_v9 }
 0x3f6   : > { %2698 = vmatmul.f32.gmra.mxu2 %v9094_v47  ;;  %3098 = vmatmul.f32.gmra.mxu0 %v9649_v16  ;;  %v2920_v47 = vld [vmem:[%s12485_s5 + $0x198] sm:$0xff] }
 0x3f7   : > { %3191 = vmatpush.msrb.mxu1 %v2920_v47  ;;  %v9688_v47 = vld [vmem:[%s12484_s4 + $0x218] sm:$0xff] }
 0x3f8   : > { %v2559_v5 = vpop.f32.mrf.mxu1  ;;  %6549 = vmatmul.msk.f32.gmra.mxu3 %vm2260_vm2, %v9260_v55  ;;  %v9679_v55 = vadd.f32 %v2544_v39, %v9227_v44 }
 0x3f9   : > { %v9669_v20 = vpop.f32.mrf.mxu2  ;;  %3192 = vmatpush.msrb.mxu1 %v2917_v36 }
 0x3fa   : > { %12760 = vst [vmem:[#allocation29_spill] sm:$0xff] %v9679_v55 }
 0x3fb   : > { %v9674_v9 = vpop.f32.mrf.mxu0  ;;  %6531 = vmatmul.msk.f32.gmra.mxu1 %vm2260_vm2, %v9664_v41 }
 0x3fc   : > { %12759 = vst [vmem:[#allocation7_spill] sm:$0xff] %v9674_v9 }
 0x3fe   : > { %2701 = vmatmul.f32.gmra.mxu2 %v9121_v10  ;;  %3101 = vmatmul.f32.gmra.mxu0 %v9679_v55  ;;  %v9698_v10 = vadd.f32 %v9567_v12, %v9243_v61  ;;  %v9728_v12 = vld [vmem:[%s12484_s4 + $0x238] sm:$0xff] }
 0x400   : > { %v2562_v16 = vpop.f32.mrf.mxu1  ;;  %6550 = vmatmul.msk.f32.gmra.mxu3 %vm2260_vm2, %v9288_v32  ;;  %12761 = vst [vmem:[#allocation24_spill] sm:$0xff] %v9698_v10  ;;  %v9707_v32 = vld [vmem:[%s12484_s4 + $0x228] sm:$0xff] }
 0x401   : > { %v9690_v19 = vpop.f32.mrf.mxu2 }
 0x403   : > { %v9692_v9 = vpop.f32.mrf.mxu0  ;;  %6532 = vmatmul.msk.f32.gmra.mxu1 %vm2260_vm2, %v9688_v47 }
 0x406   : > { %2704 = vmatmul.f32.gmra.mxu2 %v9150_v37  ;;  %3104 = vmatmul.f32.gmra.mxu0 %v9698_v10  ;;  %v9717_v37 = vadd.f32 %v9587_v60, %v9265_v46  ;;  %v9738_v46 = vadd.f32 %v9610_v15, %v9295_v23 }
 0x408   : > { %v2565_v44 = vpop.f32.mrf.mxu1  ;;  %6551 = vmatmul.msk.f32.gmra.mxu3 %vm2260_vm2, %v9325_v14  ;;  %12763 = vst [vmem:[#allocation32_spill] sm:$0xff] %v9717_v37 }
 0x409   : > { %v9709_v39 = vpop.f32.mrf.mxu2 }
 0x40b   : > { %v9711_v36 = vpop.f32.mrf.mxu0  ;;  %6533 = vmatmul.msk.f32.gmra.mxu1 %vm2260_vm2, %v9707_v32  ;;  %v2761_v61 = vpop.f32.mrf.mxu3 }
 0x40c   : > { %12762 = vst [vmem:[#allocation8_spill] sm:$0xff] %v9711_v36 }
 0x40e   : > { %2707 = vmatmul.f32.gmra.mxu2 %v9181_v27  ;;  %3107 = vmatmul.f32.gmra.mxu0 %v9717_v37 }
 0x410   : > { %v9721_v14 = vpop.f32.mrf.mxu1  ;;  %6552 = vmatmul.msk.f32.gmra.mxu3 %vm2260_vm2, %v9362_v38  ;;  %v9743_v38 = vadd.f32 %v2761_v61, %v9556_v11 }
 0x411   : > { %v9730_v10 = vpop.f32.mrf.mxu2 }
 0x413   : > { %v9732_v55 = vpop.f32.mrf.mxu0  ;;  %6534 = vmatmul.msk.f32.gmra.mxu1 %vm2260_vm2, %v9728_v12  ;;  %v2764_v27 = vpop.f32.mrf.mxu3 }
 0x414   : > { %12764 = vst [vmem:[#allocation27_spill] sm:$0xff] %v9732_v55  ;;  %v9762_v23 = vadd.f32 %v2764_v27, %v9576_v4 }
 0x416   : > { %2710 = vmatmul.f32.gmra.mxu2 %v9202_v29  ;;  %3110 = vmatmul.f32.gmra.mxu0 %v9738_v46  ;;  %v9757_v29 = vadd.f32 %v9630_v22, %v9336_v42 }
 0x418   : > { %v9745_v60 = vpop.f32.mrf.mxu1  ;;  %6553 = vmatmul.msk.f32.gmra.mxu3 %vm2260_vm2, %v9393_v26 }
 0x419   : > { %v9749_v37 = vpop.f32.mrf.mxu2 }
 0x41b   : > { %v9751_v55 = vpop.f32.mrf.mxu0  ;;  %v2767_v36 = vpop.f32.mrf.mxu3  ;;  %6571 = vmatmul.msk.f32.vlgmr.msrb.gmra.mxu1 %vm2260_vm2, %v9743_v38 }
 0x41c   : > { %v9780_v42 = vadd.f32 %v2767_v36, %v9596_v35  ;;  %v9820_v36 = vadd.f32 %v2565_v44, %v9416_v25 }
 0x41e   : > { %2713 = vmatmul.f32.gmra.mxu2 %v9218_v45  ;;  %3113 = vmatmul.f32.gmra.mxu0 %v9757_v29  ;;  %v9775_v45 = vadd.f32 %v2559_v5, %v9368_v13  ;;  %v2915_v13 = vld [vmem:[%s12485_s5 + $0x170] sm:$0xff]  ;;  %12765 = vst [vmem:[#allocation9_spill] sm:$0xff] %v9820_v36 }
 0x41f   : > { %3302 = vmatpush.msrb.mxu2 %v2915_v13 }
 0x420   : > { %v9764_v26 = vpop.f32.mrf.mxu1  ;;  %6554 = vmatmul.msk.f32.gmra.mxu3 %vm2260_vm2, %v9414_v59 }
 0x421   : > { %v9768_v11 = vpop.f32.mrf.mxu2 }
 0x423   : > { %v2770_v15 = vpop.f32.mrf.mxu3  ;;  %v9770_v61 = vpop.f32.mrf.mxu0  ;;  %6572 = vmatmul.msk.f32.gmra.mxu1 %vm2260_vm2, %v9762_v23 }
 0x426   : > { %2716 = vmatmul.f32.gmra.mxu2 %v9234_v52  ;;  %3116 = vmatmul.f32.gmra.mxu0 %v9775_v45  ;;  %v9793_v52 = vadd.f32 %v2562_v16, %v9398_v30 }
 0x428   : > { %v9782_v4 = vpop.f32.mrf.mxu1  ;;  %6555 = vmatmul.msk.f32.gmra.mxu3 %vm2260_vm2, %v9432_v62  ;;  %v9801_v62 = vadd.f32 %v2770_v15, %v9619_v31  ;;  %v2909_v31 = vld [vmem:[%s12485_s5 + $0x140] sm:$0xff]  ;;  %v2903_v15 = vld [vmem:[%s12485_s5 + $0x110] sm:$0xff] }
 0x429   : > { %v9786_v59 = vpop.f32.mrf.mxu2 }
 0x42b   : > { %v2773_v22 = vpop.f32.mrf.mxu3  ;;  %v9788_v27 = vpop.f32.mrf.mxu0  ;;  %6573 = vmatmul.msk.f32.gmra.mxu1 %vm2260_vm2, %v9780_v42 }
 0x42c   : > { %v9831_v13 = vadd.f32 %v2773_v22, %v9639_v53  ;;  %v2897_v53 = vld [vmem:[%s12485_s5 + $0xe0] sm:$0xff]  ;;  %v2894_v22 = vld [vmem:[%s12485_s5 + $0xc8] sm:$0xff] }
 0x42e   : > { %2719 = vmatmul.f32.gmra.mxu2 %v9250_v63  ;;  %3119 = vmatmul.f32.gmra.mxu0 %v9793_v52  ;;  %v2912_v63 = vld [vmem:[%s12485_s5 + $0x158] sm:$0xff]  ;;  %12766 = vst [vmem:[#allocation36_spill] sm:$0xff] %v9831_v13 }
 0x42f   : > { %3303 = vmatpush.msrb.mxu2 %v2912_v63 }
 0x430   : > { %v9803_v35 = vpop.f32.mrf.mxu1  ;;  %6556 = vmatmul.msk.f32.gmra.mxu3 %vm2260_vm2, %v9450_v56  ;;  %v2906_v56 = vld [vmem:[%s12485_s5 + $0x128] sm:$0xff] }
 0x431   : > { %v9807_v5 = vpop.f32.mrf.mxu2  ;;  %3304 = vmatpush.msrb.mxu2 %v2909_v31 }
 0x433   : > { %v2776_v30 = vpop.f32.mrf.mxu3  ;;  %v9812_v16 = vpop.f32.mrf.mxu0  ;;  %6574 = vmatmul.msk.f32.gmra.mxu1 %vm2260_vm2, %v9801_v62  ;;  %3305 = vmatpush.msrb.mxu2 %v2906_v56  ;;  %v2891_v56 = vld [vmem:[%s12485_s5 + $0xb0] sm:$0xff] }
 0x435   : > { %3306 = vmatpush.msrb.mxu2 %v2903_v15  ;;  %v2942_v15 = vld [vmem:[%s12485_s5 + $0x248] sm:$0xff] }
 0x436   : > { %2722 = vmatmul.f32.gmra.mxu2 %v9272_v8  ;;  %3122 = vmatmul.f32.gmra.mxu0 %v9820_v36  ;;  %v2900_v8 = vld [vmem:[%s12485_s5 + $0xf8] sm:$0xff] }
 0x437   : > { %3307 = vmatpush.msrb.mxu2 %v2900_v8  ;;  %3434 = vmatpush.msrb.mxu3 %v2942_v15  ;;  %v2888_v8 = vld [vmem:[%s12485_s5 + $0x98] sm:$0xff] }
 0x438   : > { %v9833_v63 = vpop.f32.mrf.mxu1  ;;  %6557 = vmatmul.msk.f32.gmra.mxu3 %vm2260_vm2, %v9470_v51  ;;  %v9851_v51 = vadd.f32 %v9721_v14, %v9434_v24  ;;  %v9865_v24 = vadd.f32 %v2776_v30, %v9669_v20  ;;  %v2885_v20 = vld [vmem:[%s12485_s5 + $0x80] sm:$0xff]  ;;  %v2882_v30 = vld [vmem:[%s12485_s5 + $0x68] sm:$0xff] }
 0x439   : > { %v9837_v25 = vpop.f32.mrf.mxu2  ;;  %3308 = vmatpush.msrb.mxu2 %v2897_v53 }
 0x43a   : > { %12767 = vst [vmem:[#allocation30_spill] sm:$0xff] %v9851_v51 }
 0x43b   : > { %v2779_v44 = vpop.f32.mrf.mxu3  ;;  %v9842_v31 = vpop.f32.mrf.mxu0  ;;  %6575 = vmatmul.msk.f32.gmra.mxu1 %vm2260_vm2, %v9831_v13  ;;  %3309 = vmatpush.msrb.mxu2 %v2894_v22  ;;  %v2879_v22 = vld [vmem:[%s12485_s5 + $0x50] sm:$0xff] }
 0x43d   : > { %3310 = vmatpush.msrb.mxu2 %v2891_v56  ;;  %v9896_v56 = vadd.f32 %v2779_v44, %v9690_v19  ;;  %v2873_v19 = vld [vmem:[%s12485_s5 + $0x20] sm:$0xff]  ;;  %v2870_v44 = vld [vmem:[%s12485_s5 + $0x8] sm:$0xff] }
 0x43e   : > { %2725 = vmatmul.f32.gmra.mxu2 %v9302_v18  ;;  %3125 = vmatmul.f32.gmra.mxu0 %v9851_v51 }
 0x43f   : > { %3311 = vmatpush.msrb.mxu2 %v2888_v8 }
 0x440   : > { %v9867_v14 = vpop.f32.mrf.mxu1  ;;  %6558 = vmatmul.msk.f32.gmra.mxu3 %vm2260_vm2, %v9487_v3  ;;  %v9885_v3 = vadd.f32 %v9745_v60, %v9452_v33 }
 0x441   : > { %v9871_v18 = vpop.f32.mrf.mxu2  ;;  %3312 = vmatpush.msrb.mxu2 %v2885_v20 }
 0x442   : > { %12768 = vst [vmem:[#allocation10_spill] sm:$0xff] %v9885_v3 }
 0x443   : > { %v2782_v53 = vpop.f32.mrf.mxu3  ;;  %v9876_v51 = vpop.f32.mrf.mxu0  ;;  %6576 = vmatmul.msk.f32.gmra.mxu1 %vm2260_vm2, %v9865_v24  ;;  %3313 = vmatpush.msrb.mxu2 %v2882_v30 }
 0x444   : > { %v9924_v20 = vadd.f32 %v2782_v53, %v9709_v39 }
 0x445   : > { %3314 = vmatpush.msrb.mxu2 %v2879_v22 }
 0x446   : > { %2728 = vmatmul.f32.gmra.mxu2 %v9343_v43  ;;  %3128 = vmatmul.f32.gmra.mxu0 %v9885_v3  ;;  %v2876_v43 = vld [vmem:[%s12485_s5 + $0x38] sm:$0xff] }
 0x447   : > { %3315 = vmatpush.msrb.mxu2 %v2876_v43 }
 0x448   : > { %v9898_v15 = vpop.f32.mrf.mxu1  ;;  %6559 = vmatmul.msk.f32.gmra.mxu3 %vm2260_vm2, %v9503_v2  ;;  %v9916_v2 = vadd.f32 %v9764_v26, %v9472_v34 }
 0x449   : > { %v9902_v33 = vpop.f32.mrf.mxu2  ;;  %3316 = vmatpush.msrb.mxu2 %v2873_v19 }
 0x44a   : > { %12769 = vst [vmem:[#allocation33_spill] sm:$0xff] %v9916_v2 }
 0x44b   : > { %v2785_v60 = vpop.f32.mrf.mxu3  ;;  %v9907_v8 = vpop.f32.mrf.mxu0  ;;  %6577 = vmatmul.msk.f32.gmra.mxu1 %vm2260_vm2, %v9896_v56  ;;  %3317 = vmatpush.msrb.mxu2 %v2870_v44 }
 0x44c   : > { %v9941_v39 = vadd.f32 %v2785_v60, %v9730_v10 }
 0x44e   : > { %2731 = vmatmul.f32.gmra.mxu2 %v9375_v49  ;;  %3131 = vmatmul.f32.gmra.mxu0 %v9916_v2  ;;  %v9936_v49 = vadd.f32 %v9782_v4, %v9489_v1 }
 0x450   : > { %v2592_v30 = vpop.f32.mrf.mxu1  ;;  %6560 = vmatmul.msk.f32.gmra.mxu3 %vm2260_vm2, %v9519_v48  ;;  %12770 = vst [vmem:[#allocation11_spill] sm:$0xff] %v9936_v49 }
 0x451   : > { %v9928_v22 = vpop.f32.mrf.mxu2 }
 0x453   : > { %v2788_v34 = vpop.f32.mrf.mxu3  ;;  %v9930_v26 = vpop.f32.mrf.mxu0  ;;  %6578 = vmatmul.msk.f32.gmra.mxu1 %vm2260_vm2, %v9924_v20 }
 0x454   : > { %v9963_v1 = vadd.f32 %v2788_v34, %v9749_v37  ;;  %v12774_v37 = vld [vmem:[#allocation12_spill] sm:$0xff] }
 0x456   : > { %2734 = vmatmul.f32.gmra.mxu2 %v9405_v28  ;;  %3134 = vmatmul.f32.gmra.mxu0 %v9936_v49  ;;  %v9955_v28 = vadd.f32 %v9803_v35, %v9505_v0 }
 0x458   : > { %v9943_v48 = vpop.f32.mrf.mxu1  ;;  %6561 = vmatmul.msk.f32.gmra.mxu3 %vm2260_vm2, %v9538_v50  ;;  %12771 = vst [vmem:[#allocation37_spill] sm:$0xff] %v9955_v28  ;;  %v2939_v50 = vld [vmem:[%s12485_s5 + $0x230] sm:$0xff] }
 0x459   : > { %v9947_v53 = vpop.f32.mrf.mxu2  ;;  %3435 = vmatpush.msrb.mxu3 %v2939_v50 }
 0x45b   : > { %v2791_v43 = vpop.f32.mrf.mxu3  ;;  %v9949_v19 = vpop.f32.mrf.mxu0  ;;  %6579 = vmatmul.msk.f32.gmra.mxu1 %vm2260_vm2, %v9941_v39 }
 0x45c   : > { %v9982_v44 = vadd.f32 %v2791_v43, %v9768_v11  ;;  %v12777_v11 = vld [vmem:[#allocation15_spill] sm:$0xff] }
 0x45e   : > { %2737 = vmatmul.f32.gmra.mxu2 %v9423_v57  ;;  %3137 = vmatmul.f32.gmra.mxu0 %v9955_v28  ;;  %v12772_v57 = vld [vmem:[#allocation17_spill] sm:$0xff]  ;;  %12775 = vst [vmem:[#allocation25_spill] sm:$0xff] %v9982_v44 }
 0x45f   : > { %v9977_v60 = vadd.f32 %v9833_v63, %v12772_v57  ;;  %v9996_v63 = vadd.f32 %v9867_v14, %v9540_v6  ;;  %v12779_v57 = vld [vmem:[#allocation21_spill] sm:$0xff]  ;;  %v12780_v6 = vld [vmem:[#allocation3_spill] sm:$0xff] }
 0x460   : > { %v9965_v10 = vpop.f32.mrf.mxu1  ;;  %6562 = vmatmul.msk.f32.gmra.mxu3 %vm2260_vm2, %v9554_v17  ;;  %v10015_v14 = vadd.f32 %v9898_v15, %v12780_v6  ;;  %v2936_v15 = vld [vmem:[%s12485_s5 + $0x218] sm:$0xff]  ;;  %v12784_v6 = vld [vmem:[#allocation13_spill] sm:$0xff] }
 0x461   : > { %v9969_v4 = vpop.f32.mrf.mxu2  ;;  %12773 = vst [vmem:[#allocation22_spill] sm:$0xff] %v9977_v60  ;;  %3436 = vmatpush.msrb.mxu3 %v2936_v15  ;;  %v2927_v15 = vld [vmem:[%s12485_s5 + $0x1d0] sm:$0xff] }
 0x462   : > { %12776 = vst [vmem:[#allocation28_spill] sm:$0xff] %v9996_v63 }
 0x463   : > { %v2794_v0 = vpop.f32.mrf.mxu3  ;;  %v9971_v35 = vpop.f32.mrf.mxu0  ;;  %6580 = vmatmul.msk.f32.gmra.mxu1 %vm2260_vm2, %v9963_v1  ;;  %12781 = vst [vmem:[#allocation34_spill] sm:$0xff] %v10015_v14 }
 0x464   : > { %v10001_v43 = vadd.f32 %v2794_v0, %v9786_v59  ;;  %v12782_v59 = vld [vmem:[#allocation19_spill] sm:$0xff] }
 0x466   : > { %2740 = vmatmul.f32.gmra.mxu2 %v12774_v37  ;;  %3140 = vmatmul.f32.gmra.mxu0 %v9977_v60  ;;  %12778 = vst [vmem:[#allocation31_spill] sm:$0xff] %v10001_v43 }
 0x468   : > { %v9984_v17 = vpop.f32.mrf.mxu1  ;;  %6563 = vmatmul.msk.f32.gmra.mxu3 %vm2260_vm2, %v9574_v21 }
 0x469   : > { %v9988_v34 = vpop.f32.mrf.mxu2 }
 0x46b   : > { %v2797_v50 = vpop.f32.mrf.mxu3  ;;  %v9990_v28 = vpop.f32.mrf.mxu0  ;;  %6581 = vmatmul.msk.f32.gmra.mxu1 %vm2260_vm2, %v9982_v44 }
 0x46c   : > { %v10020_v0 = vadd.f32 %v2797_v50, %v9807_v5  ;;  %v10036_v5 = vadd.f32 %v2592_v30, %v12784_v6  ;;  %v12786_v50 = vld [vmem:[#allocation14_spill] sm:$0xff] }
 0x46e   : > { %3143 = vmatmul.f32.gmra.mxu0 %v9996_v63  ;;  %3318 = vmatmul.f32.vlgmr.msrb.gmra.mxu2 %v12777_v11  ;;  %12783 = vst [vmem:[#allocation38_spill] sm:$0xff] %v10020_v0 }
 0x46f   : > { %12785 = vst [vmem:[#allocation17_spill] sm:$0xff] %v10036_v5 }
 0x470   : > { %v10003_v21 = vpop.f32.mrf.mxu1  ;;  %6564 = vmatmul.msk.f32.gmra.mxu3 %vm2260_vm2, %v12779_v57 }
 0x471   : > { %v10007_v37 = vpop.f32.mrf.mxu2 }
 0x473   : > { %v2800_v60 = vpop.f32.mrf.mxu3  ;;  %v10009_v49 = vpop.f32.mrf.mxu0  ;;  %6582 = vmatmul.msk.f32.gmra.mxu1 %vm2260_vm2, %v10001_v43 }
 0x476   : > { %3146 = vmatmul.f32.gmra.mxu0 %v10015_v14  ;;  %3321 = vmatmul.f32.gmra.mxu2 %v12782_v59  ;;  %v2930_v14 = vld [vmem:[%s12485_s5 + $0x1e8] sm:$0xff] }
 0x478   : > { %v10022_v57 = vpop.f32.mrf.mxu1  ;;  %6565 = vmatmul.msk.f32.gmra.mxu3 %vm2260_vm2, %v9617_v54  ;;  %v2933_v54 = vld [vmem:[%s12485_s5 + $0x200] sm:$0xff] }
 0x479   : > { %v10026_v63 = vpop.f32.mrf.mxu2  ;;  %3437 = vmatpush.msrb.mxu3 %v2933_v54  ;;  %v12791_v54 = vld [vmem:[#allocation16_spill] sm:$0xff] }
 0x47b   : > { %v2803_v2 = vpop.f32.mrf.mxu3  ;;  %v10028_v3 = vpop.f32.mrf.mxu0  ;;  %6583 = vmatmul.msk.f32.gmra.mxu1 %vm2260_vm2, %v10020_v0  ;;  %v10047_v0 = vadd.f32 %v2800_v60, %v9837_v25  ;;  %3438 = vmatpush.msrb.mxu3 %v2930_v14  ;;  %v2924_v25 = vld [vmem:[%s12485_s5 + $0x1b8] sm:$0xff]  ;;  %v12789_v60 = vld [vmem:[#allocation5_spill] sm:$0xff]  ;;  %v2921_v14 = vld [vmem:[%s12485_s5 + $0x1a0] sm:$0xff] }
 0x47d   : > { %12787 = vst [vmem:[#allocation12_spill] sm:$0xff] %v10047_v0  ;;  %3439 = vmatpush.msrb.mxu3 %v2927_v15  ;;  %v2918_v15 = vld [vmem:[%s12485_s5 + $0x188] sm:$0xff] }
 0x47e   : > { %3149 = vmatmul.f32.gmra.mxu0 %v10036_v5  ;;  %3324 = vmatmul.f32.gmra.mxu2 %v12786_v50 }
 0x47f   : > { %3440 = vmatpush.msrb.mxu3 %v2924_v25 }
 0x480   : > { %v10049_v43 = vpop.f32.mrf.mxu1  ;;  %6566 = vmatmul.msk.f32.gmra.mxu3 %vm2260_vm2, %v9637_v58  ;;  %v10067_v58 = vadd.f32 %v9943_v48, %v12789_v60  ;;  %v10081_v48 = vadd.f32 %v2803_v2, %v9871_v18  ;;  %v2910_v18 = vld [vmem:[%s12485_s5 + $0x148] sm:$0xff]  ;;  %v2907_v2 = vld [vmem:[%s12485_s5 + $0x130] sm:$0xff] }
 0x481   : > { %v10053_v30 = vpop.f32.mrf.mxu2  ;;  %3441 = vmatpush.msrb.mxu3 %v2921_v14 }
 0x482   : > { %12790 = vst [vmem:[#allocation21_spill] sm:$0xff] %v10067_v58 }
 0x483   : > { %v2806_v6 = vpop.f32.mrf.mxu3  ;;  %v10058_v5 = vpop.f32.mrf.mxu0  ;;  %6584 = vmatmul.msk.f32.gmra.mxu1 %vm2260_vm2, %v10047_v0  ;;  %v2916_v0 = vld [vmem:[%s12485_s5 + $0x178] sm:$0xff]  ;;  %12792 = vst [vmem:[#allocation3_spill] sm:$0xff] %v10081_v48  ;;  %3442 = vmatpush.msrb.mxu3 %v2918_v15 }
 0x484   : > { %12788 = vst [vmem:[#allocation15_spill] sm:$0xff] %v10058_v5  ;;  %3552 = vmatpush.msra.mxu0 %v2916_v0  ;;  %v12794_v0 = vld [vmem:[#allocation35_spill] sm:$0xff]  ;;  %v10112_v14 = vadd.f32 %v2806_v6, %v9902_v33  ;;  %v2898_v33 = vld [vmem:[%s12485_s5 + $0xe8] sm:$0xff]  ;;  %v10130_v6 = vadd.f32 %v9984_v17, %v9644_v40 }
 0x486   : > { %3152 = vmatmul.f32.gmra.mxu0 %v10067_v58  ;;  %3327 = vmatmul.f32.gmra.mxu2 %v12791_v54  ;;  %v2913_v58 = vld [vmem:[%s12485_s5 + $0x160] sm:$0xff]  ;;  %12795 = vst [vmem:[#allocation13_spill] sm:$0xff] %v10112_v14 }
 0x487   : > { %3553 = vmatpush.msra.mxu0 %v2913_v58  ;;  %v2904_v58 = vld [vmem:[%s12485_s5 + $0x118] sm:$0xff]  ;;  %12796 = vst [vmem:[#allocation14_spill] sm:$0xff] %v10130_v6 }
 0x488   : > { %v10083_v60 = vpop.f32.mrf.mxu1  ;;  %6567 = vmatmul.msk.f32.gmra.mxu3 %vm2260_vm2, %v9664_v41  ;;  %v10101_v41 = vadd.f32 %v9965_v10, %v9621_v7  ;;  %v2901_v10 = vld [vmem:[%s12485_s5 + $0x100] sm:$0xff] }
 0x489   : > { %v10087_v25 = vpop.f32.mrf.mxu2  ;;  %3554 = vmatpush.msra.mxu0 %v2910_v18 }
 0x48a   : > { %12793 = vst [vmem:[#allocation19_spill] sm:$0xff] %v10101_v41 }
 0x48b   : > { %v2809_v36 = vpop.f32.mrf.mxu3  ;;  %v10092_v5 = vpop.f32.mrf.mxu0  ;;  %6585 = vmatmul.msk.f32.gmra.mxu1 %vm2260_vm2, %v10081_v48  ;;  %3555 = vmatpush.msra.mxu0 %v2907_v2 }
 0x48d   : > { %3556 = vmatpush.msra.mxu0 %v2904_v58  ;;  %v12797_v58 = vld [vmem:[#allocation18_spill] sm:$0xff] }
 0x48e   : > { %3155 = vmatmul.f32.gmra.mxu0 %v10101_v41  ;;  %3330 = vmatmul.f32.gmra.mxu2 %v12794_v0  ;;  %v10143_v41 = vadd.f32 %v2809_v36, %v9928_v22  ;;  %v12801_v22 = vld [vmem:[#allocation20_spill] sm:$0xff] }
 0x48f   : > { %3557 = vmatpush.msra.mxu0 %v2901_v10  ;;  %v2892_v10 = vld [vmem:[%s12485_s5 + $0xb8] sm:$0xff] }
 0x490   : > { %v10114_v15 = vpop.f32.mrf.mxu1  ;;  %6568 = vmatmul.msk.f32.gmra.mxu3 %vm2260_vm2, %v9688_v47  ;;  %v2895_v47 = vld [vmem:[%s12485_s5 + $0xd0] sm:$0xff] }
 0x491   : > { %v10118_v7 = vpop.f32.mrf.mxu2  ;;  %3558 = vmatpush.msra.mxu0 %v2898_v33 }
 0x493   : > { %v2812_v18 = vpop.f32.mrf.mxu3  ;;  %6586 = vmatmul.msk.f32.gmra.mxu1 %vm2260_vm2, %v10112_v14  ;;  %v10135_v2 = vpop.f32.mrf.mxu0  ;;  %3559 = vmatpush.msra.mxu0 %v2895_v47  ;;  %v2883_v47 = vld [vmem:[%s12485_s5 + $0x70] sm:$0xff] }
 0x495   : > { %3560 = vmatpush.msra.mxu0 %v2892_v10  ;;  %v10172_v10 = vadd.f32 %v2812_v18, %v9947_v53  ;;  %v2943_v53 = vld [vmem:[%s12485_s5 + $0x250] sm:$0xff]  ;;  %v12804_v18 = vld [vmem:[#allocation4_spill] sm:$0xff] }
 0x496   : > { %3158 = vmatmul.f32.gmra.mxu0 %v10130_v6  ;;  %3333 = vmatmul.f32.gmra.mxu2 %v12797_v58  ;;  %v2889_v6 = vld [vmem:[%s12485_s5 + $0xa0] sm:$0xff] }
 0x497   : > { %3561 = vmatpush.msra.mxu0 %v2889_v6  ;;  %3684 = vmatpush.msra.mxu1 %v2943_v53  ;;  %v2871_v53 = vld [vmem:[%s12485_s5 + $0x10] sm:$0xff] }
 0x498   : > { %6569 = vmatmul.msk.f32.gmra.mxu3 %vm2260_vm2, %v9707_v32  ;;  %v3194_v40 = vpop.f32.mrf.mxu1  ;;  %v12799_v32 = vld [vmem:[#allocation7_spill] sm:$0xff] }
 0x499   : > { %v10148_v17 = vadd.f32 %v3194_v40, %v9770_v61  ;;  %v10150_v33 = vpop.f32.mrf.mxu2  ;;  %v10161_v36 = vadd.f32 %v10003_v21, %v12799_v32  ;;  %v2886_v61 = vld [vmem:[%s12485_s5 + $0x88] sm:$0xff] }
 0x49a   : > { %3562 = vmatpush.msra.mxu0 %v2886_v61  ;;  %v2874_v61 = vld [vmem:[%s12485_s5 + $0x28] sm:$0xff] }
 0x49b   : > { %12798 = vst [vmem:[#allocation5_spill] sm:$0xff] %v10148_v17  ;;  %v2815_v14 = vpop.f32.mrf.mxu3  ;;  %6587 = vmatmul.msk.f32.gmra.mxu1 %vm2260_vm2, %v10143_v41  ;;  %3826 = vrot.lane.b32.xlu1 %v10148_v17, %s6953_s14  ;;  %v10174_v40 = vpop.f32.mrf.mxu0  ;;  %v2880_v17 = vld [vmem:[%s12485_s5 + $0x58] sm:$0xff] }
 0x49c   : > { %12800 = vst [vmem:[#allocation16_spill] sm:$0xff] %v10161_v36  ;;  %3563 = vmatpush.msra.mxu0 %v2883_v47 }
 0x49e   : > { %3161 = vmatmul.f32.gmra.mxu0 %v10161_v36  ;;  %3336 = vmatmul.f32.gmra.mxu2 %v12801_v22 }
 0x49f   : > { %3564 = vmatpush.msra.mxu0 %v2880_v17 }
 0x4a0   : > { %6570 = vmatmul.msk.f32.gmra.mxu3 %vm2260_vm2, %v9728_v12  ;;  %v3197_v21 = vpop.f32.mrf.mxu1  ;;  %v10192_v12 = vadd.f32 %v10022_v57, %v9692_v9  ;;  %v10206_v9 = vadd.f32 %v2815_v14, %v9969_v4  ;;  %v12806_v4 = vld [vmem:[#allocation8_spill] sm:$0xff] }
 0x4a1   : > { %v10179_v6 = vadd.f32 %v3197_v21, %v9788_v27  ;;  %v10181_v32 = vpop.f32.mrf.mxu2  ;;  %v2877_v27 = vld [vmem:[%s12485_s5 + $0x40] sm:$0xff]  ;;  %v10226_v14 = vadd.f32 %v10049_v43, %v12806_v4 }
 0x4a2   : > { %12803 = vst [vmem:[#allocation18_spill] sm:$0xff] %v10192_v12  ;;  %3565 = vmatpush.msra.mxu0 %v2877_v27 }
 0x4a3   : > { %12802 = vst [vmem:[#allocation35_spill] sm:$0xff] %v10179_v6  ;;  %v2818_v36 = vpop.f32.mrf.mxu3  ;;  %6588 = vmatmul.msk.f32.gmra.mxu1 %vm2260_vm2, %v10172_v10  ;;  %3830 = vrot.lane.b32.xlu1 %v10179_v6, %s6953_s14  ;;  %v10210_v17 = vpop.f32.mrf.mxu0 }
 0x4a4   : > { %3566 = vmatpush.msra.mxu0 %v2874_v61  ;;  %12807 = vst [vmem:[#allocation20_spill] sm:$0xff] %v10226_v14  ;;  %v10231_v27 = vadd.f32 %v2818_v36, %v9988_v34  ;;  %v12810_v34 = vld [vmem:[#allocation27_spill] sm:$0xff] }
 0x4a5   : > { %v10248_v36 = vadd.f32 %v10083_v60, %v12810_v34 }
 0x4a6   : > { %3164 = vmatmul.f32.gmra.mxu0 %v10192_v12  ;;  %3339 = vmatmul.f32.gmra.mxu2 %v12804_v18 }
 0x4a7   : > { %3567 = vmatpush.msra.mxu0 %v2871_v53  ;;  %12811 = vst [vmem:[#allocation8_spill] sm:$0xff] %v10248_v36  ;;  %v12812_v53 = vld [vmem:[#allocation6_spill] sm:$0xff] }
 0x4a8   : > { %v3200_v57 = vpop.f32.mrf.mxu1  ;;  %6607 = vmatmul.msk.f32.vlgmr.msrb.gmra.mxu3 %vm2260_vm2, %v9743_v38 }
 0x4a9   : > { %v10213_v47 = vadd.f32 %v3200_v57, %v9812_v16  ;;  %v10215_v21 = vpop.f32.mrf.mxu2  ;;  %v12808_v16 = vld [vmem:[#allocation23_spill] sm:$0xff] }
 0x4ab   : > { %12805 = vst [vmem:[#allocation7_spill] sm:$0xff] %v10213_v47  ;;  %v2821_v6 = vpop.f32.mrf.mxu3  ;;  %6589 = vmatmul.msk.f32.gmra.mxu1 %vm2260_vm2, %v10206_v9  ;;  %3834 = vrot.lane.b32.xlu1 %v10213_v47, %s6953_s14  ;;  %v10240_v12 = vpop.f32.mrf.mxu0 }
 0x4ae   : > { %3167 = vmatmul.f32.gmra.mxu0 %v10226_v14  ;;  %3342 = vmatmul.f32.gmra.mxu2 %v12808_v16 }
 0x4b0   : > { %v3203_v61 = vpop.f32.mrf.mxu1  ;;  %6608 = vmatmul.msk.f32.gmra.mxu3 %vm2260_vm2, %v9762_v23 }
 0x4b1   : > { %v10236_v57 = vadd.f32 %v3203_v61, %v9842_v31  ;;  %v10238_v47 = vpop.f32.mrf.mxu2  ;;  %v10253_v31 = vadd.f32 %v2821_v6, %v10007_v37  ;;  %v10268_v37 = vadd.f32 %v10114_v15, %v9751_v55  ;;  %v12815_v6 = vld [vmem:[#allocation26_spill] sm:$0xff]  ;;  %v12817_v15 = vld [vmem:[#allocation29_spill] sm:$0xff] }
 0x4b3   : > { %12809 = vst [vmem:[#allocation4_spill] sm:$0xff] %v10236_v57  ;;  %v2824_v43 = vpop.f32.mrf.mxu3  ;;  %6590 = vmatmul.msk.f32.gmra.mxu1 %vm2260_vm2, %v10231_v27  ;;  %3838 = vrot.lane.b32.xlu1 %v10236_v57, %s6953_s14  ;;  %v10270_v60 = vpop.f32.mrf.mxu0 }
 0x4b4   : > { %12814 = vst [vmem:[#allocation27_spill] sm:$0xff] %v10268_v37 }
 0x4b6   : > { %3170 = vmatmul.f32.gmra.mxu0 %v10248_v36  ;;  %3345 = vmatmul.f32.gmra.mxu2 %v12812_v53 }
 0x4b8   : > { %v3206_v4 = vpop.f32.mrf.mxu1  ;;  %6609 = vmatmul.msk.f32.gmra.mxu3 %vm2260_vm2, %v9780_v42 }
 0x4b9   : > { %v10258_v61 = vadd.f32 %v3206_v4, %v9876_v51  ;;  %v10260_v14 = vpop.f32.mrf.mxu2  ;;  %v10275_v51 = vadd.f32 %v2824_v43, %v10026_v63  ;;  %v2940_v63 = vld [vmem:[%s12485_s5 + $0x238] sm:$0xff] }
 0x4ba   : > { %3685 = vmatpush.msra.mxu1 %v2940_v63 }
 0x4bb   : > { %12813 = vst [vmem:[#allocation23_spill] sm:$0xff] %v10258_v61  ;;  %v2827_v57 = vpop.f32.mrf.mxu3  ;;  %6591 = vmatmul.msk.f32.gmra.mxu1 %vm2260_vm2, %v10253_v31  ;;  %3842 = vrot.lane.b32.xlu1 %v10258_v61, %s6953_s14  ;;  %v10296_v43 = vpop.f32.mrf.mxu0 }
 0x4be   : > { %3173 = vmatmul.f32.gmra.mxu0 %v10268_v37  ;;  %3348 = vmatmul.f32.gmra.mxu2 %v12815_v6 }
 0x4c0   : > { %v3209_v34 = vpop.f32.mrf.mxu1  ;;  %6610 = vmatmul.msk.f32.gmra.mxu3 %vm2260_vm2, %v9801_v62 }
 0x4c1   : > { %v10280_v4 = vadd.f32 %v3209_v34, %v9907_v8  ;;  %v10282_v61 = vpop.f32.mrf.mxu2  ;;  %v10294_v8 = vadd.f32 %v2827_v57, %v10053_v30 }
 0x4c3   : > { %12816 = vst [vmem:[#allocation6_spill] sm:$0xff] %v10280_v4  ;;  %v2830_v55 = vpop.f32.mrf.mxu3  ;;  %6592 = vmatmul.msk.f32.gmra.mxu1 %vm2260_vm2, %v10275_v51  ;;  %3846 = vrot.lane.b32.xlu1 %v10280_v4, %s6953_s14 }
 0x4c4   : > { %v10312_v30 = vadd.f32 %v2830_v55, %v10087_v25 }
 0x4c6   : > { %3351 = vmatmul.f32.gmra.mxu2 %v12817_v15  ;;  %3568 = vmatmul.f32.vlgmr.msra.gmra.mxu0 %v12777_v11  ;;  %v12819_v11 = vld [vmem:[#allocation24_spill] sm:$0xff] }
 0x4c8   : > { %v3212_v34 = vpop.f32.mrf.mxu1  ;;  %6611 = vmatmul.msk.f32.gmra.mxu3 %vm2260_vm2, %v9831_v13 }
 0x4c9   : > { %v10301_v4 = vadd.f32 %v3212_v34, %v9930_v26  ;;  %v10303_v37 = vpop.f32.mrf.mxu2  ;;  %v10316_v26 = vpop.f32.mrf.mxu0 }
 0x4cb   : > { %12818 = vst [vmem:[#allocation26_spill] sm:$0xff] %v10301_v4  ;;  %v2833_v36 = vpop.f32.mrf.mxu3  ;;  %6593 = vmatmul.msk.f32.gmra.mxu1 %vm2260_vm2, %v10294_v8  ;;  %3850 = vrot.lane.b32.xlu1 %v10301_v4, %s6953_s14 }
 0x4cc   : > { %v10330_v25 = vadd.f32 %v2833_v36, %v10118_v7 }
 0x4ce   : > { %3354 = vmatmul.f32.gmra.mxu2 %v12819_v11  ;;  %3571 = vmatmul.f32.gmra.mxu0 %v12782_v59  ;;  %v12821_v59 = vld [vmem:[#allocation32_spill] sm:$0xff] }
 0x4d0   : > { %v3215_v57 = vpop.f32.mrf.mxu1  ;;  %6612 = vmatmul.msk.f32.gmra.mxu3 %vm2260_vm2, %v9865_v24 }
 0x4d1   : > { %v10319_v63 = vadd.f32 %v3215_v57, %v9949_v19  ;;  %v10321_v34 = vpop.f32.mrf.mxu2  ;;  %v10337_v57 = vpop.f32.mrf.mxu0 }
 0x4d3   : > { %12820 = vst [vmem:[#allocation29_spill] sm:$0xff] %v10319_v63  ;;  %v2836_v13 = vpop.f32.mrf.mxu3  ;;  %6594 = vmatmul.msk.f32.gmra.mxu1 %vm2260_vm2, %v10312_v30  ;;  %3854 = vrot.lane.b32.xlu1 %v10319_v63, %s6953_s14 }
 0x4d4   : > { %v10348_v7 = vadd.f32 %v2836_v13, %v10150_v33 }
 0x4d6   : > { %3357 = vmatmul.f32.gmra.mxu2 %v12821_v59  ;;  %3574 = vmatmul.f32.gmra.mxu0 %v12786_v50 }
 0x4d8   : > { %v3218_v55 = vpop.f32.mrf.mxu1  ;;  %6613 = vmatmul.msk.f32.gmra.mxu3 %vm2260_vm2, %v9896_v56 }
 0x4d9   : > { %v10335_v19 = vadd.f32 %v3218_v55, %v9971_v35  ;;  %v10343_v50 = vpop.f32.mrf.mxu2  ;;  %v10362_v13 = vpop.f32.mrf.mxu0 }
 0x4db   : > { %12822 = vst [vmem:[#allocation24_spill] sm:$0xff] %v10335_v19  ;;  %v2839_v4 = vpop.f32.mrf.mxu3  ;;  %6595 = vmatmul.msk.f32.gmra.mxu1 %vm2260_vm2, %v10330_v25  ;;  %3858 = vrot.lane.b32.xlu1 %v10335_v19, %s6953_s14 }
 0x4de   : > { %3360 = vmatmul.f32.gmra.mxu2 %v9738_v46  ;;  %3577 = vmatmul.f32.gmra.mxu0 %v12791_v54  ;;  %v2937_v54 = vld [vmem:[%s12485_s5 + $0x220] sm:$0xff] }
 0x4df   : > { %3686 = vmatpush.msra.mxu1 %v2937_v54 }
 0x4e0   : > { %v3221_v35 = vpop.f32.mrf.mxu1  ;;  %6614 = vmatmul.msk.f32.gmra.mxu3 %vm2260_vm2, %v9924_v20 }
 0x4e1   : > { %v10353_v36 = vadd.f32 %v3221_v35, %v9990_v28  ;;  %v10367_v28 = vadd.f32 %v2839_v4, %v10181_v32  ;;  %v10369_v33 = vpop.f32.mrf.mxu2 }
 0x4e3   : > { %12823 = vst [vmem:[#allocation32_spill] sm:$0xff] %v10353_v36  ;;  %v2842_v55 = vpop.f32.mrf.mxu3  ;;  %6596 = vmatmul.msk.f32.gmra.mxu1 %vm2260_vm2, %v10348_v7  ;;  %3862 = vrot.lane.b32.xlu1 %v10353_v36, %s6953_s14 }
 0x4e4   : > { %v10385_v32 = vadd.f32 %v2842_v55, %v10215_v21  ;;  %v12826_v55 = vld [vmem:[#allocation15_spill] sm:$0xff] }
 0x4e6   : > { %3363 = vmatmul.f32.gmra.mxu2 %v9757_v29  ;;  %3580 = vmatmul.f32.gmra.mxu0 %v12794_v0  ;;  %v10382_v0 = vpop.f32.mrf.mxu0 }
 0x4e8   : > { %v3224_v35 = vpop.f32.mrf.mxu1  ;;  %6615 = vmatmul.msk.f32.gmra.mxu3 %vm2260_vm2, %v9941_v39 }
 0x4e9   : > { %v10374_v36 = vadd.f32 %v3224_v35, %v10009_v49  ;;  %v10389_v49 = vpop.f32.mrf.mxu2 }
 0x4eb   : > { %12824 = vst [vmem:[#allocation39_spill] sm:$0xff] %v10374_v36  ;;  %v2845_v19 = vpop.f32.mrf.mxu3  ;;  %6597 = vmatmul.msk.f32.gmra.mxu1 %vm2260_vm2, %v10367_v28  ;;  %3866 = vrot.lane.b32.xlu1 %v10374_v36, %s6953_s14 }
 0x4ee   : > { %3366 = vmatmul.f32.gmra.mxu2 %v9775_v45  ;;  %3583 = vmatmul.f32.gmra.mxu0 %v12797_v58  ;;  %v10401_v58 = vadd.f32 %v2845_v19, %v10238_v47 }
 0x4f0   : > { %v3227_v4 = vpop.f32.mrf.mxu1  ;;  %6616 = vmatmul.msk.f32.gmra.mxu3 %vm2260_vm2, %v9963_v1 }
 0x4f1   : > { %v10392_v54 = vadd.f32 %v3227_v4, %v10028_v3  ;;  %v10405_v3 = vpop.f32.mrf.mxu0  ;;  %v10410_v36 = vpop.f32.mrf.mxu2 }
 0x4f3   : > { %12825 = vst [vmem:[#allocation40_spill] sm:$0xff] %v10392_v54  ;;  %v2848_v35 = vpop.f32.mrf.mxu3  ;;  %6598 = vmatmul.msk.f32.gmra.mxu1 %vm2260_vm2, %v10385_v32  ;;  %3870 = vrot.lane.b32.xlu1 %v10392_v54, %s6953_s14  ;;  %v12829_v54 = vld [vmem:[#allocation31_spill] sm:$0xff] }
 0x4f4   : > { %v10419_v47 = vadd.f32 %v2848_v35, %v10260_v14  ;;  %v12831_v35 = vld [vmem:[#allocation30_spill] sm:$0xff] }
 0x4f6   : > { %3369 = vmatmul.f32.gmra.mxu2 %v9793_v52  ;;  %3586 = vmatmul.f32.gmra.mxu0 %v12801_v22  ;;  %v12828_v22 = vld [vmem:[#allocation9_spill] sm:$0xff] }
 0x4f8   : > { %v3230_v21 = vpop.f32.mrf.mxu1  ;;  %6617 = vmatmul.msk.f32.gmra.mxu3 %vm2260_vm2, %v9982_v44 }
 0x4f9   : > { %v10408_v4 = vadd.f32 %v3230_v21, %v12826_v55  ;;  %v10426_v55 = vpop.f32.mrf.mxu0  ;;  %v10435_v14 = vpop.f32.mrf.mxu2 }
 0x4fb   : > { %12827 = vst [vmem:[#allocation15_spill] sm:$0xff] %v10408_v4  ;;  %v2851_v63 = vpop.f32.mrf.mxu3  ;;  %6599 = vmatmul.msk.f32.gmra.mxu1 %vm2260_vm2, %v10401_v58  ;;  %4044 = vrot.lane.b32.xlu2 %v10408_v4, %s6953_s14  ;;  %v12833_v4 = vld [vmem:[#allocation38_spill] sm:$0xff] }
 0x4fe   : > { %3372 = vmatmul.f32.gmra.mxu2 %v12828_v22  ;;  %3589 = vmatmul.f32.gmra.mxu0 %v12804_v18  ;;  %v2934_v18 = vld [vmem:[%s12485_s5 + $0x208] sm:$0xff] }
 0x4ff   : > { %3687 = vmatpush.msra.mxu1 %v2934_v18 }
 0x500   : > { %v3233_v19 = vpop.f32.mrf.mxu1  ;;  %6618 = vmatmul.msk.f32.gmra.mxu3 %vm2260_vm2, %v12829_v54 }
 0x501   : > { %v10424_v21 = vadd.f32 %v3233_v19, %v10092_v5  ;;  %v10440_v5 = vadd.f32 %v2851_v63, %v10282_v61  ;;  %v10451_v18 = vpop.f32.mrf.mxu0  ;;  %v10455_v61 = vpop.f32.mrf.mxu2 }
 0x503   : > { %12830 = vst [vmem:[#allocation9_spill] sm:$0xff] %v10424_v21  ;;  %v2854_v44 = vpop.f32.mrf.mxu3  ;;  %6600 = vmatmul.msk.f32.gmra.mxu1 %vm2260_vm2, %v10419_v47  ;;  %4048 = vrot.lane.b32.xlu0 %v10424_v21, %s6953_s14 }
 0x504   : > { %12832 = vst [vmem:[#allocation30_spill] sm:$0xff] %v10440_v5  ;;  %v10458_v63 = vadd.f32 %v2854_v44, %v10303_v37  ;;  %v2928_v44 = vld [vmem:[%s12485_s5 + $0x1d8] sm:$0xff] }
 0x506   : > { %3375 = vmatmul.f32.gmra.mxu2 %v12831_v35  ;;  %3592 = vmatmul.f32.gmra.mxu0 %v12808_v16  ;;  %v12835_v16 = vld [vmem:[#allocation10_spill] sm:$0xff] }
 0x508   : > { %v3236_v19 = vpop.f32.mrf.mxu1  ;;  %6619 = vmatmul.msk.f32.gmra.mxu3 %vm2260_vm2, %v12833_v4 }
 0x509   : > { %v10445_v21 = vadd.f32 %v3236_v19, %v10135_v2  ;;  %v12836_v19 = vld [vmem:[#allocation12_spill] sm:$0xff]  ;;  %v10480_v37 = vpop.f32.mrf.mxu0 }
 0x50b   : > { %12834 = vst [vmem:[#allocation41_spill] sm:$0xff] %v10445_v21  ;;  %v2857_v54 = vpop.f32.mrf.mxu3  ;;  %6601 = vmatmul.msk.f32.gmra.mxu1 %vm2260_vm2, %v10440_v5  ;;  %4052 = vrot.lane.b32.xlu0 %v10445_v21, %s6953_s14  ;;  %v2931_v21 = vld [vmem:[%s12485_s5 + $0x1f0] sm:$0xff] }
 0x50c   : > { %3688 = vmatpush.msra.mxu1 %v2931_v21  ;;  %v10483_v21 = vadd.f32 %v2857_v54, %v10321_v34  ;;  %v2919_v34 = vld [vmem:[%s12485_s5 + $0x190] sm:$0xff] }
 0x50e   : > { %3378 = vmatmul.f32.gmra.mxu2 %v12835_v16  ;;  %3595 = vmatmul.f32.gmra.mxu0 %v12812_v53  ;;  %v12838_v53 = vld [vmem:[#allocation33_spill] sm:$0xff] }
 0x50f   : > { %3689 = vmatpush.msra.mxu1 %v2928_v44  ;;  %12839 = vst [vmem:[#allocation33_spill] sm:$0xff] %v10483_v21  ;;  %v2922_v44 = vld [vmem:[%s12485_s5 + $0x1a8] sm:$0xff] }
 0x510   : > { %v3239_v2 = vpop.f32.mrf.mxu1  ;;  %6620 = vmatmul.msk.f32.gmra.mxu3 %vm2260_vm2, %v12836_v19 }
 0x511   : > { %v10463_v4 = vadd.f32 %v3239_v2, %v10174_v40  ;;  %v2925_v40 = vld [vmem:[%s12485_s5 + $0x1c0] sm:$0xff] }
 0x512   : > { %3690 = vmatpush.msra.mxu1 %v2925_v40  ;;  %v12841_v40 = vld [vmem:[#allocation11_spill] sm:$0xff] }
 0x513   : > { %12837 = vst [vmem:[#allocation10_spill] sm:$0xff] %v10463_v4  ;;  %v2860_v5 = vpop.f32.mrf.mxu3  ;;  %6602 = vmatmul.msk.f32.gmra.mxu1 %vm2260_vm2, %v10458_v63  ;;  %4056 = vrot.lane.b32.xlu0 %v10463_v4, %s6953_s14  ;;  %v10490_v4 = vpop.f32.mrf.mxu2 }
 0x514   : > { %3691 = vmatpush.msra.mxu1 %v2922_v44  ;;  %v12842_v44 = vld [vmem:[#allocation13_spill] sm:$0xff] }
 0x516   : > { %3381 = vmatmul.f32.gmra.mxu2 %v12838_v53  ;;  %3598 = vmatmul.f32.gmra.mxu0 %v12815_v6 }
 0x517   : > { %3692 = vmatpush.msra.mxu1 %v2919_v34 }
 0x518   : > { %v3242_v2 = vpop.f32.mrf.mxu1  ;;  %6621 = vmatmul.msk.f32.gmra.mxu3 %vm2260_vm2, %v10081_v48  ;;  %v10509_v48 = vpop.f32.mrf.mxu0 }
 0x519   : > { %v10493_v6 = vadd.f32 %v3242_v2, %v10210_v17  ;;  %v10505_v17 = vadd.f32 %v2860_v5, %v10343_v50 }
 0x51b   : > { %12840 = vst [vmem:[#allocation42_spill] sm:$0xff] %v10493_v6  ;;  %v2863_v54 = vpop.f32.mrf.mxu3  ;;  %6603 = vmatmul.msk.f32.gmra.mxu1 %vm2260_vm2, %v10483_v21  ;;  %4060 = vrot.lane.b32.xlu0 %v10493_v6, %s6953_s14  ;;  %v10514_v21 = vpop.f32.mrf.mxu2 }
 0x51c   : > { %v10523_v50 = vadd.f32 %v2863_v54, %v10369_v33  ;;  %v12846_v54 = vld [vmem:[#allocation22_spill] sm:$0xff] }
 0x51e   : > { %3384 = vmatmul.f32.gmra.mxu2 %v12841_v40  ;;  %3601 = vmatmul.f32.gmra.mxu0 %v12817_v15  ;;  %v12844_v15 = vld [vmem:[#allocation37_spill] sm:$0xff] }
 0x520   : > { %v3245_v2 = vpop.f32.mrf.mxu1  ;;  %6622 = vmatmul.msk.f32.gmra.mxu3 %vm2260_vm2, %v12842_v44  ;;  %v10530_v34 = vpop.f32.mrf.mxu0 }
 0x521   : > { %v10512_v19 = vadd.f32 %v3245_v2, %v10240_v12 }
 0x523   : > { %12843 = vst [vmem:[#allocation11_spill] sm:$0xff] %v10512_v19  ;;  %v2866_v6 = vpop.f32.mrf.mxu3  ;;  %6604 = vmatmul.msk.f32.gmra.mxu1 %vm2260_vm2, %v10505_v17  ;;  %4064 = vrot.lane.b32.xlu0 %v10512_v19, %s6953_s14  ;;  %v10537_v33 = vpop.f32.mrf.mxu2  ;;  %v12847_v19 = vld [vmem:[#allocation28_spill] sm:$0xff] }
 0x526   : > { %3387 = vmatmul.f32.gmra.mxu2 %v12844_v15  ;;  %3604 = vmatmul.f32.gmra.mxu0 %v12819_v11 }
 0x528   : > { %v3248_v5 = vpop.f32.mrf.mxu1  ;;  %6623 = vmatmul.msk.f32.gmra.mxu3 %vm2260_vm2, %v10143_v41 }
 0x529   : > { %v10528_v12 = vadd.f32 %v3248_v5, %v10270_v60  ;;  %v10542_v60 = vadd.f32 %v2866_v6, %v10389_v49 }
 0x52b   : > { %12845 = vst [vmem:[#allocation13_spill] sm:$0xff] %v10528_v12  ;;  %6605 = vmatmul.msk.f32.gmra.mxu1 %vm2260_vm2, %v10523_v50  ;;  %v3444_v2 = vpop.f32.mrf.mxu3  ;;  %4068 = vrot.lane.b32.xlu0 %v10528_v12, %s6953_s14 }
 0x52c   : > { %v3445_v11 = vadd.f32 %v3444_v2, %v10410_v36  ;;  %v10551_v2 = vpop.f32.mrf.mxu0 }
 0x52e   : > { %3390 = vmatmul.f32.gmra.mxu2 %v12846_v54  ;;  %3828 = vrot.lane.b32.xlu2 %v3445_v11, %s6953_s14 }
 0x52f   : > { %3607 = vmatmul.f32.gmra.mxu0 %v12821_v59  ;;  %v10555_v59 = vpop.f32.mrf.mxu2 }
 0x530   : > { %v3251_v5 = vpop.f32.mrf.mxu1  ;;  %6624 = vmatmul.msk.f32.gmra.mxu3 %vm2260_vm2, %v10172_v10 }
 0x531   : > { %v10561_v6 = vadd.f32 %v3251_v5, %v10296_v43 }
 0x533   : > { %6606 = vmatmul.msk.f32.gmra.mxu1 %vm2260_vm2, %v10542_v60  ;;  %v3447_v12 = vpop.f32.mrf.mxu3  ;;  %3923 = vrot.lane.b32.xlu0 %v3445_v11, %s6954_s29  ;;  %12848 = vst [vmem:[#allocation37_spill] sm:$0xff] %v10561_v6 }
 0x534   : > { %v3448_v36 = vadd.f32 %v3447_v12, %v10435_v14  ;;  %v12849_v14 = vld [vmem:[#allocation34_spill] sm:$0xff]  ;;  %v10569_v12 = vpop.f32.mrf.mxu0 }
 0x536   : > { %3393 = vmatmul.f32.gmra.mxu2 %v12847_v19  ;;  %3832 = vrot.lane.b32.xlu2 %v3448_v36, %s6953_s14 }
 0x537   : > { %3610 = vmatmul.f32.gmra.mxu0 %v9738_v46  ;;  %v10574_v43 = vpop.f32.mrf.mxu2 }
 0x538   : > { %v3254_v49 = vpop.f32.mrf.mxu1  ;;  %6625 = vmatmul.msk.f32.gmra.mxu3 %vm2260_vm2, %v10206_v9 }
 0x539   : > { %v10577_v5 = vadd.f32 %v3254_v49, %v10316_v26 }
 0x53b   : > { %v3450_v11 = vpop.f32.mrf.mxu3  ;;  %6643 = vmatmul.msk.f32.vlgmr.msra.gmra.mxu1 %vm2260_vm2, %v9743_v38  ;;  %4072 = vrot.lane.b32.xlu0 %v10561_v6, %s6953_s14  ;;  %12850 = vst [vmem:[#allocation22_spill] sm:$0xff] %v10577_v5  ;;  %v12851_v6 = vld [vmem:[#allocation17_spill] sm:$0xff] }
 0x53c   : > { %v10589_v26 = vpop.f32.mrf.mxu0 }
 0x53e   : > { %3396 = vmatmul.f32.gmra.mxu2 %v12849_v14  ;;  %3927 = vrot.lane.b32.xlu2 %v3448_v36, %s6954_s29  ;;  %v3451_v36 = vadd.f32 %v3450_v11, %v10455_v61  ;;  %v12853_v61 = vld [vmem:[#allocation21_spill] sm:$0xff] }
 0x53f   : > { %3613 = vmatmul.f32.gmra.mxu0 %v9757_v29 }
 0x540   : > { %v3257_v46 = vpop.f32.mrf.mxu1  ;;  %6626 = vmatmul.msk.f32.gmra.mxu3 %vm2260_vm2, %v10231_v27 }
 0x541   : > { %v10592_v49 = vadd.f32 %v3257_v46, %v10337_v57 }
 0x543   : > { %v3453_v38 = vpop.f32.mrf.mxu3  ;;  %6644 = vmatmul.msk.f32.gmra.mxu1 %vm2260_vm2, %v9762_v23  ;;  %4076 = vrot.lane.b32.xlu0 %v10577_v5, %s6953_s14  ;;  %12852 = vst [vmem:[#allocation28_spill] sm:$0xff] %v10592_v49  ;;  %v10594_v23 = vpop.f32.mrf.mxu2 }
 0x544   : > { %v10608_v11 = vpop.f32.mrf.mxu0 }
 0x546   : > { %3399 = vmatmul.f32.gmra.mxu2 %v12851_v6  ;;  %3836 = vrot.lane.b32.xlu2 %v3451_v36, %s6953_s14 }
 0x547   : > { %3616 = vmatmul.f32.gmra.mxu0 %v9775_v45 }
 0x548   : > { %v3260_v29 = vpop.f32.mrf.mxu1  ;;  %6627 = vmatmul.msk.f32.gmra.mxu3 %vm2260_vm2, %v10253_v31 }
 0x549   : > { %v10606_v57 = vadd.f32 %v3260_v29, %v10362_v13 }
 0x54b   : > { %v3456_v5 = vpop.f32.mrf.mxu3  ;;  %6645 = vmatmul.msk.f32.gmra.mxu1 %vm2260_vm2, %v9780_v42  ;;  %4080 = vrot.lane.b32.xlu0 %v10592_v49, %s6953_s14  ;;  %12854 = vst [vmem:[#allocation34_spill] sm:$0xff] %v10606_v57  ;;  %v3454_v42 = vadd.f32 %v3453_v38, %v10490_v4  ;;  %v12858_v4 = vld [vmem:[#allocation36_spill] sm:$0xff]  ;;  %v12859_v38 = vld [vmem:[#allocation14_spill] sm:$0xff] }
 0x54e   : > { %3402 = vmatmul.f32.gmra.mxu2 %v12853_v61  ;;  %3931 = vrot.lane.b32.xlu2 %v3451_v36, %s6954_s29  ;;  %v3346_v36 = vpop.f32.mrf.mxu2 }
 0x54f   : > { %3619 = vmatmul.f32.gmra.mxu0 %v9793_v52  ;;  %v12855_v52 = vld [vmem:[#allocation19_spill] sm:$0xff] }
 0x550   : > { %v3263_v45 = vpop.f32.mrf.mxu1  ;;  %6628 = vmatmul.msk.f32.gmra.mxu3 %vm2260_vm2, %v10275_v51 }
 0x551   : > { %v10621_v29 = vadd.f32 %v3263_v45, %v10382_v0 }
 0x553   : > { %v3459_v46 = vpop.f32.mrf.mxu3  ;;  %6646 = vmatmul.msk.f32.gmra.mxu1 %vm2260_vm2, %v9801_v62  ;;  %4084 = vrot.lane.b32.xlu0 %v10606_v57, %s6953_s14  ;;  %12856 = vst [vmem:[#allocation17_spill] sm:$0xff] %v10621_v29 }
 0x556   : > { %3405 = vmatmul.f32.gmra.mxu2 %v12855_v52  ;;  %3840 = vrot.lane.b32.xlu2 %v3454_v42, %s6953_s14  ;;  %v3349_v0 = vpop.f32.mrf.mxu2 }
 0x557   : > { %3622 = vmatmul.f32.gmra.mxu0 %v12828_v22  ;;  %v10634_v22 = vpop.f32.mrf.mxu0 }
 0x558   : > { %v3266_v13 = vpop.f32.mrf.mxu1  ;;  %6629 = vmatmul.msk.f32.gmra.mxu3 %vm2260_vm2, %v10294_v8 }
 0x559   : > { %v10624_v62 = vadd.f32 %v3266_v13, %v10405_v3 }
 0x55b   : > { %12857 = vst [vmem:[#allocation21_spill] sm:$0xff] %v10624_v62  ;;  %v10626_v57 = vpop.f32.mrf.mxu3  ;;  %6647 = vmatmul.msk.f32.gmra.mxu1 %vm2260_vm2, %v12858_v4  ;;  %4088 = vrot.lane.b32.xlu0 %v10621_v29, %s6953_s14  ;;  %v3457_v4 = vadd.f32 %v3456_v5, %v10514_v21  ;;  %v10667_v5 = vpop.permute.xlu1 %3826  ;;  %v12863_v29 = vld [vmem:[#allocation18_spill] sm:$0xff] }
 0x55c   : > { %4260 = vrot.lane.b32.xlu1 %v10624_v62, %s6953_s14  ;;  %v12883_v62 = vld [vmem:[#allocation12_spill] sm:$0xff] }
 0x55e   : > { %3408 = vmatmul.f32.gmra.mxu2 %v12859_v38  ;;  %3935 = vrot.lane.b32.xlu2 %v3454_v42, %s6954_s29  ;;  %v12861_v42 = vld [vmem:[#allocation16_spill] sm:$0xff] }
 0x55f   : > { %3625 = vmatmul.f32.gmra.mxu0 %v12831_v35  ;;  %v10653_v35 = vpop.f32.mrf.mxu0 }
 0x560   : > { %v3269_v3 = vpop.f32.mrf.mxu1  ;;  %6630 = vmatmul.msk.f32.gmra.mxu3 %vm2260_vm2, %v10312_v30 }
 0x561   : > { %v10642_v45 = vadd.f32 %v3269_v3, %v10426_v55  ;;  %v3352_v3 = vpop.f32.mrf.mxu2 }
 0x563   : > { %12860 = vst [vmem:[#allocation19_spill] sm:$0xff] %v10642_v45  ;;  %v10644_v13 = vpop.f32.mrf.mxu3  ;;  %6648 = vmatmul.msk.f32.gmra.mxu1 %vm2260_vm2, %v9865_v24 }
 0x564   : > { %4264 = vrot.lane.b32.xlu1 %v10642_v45, %s6953_s14 }
 0x566   : > { %3411 = vmatmul.f32.gmra.mxu2 %v12861_v42  ;;  %3844 = vrot.lane.b32.xlu2 %v3457_v4, %s6953_s14 }
 0x567   : > { %3628 = vmatmul.f32.gmra.mxu0 %v12835_v16 }
 0x568   : > { %v3272_v55 = vpop.f32.mrf.mxu1  ;;  %6631 = vmatmul.msk.f32.gmra.mxu3 %vm2260_vm2, %v10330_v25 }
 0x569   : > { %v10659_v24 = vadd.f32 %v3272_v55, %v10451_v18  ;;  %v10674_v18 = vpop.f32.mrf.mxu0 }
 0x56b   : > { %12862 = vst [vmem:[#allocation36_spill] sm:$0xff] %v10659_v24  ;;  %v10661_v21 = vpop.f32.mrf.mxu3  ;;  %6649 = vmatmul.msk.f32.gmra.mxu1 %vm2260_vm2, %v9896_v56  ;;  %v3355_v56 = vpop.f32.mrf.mxu2 }
 0x56c   : > { %4268 = vrot.lane.b32.xlu1 %v10659_v24, %s6953_s14  ;;  %v3460_v24 = vadd.f32 %v3459_v46, %v10537_v33 }
 0x56e   : > { %3414 = vmatmul.f32.gmra.mxu2 %v12863_v29  ;;  %3939 = vrot.lane.b32.xlu2 %v3457_v4, %s6954_s29  ;;  %v10688_v4 = vpop.permute.xlu1 %3830 }
 0x56f   : > { %3631 = vmatmul.f32.gmra.mxu0 %v12838_v53  ;;  %v12865_v53 = vld [vmem:[#allocation20_spill] sm:$0xff] }
 0x570   : > { %v3275_v16 = vpop.f32.mrf.mxu1  ;;  %6632 = vmatmul.msk.f32.gmra.mxu3 %vm2260_vm2, %v10348_v7 }
 0x571   : > { %v10677_v55 = vadd.f32 %v3275_v16, %v10480_v37  ;;  %v10696_v33 = vpop.f32.mrf.mxu0 }
 0x573   : > { %12864 = vst [vmem:[#allocation14_spill] sm:$0xff] %v10677_v55  ;;  %v3471_v49 = vpop.f32.mrf.mxu3  ;;  %6650 = vmatmul.msk.f32.gmra.mxu1 %vm2260_vm2, %v9924_v20 }
 0x574   : > { %v10682_v45 = vadd.f32 %v3471_v49, %v3346_v36  ;;  %4272 = vrot.lane.b32.xlu1 %v10677_v55, %s6953_s14  ;;  %v3358_v36 = vpop.f32.mrf.mxu2 }
 0x576   : > { %3417 = vmatmul.f32.gmra.mxu2 %v12865_v53  ;;  %3848 = vrot.lane.b32.xlu2 %v3460_v24, %s6953_s14 }
 0x577   : > { %3634 = vmatmul.f32.gmra.mxu0 %v12841_v40  ;;  %v12867_v40 = vld [vmem:[#allocation8_spill] sm:$0xff] }
 0x578   : > { %v3278_v37 = vpop.f32.mrf.mxu1  ;;  %6633 = vmatmul.msk.f32.gmra.mxu3 %vm2260_vm2, %v10367_v28 }
 0x579   : > { %v10694_v20 = vadd.f32 %v3278_v37, %v10509_v48  ;;  %v10707_v48 = vpop.permute.xlu2 %4044  ;;  %v10711_v37 = vpop.permute.xlu1 %3834 }
 0x57b   : > { %12866 = vst [vmem:[#allocation16_spill] sm:$0xff] %v10694_v20  ;;  %v3474_v49 = vpop.f32.mrf.mxu3  ;;  %6651 = vmatmul.msk.f32.gmra.mxu1 %vm2260_vm2, %v9941_v39 }
 0x57c   : > { %v10700_v46 = vadd.f32 %v3474_v49, %v3349_v0  ;;  %4276 = vrot.lane.b32.xlu1 %v10694_v20, %s6953_s14  ;;  %v12869_v20 = vld [vmem:[#allocation27_spill] sm:$0xff] }
 0x57e   : > { %3420 = vmatmul.f32.gmra.mxu2 %v12867_v40  ;;  %3943 = vrot.lane.b32.xlu2 %v3460_v24, %s6954_s29  ;;  %v3463_v24 = vadd.f32 %v10626_v57, %v10555_v59  ;;  %v10733_v59 = vpop.permute.xlu0 %4048 }
 0x57f   : > { %3637 = vmatmul.f32.gmra.mxu0 %v12844_v15  ;;  %v10724_v15 = vpop.f32.mrf.mxu0  ;;  %12870 = vst [vmem:[#allocation20_spill] sm:$0xff] %v10733_v59 }
 0x580   : > { %v3281_v16 = vpop.f32.mrf.mxu1  ;;  %6634 = vmatmul.msk.f32.gmra.mxu3 %vm2260_vm2, %v10385_v32 }
 0x581   : > { %v10714_v39 = vadd.f32 %v3281_v16, %v10530_v34  ;;  %v3361_v34 = vpop.f32.mrf.mxu2 }
 0x583   : > { %12868 = vst [vmem:[#allocation18_spill] sm:$0xff] %v10714_v39  ;;  %v3477_v0 = vpop.f32.mrf.mxu3  ;;  %6652 = vmatmul.msk.f32.gmra.mxu1 %vm2260_vm2, %v9963_v1 }
 0x584   : > { %v10720_v49 = vadd.f32 %v3477_v0, %v3352_v3  ;;  %4280 = vrot.lane.b32.xlu1 %v10714_v39, %s6953_s14  ;;  %v10738_v3 = vpop.permute.xlu1 %3838  ;;  %v12873_v39 = vld [vmem:[#allocation25_spill] sm:$0xff] }
 0x585   : > { %12872 = vst [vmem:[#allocation27_spill] sm:$0xff] %v10738_v3 }
 0x586   : > { %3852 = vrot.lane.b32.xlu2 %v3463_v24, %s6953_s14  ;;  %3423 = vmatmul.f32.gmra.mxu2 %v12869_v20 }
 0x587   : > { %3640 = vmatmul.f32.gmra.mxu0 %v12846_v54  ;;  %v10746_v54 = vpop.f32.mrf.mxu0 }
 0x588   : > { %v3284_v16 = vpop.f32.mrf.mxu1  ;;  %6635 = vmatmul.msk.f32.gmra.mxu3 %vm2260_vm2, %v10401_v58  ;;  %v10731_v1 = vpop.permute.xlu2 %3828 }
 0x589   : > { %v10736_v57 = vadd.f32 %v3284_v16, %v10551_v2  ;;  %v3364_v3 = vpop.f32.mrf.mxu2 }
 0x58b   : > { %12871 = vst [vmem:[#allocation8_spill] sm:$0xff] %v10736_v57  ;;  %v3480_v0 = vpop.f32.mrf.mxu3  ;;  %6653 = vmatmul.msk.f32.gmra.mxu1 %vm2260_vm2, %v12873_v39  ;;  %v10756_v39 = vpop.permute.xlu0 %4052 }
 0x58c   : > { %v3481_v55 = vadd.f32 %v3480_v0, %v3355_v56  ;;  %4284 = vrot.lane.b32.xlu1 %v10736_v57, %s6953_s14  ;;  %12875 = vst [vmem:[#allocation43_spill] sm:$0xff] %v10756_v39  ;;  %v3466_v57 = vadd.f32 %v10644_v13, %v10574_v43 }
 0x58e   : > { %3947 = vrot.lane.b32.xlu2 %v3463_v24, %s6954_s29  ;;  %4046 = vrot.lane.b32.xlu0 %v3481_v55, %s6953_s14  ;;  %v12876_v24 = vld [vmem:[#allocation31_spill] sm:$0xff] }
 0x58f   : > { %3643 = vmatmul.f32.gmra.mxu0 %v12847_v19  ;;  %v10764_v19 = vpop.permute.xlu1 %3842 }
 0x590   : > { %v3287_v2 = vpop.f32.mrf.mxu1  ;;  %6636 = vmatmul.msk.f32.gmra.mxu3 %vm2260_vm2, %v10419_v47  ;;  %v10751_v16 = vpop.permute.xlu2 %3832  ;;  %12877 = vst [vmem:[#allocation31_spill] sm:$0xff] %v10764_v19 }
 0x591   : > { %v10754_v56 = vadd.f32 %v3287_v2, %v10569_v12  ;;  %v12878_v2 = vld [vmem:[#allocation30_spill] sm:$0xff]  ;;  %v3367_v13 = vpop.f32.mrf.mxu2 }
 0x593   : > { %12874 = vst [vmem:[#allocation25_spill] sm:$0xff] %v10754_v56  ;;  %v3483_v0 = vpop.f32.mrf.mxu3  ;;  %6654 = vmatmul.msk.f32.gmra.mxu1 %vm2260_vm2, %v12876_v24  ;;  %v10773_v24 = vpop.f32.mrf.mxu0 }
 0x594   : > { %4288 = vrot.lane.b32.xlu1 %v10754_v56, %s6953_s14  ;;  %v3484_v43 = vadd.f32 %v3483_v0, %v3358_v36  ;;  %v12879_v56 = vld [vmem:[#allocation38_spill] sm:$0xff]  ;;  %v10778_v19 = vpop.permute.xlu0 %4056 }
 0x595   : > { %12880 = vst [vmem:[#allocation30_spill] sm:$0xff] %v10778_v19 }
 0x596   : > { %3856 = vrot.lane.b32.xlu2 %v3466_v57, %s6953_s14  ;;  %4140 = vrot.lane.b32.xlu0 %v3481_v55, %s6954_s29 }
 0x597   : > { %3646 = vmatmul.f32.gmra.mxu0 %v12849_v14  ;;  %v10782_v14 = vpop.permute.xlu1 %3846 }
 0x598   : > { %v3290_v12 = vpop.f32.mrf.mxu1  ;;  %6637 = vmatmul.msk.f32.gmra.mxu3 %vm2260_vm2, %v12878_v2  ;;  %v10771_v39 = vpop.permute.xlu2 %3927  ;;  %12881 = vst [vmem:[#allocation38_spill] sm:$0xff] %v10782_v14  ;;  %v12885_v14 = vld [vmem:[#allocation33_spill] sm:$0xff] }
 0x59b   : > { %v3486_v59 = vpop.f32.mrf.mxu3  ;;  %6655 = vmatmul.msk.f32.gmra.mxu1 %vm2260_vm2, %v12879_v56  ;;  %v10790_v56 = vadd.f32 %v3290_v12, %v10589_v26  ;;  %v10792_v0 = vpop.f32.mrf.mxu0 }
 0x59c   : > { %4050 = vrot.lane.b32.xlu1 %v3484_v43, %s6953_s14  ;;  %v10802_v26 = vpop.permute.xlu0 %4060 }
 0x59d   : > { %12882 = vst [vmem:[#allocation44_spill] sm:$0xff] %v10790_v56 }
 0x59e   : > { %3951 = vrot.lane.b32.xlu2 %v3466_v57, %s6954_s29  ;;  %4144 = vrot.lane.b32.xlu0 %v3484_v43, %s6954_s29  ;;  %v3469_v57 = vadd.f32 %v10661_v21, %v10594_v23  ;;  %v3487_v43 = vadd.f32 %v3486_v59, %v3361_v34  ;;  %12884 = vst [vmem:[#allocation12_spill] sm:$0xff] %v10802_v26  ;;  %v12887_v34 = vld [vmem:[#allocation3_spill] sm:$0xff] }
 0x59f   : > { %3649 = vmatmul.f32.gmra.mxu0 %v12851_v6  ;;  %v3370_v6 = vpop.f32.mrf.mxu2  ;;  %v10809_v23 = vpop.permute.xlu1 %3850 }
 0x5a0   : > { %v3293_v55 = vpop.f32.mrf.mxu1  ;;  %6638 = vmatmul.msk.f32.gmra.mxu3 %vm2260_vm2, %v10458_v63  ;;  %v10787_v36 = vpop.permute.xlu2 %3836  ;;  %12886 = vst [vmem:[#allocation33_spill] sm:$0xff] %v10809_v23 }
 0x5a3   : > { %v3489_v19 = vpop.f32.mrf.mxu3  ;;  %6656 = vmatmul.msk.f32.gmra.mxu1 %vm2260_vm2, %v12883_v62 }
 0x5a4   : > { %4292 = vrot.lane.b32.xlu1 %v10790_v56, %s6953_s14  ;;  %v3490_v59 = vadd.f32 %v3489_v19, %v3364_v3  ;;  %v10814_v56 = vpop.f32.mrf.mxu0  ;;  %v10828_v3 = vadd.f32 %v3293_v55, %v10608_v11 }
 0x5a6   : > { %3860 = vrot.lane.b32.xlu2 %v3469_v57, %s6953_s14  ;;  %4148 = vrot.lane.b32.xlu0 %v3487_v43, %s6954_s29  ;;  %12889 = vst [vmem:[#allocation45_spill] sm:$0xff] %v10828_v3 }
 0x5a7   : > { %3652 = vmatmul.f32.gmra.mxu0 %v12853_v61  ;;  %v3373_v61 = vpop.f32.mrf.mxu2  ;;  %v10830_v19 = vpop.permute.xlu1 %3854 }
 0x5a8   : > { %v3296_v12 = vpop.f32.mrf.mxu1  ;;  %6639 = vmatmul.msk.f32.gmra.mxu3 %vm2260_vm2, %v12885_v14  ;;  %v10807_v62 = vpop.permute.xlu2 %3931  ;;  %12890 = vst [vmem:[#allocation46_spill] sm:$0xff] %v10830_v19 }
 0x5ab   : > { %v3492_v21 = vpop.f32.mrf.mxu3  ;;  %6657 = vmatmul.msk.f32.gmra.mxu1 %vm2260_vm2, %v12887_v34  ;;  %v10825_v34 = vpop.permute.xlu0 %4064 }
 0x5ac   : > { %4054 = vrot.lane.b32.xlu1 %v3487_v43, %s6953_s14  ;;  %12888 = vst [vmem:[#allocation3_spill] sm:$0xff] %v10825_v34  ;;  %v3493_v43 = vadd.f32 %v3492_v21, %v3367_v13 }
 0x5ae   : > { %3955 = vrot.lane.b32.xlu2 %v3469_v57, %s6954_s29  ;;  %4152 = vrot.lane.b32.xlu0 %v3490_v59, %s6954_s29 }
 0x5af   : > { %3655 = vmatmul.f32.gmra.mxu0 %v12855_v52  ;;  %v10839_v52 = vpop.f32.mrf.mxu0  ;;  %v10851_v19 = vpop.permute.xlu1 %3858 }
 0x5b0   : > { %v10819_v26 = vpop.f32.mrf.mxu1  ;;  %6640 = vmatmul.msk.f32.gmra.mxu3 %vm2260_vm2, %v10505_v17  ;;  %v10823_v23 = vpop.permute.xlu2 %3840  ;;  %12892 = vst [vmem:[#allocation48_spill] sm:$0xff] %v10851_v19 }
 0x5b3   : > { %v3495_v57 = vpop.f32.mrf.mxu3  ;;  %6658 = vmatmul.msk.f32.gmra.mxu1 %vm2260_vm2, %v12842_v44  ;;  %v3376_v44 = vpop.f32.mrf.mxu2 }
 0x5b4   : > { %4296 = vrot.lane.b32.xlu1 %v10828_v3, %s6953_s14  ;;  %v10846_v13 = vpop.permute.xlu0 %4068  ;;  %v3496_v3 = vadd.f32 %v3495_v57, %v3370_v6 }
 0x5b5   : > { %12891 = vst [vmem:[#allocation47_spill] sm:$0xff] %v10846_v13 }
 0x5b6   : > { %3864 = vrot.lane.b32.xlu2 %v10682_v45, %s6953_s14  ;;  %4156 = vrot.lane.b32.xlu0 %v3493_v43, %s6954_s29 }
 0x5b7   : > { %3658 = vmatmul.f32.gmra.mxu0 %v12859_v38  ;;  %v10861_v34 = vpop.f32.mrf.mxu0  ;;  %v10875_v57 = vpop.permute.xlu1 %3862 }
 0x5b8   : > { %6641 = vmatmul.msk.f32.gmra.mxu3 %vm2260_vm2, %v10523_v50  ;;  %v3694_v11 = vpop.f32.mrf.mxu1  ;;  %v10844_v55 = vpop.permute.xlu2 %3935  ;;  %12894 = vst [vmem:[#allocation50_spill] sm:$0xff] %v10875_v57 }
 0x5bb   : > { %v3498_v21 = vpop.f32.mrf.mxu3  ;;  %6659 = vmatmul.msk.f32.gmra.mxu1 %vm2260_vm2, %v10143_v41  ;;  %v10864_v41 = vadd.f32 %v3296_v12, %v10634_v22  ;;  %v3379_v6 = vpop.f32.mrf.mxu2 }
 0x5bc   : > { %4058 = vrot.lane.b32.xlu1 %v3490_v59, %s6953_s14 }
 0x5bd   : > { %12893 = vst [vmem:[#allocation49_spill] sm:$0xff] %v10864_v41 }
 0x5be   : > { %3959 = vrot.lane.b32.xlu2 %v10682_v45, %s6954_s29  ;;  %4160 = vrot.lane.b32.xlu0 %v3496_v3, %s6954_s29  ;;  %v3499_v45 = vadd.f32 %v3498_v21, %v3373_v61 }
 0x5bf   : > { %3661 = vmatmul.f32.gmra.mxu0 %v12861_v42  ;;  %v10870_v42 = vpop.permute.xlu0 %3923  ;;  %v10880_v19 = vpop.f32.mrf.mxu0 }
 0x5c0   : > { %6642 = vmatmul.msk.f32.gmra.mxu3 %vm2260_vm2, %v10542_v60  ;;  %v3697_v38 = vpop.f32.mrf.mxu1  ;;  %v10859_v13 = vpop.permute.xlu2 %3844 }
 0x5c1   : > { %v3698_v61 = vadd.f32 %v3697_v38, %v10696_v33 }
 0x5c3   : > { %v3501_v59 = vpop.f32.mrf.mxu3  ;;  %6660 = vmatmul.msk.f32.gmra.mxu1 %vm2260_vm2, %v10172_v10  ;;  %v3382_v21 = vpop.f32.mrf.mxu2 }
 0x5c4   : > { %4300 = vrot.lane.b32.xlu1 %v10864_v41, %s6953_s14  ;;  %v3502_v33 = vadd.f32 %v3501_v59, %v3376_v44 }
 0x5c6   : > { %3868 = vrot.lane.b32.xlu2 %v10700_v46, %s6953_s14  ;;  %4164 = vrot.lane.b32.xlu0 %v3499_v45, %s6954_s29 }
 0x5c7   : > { %3664 = vmatmul.f32.gmra.mxu0 %v12863_v29  ;;  %v10889_v29 = vpop.permute.xlu0 %4072 }
 0x5c8   : > { %v3700_v22 = vpop.f32.mrf.mxu1  ;;  %v10878_v12 = vpop.permute.xlu2 %3939  ;;  %12896 = vst [vmem:[#allocation52_spill] sm:$0xff] %v10889_v29 }
 0x5c9   : > { %12895 = vst [vmem:[#allocation51_spill] sm:$0xff] %v10878_v12  ;;  %v10894_v12 = vpop.permute.xlu1 %3866  ;;  %v3701_v44 = vadd.f32 %v3700_v22, %v10724_v15 }
 0x5ca   : > { %12897 = vst [vmem:[#allocation53_spill] sm:$0xff] %v10894_v12 }
 0x5cb   : > { %v3504_v10 = vpop.f32.mrf.mxu3  ;;  %6661 = vmatmul.msk.f32.gmra.mxu1 %vm2260_vm2, %v10206_v9 }
 0x5cc   : > { %4062 = vrot.lane.b32.xlu1 %v3493_v43, %s6953_s14  ;;  %v10899_v43 = vpop.f32.mrf.mxu0  ;;  %v3505_v15 = vadd.f32 %v3504_v10, %v3379_v6 }
 0x5ce   : > { %3963 = vrot.lane.b32.xlu2 %v10700_v46, %s6954_s29  ;;  %3929 = vrot.lane.b32.xlu0 %v3698_v61, %s6954_s29  ;;  %v3695_v61 = vadd.f32 %v3694_v11, %v10674_v18 }
 0x5cf   : > { %3667 = vmatmul.f32.gmra.mxu0 %v12865_v53  ;;  %v3385_v53 = vpop.f32.mrf.mxu2  ;;  %v10905_v38 = vpop.permute.xlu0 %4076 }
 0x5d0   : > { %v3703_v41 = vpop.f32.mrf.mxu1  ;;  %v10892_v57 = vpop.permute.xlu2 %3848  ;;  %12898 = vst [vmem:[#allocation54_spill] sm:$0xff] %v10905_v38 }
 0x5d3   : > { %v3507_v9 = vpop.f32.mrf.mxu3  ;;  %6662 = vmatmul.msk.f32.gmra.mxu1 %vm2260_vm2, %v10231_v27 }
 0x5d4   : > { %4066 = vrot.lane.b32.xlu1 %v3496_v3, %s6953_s14  ;;  %v10912_v3 = vpop.permute.xlu1 %3870 }
 0x5d5   : > { %12899 = vst [vmem:[#allocation55_spill] sm:$0xff] %v10912_v3 }
 0x5d6   : > { %3872 = vrot.lane.b32.xlu2 %v10720_v49, %s6953_s14  ;;  %4168 = vrot.lane.b32.xlu0 %v3502_v33, %s6954_s29 }
 0x5d7   : > { %3670 = vmatmul.f32.gmra.mxu0 %v12867_v40  ;;  %v10919_v40 = vpop.f32.mrf.mxu0  ;;  %v3388_v11 = vpop.f32.mrf.mxu2 }
 0x5d8   : > { %v3706_v46 = vpop.f32.mrf.mxu1  ;;  %v10908_v12 = vpop.permute.xlu2 %3943 }
 0x5d9   : > { %v10922_v59 = vpop.permute.xlu0 %4080 }
 0x5da   : > { %12900 = vst [vmem:[#allocation56_spill] sm:$0xff] %v10922_v59  ;;  %v3704_v59 = vadd.f32 %v3703_v41, %v10746_v54 }
 0x5db   : > { %v3510_v27 = vpop.f32.mrf.mxu3  ;;  %6663 = vmatmul.msk.f32.gmra.mxu1 %vm2260_vm2, %v10253_v31 }
 0x5dc   : > { %3925 = vrot.lane.b32.xlu1 %v3695_v61, %s6954_s29  ;;  %v10926_v22 = vpop.permute.xlu1 %4260 }
 0x5de   : > { %3967 = vrot.lane.b32.xlu2 %v10720_v49, %s6954_s29  ;;  %3933 = vrot.lane.b32.xlu0 %v3701_v44, %s6954_s29 }
 0x5df   : > { %3673 = vmatmul.f32.gmra.mxu0 %v12869_v20  ;;  %v10932_v44 = vpop.f32.mrf.mxu0  ;;  %v3391_v20 = vpop.f32.mrf.mxu2 }
 0x5e0   : > { %v3709_v18 = vpop.f32.mrf.mxu1  ;;  %v10929_v49 = vpop.permute.xlu2 %3852 }
 0x5e1   : > { %v10938_v6 = vpop.permute.xlu0 %4084 }
 0x5e2   : > { %12901 = vst [vmem:[#allocation57_spill] sm:$0xff] %v10938_v6 }
 0x5e3   : > { %v3513_v31 = vpop.f32.mrf.mxu3  ;;  %6664 = vmatmul.msk.f32.gmra.mxu1 %vm2260_vm2, %v10275_v51 }
 0x5e4   : > { %4070 = vrot.lane.b32.xlu1 %v3499_v45, %s6953_s14  ;;  %v10940_v45 = vpop.permute.xlu1 %4264 }
 0x5e6   : > { %4172 = vrot.lane.b32.xlu0 %v3505_v15, %s6954_s29 }
 0x5e7   : > { %v10946_v29 = vpop.f32.mrf.mxu0 }
 0x5e8   : > { %v3712_v61 = vpop.f32.mrf.mxu1  ;;  %v10944_v10 = vpop.permute.xlu2 %3947 }
 0x5e9   : > { %v10953_v54 = vpop.permute.xlu0 %4088 }
 0x5ea   : > { %12902 = vst [vmem:[#allocation58_spill] sm:$0xff] %v10953_v54  ;;  %v3511_v54 = vadd.f32 %v3510_v27, %v3385_v53  ;;  %v10982_v53 = vadd.f32 %v3513_v31, %v3388_v11 }
 0x5eb   : > { %v3516_v3 = vpop.f32.mrf.mxu3  ;;  %6665 = vmatmul.msk.f32.gmra.mxu1 %vm2260_vm2, %v10294_v8  ;;  %v3508_v8 = vadd.f32 %v3507_v9, %v3382_v21 }
 0x5ec   : > { %v3517_v51 = vadd.f32 %v3516_v3, %v3391_v20  ;;  %4074 = vrot.lane.b32.xlu1 %v3502_v33, %s6953_s14  ;;  %v10955_v41 = vpop.permute.xlu1 %4268  ;;  %v3394_v20 = vpop.f32.mrf.mxu2 }
 0x5ee   : > { %4262 = vrot.lane.b32.xlu2 %v3517_v51, %s6953_s14  ;;  %3937 = vrot.lane.b32.xlu0 %v3704_v59, %s6954_s29 }
 0x5ef   : > { %v3611_v9 = vpop.f32.mrf.mxu0 }
 0x5f0   : > { %v3715_v38 = vpop.f32.mrf.mxu1  ;;  %v10957_v3 = vpop.permute.xlu2 %3856 }
 0x5f1   : > { %12903 = vst [vmem:[#allocation59_spill] sm:$0xff] %v10957_v3 }
 0x5f3   : > { %6666 = vmatmul.msk.f32.gmra.mxu1 %vm2260_vm2, %v10312_v30  ;;  %v3519_v59 = vpop.f32.mrf.mxu3  ;;  %v3707_v30 = vadd.f32 %v3706_v46, %v10773_v24 }
 0x5f4   : > { %4078 = vrot.lane.b32.xlu1 %v3505_v15, %s6953_s14  ;;  %v3520_v21 = vadd.f32 %v3519_v59, %v3394_v20  ;;  %v10969_v6 = vpop.permute.xlu1 %4272  ;;  %v3397_v27 = vpop.f32.mrf.mxu2 }
 0x5f6   : > { %4356 = vrot.lane.b32.xlu2 %v3517_v51, %s6954_s29  ;;  %4176 = vrot.lane.b32.xlu0 %v3508_v8, %s6954_s29 }
 0x5f8   : > { %v3718_v33 = vpop.f32.mrf.mxu1  ;;  %v10971_v3 = vpop.permute.xlu2 %3951 }
 0x5f9   : > { %12904 = vst [vmem:[#allocation60_spill] sm:$0xff] %v10971_v3 }
 0x5fb   : > { %6667 = vmatmul.msk.f32.gmra.mxu1 %vm2260_vm2, %v10330_v25  ;;  %v3614_v25 = vpop.f32.mrf.mxu0  ;;  %v3522_v46 = vpop.f32.mrf.mxu3 }
 0x5fc   : > { %4082 = vrot.lane.b32.xlu1 %v3508_v8, %s6953_s14  ;;  %v10987_v59 = vpop.permute.xlu1 %4276  ;;  %v3523_v20 = vadd.f32 %v3522_v46, %v3397_v27 }
 0x5fe   : > { %4266 = vrot.lane.b32.xlu2 %v3520_v21, %s6953_s14  ;;  %3941 = vrot.lane.b32.xlu0 %v3707_v30, %s6954_s29 }
 0x600   : > { %v10965_v15 = vpop.f32.mrf.mxu1  ;;  %v10967_v51 = vpop.permute.xlu0 %4046 }
 0x603   : > { %6668 = vmatmul.msk.f32.gmra.mxu1 %vm2260_vm2, %v10348_v7  ;;  %v3710_v7 = vadd.f32 %v3709_v18, %v10792_v0  ;;  %v3617_v31 = vpop.f32.mrf.mxu0  ;;  %v3525_v46 = vpop.f32.mrf.mxu3 }
 0x604   : > { %4086 = vrot.lane.b32.xlu1 %v3511_v54, %s6953_s14  ;;  %v11002_v0 = vpop.permute.xlu1 %4280 }
 0x605   : > { %12906 = vst [vmem:[#allocation62_spill] sm:$0xff] %v11002_v0 }
 0x606   : > { %4360 = vrot.lane.b32.xlu2 %v3520_v21, %s6954_s29  ;;  %4180 = vrot.lane.b32.xlu0 %v3511_v54, %s6954_s29  ;;  %v10991_v54 = vpop.permute.xlu2 %3860 }
 0x607   : > { %12905 = vst [vmem:[#allocation61_spill] sm:$0xff] %v10991_v54 }
 0x608   : > { %v10978_v24 = vpop.f32.mrf.mxu1  ;;  %v10980_v8 = vpop.permute.xlu0 %4140 }
 0x60b   : > { %6669 = vmatmul.msk.f32.gmra.mxu1 %vm2260_vm2, %v10367_v28  ;;  %v3713_v28 = vadd.f32 %v3712_v61, %v10814_v56  ;;  %v3620_v54 = vpop.f32.mrf.mxu0 }
 0x60c   : > { %4090 = vrot.lane.b32.xlu1 %v10982_v53, %s6953_s14 }
 0x60e   : > { %4270 = vrot.lane.b32.xlu2 %v3523_v20, %s6953_s14  ;;  %3945 = vrot.lane.b32.xlu0 %v3710_v7, %s6954_s29  ;;  %v11006_v18 = vpop.permute.xlu2 %3955  ;;  %v3400_v7 = vpop.f32.mrf.mxu2 }
 0x60f   : > { %12907 = vst [vmem:[#allocation63_spill] sm:$0xff] %v11006_v18  ;;  %v3526_v56 = vadd.f32 %v3525_v46, %v3400_v7 }
 0x610   : > { %v10995_v11 = vpop.f32.mrf.mxu1  ;;  %v10997_v30 = vpop.permute.xlu0 %4144 }
 0x613   : > { %6670 = vmatmul.msk.f32.gmra.mxu1 %vm2260_vm2, %v10385_v32  ;;  %v3716_v32 = vadd.f32 %v3715_v38, %v10839_v52  ;;  %v3623_v52 = vpop.f32.mrf.mxu0 }
 0x616   : > { %4364 = vrot.lane.b32.xlu2 %v3523_v20, %s6954_s29  ;;  %3949 = vrot.lane.b32.xlu0 %v3713_v28, %s6954_s29  ;;  %v11017_v20 = vpop.permute.xlu1 %4284 }
 0x617   : > { %12908 = vst [vmem:[#allocation64_spill] sm:$0xff] %v11017_v20 }
 0x618   : > { %v3730_v21 = vpop.f32.mrf.mxu1  ;;  %v11013_v61 = vpop.permute.xlu0 %4148 }
 0x619   : > { %v3731_v27 = vadd.f32 %v3730_v21, %v10932_v44  ;;  %v11019_v44 = vpop.permute.xlu2 %3864 }
 0x61a   : > { %12909 = vst [vmem:[#allocation65_spill] sm:$0xff] %v11019_v44 }
 0x61b   : > { %6671 = vmatmul.msk.f32.gmra.mxu1 %vm2260_vm2, %v10401_v58  ;;  %4142 = vrot.lane.b32.xlu1 %v3731_v27, %s6954_s29  ;;  %v3719_v58 = vadd.f32 %v3718_v33, %v10861_v34  ;;  %v3528_v27 = vpop.f32.mrf.mxu3  ;;  %v3626_v33 = vpop.f32.mrf.mxu0 }
 0x61e   : > { %4274 = vrot.lane.b32.xlu2 %v3526_v56, %s6953_s14  ;;  %3953 = vrot.lane.b32.xlu0 %v3716_v32, %s6954_s29  ;;  %v11030_v32 = vpop.permute.xlu1 %4288 }
 0x61f   : > { %12910 = vst [vmem:[#allocation66_spill] sm:$0xff] %v11030_v32 }
 0x620   : > { %v3733_v28 = vpop.f32.mrf.mxu1  ;;  %v11028_v38 = vpop.permute.xlu0 %4152 }
 0x621   : > { %v3734_v21 = vadd.f32 %v3733_v28, %v10946_v29  ;;  %v3403_v29 = vpop.f32.mrf.mxu2  ;;  %v11032_v28 = vpop.permute.xlu2 %3959 }
 0x622   : > { %12911 = vst [vmem:[#allocation67_spill] sm:$0xff] %v11032_v28  ;;  %v3529_v34 = vadd.f32 %v3528_v27, %v3403_v29 }
 0x623   : > { %6672 = vmatmul.msk.f32.gmra.mxu1 %vm2260_vm2, %v10419_v47  ;;  %4146 = vrot.lane.b32.xlu1 %v3734_v21, %s6954_s29  ;;  %v3722_v47 = vadd.f32 %v10965_v15, %v10880_v19  ;;  %v3531_v27 = vpop.f32.mrf.mxu3 }
 0x626   : > { %4368 = vrot.lane.b32.xlu2 %v3526_v56, %s6954_s29  ;;  %3957 = vrot.lane.b32.xlu0 %v3719_v58, %s6954_s29  ;;  %v11048_v58 = vpop.permute.xlu1 %4050 }
 0x628   : > { %v3736_v46 = vpop.f32.mrf.mxu1  ;;  %v11041_v56 = vpop.permute.xlu0 %4156 }
 0x629   : > { %v3737_v7 = vadd.f32 %v3736_v46, %v3611_v9  ;;  %v11050_v19 = vpop.permute.xlu2 %3868  ;;  %v3629_v46 = vpop.f32.mrf.mxu0 }
 0x62a   : > { %12912 = vst [vmem:[#allocation68_spill] sm:$0xff] %v11050_v19 }
 0x62b   : > { %6673 = vmatmul.msk.f32.gmra.mxu1 %vm2260_vm2, %v12878_v2  ;;  %4150 = vrot.lane.b32.xlu1 %v3737_v7, %s6954_s29  ;;  %v3725_v2 = vadd.f32 %v10978_v24, %v10899_v43  ;;  %v3406_v7 = vpop.f32.mrf.mxu2 }
 0x62c   : > { %v3532_v43 = vadd.f32 %v3531_v27, %v3406_v7 }
 0x62e   : > { %4278 = vrot.lane.b32.xlu2 %v3529_v34, %s6953_s14  ;;  %3961 = vrot.lane.b32.xlu0 %v3722_v47, %s6954_s29  ;;  %v11061_v24 = vpop.permute.xlu1 %4292 }
 0x62f   : > { %12913 = vst [vmem:[#allocation69_spill] sm:$0xff] %v11061_v24 }
 0x630   : > { %v3739_v9 = vpop.f32.mrf.mxu1  ;;  %v11054_v29 = vpop.permute.xlu0 %4160 }
 0x631   : > { %v3740_v21 = vadd.f32 %v3739_v9, %v3614_v25  ;;  %v11065_v47 = vpop.permute.xlu2 %3963  ;;  %v3632_v9 = vpop.f32.mrf.mxu0 }
 0x632   : > { %12914 = vst [vmem:[#allocation70_spill] sm:$0xff] %v11065_v47 }
 0x633   : > { %6674 = vmatmul.msk.f32.gmra.mxu1 %vm2260_vm2, %v10458_v63  ;;  %4154 = vrot.lane.b32.xlu1 %v3740_v21, %s6954_s29  ;;  %v3728_v63 = vadd.f32 %v10995_v11, %v10919_v40  ;;  %v3534_v40 = vpop.f32.mrf.mxu3  ;;  %v3409_v21 = vpop.f32.mrf.mxu2 }
 0x636   : > { %4372 = vrot.lane.b32.xlu2 %v3529_v34, %s6954_s29  ;;  %3965 = vrot.lane.b32.xlu0 %v3725_v2, %s6954_s29 }
 0x638   : > { %v3742_v15 = vpop.f32.mrf.mxu1  ;;  %v11074_v11 = vpop.permute.xlu0 %4164 }
 0x639   : > { %v3743_v25 = vadd.f32 %v3742_v15, %v3617_v31  ;;  %12916 = vst [vmem:[#allocation72_spill] sm:$0xff] %v11074_v11  ;;  %v11081_v15 = vpop.permute.xlu2 %3872 }
 0x63a   : > { %12917 = vst [vmem:[#allocation73_spill] sm:$0xff] %v11081_v15 }
 0x63b   : > { %6675 = vmatmul.msk.f32.gmra.mxu1 %vm2260_vm2, %v12885_v14  ;;  %4158 = vrot.lane.b32.xlu1 %v3743_v25, %s6954_s29  ;;  %v11072_v14 = vadd.f32 %v10819_v26, %v10653_v35  ;;  %v3535_v35 = vadd.f32 %v3534_v40, %v3409_v21  ;;  %v3635_v26 = vpop.f32.mrf.mxu0  ;;  %v3537_v27 = vpop.f32.mrf.mxu3 }
 0x63c   : > { %v3412_v7 = vpop.f32.mrf.mxu2 }
 0x63d   : > { %12915 = vst [vmem:[#allocation71_spill] sm:$0xff] %v11072_v14 }
 0x63e   : > { %4282 = vrot.lane.b32.xlu2 %v3532_v43, %s6953_s14  ;;  %3969 = vrot.lane.b32.xlu0 %v3728_v63, %s6954_s29 }
 0x640   : > { %v3745_v31 = vpop.f32.mrf.mxu1  ;;  %v11087_v25 = vpop.permute.xlu0 %3929 }
 0x641   : > { %v3746_v34 = vadd.f32 %v3745_v31, %v3620_v54  ;;  %v11079_v54 = vpop.permute.xlu1 %4054 }
 0x643   : > { %6676 = vmatmul.msk.f32.gmra.mxu1 %vm2260_vm2, %v10505_v17  ;;  %4162 = vrot.lane.b32.xlu1 %v3746_v34, %s6954_s29  ;;  %v11091_v34 = vpop.permute.xlu2 %3967 }
 0x644   : > { %12919 = vst [vmem:[#allocation75_spill] sm:$0xff] %v11091_v34 }
 0x646   : > { %4376 = vrot.lane.b32.xlu2 %v3532_v43, %s6954_s29  ;;  %4304 = vrot.lane.b32.xlu0 %v11072_v14, %s6953_s14 }
 0x648   : > { %v3748_v2 = vpop.f32.mrf.mxu1  ;;  %v11099_v21 = vpop.permute.xlu0 %4168 }
 0x649   : > { %v3749_v17 = vadd.f32 %v3748_v2, %v3623_v52  ;;  %v11089_v31 = vpop.permute.xlu1 %4296  ;;  %v3540_v52 = vpop.f32.mrf.mxu3  ;;  %12920 = vst [vmem:[#allocation76_spill] sm:$0xff] %v11099_v21 }
 0x64a   : > { %12918 = vst [vmem:[#allocation74_spill] sm:$0xff] %v11089_v31 }
 0x64b   : > { %6677 = vmatmul.msk.f32.gmra.mxu1 %vm2260_vm2, %v10523_v50  ;;  %4166 = vrot.lane.b32.xlu1 %v3749_v17, %s6954_s29  ;;  %v11097_v50 = vpop.f32.mrf.mxu0  ;;  %v3415_v17 = vpop.f32.mrf.mxu2 }
 0x64c   : > { %v3541_v24 = vadd.f32 %v3540_v52, %v3415_v17 }
 0x64e   : > { %4286 = vrot.lane.b32.xlu2 %v3535_v35, %s6953_s14 }
 0x650   : > { %v3751_v63 = vpop.f32.mrf.mxu1 }
 0x651   : > { %v3752_v43 = vadd.f32 %v3751_v63, %v3626_v33  ;;  %v6724_v33 = vld [vmem:[%s12487_s7 + $0xb8] sm:$0xff]  ;;  %v11104_v63 = vpop.permute.xlu2 %4262  ;;  %v3543_v34 = vpop.f32.mrf.mxu3 }
 0x652   : > { %4604 = vmatpush.msra.mxu3 %v6724_v33 }
 0x653   : > { %6678 = vmatmul.msk.f32.gmra.mxu1 %vm2260_vm2, %v10542_v60  ;;  %4170 = vrot.lane.b32.xlu1 %v3752_v43, %s6954_s29  ;;  %v3538_v60 = vadd.f32 %v3537_v27, %v3412_v7  ;;  %v11107_v43 = vpop.permute.xlu1 %4058  ;;  %v3641_v31 = vpop.f32.mrf.mxu0 }
 0x656   : > { %4380 = vrot.lane.b32.xlu2 %v3535_v35, %s6954_s29 }
 0x658   : > { %v3754_v40 = vpop.f32.mrf.mxu1 }
 0x659   : > { %v3755_v2 = vadd.f32 %v3754_v40, %v3629_v46  ;;  %v11110_v46 = vpop.permute.xlu0 %3933  ;;  %v3418_v40 = vpop.f32.mrf.mxu2 }
 0x65a   : > { %v11113_v15 = vpop.permute.xlu2 %4356 }
 0x65b   : > { %4174 = vrot.lane.b32.xlu1 %v3755_v2, %s6954_s29  ;;  %v11115_v33 = vpop.permute.xlu1 %4300  ;;  %v3644_v2 = vpop.f32.mrf.mxu0 }
 0x65c   : > { %12921 = vst [vmem:[#allocation77_spill] sm:$0xff] %v11115_v33 }
 0x65e   : > { %4290 = vrot.lane.b32.xlu2 %v3538_v60, %s6953_s14 }
 0x660   : > { %v3757_v35 = vpop.f32.mrf.mxu1 }
 0x661   : > { %v3758_v14 = vadd.f32 %v3757_v35, %v3632_v9  ;;  %v3546_v9 = vpop.f32.mrf.mxu3  ;;  %v11119_v35 = vpop.permute.xlu0 %4172 }
 0x662   : > { %12922 = vst [vmem:[#allocation78_spill] sm:$0xff] %v11119_v35  ;;  %v3421_v47 = vpop.f32.mrf.mxu2 }
 0x663   : > { %4178 = vrot.lane.b32.xlu1 %v3758_v14, %s6954_s29  ;;  %v11122_v14 = vpop.permute.xlu2 %4266  ;;  %v11124_v19 = vpop.permute.xlu1 %4062 }
 0x666   : > { %4384 = vrot.lane.b32.xlu2 %v3538_v60, %s6954_s29  ;;  %v3647_v60 = vpop.f32.mrf.mxu0 }
 0x668   : > { %v3760_v27 = vpop.f32.mrf.mxu1 }
 0x669   : > { %v3761_v7 = vadd.f32 %v3760_v27, %v3635_v26  ;;  %v6723_v26 = vld [vmem:[%s12487_s7 + $0xb0] sm:$0xff]  ;;  %v3549_v52 = vpop.f32.mrf.mxu3  ;;  %v11132_v17 = vpop.permute.xlu0 %3937 }
 0x66a   : > { %4605 = vmatpush.msra.mxu3 %v6723_v26  ;;  %v3424_v27 = vpop.f32.mrf.mxu2 }
 0x66b   : > { %4182 = vrot.lane.b32.xlu1 %v3761_v7, %s6954_s29  ;;  %v11134_v33 = vadd.f32 %v3549_v52, %v3424_v27  ;;  %v11136_v35 = vpop.permute.xlu2 %4360  ;;  %v11138_v44 = vpop.permute.xlu1 %4066  ;;  %v4966_v52 = vld [vmem:[%s12488_s8 + $0x78] sm:$0xff] }
 0x66e   : > { %4294 = vrot.lane.b32.xlu2 %v3541_v24, %s6953_s14 }
 0x670   : > { %v3763_v32 = vpop.f32.mrf.mxu1 }
 0x671   : > { %v11147_v27 = vpop.permute.xlu0 %4176 }
 0x672   : > { %12923 = vst [vmem:[#allocation79_spill] sm:$0xff] %v11147_v27 }
 0x673   : > { %4184 = vrot.lane.b32.xlu1 %v10982_v53, %s6954_s29  ;;  %v3544_v53 = vadd.f32 %v3543_v34, %v3418_v40  ;;  %v4963_v40 = vld [vmem:[%s12488_s8 + $0x60] sm:$0xff] }
 0x676   : > { %4388 = vrot.lane.b32.xlu2 %v3541_v24, %s6954_s29  ;;  %v3650_v24 = vpop.f32.mrf.mxu0 }
 0x678   : > { %v3766_v7 = vpop.f32.mrf.mxu1 }
 0x679   : > { %v3767_v28 = vadd.f32 %v3766_v7, %v3641_v31  ;;  %v4473_v31 = vld [vmem:[%s12487_s7 + $0x58] sm:$0xff]  ;;  %v11152_v7 = vpop.permute.xlu2 %4270  ;;  %v11161_v27 = vpop.permute.xlu0 %3941 }
 0x67a   : > { %4515 = vmatpush.msrb.mxu0 %v4473_v31  ;;  %6868 = vmatpush.msra.mxu2 %v4473_v31  ;;  %v3547_v31 = vadd.f32 %v3546_v9, %v3421_v47 }
 0x67b   : > { %4306 = vrot.lane.b32.xlu1 %v11134_v33, %s6953_s14  ;;  %4358 = vrot.lane.b32.xlu0 %v3767_v28, %s6954_s29  ;;  %v11155_v28 = vpop.permute.xlu1 %3925 }
 0x67e   : > { %4298 = vrot.lane.b32.xlu2 %v3544_v53, %s6953_s14 }
 0x680   : > { %v3769_v26 = vpop.f32.mrf.mxu1 }
 0x681   : > { %v3770_v20 = vadd.f32 %v3769_v26, %v3644_v2  ;;  %v3653_v26 = vpop.f32.mrf.mxu0  ;;  %v11176_v9 = vpop.permute.xlu0 %4180 }
 0x682   : > { %12925 = vst [vmem:[#allocation81_spill] sm:$0xff] %v11176_v9 }
 0x683   : > { %5050 = vperm.xlu1 %6916, %v4966_v52   ;;  %4362 = vrot.lane.b32.xlu0 %v3770_v20, %s6954_s29  ;;  %v11164_v52 = vpop.permute.xlu2 %4364  ;;  %v6722_v20 = vld [vmem:[%s12487_s7 + $0xa8] sm:$0xff] }
 0x684   : > { %4606 = vmatpush.msra.mxu3 %v6722_v20  ;;  %v4957_v20 = vld [vmem:[%s12488_s8 + $0x30] sm:$0xff] }
 0x686   : > { %4392 = vrot.lane.b32.xlu2 %v3544_v53, %s6954_s29  ;;  %v11169_v53 = vpop.permute.xlu1 %4070 }
 0x687   : > { %12924 = vst [vmem:[#allocation80_spill] sm:$0xff] %v11169_v53 }
 0x688   : > { %v3772_v34 = vpop.f32.mrf.mxu1 }
 0x689   : > { %v3773_v2 = vadd.f32 %v3772_v34, %v3647_v60  ;;  %v4960_v60 = vld [vmem:[%s12488_s8 + $0x48] sm:$0xff]  ;;  %v3656_v47 = vpop.f32.mrf.mxu0 }
 0x68b   : > { %5035 = vperm.xlu1 %6916, %v4963_v40   ;;  %4366 = vrot.lane.b32.xlu0 %v3773_v2, %s6954_s29  ;;  %v11179_v40 = vpop.permute.xlu2 %4274 }
 0x68e   : > { %4302 = vrot.lane.b32.xlu2 %v3547_v31, %s6953_s14  ;;  %v11181_v2 = vpop.permute.xlu1 %4074 }
 0x68f   : > { %12926 = vst [vmem:[#allocation82_spill] sm:$0xff] %v11181_v2 }
 0x690   : > { %v3775_v21 = vpop.f32.mrf.mxu1 }
 0x691   : > { %v3776_v34 = vadd.f32 %v3775_v21, %v3650_v24  ;;  %v4472_v21 = vld [vmem:[%s12487_s7 + $0x50] sm:$0xff]  ;;  %v3764_v24 = vadd.f32 %v3763_v32, %v11097_v50 }
 0x692   : > { %4516 = vmatpush.msrb.mxu0 %v4472_v21  ;;  %6869 = vmatpush.msra.mxu2 %v4472_v21  ;;  %v4970_v21 = vld [vmem:[%s12488_s8 + $0x98] sm:$0xff] }
 0x693   : > { %5020 = vperm.xlu1 %6916, %v4960_v60   ;;  %4370 = vrot.lane.b32.xlu0 %v3776_v34, %s6954_s29  ;;  %v11192_v60 = vpop.permute.xlu0 %3945 }
 0x696   : > { %4396 = vrot.lane.b32.xlu2 %v3547_v31, %s6954_s29  ;;  %v3659_v31 = vpop.f32.mrf.mxu0 }
 0x698   : > { %v3778_v18 = vpop.f32.mrf.mxu1 }
 0x699   : > { %v3779_v0 = vadd.f32 %v3778_v18, %v3653_v26  ;;  %v4955_v18 = vld [vmem:[%s12488_s8 + $0x20] sm:$0xff]  ;;  %v11197_v26 = vpop.permute.xlu2 %4368 }
 0x69b   : > { %5005 = vperm.xlu1 %6916, %v4957_v20   ;;  %4374 = vrot.lane.b32.xlu0 %v3779_v0, %s6954_s29  ;;  %v6721_v20 = vld [vmem:[%s12487_s7 + $0xa0] sm:$0xff]  ;;  %v11202_v0 = vpop.permute.xlu1 %4078 }
 0x69c   : > { %12927 = vst [vmem:[#allocation83_spill] sm:$0xff] %v11202_v0  ;;  %4607 = vmatpush.msra.mxu3 %v6721_v20  ;;  %v4952_v20 = vld [vmem:[%s12488_s8 + $0x8] sm:$0xff] }
 0x69e   : > { %4186 = vrot.lane.b32.xlu2 %v3764_v24, %s6954_s29  ;;  %v3662_v32 = vpop.f32.mrf.mxu0 }
 0x6a0   : > { %v3781_v34 = vpop.f32.mrf.mxu1 }
 0x6a1   : > { %v3782_v9 = vadd.f32 %v3781_v34, %v3656_v47  ;;  %v11210_v47 = vpop.permute.xlu0 %3949  ;;  %v11212_v34 = vpop.permute.xlu2 %4278 }
 0x6a3   : > { %4995 = vperm.xlu1 %6916, %v4955_v18   ;;  %4378 = vrot.lane.b32.xlu0 %v3782_v9, %s6954_s29  ;;  %v4965_v9 = vld [vmem:[%s12488_s8 + $0x70] sm:$0xff]  ;;  %v11218_v18 = vpop.permute.xlu1 %4082 }
 0x6a4   : > { %12928 = vst [vmem:[#allocation84_spill] sm:$0xff] %v11218_v18 }
 0x6a6   : > { %4400 = vrot.lane.b32.xlu2 %v11134_v33, %s6954_s29 }
 0x6a8   : > { %v3784_v50 = vpop.f32.mrf.mxu1 }
 0x6a9   : > { %v3785_v24 = vadd.f32 %v3784_v50, %v3659_v31  ;;  %v4471_v31 = vld [vmem:[%s12487_s7 + $0x48] sm:$0xff]  ;;  %v3665_v50 = vpop.f32.mrf.mxu0 }
 0x6aa   : > { %4517 = vmatpush.msrb.mxu0 %v4471_v31  ;;  %6870 = vmatpush.msra.mxu2 %v4471_v31 }
 0x6ab   : > { %5070 = vperm.xlu1 %6916, %v4970_v21   ;;  %4382 = vrot.lane.b32.xlu0 %v3785_v24, %s6954_s29  ;;  %v11226_v21 = vpop.permute.xlu0 %3953  ;;  %v4962_v24 = vld [vmem:[%s12488_s8 + $0x58] sm:$0xff]  ;;  %v11234_v18 = vpop.permute.xlu1 %4086 }
 0x6ac   : > { %12929 = vst [vmem:[#allocation85_spill] sm:$0xff] %v11226_v21  ;;  %v4953_v21 = vld [vmem:[%s12488_s8 + $0x10] sm:$0xff] }
 0x6ad   : > { %12930 = vst [vmem:[#allocation86_spill] sm:$0xff] %v11234_v18 }
 0x6ae   : > { %5045 = vperm.xlu2 %6917, %v4965_v9   ;;  %v11232_v9 = vpop.permute.xlu2 %4372 }
 0x6b0   : > { %v3787_v33 = vpop.f32.mrf.mxu1 }
 0x6b1   : > { %v3788_v0 = vadd.f32 %v3787_v33, %v3662_v32  ;;  %v4967_v33 = vld [vmem:[%s12488_s8 + $0x80] sm:$0xff]  ;;  %v3668_v2 = vpop.f32.mrf.mxu0 }
 0x6b3   : > { %4980 = vperm.xlu1 %6916, %v4952_v20   ;;  %4386 = vrot.lane.b32.xlu0 %v3788_v0, %s6954_s29  ;;  %v4959_v0 = vld [vmem:[%s12488_s8 + $0x40] sm:$0xff]  ;;  %v6720_v20 = vld [vmem:[%s12487_s7 + $0x98] sm:$0xff] }
 0x6b4   : > { %4608 = vmatpush.msra.mxu3 %v6720_v20  ;;  %v4468_v20 = vld [vmem:[%s12487_s7 + $0x30] sm:$0xff] }
 0x6b6   : > { %5030 = vperm.xlu2 %6917, %v4962_v24   ;;  %v11246_v24 = vpop.permute.xlu0 %3957  ;;  %v11248_v18 = vpop.permute.xlu2 %4282 }
 0x6b7   : > { %12931 = vst [vmem:[#allocation87_spill] sm:$0xff] %v11246_v24 }
 0x6b8   : > { %v3790_v32 = vpop.f32.mrf.mxu1  ;;  %12932 = vst [vmem:[#allocation88_spill] sm:$0xff] %v11248_v18 }
 0x6b9   : > { %v3791_v31 = vadd.f32 %v3790_v32, %v3665_v50  ;;  %v4470_v50 = vld [vmem:[%s12487_s7 + $0x40] sm:$0xff]  ;;  %v11253_v32 = vpop.permute.xlu1 %4090 }
 0x6ba   : > { %12933 = vst [vmem:[#allocation89_spill] sm:$0xff] %v11253_v32  ;;  %4518 = vmatpush.msrb.mxu0 %v4470_v50  ;;  %6871 = vmatpush.msra.mxu2 %v4470_v50  ;;  %v6719_v32 = vld [vmem:[%s12487_s7 + $0x90] sm:$0xff]  ;;  %v4466_v50 = vld [vmem:[%s12487_s7 + $0x20] sm:$0xff] }
 0x6bb   : > { %5055 = vperm.xlu1 %6916, %v4967_v33   ;;  %4390 = vrot.lane.b32.xlu0 %v3791_v31, %s6954_s29  ;;  %v4469_v31 = vld [vmem:[%s12487_s7 + $0x38] sm:$0xff] }
 0x6bc   : > { %4519 = vmatpush.msrb.mxu0 %v4469_v31  ;;  %6872 = vmatpush.msra.mxu2 %v4469_v31 }
 0x6bd   : > { %4609 = vmatpush.msra.mxu3 %v6719_v32  ;;  %v6717_v32 = vld [vmem:[%s12487_s7 + $0x80] sm:$0xff] }
 0x6be   : > { %5015 = vperm.xlu2 %6917, %v4959_v0   ;;  %v4956_v0 = vld [vmem:[%s12488_s8 + $0x28] sm:$0xff]  ;;  %4520 = vmatpush.msrb.mxu0 %v4468_v20  ;;  %v11280_v31 = vpop.permute.xlu0 %3961  ;;  %v11282_v53 = vpop.permute.xlu2 %4376 }
 0x6bf   : > { %6873 = vmatpush.msra.mxu2 %v4468_v20  ;;  %12934 = vst [vmem:[#allocation90_spill] sm:$0xff] %v11280_v31  ;;  %v6716_v20 = vld [vmem:[%s12487_s7 + $0x78] sm:$0xff] }
 0x6c0   : > { %v3793_v33 = vpop.f32.mrf.mxu1  ;;  %12935 = vst [vmem:[#allocation91_spill] sm:$0xff] %v11282_v53 }
 0x6c1   : > { %v3794_v11 = vadd.f32 %v3793_v33, %v3668_v2  ;;  %v4467_v2 = vld [vmem:[%s12487_s7 + $0x28] sm:$0xff]  ;;  %v3671_v33 = vpop.f32.mrf.mxu0  ;;  %v4143_v24 = vpop.permute.xlu1 %4142 }
 0x6c2   : > { %4521 = vmatpush.msrb.mxu0 %v4467_v2  ;;  %6874 = vmatpush.msra.mxu2 %v4467_v2  ;;  %v4971_v2 = vld [vmem:[%s12488_s8 + $0xa0] sm:$0xff] }
 0x6c3   : > { %4394 = vrot.lane.b32.xlu0 %v3794_v11, %s6954_s29  ;;  %v6718_v11 = vld [vmem:[%s12487_s7 + $0x88] sm:$0xff] }
 0x6c4   : > { %4610 = vmatpush.msra.mxu3 %v6718_v11  ;;  %4522 = vmatpush.msrb.mxu0 %v4466_v50  ;;  %v6715_v11 = vld [vmem:[%s12487_s7 + $0x70] sm:$0xff] }
 0x6c5   : > { %6875 = vmatpush.msra.mxu2 %v4466_v50  ;;  %v6714_v50 = vld [vmem:[%s12487_s7 + $0x68] sm:$0xff] }
 0x6c6   : > { %5000 = vperm.xlu2 %6917, %v4956_v0   ;;  %4611 = vmatpush.msra.mxu3 %v6717_v32  ;;  %v4465_v0 = vld [vmem:[%s12487_s7 + $0x18] sm:$0xff]  ;;  %v6713_v32 = vld [vmem:[%s12487_s7 + $0x60] sm:$0xff]  ;;  %v11314_v53 = vpop.permute.xlu2 %4286 }
 0x6c7   : > { %4523 = vmatpush.msrb.mxu0 %v4465_v0  ;;  %6876 = vmatpush.msra.mxu2 %v4465_v0 }
 0x6c8   : > { %v3796_v18 = vpop.f32.mrf.mxu1  ;;  %4612 = vmatpush.msra.mxu3 %v6716_v20 }
 0x6c9   : > { %v3797_v3 = vadd.f32 %v3796_v18, %v3671_v33  ;;  %v4464_v18 = vld [vmem:[%s12487_s7 + $0x10] sm:$0xff]  ;;  %v4462_v33 = vld [vmem:[%s12487_s7] sm:$0xff]  ;;  %v3674_v0 = vpop.f32.mrf.mxu0  ;;  %v4147_v31 = vpop.permute.xlu1 %4146 }
 0x6ca   : > { %4524 = vmatpush.msrb.mxu0 %v4464_v18  ;;  %4613 = vmatpush.msra.mxu3 %v6715_v11 }
 0x6cb   : > { %4398 = vrot.lane.b32.xlu0 %v3797_v3, %s6954_s29  ;;  %v4463_v3 = vld [vmem:[%s12487_s7 + $0x8] sm:$0xff]  ;;  %6877 = vmatpush.msra.mxu2 %v4464_v18  ;;  %v3875_v18 = vsel %vm3874_vm3, %v10667_v5, %v10731_v1 }
 0x6cc   : > { %4525 = vmatpush.msrb.mxu0 %v4463_v3  ;;  %4614 = vmatpush.msra.mxu3 %v6714_v50  ;;  %v4964_v50 = vld [vmem:[%s12488_s8 + $0x68] sm:$0xff] }
 0x6cd   : > { %6878 = vmatpush.msra.mxu2 %v4463_v3  ;;  %v3972_v3 = vsel %vm3971_vm4, %v10870_v42, %v11155_v28  ;;  %v4968_v5 = vld [vmem:[%s12488_s8 + $0x88] sm:$0xff]  ;;  %v3876_v42 = vsel %vm3874_vm3, %v10688_v4, %v10751_v16  ;;  %v12938_v28 = vld [vmem:[#allocation15_spill] sm:$0xff]  ;;  %v4188_v4 = vsel %vm3971_vm4, %v10980_v8, %v4143_v24 }
 0x6ce   : > { %5075 = vperm.xlu2 %6917, %v4971_v2   ;;  %v11312_v2 = vpop.permute.xlu0 %3965  ;;  %4526 = vmatpush.msrb.mxu0 %v4462_v33  ;;  %v12941_v8 = vld [vmem:[#allocation7_spill] sm:$0xff] }
 0x6cf   : > { %4615 = vmatpush.msra.mxu3 %v6713_v32  ;;  %6879 = vmatpush.msra.mxu2 %v4462_v33  ;;  %v12936_v32 = vld [vmem:[#allocation5_spill] sm:$0xff] }
 0x6d0   : > { %v3799_v20 = vpop.f32.mrf.mxu1 }
 0x6d1   : > { %v3800_v11 = vadd.f32 %v3799_v20, %v3674_v0  ;;  %v3899_v0 = vmax.f32 %v12936_v32, %v3875_v18  ;;  %v4151_v1 = vpop.permute.xlu1 %4150  ;;  %v3973_v18 = vsel %vm3971_vm4, %v10771_v39, %v11087_v25  ;;  %v3877_v39 = vsel %vm3874_vm3, %v10711_v37, %v10787_v36 }
 0x6d2   : > { %v3901_v24 = vmax.f32 %v12941_v8, %v3877_v39  ;;  %v4189_v36 = vsel %vm3971_vm4, %v10997_v30, %v4147_v31  ;;  %v3975_v39 = vsel %vm3971_vm4, %v10844_v55, %v11132_v17  ;;  %v4190_v55 = vsel %vm3971_vm4, %v11013_v61, %v4151_v1  ;;  %v12951_v1 = vld [vmem:[#allocation51_spill] sm:$0xff] }
 0x6d3   : > { %4402 = vrot.lane.b32.xlu0 %v3800_v11, %s6954_s29  ;;  %v3996_v20 = vmax.f32 %v3899_v0, %v3972_v3  ;;  %v4961_v3 = vld [vmem:[%s12488_s8 + $0x50] sm:$0xff]  ;;  %v4092_v0 = vsel %vm3874_vm3, %v10707_v48, %v10967_v51  ;;  %v3974_v48 = vsel %vm3971_vm4, %v10807_v62, %v11110_v46  ;;  %v4958_v51 = vld [vmem:[%s12488_s8 + $0x38] sm:$0xff]  ;;  %v4308_v62 = vsel %vm3874_vm3, %v10926_v22, %v11104_v63  ;;  %v4972_v22 = vld [vmem:[%s12488_s8 + $0xa8] sm:$0xff] }
 0x6d4   : > { %v12946_v63 = vld [vmem:[#allocation4_spill] sm:$0xff] }
 0x6d5   : > { %v4008_v33 = vmax.f32 %v3996_v20, %v12938_v28 }
 0x6d6   : > { %4985 = vperm.xlu2 %6917, %v4953_v21   ;;  %v11330_v11 = vpop.permute.xlu0 %3969  ;;  %v11335_v21 = vpop.permute.xlu2 %4380 }
 0x6d7   : > { %12937 = vst [vmem:[#allocation5_spill] sm:$0xff] %v11330_v11  ;;  %v12940_v11 = vld [vmem:[#allocation9_spill] sm:$0xff] }
 0x6d9   : > { %v4155_v25 = vpop.permute.xlu1 %4154 }
 0x6db   : > { %5040 = vperm.xlu0 %6915, %v4964_v50   ;;  %v12939_v50 = vld [vmem:[#allocation35_spill] sm:$0xff] }
 0x6dc   : > { %v3900_v32 = vmax.f32 %v12939_v50, %v3876_v42 }
 0x6de   : > { %5060 = vperm.xlu2 %6917, %v4968_v5   ;;  %v3997_v16 = vmax.f32 %v3900_v32, %v3973_v18  ;;  %v4116_v5 = vmax.f32 %v4008_v33, %v4092_v0  ;;  %v11353_v28 = vpop.permute.xlu0 %4304  ;;  %v11359_v50 = vpop.permute.xlu2 %4290  ;;  %v12942_v33 = vld [vmem:[#allocation21_spill] sm:$0xff] }
 0x6e0   : > { %v4212_v20 = vmax.f32 %v4116_v5, %v4188_v4  ;;  %v4009_v42 = vmax.f32 %v3997_v16, %v12940_v11  ;;  %v3998_v11 = vmax.f32 %v3901_v24, %v3974_v48  ;;  %v12944_v16 = vld [vmem:[#allocation27_spill] sm:$0xff] }
 0x6e1   : > { %v3878_v5 = vsel %vm3874_vm3, %v12944_v16, %v10823_v23  ;;  %v12953_v16 = vld [vmem:[#allocation36_spill] sm:$0xff] }
 0x6e2   : > { %v4224_v18 = vmax.f32 %v4212_v20, %v12942_v33  ;;  %v12945_v20 = vld [vmem:[#allocation41_spill] sm:$0xff]  ;;  %v3902_v48 = vmax.f32 %v12946_v63, %v3878_v5 }
 0x6e3   : > { %5025 = vperm.xlu0 %6915, %v4961_v3   ;;  %v12943_v3 = vld [vmem:[#allocation20_spill] sm:$0xff]  ;;  %v4010_v30 = vmax.f32 %v3998_v11, %v12945_v20  ;;  %v12949_v11 = vld [vmem:[#allocation31_spill] sm:$0xff] }
 0x6e4   : > { %v4093_v37 = vsel %vm3874_vm3, %v12943_v3, %v11048_v58  ;;  %v4332_v0 = vmax.f32 %v4224_v18, %v4308_v62  ;;  %v3999_v17 = vmax.f32 %v3902_v48, %v3975_v39  ;;  %v4309_v18 = vsel %vm3874_vm3, %v10940_v45, %v11122_v14  ;;  %v12950_v62 = vld [vmem:[#allocation10_spill] sm:$0xff]  ;;  %v12952_v14 = vld [vmem:[#allocation23_spill] sm:$0xff] }
 0x6e5   : > { %v4117_v32 = vmax.f32 %v4009_v42, %v4093_v37  ;;  %v4159_v42 = vpop.permute.xlu1 %4158  ;;  %v4954_v45 = vld [vmem:[%s12488_s8 + $0x18] sm:$0xff]  ;;  %v4310_v39 = vsel %vm3874_vm3, %v10955_v41, %v11152_v7  ;;  %v4969_v41 = vld [vmem:[%s12488_s8 + $0x90] sm:$0xff] }
 0x6e6   : > { %v11391_v8 = vpop.permute.xlu2 %4384  ;;  %v12957_v7 = vld [vmem:[#allocation6_spill] sm:$0xff] }
 0x6e7   : > { %v4213_v46 = vmax.f32 %v4117_v32, %v4189_v36  ;;  %v3879_v32 = vsel %vm3874_vm3, %v12949_v11, %v10859_v13  ;;  %v12954_v13 = vld [vmem:[#allocation30_spill] sm:$0xff] }
 0x6eb   : > { %5010 = vperm.xlu0 %6915, %v4958_v51   ;;  %v12947_v51 = vld [vmem:[#allocation19_spill] sm:$0xff] }
 0x6ec   : > { %v4225_v23 = vmax.f32 %v4213_v46, %v12947_v51  ;;  %v4011_v46 = vmax.f32 %v3999_v17, %v12950_v62  ;;  %v12955_v51 = vld [vmem:[#allocation38_spill] sm:$0xff]  ;;  %v12960_v62 = vld [vmem:[#allocation33_spill] sm:$0xff] }
 0x6ed   : > { %v4359_v4 = vpop.permute.xlu0 %4358  ;;  %v12958_v17 = vld [vmem:[#allocation14_spill] sm:$0xff] }
 0x6ee   : > { %v4404_v58 = vsel %vm3971_vm4, %v11113_v15, %v4359_v4  ;;  %v12948_v15 = vld [vmem:[#allocation43_spill] sm:$0xff]  ;;  %v4333_v37 = vmax.f32 %v4225_v23, %v4309_v18  ;;  %v3903_v4 = vmax.f32 %v12952_v14, %v3879_v32  ;;  %v4192_v18 = vsel %vm3971_vm4, %v11041_v56, %v4159_v42 }
 0x6ef   : > { %v4428_v31 = vmax.f32 %v4332_v0, %v4404_v58  ;;  %v4094_v24 = vsel %vm3874_vm3, %v12948_v15, %v11079_v54  ;;  %v3976_v0 = vsel %vm3971_vm4, %v12951_v1, %v11161_v27  ;;  %v4191_v58 = vsel %vm3971_vm4, %v11028_v38, %v4155_v25  ;;  %v4163_v27 = vpop.permute.xlu1 %4162  ;;  %v12956_v25 = vld [vmem:[#allocation42_spill] sm:$0xff]  ;;  %v12961_v42 = vld [vmem:[#allocation11_spill] sm:$0xff] }
 0x6f0   : > { %v4118_v33 = vmax.f32 %v4010_v30, %v4094_v24  ;;  %v4000_v20 = vmax.f32 %v3903_v4, %v3976_v0  ;;  %v3977_v24 = vsel %vm3971_vm4, %v10908_v12, %v11192_v60  ;;  %v12962_v1 = vld [vmem:[#allocation26_spill] sm:$0xff]  ;;  %v4193_v4 = vsel %vm3971_vm4, %v11054_v29, %v4163_v27 }
 0x6f1   : > { %6679 = vmatmul.msk.f32.vlgmr.msrb.gmra.mxu0 %vm4474_vm5, %v4428_v31  ;;  %6725 = vmatmul.msk.f32.vlgmr.msra.gmra.mxu3 %vm4474_vm5, %v4428_v31  ;;  %v11424_v31 = vpop.permute.xlu2 %4294 }
 0x6f2   : > { %v4214_v3 = vmax.f32 %v4118_v33, %v4190_v55  ;;  %v4012_v23 = vmax.f32 %v4000_v20, %v12956_v25  ;;  %v12966_v20 = vld [vmem:[#allocation46_spill] sm:$0xff] }
 0x6f3   : > { %5080 = vperm.xlu0 %6915, %v4972_v22  }
 0x6f4   : > { %v4226_v5 = vmax.f32 %v4214_v3, %v12953_v16  ;;  %v4311_v3 = vsel %vm3874_vm3, %v10969_v6, %v11179_v40  ;;  %v3978_v6 = vsel %vm3971_vm4, %v10944_v10, %v11210_v47  ;;  %v4951_v40 = vld [vmem:[%s12488_s8] sm:$0xff]  ;;  %v4312_v16 = vsel %vm3874_vm3, %v10987_v59, %v11212_v34  ;;  %v12970_v34 = vld [vmem:[#allocation29_spill] sm:$0xff] }
 0x6f5   : > { %v4363_v36 = vpop.permute.xlu0 %4362 }
 0x6f6   : > { %v4405_v54 = vsel %vm3971_vm4, %v11136_v35, %v4363_v36  ;;  %v4095_v35 = vsel %vm3874_vm3, %v12954_v13, %v11107_v43  ;;  %v4334_v63 = vmax.f32 %v4226_v5, %v4310_v39  ;;  %v3880_v43 = vsel %vm3874_vm3, %v12955_v51, %v10892_v57  ;;  %v12959_v57 = vld [vmem:[#allocation12_spill] sm:$0xff] }
 0x6f7   : > { %v4429_v61 = vmax.f32 %v4333_v37, %v4405_v54  ;;  %v4119_v30 = vmax.f32 %v4011_v46, %v4095_v35  ;;  %v3904_v55 = vmax.f32 %v12957_v7, %v3880_v43  ;;  %v4167_v37 = vpop.permute.xlu1 %4166  ;;  %v12969_v51 = vld [vmem:[#allocation60_spill] sm:$0xff] }
 0x6f9   : > { %6680 = vmatmul.msk.f32.gmra.mxu0 %vm4474_vm5, %v4429_v61  ;;  %6726 = vmatmul.msk.f32.gmra.mxu3 %vm4474_vm5, %v4429_v61  ;;  %v4215_v22 = vmax.f32 %v4119_v30, %v4191_v58  ;;  %v4001_v12 = vmax.f32 %v3904_v55, %v3977_v24  ;;  %v11453_v11 = vpop.permute.xlu2 %4388  ;;  %v12965_v58 = vld [vmem:[#allocation59_spill] sm:$0xff]  ;;  %v12974_v24 = vld [vmem:[#allocation72_spill] sm:$0xff] }
 0x6fa   : > { %v3882_v30 = vsel %vm3874_vm3, %v12966_v20, %v12965_v58 }
 0x6fb   : > { %4990 = vperm.xlu0 %6915, %v4954_v45   ;;  %v4227_v33 = vmax.f32 %v4215_v22, %v12958_v17  ;;  %v4013_v46 = vmax.f32 %v4001_v12, %v12961_v42  ;;  %v12963_v45 = vld [vmem:[#allocation16_spill] sm:$0xff]  ;;  %v12967_v22 = vld [vmem:[#allocation13_spill] sm:$0xff]  ;;  %v3906_v43 = vmax.f32 %v12970_v34, %v3882_v30  ;;  %v12982_v42 = vld [vmem:[#allocation63_spill] sm:$0xff] }
 0x6fc   : > { %v12975_v17 = vld [vmem:[#allocation88_spill] sm:$0xff]  ;;  %v12989_v30 = vld [vmem:[#allocation65_spill] sm:$0xff] }
 0x6fd   : > { %v4367_v48 = vpop.permute.xlu0 %4366  ;;  %v4335_v32 = vmax.f32 %v4227_v33, %v4311_v3  ;;  %v12976_v33 = vld [vmem:[#allocation62_spill] sm:$0xff]  ;;  %v12978_v3 = vld [vmem:[#allocation48_spill] sm:$0xff] }
 0x6fe   : > { %v4406_v38 = vsel %vm3971_vm4, %v11164_v52, %v4367_v48  ;;  %v4096_v52 = vsel %vm3874_vm3, %v12959_v57, %v11124_v19  ;;  %v3881_v19 = vsel %vm3874_vm3, %v12960_v62, %v10929_v49  ;;  %v12964_v49 = vld [vmem:[#allocation3_spill] sm:$0xff]  ;;  %v12968_v48 = vld [vmem:[#allocation85_spill] sm:$0xff]  ;;  %v4313_v57 = vsel %vm3874_vm3, %v12976_v33, %v12975_v17  ;;  %v12999_v33 = vld [vmem:[#allocation66_spill] sm:$0xff] }
 0x6ff   : > { %v4430_v15 = vmax.f32 %v4334_v63, %v4406_v38  ;;  %v4120_v60 = vmax.f32 %v4012_v23, %v4096_v52  ;;  %v3905_v0 = vmax.f32 %v12962_v1, %v3881_v19  ;;  %v4171_v39 = vpop.permute.xlu1 %4170  ;;  %v3979_v59 = vsel %vm3971_vm4, %v12969_v51, %v12968_v48  ;;  %v12971_v38 = vld [vmem:[#allocation18_spill] sm:$0xff]  ;;  %v12972_v23 = vld [vmem:[#allocation80_spill] sm:$0xff]  ;;  %v12980_v62 = vld [vmem:[#allocation37_spill] sm:$0xff] }
 0x700   : > { %v4003_v7 = vmax.f32 %v3906_v43, %v3979_v59  ;;  %v12984_v1 = vld [vmem:[#allocation8_spill] sm:$0xff]  ;;  %v12993_v59 = vld [vmem:[#allocation67_spill] sm:$0xff] }
 0x701   : > { %6681 = vmatmul.msk.f32.gmra.mxu0 %vm4474_vm5, %v4430_v15  ;;  %6727 = vmatmul.msk.f32.gmra.mxu3 %vm4474_vm5, %v4430_v15  ;;  %v4216_v36 = vmax.f32 %v4120_v60, %v4192_v18  ;;  %v4002_v10 = vmax.f32 %v3905_v0, %v3978_v6  ;;  %v11485_v27 = vpop.permute.xlu2 %4298  ;;  %v12973_v15 = vld [vmem:[#allocation47_spill] sm:$0xff]  ;;  %v12977_v60 = vld [vmem:[#allocation61_spill] sm:$0xff]  ;;  %v12983_v6 = vld [vmem:[#allocation24_spill] sm:$0xff] }
 0x702   : > { %v4015_v19 = vmax.f32 %v4003_v7, %v12980_v62  ;;  %v12994_v43 = vld [vmem:[#allocation32_spill] sm:$0xff]  ;;  %v13002_v62 = vld [vmem:[#allocation53_spill] sm:$0xff] }
 0x703   : > { %5065 = vperm.xlu0 %6915, %v4969_v41   ;;  %v4228_v14 = vmax.f32 %v4216_v36, %v12963_v45  ;;  %v4014_v29 = vmax.f32 %v4002_v10, %v12967_v22  ;;  %v4194_v41 = vsel %vm3971_vm4, %v12974_v24, %v4167_v37  ;;  %v3883_v36 = vsel %vm3874_vm3, %v12978_v3, %v12977_v60  ;;  %v12981_v37 = vld [vmem:[#allocation87_spill] sm:$0xff]  ;;  %v13000_v3 = vld [vmem:[#allocation28_spill] sm:$0xff] }
 0x705   : > { %v4371_v54 = vpop.permute.xlu0 %4370  ;;  %v4336_v13 = vmax.f32 %v4228_v14, %v4312_v16  ;;  %v12985_v14 = vld [vmem:[#allocation82_spill] sm:$0xff] }
 0x706   : > { %v4407_v56 = vsel %vm3971_vm4, %v11197_v26, %v4371_v54  ;;  %v4097_v26 = vsel %vm3874_vm3, %v12964_v49, %v11138_v44  ;;  %v12986_v49 = vld [vmem:[#allocation52_spill] sm:$0xff] }
 0x707   : > { %v4431_v61 = vmax.f32 %v4335_v32, %v4407_v56  ;;  %v4121_v47 = vmax.f32 %v4013_v46, %v4097_v26  ;;  %v12979_v32 = vld [vmem:[#allocation91_spill] sm:$0xff]  ;;  %v3980_v46 = vsel %vm3971_vm4, %v12982_v42, %v12981_v37  ;;  %v4099_v26 = vsel %vm3874_vm3, %v12986_v49, %v12985_v14  ;;  %v13005_v42 = vld [vmem:[#allocation56_spill] sm:$0xff]  ;;  %v13009_v49 = vld [vmem:[#allocation69_spill] sm:$0xff] }
 0x708   : > { %v4123_v16 = vmax.f32 %v4015_v19, %v4099_v26  ;;  %v4316_v26 = vsel %vm3874_vm3, %v13009_v49, %v11424_v31 }
 0x709   : > { %6682 = vmatmul.msk.f32.gmra.mxu0 %vm4474_vm5, %v4431_v61  ;;  %6728 = vmatmul.msk.f32.gmra.mxu3 %vm4474_vm5, %v4431_v61  ;;  %v4217_v5 = vmax.f32 %v4121_v47, %v4193_v4  ;;  %v4175_v61 = vpop.permute.xlu1 %4174  ;;  %v11513_v45 = vpop.permute.xlu2 %4392  ;;  %v12987_v4 = vld [vmem:[#allocation76_spill] sm:$0xff] }
 0x70a   : > { %v4195_v10 = vsel %vm3971_vm4, %v12987_v4, %v4171_v39  ;;  %v12992_v39 = vld [vmem:[#allocation90_spill] sm:$0xff] }
 0x70b   : > { %4975 = vperm.xlu0 %6915, %v4951_v40   ;;  %v4229_v25 = vmax.f32 %v4217_v5, %v12971_v38  ;;  %v3907_v40 = vmax.f32 %v12983_v6, %v3883_v36  ;;  %v12988_v5 = vld [vmem:[#allocation64_spill] sm:$0xff]  ;;  %v3981_v34 = vsel %vm3971_vm4, %v12993_v59, %v12992_v39  ;;  %v13007_v6 = vld [vmem:[#allocation79_spill] sm:$0xff]  ;;  %v13016_v39 = vld [vmem:[#allocation45_spill] sm:$0xff] }
 0x70d   : > { %v4375_v35 = vpop.permute.xlu0 %4374  ;;  %v4337_v18 = vmax.f32 %v4229_v25, %v4313_v57  ;;  %v4004_v47 = vmax.f32 %v3907_v40, %v3980_v46  ;;  %v4315_v57 = vsel %vm3874_vm3, %v12999_v33, %v11359_v50  ;;  %v13004_v50 = vld [vmem:[#allocation84_spill] sm:$0xff] }
 0x70e   : > { %v4408_v44 = vsel %vm3971_vm4, %v11232_v9, %v4375_v35  ;;  %v4098_v9 = vsel %vm3874_vm3, %v12973_v15, %v12972_v23  ;;  %v4219_v35 = vmax.f32 %v4123_v16, %v4195_v10  ;;  %v12996_v23 = vld [vmem:[#allocation83_spill] sm:$0xff]  ;;  %v12997_v15 = vld [vmem:[#allocation54_spill] sm:$0xff]  ;;  %v4101_v46 = vsel %vm3874_vm3, %v13005_v42, %v13004_v50 }
 0x70f   : > { %v4432_v63 = vmax.f32 %v4336_v13, %v4408_v44  ;;  %v4122_v55 = vmax.f32 %v4014_v29, %v4098_v9  ;;  %v4314_v13 = vsel %vm3874_vm3, %v12988_v5, %v11314_v53  ;;  %v12990_v44 = vld [vmem:[#allocation50_spill] sm:$0xff]  ;;  %v12995_v53 = vld [vmem:[#allocation25_spill] sm:$0xff]  ;;  %v4100_v9 = vsel %vm3874_vm3, %v12997_v15, %v12996_v23 }
 0x710   : > { %v3884_v22 = vsel %vm3874_vm3, %v12990_v44, %v12989_v30  ;;  %v4231_v25 = vmax.f32 %v4219_v35, %v12995_v53  ;;  %v13010_v35 = vld [vmem:[#allocation73_spill] sm:$0xff] }
 0x711   : > { %6683 = vmatmul.msk.f32.gmra.mxu0 %vm4474_vm5, %v4432_v63  ;;  %6729 = vmatmul.msk.f32.gmra.mxu3 %vm4474_vm5, %v4432_v63  ;;  %v4218_v52 = vmax.f32 %v4122_v55, %v4194_v41  ;;  %v12991_v63 = vld [vmem:[#allocation22_spill] sm:$0xff]  ;;  %v3908_v38 = vmax.f32 %v12994_v43, %v3884_v22  ;;  %v4179_v41 = vpop.permute.xlu1 %4178  ;;  %v4303_v17 = vpop.permute.xlu2 %4302  ;;  %v13012_v44 = vld [vmem:[#allocation5_spill] sm:$0xff]  ;;  %v13013_v22 = vld [vmem:[#allocation75_spill] sm:$0xff] }
 0x712   : > { %v4016_v48 = vmax.f32 %v4004_v47, %v12991_v63  ;;  %v4197_v40 = vsel %vm3971_vm4, %v13007_v6, %v4179_v41  ;;  %v13014_v63 = vld [vmem:[#allocation40_spill] sm:$0xff]  ;;  %v13019_v53 = vld [vmem:[#allocation57_spill] sm:$0xff] }
 0x713   : > { %v4230_v0 = vmax.f32 %v4218_v52, %v12984_v1  ;;  %v4005_v7 = vmax.f32 %v3908_v38, %v3981_v34  ;;  %v13008_v1 = vld [vmem:[#allocation39_spill] sm:$0xff]  ;;  %v13017_v34 = vld [vmem:[#allocation74_spill] sm:$0xff]  ;;  %v13020_v23 = vld [vmem:[#allocation81_spill] sm:$0xff] }
 0x714   : > { %v4124_v55 = vmax.f32 %v4016_v48, %v4100_v9  ;;  %v13015_v48 = vld [vmem:[#allocation34_spill] sm:$0xff]  ;;  %v4317_v43 = vsel %vm3874_vm3, %v13017_v34, %v11485_v27 }
 0x715   : > { %v4379_v12 = vpop.permute.xlu0 %4378  ;;  %v4338_v58 = vmax.f32 %v4230_v0, %v4314_v13  ;;  %v4017_v36 = vmax.f32 %v4005_v7, %v13000_v3  ;;  %v13018_v38 = vld [vmem:[#allocation86_spill] sm:$0xff]  ;;  %v13021_v7 = vld [vmem:[#allocation17_spill] sm:$0xff] }
 0x716   : > { %v4409_v54 = vsel %vm3971_vm4, %v12979_v32, %v4379_v12  ;;  %v13024_v3 = vld [vmem:[#allocation77_spill] sm:$0xff] }
 0x717   : > { %v4433_v56 = vmax.f32 %v4337_v18, %v4409_v54  ;;  %v4339_v18 = vmax.f32 %v4231_v25, %v4315_v57  ;;  %v13001_v54 = vld [vmem:[#allocation68_spill] sm:$0xff]  ;;  %v4125_v14 = vmax.f32 %v4017_v36, %v4101_v46  ;;  %v4102_v25 = vsel %vm3874_vm3, %v13019_v53, %v13018_v38  ;;  %v6692_v38 = vld [vmem:[%s12486_s6 + $0xb8] sm:$0xff] }
 0x718   : > { %v3885_v19 = vsel %vm3874_vm3, %v13002_v62, %v13001_v54  ;;  %v4318_v36 = vsel %vm3874_vm3, %v13024_v3, %v4303_v17  ;;  %v4441_v53 = vld [vmem:[%s12486_s6 + $0x8] sm:$0xff]  ;;  %v6701_v3 = vld [vmem:[%s12486_s6 + $0x100] sm:$0xff] }
 0x719   : > { %6684 = vmatmul.msk.f32.gmra.mxu0 %vm4474_vm5, %v4433_v56  ;;  %6730 = vmatmul.msk.f32.gmra.mxu3 %vm4474_vm5, %v4433_v56  ;;  %v13003_v56 = vld [vmem:[#allocation44_spill] sm:$0xff]  ;;  %v3909_v0 = vmax.f32 %v13008_v1, %v3885_v19  ;;  %v4183_v4 = vpop.permute.xlu1 %4182  ;;  %v4221_v47 = vmax.f32 %v4125_v14, %v4197_v40  ;;  %v4397_v16 = vpop.permute.xlu2 %4396 }
 0x71a   : > { %v4198_v15 = vsel %vm3971_vm4, %v13020_v23, %v4183_v4  ;;  %v4442_v23 = vld [vmem:[%s12486_s6 + $0x10] sm:$0xff] }
 0x71b   : > { %v4233_v59 = vmax.f32 %v4221_v47, %v13016_v39 }
 0x71d   : > { %v4383_v20 = vpop.permute.xlu0 %4382  ;;  %v4341_v9 = vmax.f32 %v4233_v59, %v4317_v43  ;;  %v6691_v43 = vld [vmem:[%s12486_s6 + $0xb0] sm:$0xff] }
 0x71e   : > { %v4410_v29 = vsel %vm3971_vm4, %v11335_v21, %v4383_v20  ;;  %v12998_v21 = vld [vmem:[#allocation78_spill] sm:$0xff] }
 0x71f   : > { %v4434_v51 = vmax.f32 %v4338_v58, %v4410_v29  ;;  %v4196_v24 = vsel %vm3971_vm4, %v12998_v21, %v4175_v61  ;;  %v13006_v61 = vld [vmem:[#allocation70_spill] sm:$0xff]  ;;  %v13011_v58 = vld [vmem:[#allocation55_spill] sm:$0xff]  ;;  %v3983_v29 = vsel %vm3971_vm4, %v13013_v22, %v13012_v44 }
 0x720   : > { %v4220_v52 = vmax.f32 %v4124_v55, %v4196_v24 }
 0x721   : > { %6685 = vmatmul.msk.f32.gmra.mxu0 %vm4474_vm5, %v4434_v51  ;;  %6731 = vmatmul.msk.f32.gmra.mxu3 %vm4474_vm5, %v4434_v51  ;;  %v4185_v57 = vpop.permute.xlu1 %4184 }
 0x722   : > { %v4232_v37 = vmax.f32 %v4220_v52, %v13003_v56  ;;  %v4187_v52 = vpop.permute.xlu2 %4186 }
 0x724   : > { %v4340_v5 = vmax.f32 %v4232_v37, %v4316_v26 }
 0x725   : > { %v4387_v12 = vpop.permute.xlu0 %4386 }
 0x726   : > { %v4411_v60 = vsel %vm3971_vm4, %v11391_v8, %v4387_v12  ;;  %v3982_v8 = vsel %vm3971_vm4, %v13006_v61, %v11312_v2  ;;  %v3886_v2 = vsel %vm3874_vm3, %v13011_v58, %v13010_v35  ;;  %v13023_v12 = vld [vmem:[#allocation58_spill] sm:$0xff]  ;;  %v13026_v61 = vld [vmem:[#allocation71_spill] sm:$0xff] }
 0x727   : > { %v4435_v32 = vmax.f32 %v4339_v18, %v4411_v60  ;;  %v4006_v10 = vmax.f32 %v3909_v0, %v3982_v8  ;;  %v3910_v31 = vmax.f32 %v13014_v63, %v3886_v2  ;;  %v13022_v18 = vld [vmem:[#allocation89_spill] sm:$0xff] }
 0x728   : > { %v4103_v60 = vsel %vm3874_vm3, %v13023_v12, %v13022_v18  ;;  %v4448_v18 = vld [vmem:[%s12486_s6 + $0x40] sm:$0xff]  ;;  %v6700_v12 = vld [vmem:[%s12486_s6 + $0xf8] sm:$0xff] }
 0x729   : > { %6686 = vmatmul.msk.f32.gmra.mxu0 %vm4474_vm5, %v4435_v32  ;;  %6732 = vmatmul.msk.f32.gmra.mxu3 %vm4474_vm5, %v4435_v32  ;;  %v4018_v51 = vmax.f32 %v4006_v10, %v13015_v48  ;;  %v4199_v32 = vsel %vm3971_vm4, %v4185_v57, %v4187_v52  ;;  %v4307_v46 = vpop.permute.xlu1 %4306  ;;  %v6698_v57 = vld [vmem:[%s12486_s6 + $0xe8] sm:$0xff]  ;;  %v4447_v52 = vld [vmem:[%s12486_s6 + $0x38] sm:$0xff] }
 0x72a   : > { %v4319_v17 = vsel %vm3874_vm3, %v11353_v28, %v4307_v46  ;;  %v4401_v6 = vpop.permute.xlu2 %4400  ;;  %v4455_v46 = vld [vmem:[%s12486_s6 + $0x78] sm:$0xff] }
 0x72b   : > { %v4126_v21 = vmax.f32 %v4018_v51, %v4102_v25  ;;  %v6693_v25 = vld [vmem:[%s12486_s6 + $0xc0] sm:$0xff] }
 0x72d   : > { %v4391_v13 = vpop.permute.xlu0 %4390  ;;  %v4222_v33 = vmax.f32 %v4126_v21, %v4198_v15  ;;  %v6694_v15 = vld [vmem:[%s12486_s6 + $0xc8] sm:$0xff]  ;;  %v6695_v21 = vld [vmem:[%s12486_s6 + $0xd0] sm:$0xff] }
 0x72e   : > { %v4412_v20 = vsel %vm3971_vm4, %v11453_v11, %v4391_v13  ;;  %v4007_v11 = vmax.f32 %v3910_v31, %v3983_v29 }
 0x72f   : > { %v4436_v30 = vmax.f32 %v4340_v5, %v4412_v20 }
 0x730   : > { %v4019_v55 = vmax.f32 %v4007_v11, %v13021_v7  ;;  %v4440_v11 = vld [vmem:[%s12486_s6] sm:$0xff]  ;;  %v4445_v7 = vld [vmem:[%s12486_s6 + $0x28] sm:$0xff] }
 0x731   : > { %6687 = vmatmul.msk.f32.gmra.mxu0 %vm4474_vm5, %v4436_v30  ;;  %6733 = vmatmul.msk.f32.gmra.mxu3 %vm4474_vm5, %v4436_v30 }
 0x732   : > { %v4127_v62 = vmax.f32 %v4019_v55, %v4103_v60  ;;  %v6697_v55 = vld [vmem:[%s12486_s6 + $0xe0] sm:$0xff]  ;;  %v4449_v60 = vld [vmem:[%s12486_s6 + $0x48] sm:$0xff] }
 0x734   : > { %v4223_v56 = vmax.f32 %v4127_v62, %v4199_v32  ;;  %v6702_v32 = vld [vmem:[%s12486_s6 + $0x108] sm:$0xff]  ;;  %v4452_v62 = vld [vmem:[%s12486_s6 + $0x60] sm:$0xff] }
 0x735   : > { %v4395_v24 = vpop.permute.xlu0 %4394 }
 0x736   : > { %v4413_v41 = vsel %vm3971_vm4, %v11513_v45, %v4395_v24  ;;  %v13025_v45 = vld [vmem:[#allocation49_spill] sm:$0xff]  ;;  %v4235_v8 = vmax.f32 %v4223_v56, %v13026_v61  ;;  %v4444_v24 = vld [vmem:[%s12486_s6 + $0x20] sm:$0xff]  ;;  %v4453_v56 = vld [vmem:[%s12486_s6 + $0x68] sm:$0xff] }
 0x737   : > { %v4437_v27 = vmax.f32 %v4341_v9, %v4413_v41  ;;  %v4234_v54 = vmax.f32 %v4222_v33, %v13025_v45  ;;  %v4443_v9 = vld [vmem:[%s12486_s6 + $0x18] sm:$0xff]  ;;  %v4446_v33 = vld [vmem:[%s12486_s6 + $0x30] sm:$0xff] }
 0x738   : > { %v4343_v1 = vmax.f32 %v4235_v8, %v4319_v17  ;;  %v6696_v41 = vld [vmem:[%s12486_s6 + $0xd8] sm:$0xff]  ;;  %v6707_v61 = vld [vmem:[%s12486_s6 + $0x130] sm:$0xff]  ;;  %v4456_v8 = vld [vmem:[%s12486_s6 + $0x80] sm:$0xff] }
 0x739   : > { %6688 = vmatmul.msk.f32.vlgmr.msra.gmra.mxu2 %vm4474_vm5, %v4437_v27  ;;  %6734 = vmatmul.msk.f32.gmra.mxu3 %vm4474_vm5, %v4437_v27  ;;  %v4342_v19 = vmax.f32 %v4234_v54, %v4318_v36  ;;  %v6699_v27 = vld [vmem:[%s12486_s6 + $0xf0] sm:$0xff]  ;;  %v4451_v45 = vld [vmem:[%s12486_s6 + $0x58] sm:$0xff] }
 0x73a   : > { %v4450_v36 = vld [vmem:[%s12486_s6 + $0x50] sm:$0xff] }
 0x73b   : > { %v6703_v54 = vld [vmem:[%s12486_s6 + $0x110] sm:$0xff] }
 0x73d   : > { %v4399_v37 = vpop.permute.xlu0 %4398 }
 0x73e   : > { %v4414_v50 = vsel %vm3971_vm4, %v4397_v16, %v4399_v37  ;;  %v6705_v37 = vld [vmem:[%s12486_s6 + $0x120] sm:$0xff] }
 0x73f   : > { %v4438_v42 = vmax.f32 %v4342_v19, %v4414_v50  ;;  %v6704_v19 = vld [vmem:[%s12486_s6 + $0x118] sm:$0xff]  ;;  %v4454_v50 = vld [vmem:[%s12486_s6 + $0x70] sm:$0xff] }
 0x741   : > { %6689 = vmatmul.msk.f32.gmra.mxu2 %vm4474_vm5, %v4438_v42  ;;  %6735 = vmatmul.msk.f32.gmra.mxu3 %vm4474_vm5, %v4438_v42  ;;  %v6706_v42 = vld [vmem:[%s12486_s6 + $0x128] sm:$0xff] }
 0x745   : > { %v4403_v40 = vpop.permute.xlu0 %4402 }
 0x746   : > { %v4415_v0 = vsel %vm3971_vm4, %v4401_v6, %v4403_v40  ;;  %v6708_v40 = vld [vmem:[%s12486_s6 + $0x138] sm:$0xff] }
 0x747   : > { %v4439_v14 = vmax.f32 %v4343_v1, %v4415_v0  ;;  %v4457_v1 = vld [vmem:[%s12486_s6 + $0x88] sm:$0xff] }
 0x749   : > { %6690 = vmatmul.msk.f32.gmra.mxu2 %vm4474_vm5, %v4439_v14  ;;  %6736 = vmatmul.msk.f32.gmra.mxu3 %vm4474_vm5, %v4439_v14 }
 0x76e   : > { %v4528_v4 = vpop.f32.mrf.mxu0 }
 0x774   : > { %v4617_v49 = vpop.f32.mrf.mxu3 }
 0x776   : > { %v4531_v47 = vpop.f32.mrf.mxu0 }
 0x77c   : > { %v4620_v26 = vpop.f32.mrf.mxu3 }
 0x77e   : > { %v4534_v13 = vpop.f32.mrf.mxu0 }
 0x784   : > { %v4623_v10 = vpop.f32.mrf.mxu3 }
 0x786   : > { %v4537_v28 = vpop.f32.mrf.mxu0 }
 0x78c   : > { %v4626_v16 = vpop.f32.mrf.mxu3 }
 0x78e   : > { %v4540_v2 = vpop.f32.mrf.mxu0 }
 0x794   : > { %v4629_v5 = vpop.f32.mrf.mxu3 }
 0x796   : > { %v4543_v30 = vpop.f32.mrf.mxu0 }
 0x79c   : > { %v4632_v35 = vpop.f32.mrf.mxu3 }
 0x79e   : > { %v4546_v63 = vpop.f32.mrf.mxu0 }
 0x7a4   : > { %v4635_v58 = vpop.f32.mrf.mxu3 }
 0x7a6   : > { %v4549_v51 = vpop.f32.mrf.mxu0 }
 0x7ac   : > { %v4638_v20 = vpop.f32.mrf.mxu3 }
 0x7ae   : > { %v4552_v34 = vpop.f32.mrf.mxu0 }
 0x7b4   : > { %v4641_v44 = vpop.f32.mrf.mxu3 }
 0x7bc   : > { %v4555_v22 = vpop.f32.mrf.mxu2  ;;  %v4644_v29 = vpop.f32.mrf.mxu3 }
 0x7c4   : > { %v4558_v31 = vpop.f32.mrf.mxu2  ;;  %v4647_v48 = vpop.f32.mrf.mxu3 }
 0x7cc   : > { %v4561_v39 = vpop.f32.mrf.mxu2  ;;  %v4650_v59 = vpop.f32.mrf.mxu3 }
 0x7cd   : > { %4723 = vmatpush.msrb.mxu2 %v4650_v59  ;;  %4872 = vmatpush.msrb.mxu3 %v4561_v39 }
 0x7cf   : > { %4724 = vmatpush.msrb.mxu2 %v4647_v48  ;;  %4873 = vmatpush.msrb.mxu3 %v4558_v31 }
 0x7d1   : > { %4725 = vmatpush.msrb.mxu2 %v4644_v29  ;;  %4874 = vmatpush.msrb.mxu3 %v4555_v22 }
 0x7d3   : > { %4726 = vmatpush.msrb.mxu2 %v4641_v44  ;;  %4875 = vmatpush.msrb.mxu3 %v4552_v34 }
 0x7d5   : > { %4727 = vmatpush.msrb.mxu2 %v4638_v20  ;;  %4876 = vmatpush.msrb.mxu3 %v4549_v51  ;;  %v6712_v20 = vld [vmem:[%s12486_s6 + $0x158] sm:$0xff] }
 0x7d7   : > { %4728 = vmatpush.msrb.mxu2 %v4635_v58  ;;  %4877 = vmatpush.msrb.mxu3 %v4546_v63 }
 0x7d9   : > { %4729 = vmatpush.msrb.mxu2 %v4632_v35  ;;  %4878 = vmatpush.msrb.mxu3 %v4543_v30  ;;  %v6711_v35 = vld [vmem:[%s12486_s6 + $0x150] sm:$0xff]  ;;  %v4461_v30 = vld [vmem:[%s12486_s6 + $0xa8] sm:$0xff] }
 0x7db   : > { %4730 = vmatpush.msrb.mxu2 %v4629_v5  ;;  %4879 = vmatpush.msrb.mxu3 %v4540_v2 }
 0x7dd   : > { %4731 = vmatpush.msrb.mxu2 %v4626_v16  ;;  %4880 = vmatpush.msrb.mxu3 %v4537_v28  ;;  %v4459_v16 = vld [vmem:[%s12486_s6 + $0x98] sm:$0xff]  ;;  %v4460_v28 = vld [vmem:[%s12486_s6 + $0xa0] sm:$0xff] }
 0x7df   : > { %4732 = vmatpush.msrb.mxu2 %v4623_v10  ;;  %4881 = vmatpush.msrb.mxu3 %v4534_v13 }
 0x7e1   : > { %4733 = vmatpush.msrb.mxu2 %v4620_v26  ;;  %4882 = vmatpush.msrb.mxu3 %v4531_v47  ;;  %v4458_v26 = vld [vmem:[%s12486_s6 + $0x90] sm:$0xff]  ;;  %v6710_v47 = vld [vmem:[%s12486_s6 + $0x148] sm:$0xff] }
 0x7e3   : > { %4734 = vmatpush.msrb.mxu2 %v4617_v49  ;;  %4883 = vmatpush.msrb.mxu3 %v4528_v4  ;;  %v6709_v49 = vld [vmem:[%s12486_s6 + $0x140] sm:$0xff] }
 0x7e4   : > { %6737 = vmatmul.msk.f32.vlgmr.msrb.gmra.mxu2 %vm4474_vm5, %v6691_v43  ;;  %6759 = vmatmul.msk.f32.vlgmr.msrb.gmra.mxu3 %vm4474_vm5, %v4440_v11 }
 0x7ec   : > { %6738 = vmatmul.msk.f32.gmra.mxu2 %vm4474_vm5, %v6692_v38  ;;  %6760 = vmatmul.msk.f32.gmra.mxu3 %vm4474_vm5, %v4441_v53  ;;  %v5051_v38 = vpop.permute.xlu1 %5050 }
 0x7f4   : > { %6739 = vmatmul.msk.f32.gmra.mxu2 %vm4474_vm5, %v6693_v25  ;;  %6761 = vmatmul.msk.f32.gmra.mxu3 %vm4474_vm5, %v4442_v23  ;;  %v5041_v23 = vpop.permute.xlu0 %5040 }
 0x7fc   : > { %6740 = vmatmul.msk.f32.gmra.mxu2 %vm4474_vm5, %v6694_v15  ;;  %6762 = vmatmul.msk.f32.gmra.mxu3 %vm4474_vm5, %v4443_v9  ;;  %v5046_v15 = vpop.permute.xlu2 %5045 }
 0x804   : > { %6741 = vmatmul.msk.f32.gmra.mxu2 %vm4474_vm5, %v6695_v21  ;;  %6763 = vmatmul.msk.f32.gmra.mxu3 %vm4474_vm5, %v4444_v24  ;;  %v5036_v24 = vpop.permute.xlu1 %5035 }
 0x80c   : > { %6742 = vmatmul.msk.f32.gmra.mxu2 %vm4474_vm5, %v6696_v41  ;;  %6764 = vmatmul.msk.f32.gmra.mxu3 %vm4474_vm5, %v4445_v7  ;;  %v5026_v41 = vpop.permute.xlu0 %5025 }
 0x814   : > { %6743 = vmatmul.msk.f32.gmra.mxu2 %vm4474_vm5, %v6697_v55  ;;  %6765 = vmatmul.msk.f32.gmra.mxu3 %vm4474_vm5, %v4446_v33  ;;  %v5031_v33 = vpop.permute.xlu2 %5030 }
 0x81c   : > { %6744 = vmatmul.msk.f32.gmra.mxu2 %vm4474_vm5, %v6698_v57  ;;  %6766 = vmatmul.msk.f32.gmra.mxu3 %vm4474_vm5, %v4447_v52  ;;  %v5021_v57 = vpop.permute.xlu1 %5020  ;;  %v5011_v52 = vpop.permute.xlu0 %5010 }
 0x824   : > { %6745 = vmatmul.msk.f32.gmra.mxu2 %vm4474_vm5, %v6699_v27  ;;  %6767 = vmatmul.msk.f32.gmra.mxu3 %vm4474_vm5, %v4448_v18 }
 0x82c   : > { %6746 = vmatmul.msk.f32.gmra.mxu2 %vm4474_vm5, %v6700_v12  ;;  %6768 = vmatmul.msk.f32.gmra.mxu3 %vm4474_vm5, %v4449_v60  ;;  %v5016_v12 = vpop.permute.xlu2 %5015  ;;  %v5006_v60 = vpop.permute.xlu1 %5005 }
 0x834   : > { %6747 = vmatmul.msk.f32.gmra.mxu2 %vm4474_vm5, %v6701_v3  ;;  %6769 = vmatmul.msk.f32.gmra.mxu3 %vm4474_vm5, %v4450_v36  ;;  %v11809_v3 = vpop.permute.xlu0 %5080 }
 0x83c   : > { %6748 = vmatmul.msk.f32.gmra.mxu2 %vm4474_vm5, %v6702_v32  ;;  %6770 = vmatmul.msk.f32.gmra.mxu3 %vm4474_vm5, %v4451_v45 }
 0x844   : > { %6749 = vmatmul.msk.f32.gmra.mxu2 %vm4474_vm5, %v6703_v54  ;;  %6771 = vmatmul.msk.f32.gmra.mxu3 %vm4474_vm5, %v4452_v62 }
 0x84c   : > { %6750 = vmatmul.msk.f32.gmra.mxu2 %vm4474_vm5, %v6704_v19  ;;  %6772 = vmatmul.msk.f32.gmra.mxu3 %vm4474_vm5, %v4453_v56 }
 0x854   : > { %6751 = vmatmul.msk.f32.gmra.mxu2 %vm4474_vm5, %v6705_v37  ;;  %6773 = vmatmul.msk.f32.gmra.mxu3 %vm4474_vm5, %v4454_v50  ;;  %v5001_v50 = vpop.permute.xlu2 %5000 }
 0x85c   : > { %6752 = vmatmul.msk.f32.gmra.mxu2 %vm4474_vm5, %v6706_v42  ;;  %6774 = vmatmul.msk.f32.gmra.mxu3 %vm4474_vm5, %v4455_v46 }
 0x864   : > { %6753 = vmatmul.msk.f32.gmra.mxu2 %vm4474_vm5, %v6707_v61  ;;  %6775 = vmatmul.msk.f32.gmra.mxu3 %vm4474_vm5, %v4456_v8  ;;  %v4996_v8 = vpop.permute.xlu1 %4995 }
 0x867   : > { %v11745_v17 = vpop.f32.mrf.mxu2  ;;  %v11747_v6 = vpop.f32.mrf.mxu3 }
 0x86c   : > { %6754 = vmatmul.msk.f32.gmra.mxu2 %vm4474_vm5, %v6708_v40  ;;  %6776 = vmatmul.msk.f32.gmra.mxu3 %vm4474_vm5, %v4457_v1 }
 0x86f   : > { %v11757_v0 = vpop.f32.mrf.mxu2  ;;  %v11759_v14 = vpop.f32.mrf.mxu3 }
 0x874   : > { %6755 = vmatmul.msk.f32.gmra.mxu2 %vm4474_vm5, %v6709_v49  ;;  %6777 = vmatmul.msk.f32.gmra.mxu3 %vm4474_vm5, %v4458_v26 }
 0x877   : > { %v11769_v4 = vpop.f32.mrf.mxu2  ;;  %v11771_v10 = vpop.f32.mrf.mxu3 }
 0x87c   : > { %6756 = vmatmul.msk.f32.gmra.mxu2 %vm4474_vm5, %v6710_v47  ;;  %6778 = vmatmul.msk.f32.gmra.mxu3 %vm4474_vm5, %v4459_v16 }
 0x87f   : > { %v11781_v5 = vpop.f32.mrf.mxu2  ;;  %v11783_v13 = vpop.f32.mrf.mxu3 }
 0x884   : > { %6757 = vmatmul.msk.f32.gmra.mxu2 %vm4474_vm5, %v6711_v35  ;;  %6779 = vmatmul.msk.f32.gmra.mxu3 %vm4474_vm5, %v4460_v28 }
 0x887   : > { %v11793_v58 = vpop.f32.mrf.mxu2  ;;  %v11795_v2 = vpop.f32.mrf.mxu3 }
 0x88c   : > { %6758 = vmatmul.msk.f32.gmra.mxu2 %vm4474_vm5, %v6712_v20  ;;  %6780 = vmatmul.msk.f32.gmra.mxu3 %vm4474_vm5, %v4461_v30  ;;  %v4991_v20 = vpop.permute.xlu0 %4990 }
 0x88f   : > { %v11805_v44 = vpop.f32.mrf.mxu2  ;;  %v11807_v22 = vpop.f32.mrf.mxu3 }
 0x897   : > { %v4754_v29 = vpop.f32.mrf.mxu2  ;;  %v4903_v63 = vpop.f32.mrf.mxu3 }
 0x89f   : > { %v4757_v31 = vpop.f32.mrf.mxu2  ;;  %v4906_v48 = vpop.f32.mrf.mxu3 }
 0x8a7   : > { %v4760_v51 = vpop.f32.mrf.mxu2  ;;  %v4909_v39 = vpop.f32.mrf.mxu3 }
 0x8a8   : > { %v4910_v30 = vadd.f32 %v4909_v39, %v4760_v51  ;;  %v5071_v39 = vpop.permute.xlu1 %5070 }
 0x8af   : > { %v4763_v59 = vpop.f32.mrf.mxu2  ;;  %v4912_v34 = vpop.f32.mrf.mxu3 }
 0x8b0   : > { %v4913_v16 = vadd.f32 %v4912_v34, %v4763_v59  ;;  %v4901_v34 = vadd.f32 %v11807_v22, %v11805_v44  ;;  %v4892_v44 = vadd.f32 %v11771_v10, %v11769_v4 }
 0x8b7   : > { %v4766_v43 = vpop.f32.mrf.mxu2  ;;  %v4915_v11 = vpop.f32.mrf.mxu3 }
 0x8b8   : > { %v4916_v40 = vadd.f32 %v4915_v11, %v4766_v43  ;;  %v11815_v11 = vpop.permute.xlu2 %5075 }
 0x8bf   : > { %v4769_v53 = vpop.f32.mrf.mxu2  ;;  %v4918_v25 = vpop.f32.mrf.mxu3 }
 0x8c0   : > { %v4919_v42 = vadd.f32 %v4918_v25, %v4769_v53  ;;  %v4907_v25 = vadd.f32 %v4906_v48, %v4757_v31  ;;  %v4898_v31 = vadd.f32 %v11795_v2, %v11793_v58  ;;  %v4889_v58 = vadd.f32 %v11759_v14, %v11757_v0 }
 0x8c2   : > { %v5094_v35 = vadd.f32 %v5031_v33, %v4919_v42  ;;  %v5087_v22 = vadd.f32 %v4996_v8, %v4898_v31  ;;  %v5141_v31 = vld [vmem:[%s12489_s9 + $0x70] sm:$0xff] }
 0x8c4   : > { %v5116_v43 = vmax.f32 %v5094_v35, 0.0 }
 0x8c7   : > { %v4772_v9 = vpop.f32.mrf.mxu2  ;;  %v4921_v21 = vpop.f32.mrf.mxu3 }
 0x8c8   : > { %v4922_v19 = vadd.f32 %v4921_v21, %v4772_v9  ;;  %v5091_v9 = vadd.f32 %v5016_v12, %v4910_v30  ;;  %v4986_v12 = vpop.permute.xlu2 %4985 }
 0x8ca   : > { %v5095_v1 = vadd.f32 %v5036_v24, %v4922_v19 }
 0x8cc   : > { %v5117_v53 = vmax.f32 %v5095_v1, 0.0 }
 0x8cf   : > { %v4775_v7 = vpop.f32.mrf.mxu2  ;;  %v4924_v55 = vpop.f32.mrf.mxu3 }
 0x8d0   : > { %v4925_v54 = vadd.f32 %v4924_v55, %v4775_v7  ;;  %v5090_v7 = vadd.f32 %v5011_v52, %v4907_v25  ;;  %v5066_v55 = vpop.permute.xlu0 %5065  ;;  %v5061_v25 = vpop.permute.xlu2 %5060 }
 0x8d2   : > { %v5096_v46 = vadd.f32 %v5041_v23, %v4925_v54  ;;  %v5092_v23 = vadd.f32 %v5021_v57, %v4913_v16  ;;  %v5112_v33 = vmax.f32 %v5090_v7, 0.0  ;;  %v5131_v16 = vld [vmem:[%s12489_s9 + $0x20] sm:$0xff]  ;;  %v5132_v7 = vld [vmem:[%s12489_s9 + $0x28] sm:$0xff] }
 0x8d4   : > { %v5118_v28 = vmax.f32 %v5096_v46, 0.0  ;;  %v5114_v51 = vmax.f32 %v5092_v23, 0.0 }
 0x8d7   : > { %v4778_v27 = vpop.f32.mrf.mxu2  ;;  %v4927_v18 = vpop.f32.mrf.mxu3 }
 0x8d8   : > { %v4928_v36 = vadd.f32 %v4927_v18, %v4778_v27 }
 0x8da   : > { %v5097_v56 = vadd.f32 %v5046_v15, %v4928_v36  ;;  %v4904_v15 = vadd.f32 %v4903_v63, %v4754_v29  ;;  %v4895_v29 = vadd.f32 %v11783_v13, %v11781_v5  ;;  %v5088_v63 = vadd.f32 %v5001_v50, %v4901_v34  ;;  %v4981_v36 = vpop.permute.xlu1 %4980  ;;  %v5137_v34 = vld [vmem:[%s12489_s9 + $0x50] sm:$0xff] }
 0x8db   : > { %v4886_v5 = vadd.f32 %v11747_v6, %v11745_v17  ;;  %v5085_v13 = vadd.f32 %v4986_v12, %v4892_v44  ;;  %v5084_v4 = vadd.f32 %v4981_v36, %v4889_v58  ;;  %v5127_v17 = vld [vmem:[%s12489_s9] sm:$0xff]  ;;  %v5142_v44 = vld [vmem:[%s12489_s9 + $0x78] sm:$0xff]  ;;  %v5153_v58 = vld [vmem:[%s12489_s9 + $0xd0] sm:$0xff] }
 0x8dc   : > { %v5119_v49 = vmax.f32 %v5097_v56, 0.0  ;;  %v5089_v48 = vadd.f32 %v5006_v60, %v4904_v15  ;;  %v5086_v2 = vadd.f32 %v4991_v20, %v4895_v29  ;;  %v5110_v18 = vmax.f32 %v5088_v63, 0.0  ;;  %v5145_v29 = vld [vmem:[%s12489_s9 + $0x90] sm:$0xff]  ;;  %v5140_v63 = vld [vmem:[%s12489_s9 + $0x68] sm:$0xff]  ;;  %v5150_v36 = vld [vmem:[%s12489_s9 + $0xb8] sm:$0xff] }
 0x8dd   : > { %v5109_v60 = vmax.f32 %v5087_v22, 0.0  ;;  %v5107_v54 = vmax.f32 %v5085_v13, 0.0  ;;  %v5106_v14 = vmax.f32 %v5084_v4, 0.0  ;;  %v5149_v22 = vld [vmem:[%s12489_s9 + $0xb0] sm:$0xff]  ;;  %v5501_v12 = vld [vmem:[%s12490_s10 + $0x48] sm:$0xff]  ;;  %v5500_v13 = vld [vmem:[%s12490_s10 + $0x40] sm:$0xff] }
 0x8de   : > { %v5111_v57 = vmax.f32 %v5089_v48, 0.0  ;;  %v5108_v10 = vmax.f32 %v5086_v2, 0.0  ;;  %v5136_v48 = vld [vmem:[%s12489_s9 + $0x48] sm:$0xff]  ;;  %v5498_v4 = vld [vmem:[%s12490_s10 + $0x30] sm:$0xff] }
 0x8df   : > { %v4781_v32 = vpop.f32.mrf.mxu2  ;;  %v4930_v45 = vpop.f32.mrf.mxu3  ;;  %v5148_v2 = vld [vmem:[%s12489_s9 + $0xa8] sm:$0xff] }
 0x8e0   : > { %v4931_v62 = vadd.f32 %v4930_v45, %v4781_v32  ;;  %v4976_v32 = vpop.permute.xlu0 %4975 }
 0x8e1   : > { %v5083_v45 = vadd.f32 %v4976_v32, %v4886_v5  ;;  %v5155_v5 = vld [vmem:[%s12489_s9 + $0xe0] sm:$0xff]  ;;  %v5157_v32 = vld [vmem:[%s12489_s9 + $0xf0] sm:$0xff] }
 0x8e2   : > { %v5098_v37 = vadd.f32 %v5051_v38, %v4931_v62  ;;  %v5093_v38 = vadd.f32 %v5026_v41, %v4916_v40  ;;  %v5113_v41 = vmax.f32 %v5091_v9, 0.0  ;;  %v5133_v9 = vld [vmem:[%s12489_s9 + $0x30] sm:$0xff] }
 0x8e3   : > { %v5105_v19 = vmax.f32 %v5083_v45, 0.0  ;;  %v5496_v45 = vld [vmem:[%s12490_s10 + $0x20] sm:$0xff] }
 0x8e4   : > { %v5120_v61 = vmax.f32 %v5098_v37, 0.0  ;;  %v5115_v21 = vmax.f32 %v5093_v38, 0.0  ;;  %v5129_v37 = vld [vmem:[%s12489_s9 + $0x10] sm:$0xff] }
 0x8e6   : > { %5278 = vmatpush.msra.mxu2 %v5120_v61 }
 0x8e7   : > { %v11811_v26 = vpop.f32.mrf.mxu2  ;;  %v11813_v47 = vpop.f32.mrf.mxu3 }
 0x8e8   : > { %5279 = vmatpush.msra.mxu2 %v5119_v49  ;;  %v4934_v30 = vadd.f32 %v11813_v47, %v11811_v26  ;;  %v5128_v47 = vld [vmem:[%s12489_s9 + $0x8] sm:$0xff] }
 0x8ea   : > { %5280 = vmatpush.msra.mxu2 %v5118_v28 }
 0x8ec   : > { %5281 = vmatpush.msra.mxu2 %v5117_v53 }
 0x8ee   : > { %5282 = vmatpush.msra.mxu2 %v5116_v43 }
 0x8ef   : > { %v4787_v24 = vpop.f32.mrf.mxu2  ;;  %v4936_v59 = vpop.f32.mrf.mxu3 }
 0x8f0   : > { %5283 = vmatpush.msra.mxu2 %v5115_v21  ;;  %v4937_v35 = vadd.f32 %v4936_v59, %v4787_v24  ;;  %v5135_v24 = vld [vmem:[%s12489_s9 + $0x40] sm:$0xff]  ;;  %v5130_v59 = vld [vmem:[%s12489_s9 + $0x18] sm:$0xff] }
 0x8f2   : > { %5284 = vmatpush.msra.mxu2 %v5114_v51  ;;  %v5100_v23 = vadd.f32 %v5061_v25, %v4937_v35  ;;  %v5139_v51 = vld [vmem:[%s12489_s9 + $0x60] sm:$0xff] }
 0x8f4   : > { %5285 = vmatpush.msra.mxu2 %v5113_v41  ;;  %v5122_v21 = vmax.f32 %v5100_v23, 0.0  ;;  %v5143_v41 = vld [vmem:[%s12489_s9 + $0x80] sm:$0xff]  ;;  %v5164_v23 = vld [vmem:[%s12489_s9 + $0x128] sm:$0xff] }
 0x8f6   : > { %5286 = vmatpush.msra.mxu2 %v5112_v33  ;;  %v5147_v33 = vld [vmem:[%s12489_s9 + $0xa0] sm:$0xff] }
 0x8f7   : > { %v4790_v52 = vpop.f32.mrf.mxu2  ;;  %v4939_v27 = vpop.f32.mrf.mxu3 }
 0x8f8   : > { %5287 = vmatpush.msra.mxu2 %v5111_v57  ;;  %v4940_v40 = vadd.f32 %v4939_v27, %v4790_v52  ;;  %v5144_v57 = vld [vmem:[%s12489_s9 + $0x88] sm:$0xff]  ;;  %v5151_v52 = vld [vmem:[%s12489_s9 + $0xc0] sm:$0xff]  ;;  %v5146_v27 = vld [vmem:[%s12489_s9 + $0x98] sm:$0xff] }
 0x8fa   : > { %5288 = vmatpush.msra.mxu2 %v5110_v18  ;;  %v5101_v38 = vadd.f32 %v5066_v55, %v4940_v40  ;;  %v5138_v55 = vld [vmem:[%s12489_s9 + $0x58] sm:$0xff]  ;;  %v5502_v18 = vld [vmem:[%s12490_s10 + $0x50] sm:$0xff] }
 0x8fb   : > { %5599 = vmatpush.msra.mxu0 %v5502_v18  ;;  %v5165_v40 = vld [vmem:[%s12489_s9 + $0x130] sm:$0xff] }
 0x8fc   : > { %5289 = vmatpush.msra.mxu2 %v5109_v60  ;;  %v5123_v15 = vmax.f32 %v5101_v38, 0.0  ;;  %v5499_v60 = vld [vmem:[%s12490_s10 + $0x38] sm:$0xff]  ;;  %v5169_v38 = vld [vmem:[%s12489_s9 + $0x150] sm:$0xff] }
 0x8fd   : > { %5600 = vmatpush.msra.mxu0 %v5501_v12  ;;  %v5176_v12 = vld [vmem:[%s12489_s9 + $0x188] sm:$0xff] }
 0x8fe   : > { %5290 = vmatpush.msra.mxu2 %v5108_v10  ;;  %v5497_v10 = vld [vmem:[%s12490_s10 + $0x28] sm:$0xff] }
 0x8ff   : > { %v4793_v62 = vpop.f32.mrf.mxu2  ;;  %v4942_v0 = vpop.f32.mrf.mxu3  ;;  %5601 = vmatpush.msra.mxu0 %v5500_v13  ;;  %v5183_v13 = vld [vmem:[%s12489_s9 + $0x1c0] sm:$0xff] }
 0x900   : > { %5291 = vmatpush.msra.mxu2 %v5107_v54  ;;  %v4943_v61 = vadd.f32 %v4942_v0, %v4793_v62  ;;  %v5495_v54 = vld [vmem:[%s12490_s10 + $0x18] sm:$0xff]  ;;  %v5152_v62 = vld [vmem:[%s12489_s9 + $0xc8] sm:$0xff]  ;;  %v5494_v0 = vld [vmem:[%s12490_s10 + $0x10] sm:$0xff] }
 0x901   : > { %5602 = vmatpush.msra.mxu0 %v5499_v60 }
 0x902   : > { %5292 = vmatpush.msra.mxu2 %v5106_v14  ;;  %v5102_v28 = vadd.f32 %v5071_v39, %v4943_v61  ;;  %v5134_v39 = vld [vmem:[%s12489_s9 + $0x38] sm:$0xff]  ;;  %v5159_v14 = vld [vmem:[%s12489_s9 + $0x100] sm:$0xff] }
 0x903   : > { %5603 = vmatpush.msra.mxu0 %v5498_v4  ;;  %v5158_v61 = vld [vmem:[%s12489_s9 + $0xf8] sm:$0xff] }
 0x904   : > { %5293 = vmatpush.msra.mxu2 %v5105_v19  ;;  %v5124_v43 = vmax.f32 %v5102_v28, 0.0  ;;  %v5493_v19 = vld [vmem:[%s12490_s10 + $0x8] sm:$0xff]  ;;  %v5178_v4 = vld [vmem:[%s12489_s9 + $0x198] sm:$0xff] }
 0x905   : > { %5294 = vmatmul.f32.vlgmr.msra.gmra.mxu2 %v5127_v17  ;;  %5604 = vmatpush.msra.mxu0 %v5497_v10  ;;  %v5492_v17 = vld [vmem:[%s12490_s10] sm:$0xff] }
 0x907   : > { %v4796_v6 = vpop.f32.mrf.mxu2  ;;  %v4945_v56 = vpop.f32.mrf.mxu3  ;;  %5605 = vmatpush.msra.mxu0 %v5496_v45 }
 0x908   : > { %v4946_v50 = vadd.f32 %v4945_v56, %v4796_v6  ;;  %v5154_v6 = vld [vmem:[%s12489_s9 + $0xd8] sm:$0xff] }
 0x909   : > { %5606 = vmatpush.msra.mxu0 %v5495_v54 }
 0x90a   : > { %v5103_v1 = vadd.f32 %v11815_v11, %v4946_v50  ;;  %v5056_v11 = vpop.permute.xlu1 %5055  ;;  %v5156_v50 = vld [vmem:[%s12489_s9 + $0xe8] sm:$0xff] }
 0x90b   : > { %5607 = vmatpush.msra.mxu0 %v5494_v0 }
 0x90c   : > { %v5125_v53 = vmax.f32 %v5103_v1, 0.0  ;;  %v5160_v1 = vld [vmem:[%s12489_s9 + $0x108] sm:$0xff] }
 0x90d   : > { %5297 = vmatmul.f32.gmra.mxu2 %v5129_v37  ;;  %5608 = vmatpush.msra.mxu0 %v5493_v19  ;;  %v5161_v37 = vld [vmem:[%s12489_s9 + $0x110] sm:$0xff] }
 0x90f   : > { %v4799_v42 = vpop.f32.mrf.mxu2  ;;  %v4948_v46 = vpop.f32.mrf.mxu3  ;;  %5609 = vmatpush.msra.mxu0 %v5492_v17  ;;  %v5182_v17 = vld [vmem:[%s12489_s9 + $0x1b8] sm:$0xff] }
 0x910   : > { %v4949_v8 = vadd.f32 %v4948_v46, %v4799_v42  ;;  %v5163_v46 = vld [vmem:[%s12489_s9 + $0x120] sm:$0xff] }
 0x912   : > { %v5104_v49 = vadd.f32 %v11809_v3, %v4949_v8  ;;  %v5099_v3 = vadd.f32 %v5056_v11, %v4934_v30  ;;  %v5171_v11 = vld [vmem:[%s12489_s9 + $0x160] sm:$0xff] }
 0x914   : > { %v5126_v20 = vmax.f32 %v5104_v49, 0.0  ;;  %v5121_v26 = vmax.f32 %v5099_v3, 0.0 }
 0x915   : > { %5300 = vmatmul.f32.gmra.mxu2 %v5131_v16  ;;  %v5167_v16 = vld [vmem:[%s12489_s9 + $0x140] sm:$0xff] }
 0x916   : > { %5395 = vmatpush.msra.mxu3 %v5126_v20  ;;  %v5162_v20 = vld [vmem:[%s12489_s9 + $0x118] sm:$0xff] }
 0x918   : > { %5396 = vmatpush.msra.mxu3 %v5125_v53 }
 0x91a   : > { %5397 = vmatpush.msra.mxu3 %v5124_v43 }
 0x91c   : > { %5398 = vmatpush.msra.mxu3 %v5123_v15 }
 0x91d   : > { %5303 = vmatmul.f32.gmra.mxu2 %v5133_v9  ;;  %v5166_v9 = vld [vmem:[%s12489_s9 + $0x138] sm:$0xff] }
 0x91e   : > { %5399 = vmatpush.msra.mxu3 %v5122_v21 }
 0x920   : > { %5400 = vmatpush.msra.mxu3 %v5121_v26  ;;  %v5173_v26 = vld [vmem:[%s12489_s9 + $0x170] sm:$0xff] }
 0x921   : > { %6781 = vmatmul.msk.f32.vlgmr.msra.gmra.mxu3 %vm5187_vm6, %v5128_v47 }
 0x925   : > { %5306 = vmatmul.f32.gmra.mxu2 %v5135_v24 }
 0x929   : > { %6782 = vmatmul.msk.f32.gmra.mxu3 %vm5187_vm6, %v5130_v59  ;;  %v5168_v59 = vld [vmem:[%s12489_s9 + $0x148] sm:$0xff] }
 0x92d   : > { %5309 = vmatmul.f32.gmra.mxu2 %v5137_v34 }
 0x931   : > { %6783 = vmatmul.msk.f32.gmra.mxu3 %vm5187_vm6, %v5132_v7  ;;  %v5175_v7 = vld [vmem:[%s12489_s9 + $0x180] sm:$0xff] }
 0x935   : > { %5312 = vmatmul.f32.gmra.mxu2 %v5139_v51 }
 0x939   : > { %6784 = vmatmul.msk.f32.gmra.mxu3 %vm5187_vm6, %v5134_v39 }
 0x93d   : > { %5315 = vmatmul.f32.gmra.mxu2 %v5141_v31  ;;  %v5170_v31 = vld [vmem:[%s12489_s9 + $0x158] sm:$0xff] }
 0x941   : > { %6785 = vmatmul.msk.f32.gmra.mxu3 %vm5187_vm6, %v5136_v48 }
 0x945   : > { %5318 = vmatmul.f32.gmra.mxu2 %v5143_v41  ;;  %v5177_v41 = vld [vmem:[%s12489_s9 + $0x190] sm:$0xff] }
 0x949   : > { %6786 = vmatmul.msk.f32.gmra.mxu3 %vm5187_vm6, %v5138_v55 }
 0x94d   : > { %5321 = vmatmul.f32.gmra.mxu2 %v5145_v29 }
 0x951   : > { %6787 = vmatmul.msk.f32.gmra.mxu3 %vm5187_vm6, %v5140_v63  ;;  %v5172_v63 = vld [vmem:[%s12489_s9 + $0x168] sm:$0xff] }
 0x955   : > { %5324 = vmatmul.f32.gmra.mxu2 %v5147_v33 }
 0x959   : > { %6788 = vmatmul.msk.f32.gmra.mxu3 %vm5187_vm6, %v5142_v44  ;;  %v5179_v44 = vld [vmem:[%s12489_s9 + $0x1a0] sm:$0xff] }
 0x95d   : > { %5327 = vmatmul.f32.gmra.mxu2 %v5149_v22 }
 0x961   : > { %6789 = vmatmul.msk.f32.gmra.mxu3 %vm5187_vm6, %v5144_v57 }
 0x965   : > { %5330 = vmatmul.f32.gmra.mxu2 %v5151_v52  ;;  %v5174_v52 = vld [vmem:[%s12489_s9 + $0x178] sm:$0xff] }
 0x969   : > { %6790 = vmatmul.msk.f32.gmra.mxu3 %vm5187_vm6, %v5146_v27 }
 0x96d   : > { %5333 = vmatmul.f32.gmra.mxu2 %v5153_v58  ;;  %v5181_v58 = vld [vmem:[%s12489_s9 + $0x1b0] sm:$0xff] }
 0x971   : > { %6791 = vmatmul.msk.f32.gmra.mxu3 %vm5187_vm6, %v5148_v2 }
 0x975   : > { %5336 = vmatmul.f32.gmra.mxu2 %v5155_v5 }
 0x979   : > { %6792 = vmatmul.msk.f32.gmra.mxu3 %vm5187_vm6, %v5150_v36 }
 0x97d   : > { %5339 = vmatmul.f32.gmra.mxu2 %v5157_v32  ;;  %v5185_v32 = vld [vmem:[%s12489_s9 + $0x1d0] sm:$0xff] }
 0x981   : > { %6793 = vmatmul.msk.f32.gmra.mxu3 %vm5187_vm6, %v5152_v62  ;;  %v5180_v62 = vld [vmem:[%s12489_s9 + $0x1a8] sm:$0xff] }
 0x985   : > { %5342 = vmatmul.f32.gmra.mxu2 %v5159_v14 }
 0x988   : > { %v5295_v56 = vpop.f32.mrf.mxu2 }
 0x989   : > { %6794 = vmatmul.msk.f32.gmra.mxu3 %vm5187_vm6, %v5154_v6 }
 0x98d   : > { %5345 = vmatmul.f32.gmra.mxu2 %v5161_v37 }
 0x990   : > { %v5298_v42 = vpop.f32.mrf.mxu2 }
 0x991   : > { %6795 = vmatmul.msk.f32.gmra.mxu3 %vm5187_vm6, %v5156_v50  ;;  %v5184_v50 = vld [vmem:[%s12489_s9 + $0x1c8] sm:$0xff] }
 0x995   : > { %5348 = vmatmul.f32.gmra.mxu2 %v5163_v46 }
 0x998   : > { %v5301_v8 = vpop.f32.mrf.mxu2 }
 0x999   : > { %6796 = vmatmul.msk.f32.gmra.mxu3 %vm5187_vm6, %v5158_v61 }
 0x99d   : > { %5351 = vmatmul.f32.gmra.mxu2 %v5165_v40 }
 0x9a0   : > { %v5304_v49 = vpop.f32.mrf.mxu2 }
 0x9a1   : > { %6797 = vmatmul.msk.f32.gmra.mxu3 %vm5187_vm6, %v5160_v1 }
 0x9a4   : > { %v5402_v35 = vpop.f32.mrf.mxu3 }
 0x9a5   : > { %v5403_v28 = vadd.f32 %v5402_v35, %v5295_v56  ;;  %5354 = vmatmul.f32.gmra.mxu2 %v5167_v16 }
 0x9a7   : > { %6811 = vmatmul.msk.f32.vlgmr.msra.gmra.mxu0 %vm5503_vm7, %v5403_v28 }
 0x9a8   : > { %v5307_v30 = vpop.f32.mrf.mxu2 }
 0x9a9   : > { %6798 = vmatmul.msk.f32.gmra.mxu3 %vm5187_vm6, %v5162_v20 }
 0x9ac   : > { %v5405_v53 = vpop.f32.mrf.mxu3 }
 0x9ad   : > { %v5406_v25 = vadd.f32 %v5405_v53, %v5298_v42  ;;  %5357 = vmatmul.f32.gmra.mxu2 %v5169_v38 }
 0x9af   : > { %6812 = vmatmul.msk.f32.gmra.mxu0 %vm5503_vm7, %v5406_v25 }
 0x9b0   : > { %v5310_v43 = vpop.f32.mrf.mxu2 }
 0x9b1   : > { %6799 = vmatmul.msk.f32.gmra.mxu3 %vm5187_vm6, %v5164_v23 }
 0x9b4   : > { %v5408_v3 = vpop.f32.mrf.mxu3 }
 0x9b5   : > { %v5409_v15 = vadd.f32 %v5408_v3, %v5301_v8  ;;  %5360 = vmatmul.f32.gmra.mxu2 %v5171_v11  ;;  %v5186_v8 = vld [vmem:[%s12489_s9 + $0x1d8] sm:$0xff] }
 0x9b7   : > { %6813 = vmatmul.msk.f32.gmra.mxu0 %vm5503_vm7, %v5409_v15 }
 0x9b8   : > { %v5313_v21 = vpop.f32.mrf.mxu2 }
 0x9b9   : > { %6800 = vmatmul.msk.f32.gmra.mxu3 %vm5187_vm6, %v5166_v9 }
 0x9bc   : > { %v5411_v47 = vpop.f32.mrf.mxu3 }
 0x9bd   : > { %v5412_v24 = vadd.f32 %v5411_v47, %v5304_v49  ;;  %5363 = vmatmul.f32.gmra.mxu2 %v5173_v26 }
 0x9bf   : > { %6814 = vmatmul.msk.f32.gmra.mxu0 %vm5503_vm7, %v5412_v24 }
 0x9c0   : > { %v5316_v34 = vpop.f32.mrf.mxu2 }
 0x9c1   : > { %6801 = vmatmul.msk.f32.gmra.mxu3 %vm5187_vm6, %v5168_v59 }
 0x9c4   : > { %v5414_v51 = vpop.f32.mrf.mxu3 }
 0x9c5   : > { %v5415_v39 = vadd.f32 %v5414_v51, %v5307_v30  ;;  %5366 = vmatmul.f32.gmra.mxu2 %v5175_v7 }
 0x9c7   : > { %6815 = vmatmul.msk.f32.gmra.mxu0 %vm5503_vm7, %v5415_v39 }
 0x9c8   : > { %v5319_v48 = vpop.f32.mrf.mxu2 }
 0x9c9   : > { %6802 = vmatmul.msk.f32.gmra.mxu3 %vm5187_vm6, %v5170_v31 }
 0x9cc   : > { %v5417_v55 = vpop.f32.mrf.mxu3 }
 0x9cd   : > { %v5418_v29 = vadd.f32 %v5417_v55, %v5310_v43  ;;  %5369 = vmatmul.f32.gmra.mxu2 %v5177_v41 }
 0x9cf   : > { %6816 = vmatmul.msk.f32.gmra.mxu0 %vm5503_vm7, %v5418_v29 }
 0x9d0   : > { %v5322_v33 = vpop.f32.mrf.mxu2 }
 0x9d1   : > { %6803 = vmatmul.msk.f32.gmra.mxu3 %vm5187_vm6, %v5172_v63 }
 0x9d4   : > { %v5420_v22 = vpop.f32.mrf.mxu3 }
 0x9d5   : > { %v5421_v57 = vadd.f32 %v5420_v22, %v5313_v21  ;;  %5372 = vmatmul.f32.gmra.mxu2 %v5179_v44 }
 0x9d7   : > { %6817 = vmatmul.msk.f32.gmra.mxu0 %vm5503_vm7, %v5421_v57 }
 0x9d8   : > { %v5325_v27 = vpop.f32.mrf.mxu2 }
 0x9d9   : > { %6804 = vmatmul.msk.f32.gmra.mxu3 %vm5187_vm6, %v5174_v52 }
 0x9dc   : > { %v5423_v2 = vpop.f32.mrf.mxu3 }
 0x9dd   : > { %v5424_v18 = vadd.f32 %v5423_v2, %v5316_v34  ;;  %5375 = vmatmul.f32.gmra.mxu2 %v5181_v58 }
 0x9df   : > { %6818 = vmatmul.msk.f32.gmra.mxu0 %vm5503_vm7, %v5424_v18 }
 0x9e0   : > { %v5328_v5 = vpop.f32.mrf.mxu2 }
 0x9e1   : > { %6805 = vmatmul.msk.f32.gmra.mxu3 %vm5187_vm6, %v5176_v12 }
 0x9e4   : > { %v5426_v60 = vpop.f32.mrf.mxu3 }
 0x9e5   : > { %v5427_v36 = vadd.f32 %v5426_v60, %v5319_v48  ;;  %5378 = vmatmul.f32.gmra.mxu2 %v5183_v13 }
 0x9e7   : > { %6819 = vmatmul.msk.f32.gmra.mxu0 %vm5503_vm7, %v5427_v36 }
 0x9e8   : > { %v5331_v10 = vpop.f32.mrf.mxu2 }
 0x9e9   : > { %6806 = vmatmul.msk.f32.gmra.mxu3 %vm5187_vm6, %v5178_v4 }
 0x9ec   : > { %v5429_v45 = vpop.f32.mrf.mxu3 }
 0x9ed   : > { %v5430_v54 = vadd.f32 %v5429_v45, %v5322_v33  ;;  %5381 = vmatmul.f32.gmra.mxu2 %v5185_v32 }
 0x9ef   : > { %6820 = vmatmul.msk.f32.gmra.mxu0 %vm5503_vm7, %v5430_v54 }
 0x9f0   : > { %v5334_v0 = vpop.f32.mrf.mxu2 }
 0x9f1   : > { %6807 = vmatmul.msk.f32.gmra.mxu3 %vm5187_vm6, %v5180_v62 }
 0x9f4   : > { %v5432_v14 = vpop.f32.mrf.mxu3 }
 0x9f5   : > { %v5433_v19 = vadd.f32 %v5432_v14, %v5325_v27 }
 0x9f7   : > { %6821 = vmatmul.msk.f32.gmra.mxu0 %vm5503_vm7, %v5433_v19 }
 0x9f8   : > { %v5337_v6 = vpop.f32.mrf.mxu2 }
 0x9f9   : > { %6808 = vmatmul.msk.f32.gmra.mxu3 %vm5187_vm6, %v5182_v17 }
 0x9fc   : > { %v5435_v56 = vpop.f32.mrf.mxu3 }
 0x9fd   : > { %v5436_v37 = vadd.f32 %v5435_v56, %v5328_v5 }
 0x9ff   : > { %6822 = vmatmul.msk.f32.gmra.mxu0 %vm5503_vm7, %v5436_v37 }
 0xa00   : > { %v5340_v42 = vpop.f32.mrf.mxu2 }
 0xa01   : > { %6809 = vmatmul.msk.f32.gmra.mxu3 %vm5187_vm6, %v5184_v50 }
 0xa04   : > { %v5438_v46 = vpop.f32.mrf.mxu3 }
 0xa05   : > { %v5439_v61 = vadd.f32 %v5438_v46, %v5331_v10 }
 0xa07   : > { %6823 = vmatmul.msk.f32.gmra.mxu0 %vm5503_vm7, %v5439_v61 }
 0xa08   : > { %v5343_v40 = vpop.f32.mrf.mxu2 }
 0xa09   : > { %6810 = vmatmul.msk.f32.gmra.mxu3 %vm5187_vm6, %v5186_v8 }
 0xa0c   : > { %v5441_v1 = vpop.f32.mrf.mxu3 }
 0xa0d   : > { %v5442_v49 = vadd.f32 %v5441_v1, %v5334_v0 }
 0xa0f   : > { %6824 = vmatmul.msk.f32.gmra.mxu0 %vm5503_vm7, %v5442_v49 }
 0xa10   : > { %v5346_v16 = vpop.f32.mrf.mxu2 }
 0xa14   : > { %v5444_v35 = vpop.f32.mrf.mxu3 }
 0xa15   : > { %v5445_v28 = vadd.f32 %v5444_v35, %v5337_v6 }
 0xa17   : > { %6825 = vmatmul.msk.f32.gmra.mxu0 %vm5503_vm7, %v5445_v28 }
 0xa18   : > { %v5349_v20 = vpop.f32.mrf.mxu2 }
 0xa1c   : > { %v5447_v30 = vpop.f32.mrf.mxu3 }
 0xa1d   : > { %v5448_v38 = vadd.f32 %v5447_v30, %v5340_v42 }
 0xa1f   : > { %6826 = vmatmul.msk.f32.gmra.mxu0 %vm5503_vm7, %v5448_v38 }
 0xa20   : > { %v5352_v43 = vpop.f32.mrf.mxu2 }
 0xa24   : > { %v5450_v53 = vpop.f32.mrf.mxu3  ;;  %v12092_v25 = vpop.f32.mrf.mxu0 }
 0xa25   : > { %v5451_v23 = vadd.f32 %v5450_v53, %v5343_v40  ;;  %5711 = vrot.lane.b32.xlu2 %v12092_v25, %s6955_s13  ;;  %5751 = vrot.lane.b32.xlu0 %v12092_v25, %s6956_s28 }
 0xa27   : > { %6827 = vmatmul.msk.f32.gmra.mxu0 %vm5503_vm7, %v5451_v23 }
 0xa28   : > { %v5355_v9 = vpop.f32.mrf.mxu2 }
 0xa2c   : > { %v5453_v11 = vpop.f32.mrf.mxu3  ;;  %v12099_v3 = vpop.f32.mrf.mxu0 }
 0xa2d   : > { %v5454_v15 = vadd.f32 %v5453_v11, %v5346_v16  ;;  %5753 = vrot.lane.b32.xlu1 %v12099_v3, %s6956_s28  ;;  %5713 = vrot.lane.b32.xlu0 %v12099_v3, %s6955_s13 }
 0xa2f   : > { %6828 = vmatmul.msk.f32.gmra.mxu0 %vm5503_vm7, %v5454_v15 }
 0xa30   : > { %v5358_v24 = vpop.f32.mrf.mxu2 }
 0xa34   : > { %v5456_v21 = vpop.f32.mrf.mxu3  ;;  %v12106_v26 = vpop.f32.mrf.mxu0 }
 0xa35   : > { %v5457_v47 = vadd.f32 %v5456_v21, %v5349_v20  ;;  %5755 = vrot.lane.b32.xlu2 %v12106_v26, %s6956_s28  ;;  %5715 = vrot.lane.b32.xlu1 %v12106_v26, %s6955_s13 }
 0xa37   : > { %6829 = vmatmul.msk.f32.gmra.mxu0 %vm5503_vm7, %v5457_v47 }
 0xa38   : > { %v5361_v51 = vpop.f32.mrf.mxu2 }
 0xa3c   : > { %v5459_v59 = vpop.f32.mrf.mxu3  ;;  %v12113_v34 = vpop.f32.mrf.mxu0 }
 0xa3d   : > { %v5460_v7 = vadd.f32 %v5459_v59, %v5352_v43  ;;  %5717 = vrot.lane.b32.xlu2 %v12113_v34, %s6955_s13  ;;  %5757 = vrot.lane.b32.xlu0 %v12113_v34, %s6956_s28 }
 0xa3f   : > { %6830 = vmatmul.msk.f32.gmra.mxu0 %vm5503_vm7, %v5460_v7 }
 0xa40   : > { %v5364_v63 = vpop.f32.mrf.mxu2 }
 0xa44   : > { %v5462_v39 = vpop.f32.mrf.mxu3  ;;  %v12120_v31 = vpop.f32.mrf.mxu0 }
 0xa45   : > { %v5463_v48 = vadd.f32 %v5462_v39, %v5355_v9  ;;  %5759 = vrot.lane.b32.xlu1 %v12120_v31, %s6956_s28  ;;  %5719 = vrot.lane.b32.xlu0 %v12120_v31, %s6955_s13 }
 0xa47   : > { %6831 = vmatmul.msk.f32.gmra.mxu0 %vm5503_vm7, %v5463_v48 }
 0xa48   : > { %v5367_v57 = vpop.f32.mrf.mxu2 }
 0xa4c   : > { %v5465_v41 = vpop.f32.mrf.mxu3  ;;  %v12127_v55 = vpop.f32.mrf.mxu0 }
 0xa4d   : > { %v5466_v29 = vadd.f32 %v5465_v41, %v5358_v24  ;;  %5761 = vrot.lane.b32.xlu2 %v12127_v55, %s6956_s28  ;;  %5721 = vrot.lane.b32.xlu1 %v12127_v55, %s6955_s13 }
 0xa4f   : > { %6832 = vmatmul.msk.f32.gmra.mxu0 %vm5503_vm7, %v5466_v29 }
 0xa50   : > { %v5370_v2 = vpop.f32.mrf.mxu2 }
 0xa54   : > { %v5468_v33 = vpop.f32.mrf.mxu3  ;;  %v12134_v44 = vpop.f32.mrf.mxu0 }
 0xa55   : > { %v5469_v22 = vadd.f32 %v5468_v33, %v5361_v51  ;;  %5723 = vrot.lane.b32.xlu2 %v12134_v44, %s6955_s13  ;;  %5763 = vrot.lane.b32.xlu0 %v12134_v44, %s6956_s28 }
 0xa57   : > { %6833 = vmatmul.msk.f32.gmra.mxu0 %vm5503_vm7, %v5469_v22 }
 0xa58   : > { %v5373_v13 = vpop.f32.mrf.mxu2 }
 0xa5c   : > { %v5471_v52 = vpop.f32.mrf.mxu3  ;;  %v12141_v27 = vpop.f32.mrf.mxu0 }
 0xa5d   : > { %v5472_v58 = vadd.f32 %v5471_v52, %v5364_v63  ;;  %5765 = vrot.lane.b32.xlu1 %v12141_v27, %s6956_s28  ;;  %5725 = vrot.lane.b32.xlu0 %v12141_v27, %s6955_s13 }
 0xa5f   : > { %6834 = vmatmul.msk.f32.gmra.mxu0 %vm5503_vm7, %v5472_v58 }
 0xa60   : > { %v5376_v54 = vpop.f32.mrf.mxu2 }
 0xa64   : > { %v5474_v18 = vpop.f32.mrf.mxu3  ;;  %v12148_v12 = vpop.f32.mrf.mxu0 }
 0xa65   : > { %v5475_v5 = vadd.f32 %v5474_v18, %v5367_v57  ;;  %5767 = vrot.lane.b32.xlu2 %v12148_v12, %s6956_s28  ;;  %5727 = vrot.lane.b32.xlu1 %v12148_v12, %s6955_s13 }
 0xa67   : > { %6835 = vmatmul.msk.f32.gmra.mxu0 %vm5503_vm7, %v5475_v5 }
 0xa68   : > { %v5379_v19 = vpop.f32.mrf.mxu2 }
 0xa6c   : > { %v5477_v60 = vpop.f32.mrf.mxu3  ;;  %v12155_v36 = vpop.f32.mrf.mxu0 }
 0xa6d   : > { %v5478_v4 = vadd.f32 %v5477_v60, %v5370_v2  ;;  %5729 = vrot.lane.b32.xlu2 %v12155_v36, %s6955_s13  ;;  %5769 = vrot.lane.b32.xlu0 %v12155_v36, %s6956_s28 }
 0xa6f   : > { %6836 = vmatmul.msk.f32.gmra.mxu0 %vm5503_vm7, %v5478_v4 }
 0xa70   : > { %v5382_v37 = vpop.f32.mrf.mxu2 }
 0xa74   : > { %v5480_v10 = vpop.f32.mrf.mxu3  ;;  %v12162_v32 = vpop.f32.mrf.mxu0 }
 0xa75   : > { %v5481_v45 = vadd.f32 %v5480_v10, %v5373_v13  ;;  %5811 = vrot.lane.b32.xlu1 %v12162_v32, %s6955_s13  ;;  %5851 = vrot.lane.b32.xlu2 %v12162_v32, %s6956_s28 }
 0xa77   : > { %6837 = vmatmul.msk.f32.gmra.mxu0 %vm5503_vm7, %v5481_v45 }
 0xa7c   : > { %v5483_v62 = vpop.f32.mrf.mxu3  ;;  %v12169_v0 = vpop.f32.mrf.mxu0 }
 0xa7d   : > { %v5484_v14 = vadd.f32 %v5483_v62, %v5376_v54  ;;  %5853 = vrot.lane.b32.xlu0 %v12169_v0, %s6956_s28  ;;  %5813 = vrot.lane.b32.xlu2 %v12169_v0, %s6955_s13 }
 0xa7f   : > { %6838 = vmatmul.msk.f32.gmra.mxu0 %vm5503_vm7, %v5484_v14  ;;  %v5712_v61 = vpop.permute.xlu2 %5711 }
 0xa80   : > { %v5741_v40 = vmax.f32 %v12092_v25, %v5712_v61 }
 0xa84   : > { %v5486_v17 = vpop.f32.mrf.mxu3  ;;  %v12176_v6 = vpop.f32.mrf.mxu0 }
 0xa85   : > { %v5487_v56 = vadd.f32 %v5486_v17, %v5379_v19  ;;  %5855 = vrot.lane.b32.xlu1 %v12176_v6, %s6956_s28  ;;  %5815 = vrot.lane.b32.xlu0 %v12176_v6, %s6955_s13 }
 0xa87   : > { %6839 = vmatmul.msk.f32.gmra.mxu0 %vm5503_vm7, %v5487_v56 }
 0xa8c   : > { %v5489_v50 = vpop.f32.mrf.mxu3  ;;  %v12183_v42 = vpop.f32.mrf.mxu0 }
 0xa8d   : > { %v5490_v46 = vadd.f32 %v5489_v50, %v5382_v37  ;;  %5817 = vrot.lane.b32.xlu1 %v12183_v42, %s6955_s13  ;;  %5857 = vrot.lane.b32.xlu2 %v12183_v42, %s6956_s28 }
 0xa8f   : > { %6840 = vmatmul.msk.f32.gmra.mxu0 %vm5503_vm7, %v5490_v46  ;;  %v5756_v38 = vpop.permute.xlu2 %5755 }
 0xa94   : > { %v12190_v8 = vpop.f32.mrf.mxu0 }
 0xa95   : > { %5859 = vrot.lane.b32.xlu0 %v12190_v8, %s6956_s28  ;;  %5819 = vrot.lane.b32.xlu2 %v12190_v8, %s6955_s13 }
 0xa97   : > { %v5752_v1 = vpop.permute.xlu0 %5751 }
 0xa98   : > { %v12197_v49 = vmax.f32 %v5741_v40, %v5752_v1 }
 0xa9a   : > { %v5791_v16 = vmax.f32 %v12197_v49, %v12162_v32 }
 0xa9c   : > { %v12201_v35 = vpop.f32.mrf.mxu0 }
 0xa9d   : > { %5861 = vrot.lane.b32.xlu1 %v12201_v35, %s6956_s28  ;;  %5821 = vrot.lane.b32.xlu0 %v12201_v35, %s6955_s13 }
 0xa9f   : > { %v5754_v28 = vpop.permute.xlu1 %5753  ;;  %v5714_v20 = vpop.permute.xlu0 %5713 }
 0xaa0   : > { %v5742_v30 = vmax.f32 %v12099_v3, %v5714_v20  ;;  %v5718_v3 = vpop.permute.xlu2 %5717 }
 0xaa1   : > { %v5744_v47 = vmax.f32 %v12113_v34, %v5718_v3 }
 0xaa2   : > { %v12208_v53 = vmax.f32 %v5742_v30, %v5754_v28 }
 0xaa4   : > { %v12210_v25 = vpop.f32.mrf.mxu0  ;;  %v5792_v23 = vmax.f32 %v12208_v53, %v12169_v0 }
 0xaa5   : > { %5823 = vrot.lane.b32.xlu1 %v12210_v25, %s6955_s13  ;;  %5863 = vrot.lane.b32.xlu2 %v12210_v25, %s6956_s28 }
 0xaa7   : > { %v5716_v43 = vpop.permute.xlu1 %5715 }
 0xaa8   : > { %v5743_v11 = vmax.f32 %v12106_v26, %v5716_v43  ;;  %v5762_v7 = vpop.permute.xlu2 %5761 }
 0xaaa   : > { %v12219_v15 = vmax.f32 %v5743_v11, %v5756_v38 }
 0xaac   : > { %v12221_v9 = vpop.f32.mrf.mxu0  ;;  %v5793_v21 = vmax.f32 %v12219_v15, %v12176_v6 }
 0xaad   : > { %5865 = vrot.lane.b32.xlu0 %v12221_v9, %s6956_s28  ;;  %5825 = vrot.lane.b32.xlu2 %v12221_v9, %s6955_s13 }
 0xaaf   : > { %v5758_v24 = vpop.permute.xlu0 %5757 }
 0xab0   : > { %v12230_v59 = vmax.f32 %v5744_v47, %v5758_v24  ;;  %v5724_v33 = vpop.permute.xlu2 %5723 }
 0xab1   : > { %v5747_v2 = vmax.f32 %v12134_v44, %v5724_v33 }
 0xab2   : > { %v5794_v26 = vmax.f32 %v12230_v59, %v12183_v42 }
 0xab4   : > { %v12234_v51 = vpop.f32.mrf.mxu0 }
 0xab5   : > { %5867 = vrot.lane.b32.xlu1 %v12234_v51, %s6956_s28  ;;  %5827 = vrot.lane.b32.xlu0 %v12234_v51, %s6955_s13 }
 0xab7   : > { %v5760_v39 = vpop.permute.xlu1 %5759  ;;  %v5720_v48 = vpop.permute.xlu0 %5719 }
 0xab8   : > { %v5745_v41 = vmax.f32 %v12120_v31, %v5720_v48 }
 0xaba   : > { %v12241_v34 = vmax.f32 %v5745_v41, %v5760_v39 }
 0xabc   : > { %v12243_v29 = vpop.f32.mrf.mxu0  ;;  %v5795_v63 = vmax.f32 %v12241_v34, %v12190_v8 }
 0xabd   : > { %5829 = vrot.lane.b32.xlu1 %v12243_v29, %s6955_s13  ;;  %5869 = vrot.lane.b32.xlu2 %v12243_v29, %s6956_s28 }
 0xabf   : > { %v5722_v22 = vpop.permute.xlu1 %5721  ;;  %v5768_v18 = vpop.permute.xlu2 %5767 }
 0xac0   : > { %v5746_v57 = vmax.f32 %v12127_v55, %v5722_v22 }
 0xac2   : > { %v12252_v52 = vmax.f32 %v5746_v57, %v5762_v7 }
 0xac4   : > { %v5671_v31 = vpop.f32.mrf.mxu0  ;;  %v5796_v58 = vmax.f32 %v12252_v52, %v12201_v35 }
 0xac5   : > { %5951 = vrot.lane.b32.xlu1 %v5671_v31, %s6956_s28  ;;  %5911 = vrot.lane.b32.xlu0 %v5671_v31, %s6955_s13 }
 0xac7   : > { %v5764_v5 = vpop.permute.xlu0 %5763  ;;  %v5730_v10 = vpop.permute.xlu2 %5729 }
 0xac8   : > { %v12259_v13 = vmax.f32 %v5747_v2, %v5764_v5 }
 0xaca   : > { %v5797_v60 = vmax.f32 %v12259_v13, %v12210_v25 }
 0xacc   : > { %v5674_v55 = vpop.f32.mrf.mxu0 }
 0xacd   : > { %5953 = vrot.lane.b32.xlu2 %v5674_v55, %s6956_s28  ;;  %5913 = vrot.lane.b32.xlu1 %v5674_v55, %s6955_s13 }
 0xacf   : > { %v5766_v4 = vpop.permute.xlu1 %5765  ;;  %v5726_v45 = vpop.permute.xlu0 %5725 }
 0xad0   : > { %v5748_v54 = vmax.f32 %v12141_v27, %v5726_v45  ;;  %v5852_v56 = vpop.permute.xlu2 %5851  ;;  %v5750_v27 = vmax.f32 %v12155_v36, %v5730_v10 }
 0xad2   : > { %v5788_v62 = vmax.f32 %v5748_v54, %v5766_v4 }
 0xad4   : > { %v5677_v14 = vpop.f32.mrf.mxu0  ;;  %v5798_v44 = vmax.f32 %v5788_v62, %v12221_v9 }
 0xad5   : > { %5955 = vrot.lane.b32.xlu0 %v5677_v14, %s6956_s28  ;;  %5915 = vrot.lane.b32.xlu2 %v5677_v14, %s6955_s13 }
 0xad7   : > { %v5728_v19 = vpop.permute.xlu1 %5727 }
 0xad8   : > { %v5749_v17 = vmax.f32 %v12148_v12, %v5728_v19  ;;  %v5814_v12 = vpop.permute.xlu2 %5813 }
 0xad9   : > { %v5842_v3 = vmax.f32 %v5792_v23, %v5814_v12 }
 0xada   : > { %v12270_v37 = vmax.f32 %v5749_v17, %v5768_v18 }
 0xadc   : > { %v5680_v50 = vpop.f32.mrf.mxu0  ;;  %v5799_v46 = vmax.f32 %v12270_v37, %v12234_v51 }
 0xadd   : > { %5957 = vrot.lane.b32.xlu1 %v5680_v50, %s6956_s28  ;;  %5917 = vrot.lane.b32.xlu0 %v5680_v50, %s6955_s13 }
 0xadf   : > { %v5770_v61 = vpop.permute.xlu0 %5769 }
 0xae0   : > { %v12277_v40 = vmax.f32 %v5750_v27, %v5770_v61 }
 0xae2   : > { %v5800_v1 = vmax.f32 %v12277_v40, %v12243_v29 }
 0xae4   : > { %v5683_v28 = vpop.f32.mrf.mxu0 }
 0xae5   : > { %5959 = vrot.lane.b32.xlu2 %v5683_v28, %s6956_s28  ;;  %5919 = vrot.lane.b32.xlu1 %v5683_v28, %s6955_s13 }
 0xae7   : > { %v5812_v20 = vpop.permute.xlu1 %5811  ;;  %v5858_v43 = vpop.permute.xlu2 %5857 }
 0xae8   : > { %v5841_v30 = vmax.f32 %v5791_v16, %v5812_v20 }
 0xaea   : > { %v5881_v38 = vmax.f32 %v5841_v30, %v5852_v56 }
 0xaec   : > { %v5686_v36 = vpop.f32.mrf.mxu0  ;;  %v5891_v11 = vmax.f32 %v5881_v38, %v5671_v31 }
 0xaed   : > { %5961 = vrot.lane.b32.xlu0 %v5686_v36, %s6956_s28  ;;  %5921 = vrot.lane.b32.xlu2 %v5686_v36, %s6955_s13 }
 0xaef   : > { %v5854_v9 = vpop.permute.xlu0 %5853  ;;  %v5820_v32 = vpop.permute.xlu2 %5819 }
 0xaf0   : > { %v5882_v47 = vmax.f32 %v5842_v3, %v5854_v9  ;;  %v5845_v6 = vmax.f32 %v5795_v63, %v5820_v32 }
 0xaf2   : > { %v12291_v24 = vmax.f32 %v5882_v47, %v5674_v55 }
 0xaf4   : > { %v5689_v7 = vpop.f32.mrf.mxu0 }
 0xaf5   : > { %5963 = vrot.lane.b32.xlu1 %v5689_v7, %s6956_s28  ;;  %5923 = vrot.lane.b32.xlu0 %v5689_v7, %s6955_s13 }
 0xaf7   : > { %v5856_v49 = vpop.permute.xlu1 %5855  ;;  %v5816_v16 = vpop.permute.xlu0 %5815 }
 0xaf8   : > { %v5843_v39 = vmax.f32 %v5793_v21, %v5816_v16 }
 0xafa   : > { %v5883_v48 = vmax.f32 %v5843_v39, %v5856_v49 }
 0xafc   : > { %v5692_v41 = vpop.f32.mrf.mxu0  ;;  %v12298_v0 = vmax.f32 %v5883_v48, %v5677_v14 }
 0xafd   : > { %5965 = vrot.lane.b32.xlu2 %v5692_v41, %s6956_s28  ;;  %5925 = vrot.lane.b32.xlu1 %v5692_v41, %s6955_s13 }
 0xaff   : > { %v5818_v53 = vpop.permute.xlu1 %5817  ;;  %v5864_v23 = vpop.permute.xlu2 %5863 }
 0xb00   : > { %v5844_v33 = vmax.f32 %v5794_v26, %v5818_v53 }
 0xb02   : > { %v5884_v22 = vmax.f32 %v5844_v33, %v5858_v43 }
 0xb04   : > { %v5695_v57 = vpop.f32.mrf.mxu0  ;;  %v12305_v31 = vmax.f32 %v5884_v22, %v5680_v50 }
 0xb05   : > { %5967 = vrot.lane.b32.xlu0 %v5695_v57, %s6956_s28  ;;  %5927 = vrot.lane.b32.xlu2 %v5695_v57, %s6955_s13 }
 0xb07   : > { %v5860_v15 = vpop.permute.xlu0 %5859  ;;  %v5826_v21 = vpop.permute.xlu2 %5825 }
 0xb08   : > { %v5885_v2 = vmax.f32 %v5845_v6, %v5860_v15  ;;  %v5848_v18 = vmax.f32 %v5798_v44, %v5826_v21 }
 0xb0a   : > { %v12312_v5 = vmax.f32 %v5885_v2, %v5683_v28 }
 0xb0c   : > { %v5698_v42 = vpop.f32.mrf.mxu0 }
 0xb0d   : > { %5929 = vrot.lane.b32.xlu0 %v5698_v42, %s6955_s13  ;;  %5969 = vrot.lane.b32.xlu1 %v5698_v42, %s6956_s28 }
 0xb0f   : > { %v5862_v59 = vpop.permute.xlu1 %5861  ;;  %v5822_v26 = vpop.permute.xlu0 %5821 }
 0xb10   : > { %v5846_v55 = vmax.f32 %v5796_v58, %v5822_v26 }
 0xb12   : > { %v5886_v4 = vmax.f32 %v5846_v55, %v5862_v59 }
 0xb14   : > { %v12319_v8 = vmax.f32 %v5886_v4, %v5686_v36 }
 0xb17   : > { %v5824_v34 = vpop.permute.xlu1 %5823  ;;  %v5870_v13 = vpop.permute.xlu2 %5869 }
 0xb18   : > { %v5847_v63 = vmax.f32 %v5797_v60, %v5824_v34 }
 0xb1a   : > { %v5887_v10 = vmax.f32 %v5847_v63, %v5864_v23 }
 0xb1c   : > { %v12324_v45 = vmax.f32 %v5887_v10, %v5689_v7 }
 0xb1f   : > { %v5866_v54 = vpop.permute.xlu0 %5865 }
 0xb20   : > { %v5888_v62 = vmax.f32 %v5848_v18, %v5866_v54 }
 0xb22   : > { %v12326_v14 = vmax.f32 %v5888_v62, %v5692_v41 }
 0xb27   : > { %v5868_v44 = vpop.permute.xlu1 %5867  ;;  %v5828_v19 = vpop.permute.xlu0 %5827 }
 0xb28   : > { %v5849_v35 = vmax.f32 %v5799_v46, %v5828_v19  ;;  %v5954_v28 = vpop.permute.xlu2 %5953 }
 0xb2a   : > { %v5889_v52 = vmax.f32 %v5849_v35, %v5868_v44 }
 0xb2c   : > { %v12331_v58 = vmax.f32 %v5889_v52, %v5695_v57 }
 0xb2f   : > { %v5830_v17 = vpop.permute.xlu1 %5829 }
 0xb30   : > { %v5850_v25 = vmax.f32 %v5800_v1, %v5830_v17  ;;  %v5916_v46 = vpop.permute.xlu2 %5915 }
 0xb31   : > { %v5943_v1 = vmax.f32 %v12298_v0, %v5916_v46 }
 0xb32   : > { %v5890_v60 = vmax.f32 %v5850_v25, %v5870_v13 }
 0xb34   : > { %v12336_v56 = vmax.f32 %v5890_v60, %v5698_v42 }
 0xb37   : > { %v5952_v50 = vpop.permute.xlu1 %5951  ;;  %v5912_v27 = vpop.permute.xlu0 %5911 }
 0xb38   : > { %v5941_v61 = vmax.f32 %v5891_v11, %v5912_v27 }
 0xb3a   : > { %v12338_v12 = vmax.f32 %v5941_v61, %v5952_v50 }
 0xb3c   : > { %6001 = vrot.lane.b32.xlu2 %v12338_v12, %s6957_s26  ;;  %6081 = vrot.lane.b32.xlu1 %v12338_v12, %s6958_s15 }
 0xb3d   : > { %6041 = vrot.lane.b32.xlu0 %v12338_v12, %s6959_s16 }
 0xb3f   : > { %v5914_v51 = vpop.permute.xlu1 %5913  ;;  %v5960_v11 = vpop.permute.xlu2 %5959 }
 0xb40   : > { %v5942_v29 = vmax.f32 %v12291_v24, %v5914_v51 }
 0xb42   : > { %v12347_v37 = vmax.f32 %v5942_v29, %v5954_v28 }
 0xb44   : > { %6083 = vrot.lane.b32.xlu2 %v12347_v37, %s6958_s15  ;;  %6121 = vrot.lane.b32.xlu1 %v12338_v12, %s6960_s22 }
 0xb45   : > { %6003 = vrot.lane.b32.xlu0 %v12347_v37, %s6957_s26 }
 0xb47   : > { %v5956_v40 = vpop.permute.xlu0 %5955  ;;  %v5922_v7 = vpop.permute.xlu2 %5921 }
 0xb48   : > { %v12356_v20 = vmax.f32 %v5943_v1, %v5956_v40  ;;  %v5946_v32 = vmax.f32 %v12319_v8, %v5922_v7 }
 0xb4c   : > { %6123 = vrot.lane.b32.xlu2 %v12347_v37, %s6960_s22  ;;  %6043 = vrot.lane.b32.xlu1 %v12347_v37, %s6959_s16 }
 0xb4d   : > { %6085 = vrot.lane.b32.xlu0 %v12356_v20, %s6958_s15 }
 0xb4f   : > { %v5958_v30 = vpop.permute.xlu1 %5957  ;;  %v5918_v38 = vpop.permute.xlu0 %5917 }
 0xb50   : > { %v5944_v43 = vmax.f32 %v12305_v31, %v5918_v38 }
 0xb52   : > { %v12371_v36 = vmax.f32 %v5944_v43, %v5958_v30 }
 0xb54   : > { %6045 = vrot.lane.b32.xlu2 %v12356_v20, %s6959_s16  ;;  %6005 = vrot.lane.b32.xlu1 %v12356_v20, %s6957_s26 }
 0xb55   : > { %6125 = vrot.lane.b32.xlu0 %v12356_v20, %s6960_s22 }
 0xb57   : > { %v5920_v3 = vpop.permute.xlu1 %5919  ;;  %v5966_v23 = vpop.permute.xlu2 %5965 }
 0xb58   : > { %v5945_v9 = vmax.f32 %v12312_v5, %v5920_v3 }
 0xb5a   : > { %v12380_v47 = vmax.f32 %v5945_v9, %v5960_v11 }
 0xb5c   : > { %6007 = vrot.lane.b32.xlu2 %v12371_v36, %s6957_s26  ;;  %6087 = vrot.lane.b32.xlu1 %v12371_v36, %s6958_s15 }
 0xb5d   : > { %6047 = vrot.lane.b32.xlu0 %v12371_v36, %s6959_s16 }
 0xb5f   : > { %v5962_v24 = vpop.permute.xlu0 %5961  ;;  %v5928_v57 = vpop.permute.xlu2 %5927 }
 0xb60   : > { %v12389_v49 = vmax.f32 %v5946_v32, %v5962_v24  ;;  %v5949_v31 = vmax.f32 %v12331_v58, %v5928_v57 }
 0xb64   : > { %6089 = vrot.lane.b32.xlu2 %v12380_v47, %s6958_s15  ;;  %6127 = vrot.lane.b32.xlu1 %v12371_v36, %s6960_s22 }
 0xb65   : > { %6009 = vrot.lane.b32.xlu0 %v12380_v47, %s6957_s26 }
 0xb67   : > { %v5964_v16 = vpop.permute.xlu1 %5963  ;;  %v5924_v39 = vpop.permute.xlu0 %5923 }
 0xb68   : > { %v5947_v48 = vmax.f32 %v12324_v45, %v5924_v39 }
 0xb6a   : > { %v12398_v41 = vmax.f32 %v5947_v48, %v5964_v16 }
 0xb6c   : > { %6051 = vrot.lane.b32.xlu2 %v12389_v49, %s6959_s16  ;;  %6049 = vrot.lane.b32.xlu1 %v12380_v47, %s6959_s16 }
 0xb6d   : > { %6091 = vrot.lane.b32.xlu0 %v12389_v49, %s6958_s15 }
 0xb6f   : > { %v5926_v0 = vpop.permute.xlu1 %5925 }
 0xb70   : > { %v5948_v53 = vmax.f32 %v12326_v14, %v5926_v0 }
 0xb72   : > { %v12407_v33 = vmax.f32 %v5948_v53, %v5966_v23 }
 0xb74   : > { %6131 = vrot.lane.b32.xlu2 %v12389_v49, %s6960_s22  ;;  %6129 = vrot.lane.b32.xlu1 %v12380_v47, %s6960_s22 }
 0xb75   : > { %6053 = vrot.lane.b32.xlu0 %v12398_v41, %s6959_s16 }
 0xb77   : > { %v5968_v22 = vpop.permute.xlu0 %5967 }
 0xb78   : > { %v12422_v6 = vmax.f32 %v5949_v31, %v5968_v22 }
 0xb7c   : > { %6013 = vrot.lane.b32.xlu2 %v12398_v41, %s6957_s26  ;;  %6011 = vrot.lane.b32.xlu1 %v12389_v49, %s6957_s26 }
 0xb7d   : > { %6015 = vrot.lane.b32.xlu0 %v12407_v33, %s6957_s26 }
 0xb7f   : > { %v5930_v15 = vpop.permute.xlu0 %5929  ;;  %v5970_v2 = vpop.permute.xlu1 %5969 }
 0xb80   : > { %v5950_v21 = vmax.f32 %v12336_v56, %v5930_v15 }
 0xb82   : > { %v12431_v18 = vmax.f32 %v5950_v21, %v5970_v2 }
 0xb84   : > { %6093 = vrot.lane.b32.xlu2 %v12398_v41, %s6958_s15  ;;  %6055 = vrot.lane.b32.xlu1 %v12407_v33, %s6959_s16 }
 0xb85   : > { %6095 = vrot.lane.b32.xlu0 %v12407_v33, %s6958_s15 }
 0xb8c   : > { %6133 = vrot.lane.b32.xlu2 %v12398_v41, %s6960_s22  ;;  %6017 = vrot.lane.b32.xlu1 %v12422_v6, %s6957_s26 }
 0xb8d   : > { %6097 = vrot.lane.b32.xlu0 %v12422_v6, %s6958_s15 }
 0xb94   : > { %6057 = vrot.lane.b32.xlu2 %v12422_v6, %s6959_s16  ;;  %6099 = vrot.lane.b32.xlu1 %v12431_v18, %s6958_s15 }
 0xb95   : > { %6059 = vrot.lane.b32.xlu0 %v12431_v18, %s6959_s16 }
 0xb96   : > { %v6002_v5 = vpop.permute.xlu2 %6001 }
 0xb97   : > { %v6031_v26 = vmax.f32 %v12338_v12, %v6002_v5 }
 0xb9c   : > { %6137 = vrot.lane.b32.xlu1 %v12422_v6, %s6960_s22  ;;  %6019 = vrot.lane.b32.xlu2 %v12431_v18, %s6957_s26 }
 0xb9d   : > { %6135 = vrot.lane.b32.xlu0 %v12407_v33, %s6960_s22 }
 0xb9e   : > { %v6084_v42 = vpop.permute.xlu2 %6083 }
 0xba4   : > { %6139 = vrot.lane.b32.xlu2 %v12431_v18, %s6960_s22 }
 0xba6   : > { %v6124_v59 = vpop.permute.xlu2 %6123 }
 0xbae   : > { %v6046_v55 = vpop.permute.xlu2 %6045  ;;  %v6082_v4 = vpop.permute.xlu1 %6081 }
 0xbaf   : > { %v6042_v8 = vpop.permute.xlu0 %6041 }
 0xbb0   : > { %v6071_v34 = vmax.f32 %v6031_v26, %v6042_v8 }
 0xbb2   : > { %v6111_v63 = vmax.f32 %v6071_v34, %v6082_v4 }
 0xbb6   : > { %v6008_v10 = vpop.permute.xlu2 %6007  ;;  %v6122_v45 = vpop.permute.xlu1 %6121 }
 0xbb7   : > { %v12448_v54 = vmax.f32 %v6111_v63, %v6122_v45  ;;  %v6004_v62 = vpop.permute.xlu0 %6003  ;;  %v6034_v23 = vmax.f32 %v12371_v36, %v6008_v10 }
 0xbb8   : > { %v6032_v14 = vmax.f32 %v12347_v37, %v6004_v62 }
 0xbbe   : > { %v6044_v44 = vpop.permute.xlu1 %6043  ;;  %v6090_v19 = vpop.permute.xlu2 %6089 }
 0xbbf   : > { %v6072_v35 = vmax.f32 %v6032_v14, %v6044_v44  ;;  %v6086_v52 = vpop.permute.xlu0 %6085 }
 0xbc1   : > { %v6112_v58 = vmax.f32 %v6072_v35, %v6084_v42 }
 0xbc3   : > { %v12451_v17 = vmax.f32 %v6112_v58, %v6124_v59 }
 0xbc6   : > { %v6006_v25 = vpop.permute.xlu1 %6005  ;;  %v6052_v56 = vpop.permute.xlu2 %6051 }
 0xbc7   : > { %v6033_v13 = vmax.f32 %v12356_v20, %v6006_v25  ;;  %v6126_v60 = vpop.permute.xlu0 %6125 }
 0xbc9   : > { %v6073_v50 = vmax.f32 %v6033_v13, %v6046_v55 }
 0xbcb   : > { %v6113_v27 = vmax.f32 %v6073_v50, %v6086_v52 }
 0xbcd   : > { %v6153_v61 = vmax.f32 %v6113_v27, %v6126_v60 }
 0xbce   : > { %v6088_v12 = vpop.permute.xlu1 %6087  ;;  %v6132_v29 = vpop.permute.xlu2 %6131 }
 0xbcf   : > { %v6161_v28 = vmax.f32 %v12448_v54, %v6153_v61  ;;  %v6048_v51 = vpop.permute.xlu0 %6047 }
 0xbd0   : > { %v6074_v31 = vmax.f32 %v6034_v23, %v6048_v51 }
 0xbd2   : > { %v6114_v26 = vmax.f32 %v6074_v31, %v6088_v12 }
 0xbd6   : > { %v6128_v37 = vpop.permute.xlu1 %6127  ;;  %v6014_v40 = vpop.permute.xlu2 %6013 }
 0xbd7   : > { %v6010_v46 = vpop.permute.xlu0 %6009  ;;  %v6037_v0 = vmax.f32 %v12398_v41, %v6014_v40  ;;  %v6154_v8 = vmax.f32 %v6114_v26, %v6128_v37 }
 0xbd8   : > { %v6035_v53 = vmax.f32 %v12380_v47, %v6010_v46 }
 0xbd9   : > { %v6162_v62 = vmax.f32 %v12451_v17, %v6154_v8 }
 0xbde   : > { %v6050_v1 = vpop.permute.xlu1 %6049  ;;  %v6094_v43 = vpop.permute.xlu2 %6093 }
 0xbdf   : > { %v6092_v30 = vpop.permute.xlu0 %6091  ;;  %v6075_v22 = vmax.f32 %v6035_v53, %v6050_v1 }
 0xbe1   : > { %v6115_v42 = vmax.f32 %v6075_v22, %v6090_v19 }
 0xbe6   : > { %v6130_v38 = vpop.permute.xlu1 %6129  ;;  %v6134_v9 = vpop.permute.xlu2 %6133 }
 0xbe7   : > { %v6054_v11 = vpop.permute.xlu0 %6053  ;;  %v6155_v55 = vmax.f32 %v6115_v42, %v6130_v38 }
 0xbe8   : > { %v6077_v57 = vmax.f32 %v6037_v0, %v6054_v11 }
 0xbe9   : > { %v6163_v45 = vmax.f32 %v6161_v28, %v6155_v55 }
 0xbea   : > { %v6117_v59 = vmax.f32 %v6077_v57, %v6094_v43 }
 0xbee   : > { %v6012_v3 = vpop.permute.xlu1 %6011  ;;  %v6058_v32 = vpop.permute.xlu2 %6057 }
 0xbef   : > { %v6016_v20 = vpop.permute.xlu0 %6015  ;;  %v6036_v48 = vmax.f32 %v12389_v49, %v6012_v3 }
 0xbf0   : > { %v6038_v47 = vmax.f32 %v12407_v33, %v6016_v20 }
 0xbf1   : > { %v6076_v15 = vmax.f32 %v6036_v48, %v6052_v56 }
 0xbf3   : > { %v6116_v41 = vmax.f32 %v6076_v15, %v6092_v30 }
 0xbf5   : > { %v6156_v10 = vmax.f32 %v6116_v41, %v6132_v29 }
 0xbf6   : > { %v6056_v24 = vpop.permute.xlu1 %6055  ;;  %v6020_v21 = vpop.permute.xlu2 %6019 }
 0xbf7   : > { %v6096_v7 = vpop.permute.xlu0 %6095  ;;  %v6040_v36 = vmax.f32 %v12431_v18, %v6020_v21  ;;  %v6078_v34 = vmax.f32 %v6038_v47, %v6056_v24  ;;  %v6164_v52 = vmax.f32 %v6162_v62, %v6156_v10 }
 0xbf9   : > { %v6118_v14 = vmax.f32 %v6078_v34, %v6096_v7 }
 0xbfe   : > { %v6018_v16 = vpop.permute.xlu1 %6017  ;;  %v6140_v25 = vpop.permute.xlu2 %6139 }
 0xbff   : > { %v6098_v39 = vpop.permute.xlu0 %6097  ;;  %v6039_v2 = vmax.f32 %v12422_v6, %v6018_v16  ;;  %v6157_v6 = vmax.f32 %v6117_v59, %v6134_v9 }
 0xc01   : > { %v6079_v4 = vmax.f32 %v6039_v2, %v6058_v32  ;;  %v6165_v33 = vmax.f32 %v6163_v45, %v6157_v6 }
 0xc03   : > { %v6119_v54 = vmax.f32 %v6079_v4, %v6098_v39 }
 0xc06   : > { %v6100_v5 = vpop.permute.xlu1 %6099 }
 0xc07   : > { %v6060_v49 = vpop.permute.xlu0 %6059 }
 0xc08   : > { %v6080_v63 = vmax.f32 %v6040_v36, %v6060_v49 }
 0xc0a   : > { %v6120_v44 = vmax.f32 %v6080_v63, %v6100_v5 }
 0xc0c   : > { %v6160_v60 = vmax.f32 %v6120_v44, %v6140_v25 }
 0xc0e   : > { %v6138_v19 = vpop.permute.xlu1 %6137 }
 0xc0f   : > { %v6159_v35 = vmax.f32 %v6119_v54, %v6138_v19  ;;  %v6136_v18 = vpop.permute.xlu0 %6135 }
 0xc10   : > { %v6158_v58 = vmax.f32 %v6118_v14, %v6136_v18 }
 0xc11   : > { %v6167_v13 = vmax.f32 %v6165_v33, %v6159_v35 }
 0xc12   : > { %v6166_v56 = vmax.f32 %v6164_v52, %v6158_v58 }
 0xc13   : > { %6170 = vst.msk [vmem:[%s461_s19] sm:$0xff] %vm6169_vm8, %v6167_v13 }
 0xc14   : > { %v6168_v50 = vmax.f32 %v6166_v56, %v6160_v60 }
 0xc16   : > { %6171 = vst.msk [vmem:[%s461_s19 + $0x8] sm:$0xff] %vm6169_vm8, %v6168_v50 }
 0xc17 PF: > { %p18_p9 = scmp.ge.s32.totalorder %s7038_s21, 4   ;;  %s13027_s17 = smov %s6946_s18 }
 0xc18   : > { %s13028_s18 = smov %s7047_s24  ;;  %s13029_s19 = smov %s7038_s21 }
 0xc19   :  { %20 = sbr.rel (!%p18_p9) target bundleno = 2 (0x2), region = 126 }

</bundles_post_ra>
